<compile_context>
chip_gen: v6e
topology: v6e:2x2x1
jax: 0.10.0
libtpu: 0.0.40
codegen_flags: <defaults>
</compile_context>

<pallas_src>
import functools

import jax
import jax.numpy as jnp
from jax.experimental import pallas as pl
from jax.experimental.pallas import tpu as pltpu


def _round_up(x, m):
    return (x + m - 1) // m * m


def _choose_rows_per_tile(h, wp, target_rows=512):
    """Largest divisor of H whose pass-1 row tile (rows*wp sublane rows) <= target."""
    best = 1
    for cand in range(1, h + 1):
        if h % cand == 0 and cand * wp <= max(target_rows, wp):
            best = cand
    return best


def _choose_flat_tile(total_rows, target=1024):
    """Largest multiple-of-8 divisor of total_rows that is <= target."""
    cand = min(total_rows, target)
    cand = max(8, cand - cand % 8)
    while cand > 8 and total_rows % cand:
        cand -= 8
    return cand


# ----------------------------------------------------------------------------
# Pass 1: 3x3 conv as ONE fused-K matmul per (image, row-tile) + BN partials.
# ----------------------------------------------------------------------------
def conv_stats_kernel(x_ref, w_ref, conv_ref, stats_ref, col_ref, *,
                      wp, w_valid, rt, c_in, n_row_tiles):
    """
    x_ref    : (P_pad, C_in)      bf16  whole padded image, row index q = hp*wp + wpix
    w_ref    : (9*C_in, C_out_p)  bf16  tap-major im2col weight matrix
    conv_ref : (rt, C_out_p)      bf16  conv output rows for this tile
    stats_ref: (1, 2, C_out_p)    f32   per-tile (sum, sum-of-squares) partials
    col_ref  : (rt, 9*C_in)       bf16  VMEM im2col scratch
    """
    if n_row_tiles == 1:
        base = 0                                        # fully static slicing
    else:
        base = pl.multiple_of(pl.program_id(1) * rt, 8)

    # Pack the 9 shifted row-windows (tap (dh, dw) -> row offset dh*wp + dw) of the
    # resident image block into the im2col scratch; the conv is then a single
    # matmul with contraction K = 9*C_in (MXU stays fed, no accumulator passes).
    for t in range(9):
        dh, dw = t // 3, t % 3
        col_ref[:, t * c_in:(t + 1) * c_in] = x_ref[pl.ds(base + dh * wp + dw, rt), :]

    acc = jnp.dot(col_ref[...], w_ref[...], preferred_element_type=jnp.float32)

    y16 = acc.astype(jnp.bfloat16)                      # bf16 conv intermediate
    conv_ref[...] = y16

    # Partial BN statistics over the *stored* (bf16-quantized) values so the
    # normalization in pass 2 is self-consistent.  The padded-width columns
    # (wpix >= W) hold garbage conv values -> masked out of the statistics
    # (mask built in-kernel, no extra input DMA).
    y = y16.astype(jnp.float32)
    col_idx = jax.lax.broadcasted_iota(jnp.int32, (rt, 1), 0) % wp
    mask = (col_idx < w_valid).astype(jnp.float32)
    ym = y * mask
    stats_ref[0:1, 0:1, :] = jnp.sum(ym, axis=0, keepdims=True)[None]
    stats_ref[0:1, 1:2, :] = jnp.sum(ym * y, axis=0, keepdims=True)[None]


# ----------------------------------------------------------------------------
# Pass 2: precomputed BN affine (y*scale + shift) + LeakyReLU(0.1), in place.
# ----------------------------------------------------------------------------
def bn_lrelu_kernel(conv_ref, affine_ref, out_ref, *, slope):
    y = conv_ref[...].astype(jnp.float32)
    z = y * affine_ref[0:1, :] + affine_ref[1:2, :]
    out_ref[...] = jnp.where(z > 0, z, slope * z).astype(out_ref.dtype)


# ----------------------------------------------------------------------------
# Wrapper
# ----------------------------------------------------------------------------
def cnn_block_forward(x_nchw, weight, gamma, beta, *, eps=1e-5, slope=0.1):
    """x_nchw: (N, C_in, H, W); weight: (C_out, C_in, 3, 3); gamma/beta: (C_out,)."""
    n, c_in, h, w = x_nchw.shape
    c_out, c_in_w, kh, kw = weight.shape
    assert c_in_w == c_in and (kh, kw) == (3, 3), "fixed to kernel_size=3, stride=1, padding=1"

    wp = _round_up(w + 2, 8)                    # padded-width row stride (sublane aligned)
    lq = h * wp                                 # output rows per image (padded-width layout)
    c_out_p = _round_up(c_out, 256) if c_out > 128 else 128   # 256-wide N for v6e/v7x MXU

    rows_per_tile = _choose_rows_per_tile(h, wp)
    n_row_tiles = h // rows_per_tile
    rt = rows_per_tile * wp                     # output rows per pass-1 grid step
    l8 = _round_up(rt + 2 * wp + 2, 8)          # per-tile input-row reach (incl. halo)
    p_pad = lq - rt + l8                        # padded-input rows per image (mult. of 8)

    # ---- layout prologue (XLA): NCHW -> NHWC, zero-pad, flatten rows, bf16 ----
    x_nhwc = jnp.transpose(x_nchw, (0, 2, 3, 1)).astype(jnp.bfloat16)
    x_padded = jnp.pad(x_nhwc, ((0, 0), (1, 1), (1, wp - w - 1), (0, 0)))
    x_rows = x_padded.reshape(n, (h + 2) * wp, c_in)
    x_rows = jnp.pad(x_rows, ((0, 0), (0, p_pad - (h + 2) * wp), (0, 0)))
    x_flat = x_rows.reshape(n * p_pad, c_in)

    # weights: (C_out, C_in, 3, 3) -> (9*C_in, C_out_p), tap-major rows, bf16
    w_mat = jnp.transpose(weight, (2, 3, 1, 0)).reshape(9 * c_in, c_out)
    w_mat = jnp.pad(w_mat, ((0, 0), (0, c_out_p - c_out))).astype(jnp.bfloat16)

    # ---- Pallas pass 1: fused-K conv + per-tile partial BN statistics ----
    conv_flat, part_stats = pl.pallas_call(
        functools.partial(conv_stats_kernel, wp=wp, w_valid=w, rt=rt,
                          c_in=c_in, n_row_tiles=n_row_tiles),
        out_shape=(
            jax.ShapeDtypeStruct((n * lq, c_out_p), jnp.bfloat16),
            jax.ShapeDtypeStruct((n * n_row_tiles, 2, c_out_p), jnp.float32),
        ),
        grid_spec=pltpu.PrefetchScalarGridSpec(
            num_scalar_prefetch=0,
            grid=(n, n_row_tiles),
            in_specs=[
                pl.BlockSpec((p_pad, c_in), lambda i, r: (i, 0)),          # image resident over r
                pl.BlockSpec((9 * c_in, c_out_p), lambda i, r: (0, 0)),
            ],
            out_specs=[
                pl.BlockSpec((rt, c_out_p),
                             lambda i, r: (i * n_row_tiles + r, 0)),
                pl.BlockSpec((1, 2, c_out_p),
                             lambda i, r: (i * n_row_tiles + r, 0, 0)),
            ],
            scratch_shapes=[pltpu.VMEM((rt, 9 * c_in), jnp.bfloat16)],
        ),
        compiler_params=pltpu.CompilerParams(
            dimension_semantics=("parallel", "parallel"),
            vmem_limit_bytes=64 * 1024 * 1024),
    )(x_flat, w_mat)

    # ---- fold partial statistics into a per-channel affine (tiny JAX glue) ----
    stats = jnp.sum(part_stats, axis=0)                 # (2, C_out_p)
    inv_m = 1.0 / float(n * h * w)
    mean = stats[0] * inv_m
    var = stats[1] * inv_m - mean * mean                # biased variance (training BN)
    gamma_p = jnp.pad(gamma.astype(jnp.float32), (0, c_out_p - c_out), constant_values=1.0)
    beta_p = jnp.pad(beta.astype(jnp.float32), (0, c_out_p - c_out))
    scale = gamma_p * jax.lax.rsqrt(var + eps)
    shift = beta_p - mean * scale
    affine = jnp.stack([scale, shift], axis=0)          # (2, C_out_p) f32

    # ---- Pallas pass 2: y*scale + shift -> LeakyReLU, flat row tiles, in place ----
    total_rows = n * lq
    rt2 = _choose_flat_tile(total_rows, target=1024)
    out_flat = pl.pallas_call(
        functools.partial(bn_lrelu_kernel, slope=slope),
        out_shape=jax.ShapeDtypeStruct((total_rows, c_out_p), jnp.bfloat16),
        grid_spec=pltpu.PrefetchScalarGridSpec(
            num_scalar_prefetch=0,
            grid=(total_rows // rt2,),
            in_specs=[
                pl.BlockSpec((rt2, c_out_p), lambda i: (i, 0)),
                pl.BlockSpec((2, c_out_p), lambda i: (0, 0)),
            ],
            out_specs=pl.BlockSpec((rt2, c_out_p), lambda i: (i, 0)),
        ),
        input_output_aliases={0: 0},
        compiler_params=pltpu.CompilerParams(
            dimension_semantics=("parallel",),
            vmem_limit_bytes=64 * 1024 * 1024),
    )(conv_flat, affine)

    # back to NCHW f32, dropping padded-width columns and padded channels
    out = out_flat.reshape(n, h, wp, c_out_p)[:, :, :w, :c_out]
    return jnp.transpose(out, (0, 3, 1, 2)).astype(jnp.float32)


# ----------------------------------------------------------------------------
# Pure-JAX reference, quantization-matched to the kernel (bf16 MXU operands,
# bf16 conv intermediate, bf16 activation store; f32 math everywhere else).
# ----------------------------------------------------------------------------
def cnn_block_reference(x_nchw, weight, gamma, beta, *, eps=1e-5, slope=0.1):
    xq = x_nchw.astype(jnp.bfloat16).astype(jnp.float32)
    wq = weight.astype(jnp.bfloat16).astype(jnp.float32)
    y = jax.lax.conv_general_dilated(
        xq, wq, window_strides=(1, 1), padding=((1, 1), (1, 1)),
        dimension_numbers=("NCHW", "OIHW", "NCHW"))
    y = y.astype(jnp.bfloat16).astype(jnp.float32)       # bf16 conv intermediate
    mean = jnp.mean(y, axis=(0, 2, 3), keepdims=True)
    var = jnp.mean((y - mean) ** 2, axis=(0, 2, 3), keepdims=True)  # biased (training BN)
    z = (y - mean) * jax.lax.rsqrt(var + eps)
    z = z * gamma.reshape(1, -1, 1, 1) + beta.reshape(1, -1, 1, 1)
    out = jnp.where(z > 0, z, slope * z)
    return out.astype(jnp.bfloat16).astype(jnp.float32)  # bf16 activation store


if __name__ == "__main__":
    key = jax.random.PRNGKey(0)
    k_x, k_w, k_g, k_b = jax.random.split(key, 4)

    N, C_IN, C_OUT, H, W = 2, 4, 8, 16, 16
    x = jax.random.normal(k_x, (N, C_IN, H, W), dtype=jnp.float32)
    weight = jax.random.normal(k_w, (C_OUT, C_IN, 3, 3), dtype=jnp.float32) * 0.1
    gamma = 1.0 + 0.1 * jax.random.normal(k_g, (C_OUT,), dtype=jnp.float32)
    beta = 0.1 * jax.random.normal(k_b, (C_OUT,), dtype=jnp.float32)

    fwd = jax.jit(cnn_block_forward)
    out = jax.block_until_ready(fwd(x, weight, gamma, beta))
    assert out.shape == (N, C_OUT, H, W) and out.dtype == jnp.float32

    ref = cnn_block_reference(x, weight, gamma, beta)
    max_diff = float(jnp.max(jnp.abs(out - ref)))
    assert jnp.allclose(out, ref, atol=2e-2, rtol=2e-2), (
        f"mismatch vs reference (max abs diff {max_diff:.4e})")

    print("KERNEL_OK")
</pallas_src>

<mosaic_0001>
module attributes {stable_mosaic.version = 11 : i64} {
  func.func @conv_stats_kernel(%arg0: i32, %arg1: i32, %arg2: memref<440x4xbf16, #tpu.memory_space<vmem>>, %arg3: memref<36x128xbf16, #tpu.memory_space<vmem>>, %arg4: memref<384x128xbf16, #tpu.memory_space<vmem>>, %arg5: memref<1x2x128xf32, #tpu.memory_space<vmem>>, %arg6: memref<384x36xbf16, #tpu.memory_space<vmem>>) attributes {dimension_semantics = [#tpu.dimension_semantics<parallel>, #tpu.dimension_semantics<parallel>], iteration_bounds = array<i64: 2, 1>, scalar_prefetch = 0 : i64, scratch_operands = 1 : i64, tpu.core_type = #tpu.core_type<tc>, window_params = [{transform_indices = @transform_0, window_bounds = array<i64: 440, 4>}, {pipeline_mode = #tpu.pipeline_mode<synchronous>, transform_indices = @transform_1, window_bounds = array<i64: 36, 128>}, {transform_indices = @transform_2, window_bounds = array<i64: 384, 128>}, {transform_indices = @transform_3, window_bounds = array<i64: 1, 2, 128>}]} {
    %c0 = arith.constant 0 : index
    %c0_0 = arith.constant 0 : index
    %0 = vector.load %arg2[%c0, %c0_0] : memref<440x4xbf16, #tpu.memory_space<vmem>>, vector<384x4xbf16>
    %c0_1 = arith.constant 0 : index
    %c0_2 = arith.constant 0 : index
    %1 = vector.load %arg6[%c0_1, %c0_2] : memref<384x36xbf16, #tpu.memory_space<vmem>>, vector<384x4xbf16>
    tpu.vector_store %arg6[%c0_1, %c0_2], %0 {strides = array<i32>} : memref<384x36xbf16, #tpu.memory_space<vmem>>, vector<384x4xbf16>,
    %c1 = arith.constant 1 : index
    %c0_3 = arith.constant 0 : index
    %2 = vector.load %arg2[%c1, %c0_3] : memref<440x4xbf16, #tpu.memory_space<vmem>>, vector<384x4xbf16>
    %c0_4 = arith.constant 0 : index
    %c4 = arith.constant 4 : index
    %3 = vector.load %arg6[%c0_4, %c4] : memref<384x36xbf16, #tpu.memory_space<vmem>>, vector<384x4xbf16>
    tpu.vector_store %arg6[%c0_4, %c4], %2 {strides = array<i32>} : memref<384x36xbf16, #tpu.memory_space<vmem>>, vector<384x4xbf16>,
    %c2 = arith.constant 2 : index
    %c0_5 = arith.constant 0 : index
    %4 = vector.load %arg2[%c2, %c0_5] : memref<440x4xbf16, #tpu.memory_space<vmem>>, vector<384x4xbf16>
    %c0_6 = arith.constant 0 : index
    %c8 = arith.constant 8 : index
    %5 = vector.load %arg6[%c0_6, %c8] : memref<384x36xbf16, #tpu.memory_space<vmem>>, vector<384x4xbf16>
    tpu.vector_store %arg6[%c0_6, %c8], %4 {strides = array<i32>} : memref<384x36xbf16, #tpu.memory_space<vmem>>, vector<384x4xbf16>,
    %c24 = arith.constant 24 : index
    %c0_7 = arith.constant 0 : index
    %6 = vector.load %arg2[%c24, %c0_7] : memref<440x4xbf16, #tpu.memory_space<vmem>>, vector<384x4xbf16>
    %c0_8 = arith.constant 0 : index
    %c12 = arith.constant 12 : index
    %7 = vector.load %arg6[%c0_8, %c12] : memref<384x36xbf16, #tpu.memory_space<vmem>>, vector<384x4xbf16>
    tpu.vector_store %arg6[%c0_8, %c12], %6 {strides = array<i32>} : memref<384x36xbf16, #tpu.memory_space<vmem>>, vector<384x4xbf16>,
    %c25 = arith.constant 25 : index
    %c0_9 = arith.constant 0 : index
    %8 = vector.load %arg2[%c25, %c0_9] : memref<440x4xbf16, #tpu.memory_space<vmem>>, vector<384x4xbf16>
    %c0_10 = arith.constant 0 : index
    %c16 = arith.constant 16 : index
    %9 = vector.load %arg6[%c0_10, %c16] : memref<384x36xbf16, #tpu.memory_space<vmem>>, vector<384x4xbf16>
    tpu.vector_store %arg6[%c0_10, %c16], %8 {strides = array<i32>} : memref<384x36xbf16, #tpu.memory_space<vmem>>, vector<384x4xbf16>,
    %c26 = arith.constant 26 : index
    %c0_11 = arith.constant 0 : index
    %10 = vector.load %arg2[%c26, %c0_11] : memref<440x4xbf16, #tpu.memory_space<vmem>>, vector<384x4xbf16>
    %c0_12 = arith.constant 0 : index
    %c20 = arith.constant 20 : index
    %11 = vector.load %arg6[%c0_12, %c20] : memref<384x36xbf16, #tpu.memory_space<vmem>>, vector<384x4xbf16>
    tpu.vector_store %arg6[%c0_12, %c20], %10 {strides = array<i32>} : memref<384x36xbf16, #tpu.memory_space<vmem>>, vector<384x4xbf16>,
    %c48 = arith.constant 48 : index
    %c0_13 = arith.constant 0 : index
    %12 = vector.load %arg2[%c48, %c0_13] : memref<440x4xbf16, #tpu.memory_space<vmem>>, vector<384x4xbf16>
    %c0_14 = arith.constant 0 : index
    %c24_15 = arith.constant 24 : index
    %13 = vector.load %arg6[%c0_14, %c24_15] : memref<384x36xbf16, #tpu.memory_space<vmem>>, vector<384x4xbf16>
    tpu.vector_store %arg6[%c0_14, %c24_15], %12 {strides = array<i32>} : memref<384x36xbf16, #tpu.memory_space<vmem>>, vector<384x4xbf16>,
    %c49 = arith.constant 49 : index
    %c0_16 = arith.constant 0 : index
    %14 = vector.load %arg2[%c49, %c0_16] : memref<440x4xbf16, #tpu.memory_space<vmem>>, vector<384x4xbf16>
    %c0_17 = arith.constant 0 : index
    %c28 = arith.constant 28 : index
    %15 = vector.load %arg6[%c0_17, %c28] : memref<384x36xbf16, #tpu.memory_space<vmem>>, vector<384x4xbf16>
    tpu.vector_store %arg6[%c0_17, %c28], %14 {strides = array<i32>} : memref<384x36xbf16, #tpu.memory_space<vmem>>, vector<384x4xbf16>,
    %c50 = arith.constant 50 : index
    %c0_18 = arith.constant 0 : index
    %16 = vector.load %arg2[%c50, %c0_18] : memref<440x4xbf16, #tpu.memory_space<vmem>>, vector<384x4xbf16>
    %c0_19 = arith.constant 0 : index
    %c32 = arith.constant 32 : index
    %17 = vector.load %arg6[%c0_19, %c32] : memref<384x36xbf16, #tpu.memory_space<vmem>>, vector<384x4xbf16>
    tpu.vector_store %arg6[%c0_19, %c32], %16 {strides = array<i32>} : memref<384x36xbf16, #tpu.memory_space<vmem>>, vector<384x4xbf16>,
    %c0_20 = arith.constant 0 : index
    %c0_21 = arith.constant 0 : index
    %18 = vector.load %arg6[%c0_20, %c0_21] : memref<384x36xbf16, #tpu.memory_space<vmem>>, vector<384x36xbf16>
    %c0_22 = arith.constant 0 : index
    %c0_23 = arith.constant 0 : index
    %19 = vector.load %arg3[%c0_22, %c0_23] : memref<36x128xbf16, #tpu.memory_space<vmem>>, vector<36x128xbf16>
    %cst = arith.constant dense<0.000000e+00> : vector<384x128xf32>
    %20 = tpu.matmul %18, %19, %cst {dimension_numbers = #tpu.dot_dimension_numbers<[1], [0], [0], [1], [0, 0, 1, 1], [], []>} : vector<384x36xbf16>, vector<36x128xbf16>, vector<384x128xf32> -> vector<384x128xf32>
    %21 = arith.truncf %20 : vector<384x128xf32> to vector<384x128xbf16>
    %c0_24 = arith.constant 0 : index
    %c0_25 = arith.constant 0 : index
    %22 = vector.load %arg4[%c0_24, %c0_25] : memref<384x128xbf16, #tpu.memory_space<vmem>>, vector<384x128xbf16>
    tpu.vector_store %arg4[%c0_24, %c0_25], %21 {strides = array<i32>} : memref<384x128xbf16, #tpu.memory_space<vmem>>, vector<384x128xbf16>,
    %23 = arith.extf %21 : vector<384x128xbf16> to vector<384x128xf32>
    %24 = tpu.iota {dimensions = array<i32: 0>} : vector<384x1xi32>
    %c24_i32 = arith.constant 24 : i32
    %c0_i32 = arith.constant 0 : i32
    %25 = arith.cmpi eq, %c24_i32, %c0_i32 : i32
    %c1_i32 = arith.constant 1 : i32
    %26 = arith.select %25, %c1_i32, %c24_i32 : i32
    %27 = vector.broadcast %26 : i32 to vector<384x1xi32>
    %28 = arith.remsi %24, %27 : vector<384x1xi32>
    %c0_i32_26 = arith.constant 0 : i32
    %29 = vector.broadcast %c0_i32_26 : i32 to vector<384x1xi32>
    %30 = arith.cmpi ne, %28, %29 : vector<384x1xi32>
    %c0_i32_27 = arith.constant 0 : i32
    %31 = vector.broadcast %c0_i32_27 : i32 to vector<384x1xi32>
    %32 = arith.cmpi slt, %28, %31 : vector<384x1xi32>
    %c0_i32_28 = arith.constant 0 : i32
    %33 = arith.cmpi slt, %26, %c0_i32_28 : i32
    %34 = vector.broadcast %33 : i1 to vector<384x1xi1>
    %35 = vector.broadcast %34 : vector<384x1xi1> to vector<384x1xi1>
    %36 = arith.xori %32, %35 : vector<384x1xi1>
    %37 = arith.andi %36, %30 : vector<384x1xi1>
    %38 = vector.broadcast %26 : i32 to vector<384x1xi32>
    %39 = arith.addi %28, %38 : vector<384x1xi32>
    %40 = arith.select %37, %39, %28 : vector<384x1xi1>, vector<384x1xi32>
    %c16_i32 = arith.constant 16 : i32
    %41 = vector.broadcast %c16_i32 : i32 to vector<384x1xi32>
    %42 = arith.cmpi slt, %40, %41 : vector<384x1xi32>
    %43 = arith.extui %42 : vector<384x1xi1> to vector<384x1xi32>
    %44 = arith.sitofp %43 : vector<384x1xi32> to vector<384x1xf32>
    %45 = vector.broadcast %44 : vector<384x1xf32> to vector<384x128xf32>
    %46 = arith.mulf %23, %45 : vector<384x128xf32>
    %cst_29 = arith.constant dense<0.000000e+00> : vector<128xf32>
    %47 = vector.multi_reduction <add>, %46, %cst_29 [0] : vector<384x128xf32> to vector<128xf32>
    %48 = vector.shape_cast %47 : vector<128xf32> to vector<1x128xf32>
    %49 = vector.shape_cast %48 : vector<1x128xf32> to vector<1x1x128xf32>
    %c0_30 = arith.constant 0 : index
    %c0_31 = arith.constant 0 : index
    %c0_32 = arith.constant 0 : index
    %50 = vector.load %arg5[%c0_30, %c0_31, %c0_32] : memref<1x2x128xf32, #tpu.memory_space<vmem>>, vector<1x1x128xf32>
    tpu.vector_store %arg5[%c0_30, %c0_31, %c0_32], %49 {strides = array<i32>} : memref<1x2x128xf32, #tpu.memory_space<vmem>>, vector<1x1x128xf32>,
    %51 = arith.mulf %46, %23 : vector<384x128xf32>
    %cst_33 = arith.constant dense<0.000000e+00> : vector<128xf32>
    %52 = vector.multi_reduction <add>, %51, %cst_33 [0] : vector<384x128xf32> to vector<128xf32>
    %53 = vector.shape_cast %52 : vector<128xf32> to vector<1x128xf32>
    %54 = vector.shape_cast %53 : vector<1x128xf32> to vector<1x1x128xf32>
    %c0_34 = arith.constant 0 : index
    %c1_35 = arith.constant 1 : index
    %c0_36 = arith.constant 0 : index
    %55 = vector.load %arg5[%c0_34, %c1_35, %c0_36] : memref<1x2x128xf32, #tpu.memory_space<vmem>>, vector<1x1x128xf32>
    tpu.vector_store %arg5[%c0_34, %c1_35, %c0_36], %54 {strides = array<i32>} : memref<1x2x128xf32, #tpu.memory_space<vmem>>, vector<1x1x128xf32>,
    return
  }
  func.func @transform_0(%arg0: i32, %arg1: i32) -> (i32, i32) {
    %c0_i32 = arith.constant 0 : i32
    %c0_i32_0 = arith.constant 0 : i32
    return %arg0, %c0_i32 : i32, i32
  }
  func.func @transform_1(%arg0: i32, %arg1: i32) -> (i32, i32) {
    %c0_i32 = arith.constant 0 : i32
    %c0_i32_0 = arith.constant 0 : i32
    %c0_i32_1 = arith.constant 0 : i32
    return %c0_i32, %c0_i32_0 : i32, i32
  }
  func.func @transform_2(%arg0: i32, %arg1: i32) -> (i32, i32) {
    %c1_i32 = arith.constant 1 : i32
    %0 = arith.muli %arg0, %c1_i32 : i32
    %1 = arith.addi %0, %arg1 : i32
    %c0_i32 = arith.constant 0 : i32
    %c0_i32_0 = arith.constant 0 : i32
    return %1, %c0_i32 : i32, i32
  }
  func.func @transform_3(%arg0: i32, %arg1: i32) -> (i32, i32, i32) {
    %c1_i32 = arith.constant 1 : i32
    %0 = arith.muli %arg0, %c1_i32 : i32
    %1 = arith.addi %0, %arg1 : i32
    %c0_i32 = arith.constant 0 : i32
    %c0_i32_0 = arith.constant 0 : i32
    %c0_i32_1 = arith.constant 0 : i32
    return %1, %c0_i32, %c0_i32_0 : i32, i32, i32
  }
}

module attributes {stable_mosaic.version = 11 : i64} {
  func.func @bn_lrelu_kernel(%arg0: i32, %arg1: memref<768x128xbf16, #tpu.memory_space<vmem>>, %arg2: memref<2x128xf32, #tpu.memory_space<vmem>>, %arg3: memref<768x128xbf16, #tpu.memory_space<vmem>>) attributes {dimension_semantics = [#tpu.dimension_semantics<parallel>], iteration_bounds = array<i64: 1>, scalar_prefetch = 0 : i64, scratch_operands = 0 : i64, tpu.core_type = #tpu.core_type<tc>, window_params = [{transform_indices = @transform_0, window_bounds = array<i64: 768, 128>}, {pipeline_mode = #tpu.pipeline_mode<synchronous>, transform_indices = @transform_1, window_bounds = array<i64: 2, 128>}, {transform_indices = @transform_2, window_bounds = array<i64: 768, 128>}]} {
    %c0 = arith.constant 0 : index
    %c0_0 = arith.constant 0 : index
    %0 = vector.load %arg1[%c0, %c0_0] : memref<768x128xbf16, #tpu.memory_space<vmem>>, vector<768x128xbf16>
    %1 = arith.extf %0 : vector<768x128xbf16> to vector<768x128xf32>
    %c0_1 = arith.constant 0 : index
    %c0_2 = arith.constant 0 : index
    %2 = vector.load %arg2[%c0_1, %c0_2] : memref<2x128xf32, #tpu.memory_space<vmem>>, vector<1x128xf32>
    %3 = vector.broadcast %2 : vector<1x128xf32> to vector<768x128xf32>
    %4 = arith.mulf %1, %3 : vector<768x128xf32>
    %c1 = arith.constant 1 : index
    %c0_3 = arith.constant 0 : index
    %5 = vector.load %arg2[%c1, %c0_3] : memref<2x128xf32, #tpu.memory_space<vmem>>, vector<1x128xf32>
    %6 = vector.broadcast %5 : vector<1x128xf32> to vector<768x128xf32>
    %7 = arith.addf %4, %6 : vector<768x128xf32>
    %cst = arith.constant 0.000000e+00 : f32
    %8 = vector.broadcast %cst : f32 to vector<768x128xf32>
    %9 = arith.cmpf ogt, %7, %8 : vector<768x128xf32>
    %cst_4 = arith.constant 1.000000e-01 : f32
    %10 = vector.broadcast %cst_4 : f32 to vector<768x128xf32>
    %11 = arith.mulf %10, %7 : vector<768x128xf32>
    %12 = arith.select %9, %7, %11 : vector<768x128xi1>, vector<768x128xf32>
    %13 = arith.truncf %12 : vector<768x128xf32> to vector<768x128xbf16>
    %c0_5 = arith.constant 0 : index
    %c0_6 = arith.constant 0 : index
    %14 = vector.load %arg3[%c0_5, %c0_6] : memref<768x128xbf16, #tpu.memory_space<vmem>>, vector<768x128xbf16>
    tpu.vector_store %arg3[%c0_5, %c0_6], %13 {strides = array<i32>} : memref<768x128xbf16, #tpu.memory_space<vmem>>, vector<768x128xbf16>,
    return
  }
  func.func @transform_0(%arg0: i32) -> (i32, i32) {
    %c0_i32 = arith.constant 0 : i32
    %c0_i32_0 = arith.constant 0 : i32
    return %arg0, %c0_i32 : i32, i32
  }
  func.func @transform_1(%arg0: i32) -> (i32, i32) {
    %c0_i32 = arith.constant 0 : i32
    %c0_i32_0 = arith.constant 0 : i32
    %c0_i32_1 = arith.constant 0 : i32
    return %c0_i32, %c0_i32_0 : i32, i32
  }
  func.func @transform_2(%arg0: i32) -> (i32, i32) {
    %c0_i32 = arith.constant 0 : i32
    %c0_i32_0 = arith.constant 0 : i32
    return %arg0, %c0_i32 : i32, i32
  }
}

</mosaic_0001>

<bundles_post_ra>
// kernel: cnn_block_forward.3
= control target key start
LH: loop header
LB: loop body
LE: loop exit
PB: predicated region body
PF: predicated region fallthrough
CT: control target
= control target key end

     0   :  { %s2415_s0 = inlined_call_operand.vmem [shape: bf16[768,128], index: 0, kind: input, shape index: {}, may-alias: {0,2}]   ;;  %s2416_s1 = inlined_call_operand.vmem [shape: f32[2,128], index: 1, kind: input, shape index: {}]   ;;  %s2417_s2 = inlined_call_operand.vmem [shape: bf16[768,128], index: 2, kind: output, shape index: {}, may-alias: {0,2}]  }
   0x1   :  { %v1372_v0 = vld [vmem:[%s2415_s0] sm:$0xff]   ;;  %v1803_v4 = vld [vmem:[%s2415_s0 + $0x8] sm:$0xff]   ;;  %v1804_v5 = vld [vmem:[%s2415_s0 + $0x10] sm:$0xff]  }
   0x2   :  { %v1920_v1 = vld [vmem:[%s2416_s1] ss:$0 sm:$0xff]  ;;  %v1373_v2 = vunpack.c.l.bf16 %v1372_v0  ;;  %v1374_v3 = vunpack.c.h.bf16 %v1372_v0  ;;  %v1805_v6 = vld [vmem:[%s2415_s0 + $0x18] sm:$0xff]   ;;  %v1934_v7 = vld [vmem:[%s2416_s1 + $0x1] ss:$0 sm:$0xff]  ;;  %v1377_v8 = vunpack.c.l.bf16 %v1803_v4  ;;  %v1378_v9 = vunpack.c.h.bf16 %v1803_v4 }
   0x3   :  { %v1381_v10 = vunpack.c.l.bf16 %v1804_v5  ;;  %v1382_v11 = vunpack.c.h.bf16 %v1804_v5  ;;  %v1385_v14 = vunpack.c.l.bf16 %v1805_v6  ;;  %v1386_v15 = vunpack.c.h.bf16 %v1805_v6  ;;  %v1806_v34 = vld [vmem:[%s2415_s0 + $0x20] sm:$0xff]   ;;  %v1807_v35 = vld [vmem:[%s2415_s0 + $0x28] sm:$0xff]  }
   0x4   :  { %v208_v12 = vmul.f32 %v1373_v2, %v1920_v1  ;;  %v209_v13 = vmul.f32 %v1374_v3, %v1920_v1  ;;  %v210_v16 = vmul.f32 %v1377_v8, %v1920_v1  ;;  %v211_v17 = vmul.f32 %v1378_v9, %v1920_v1 }
   0x5   :  { %v212_v18 = vmul.f32 %v1381_v10, %v1920_v1  ;;  %v213_v19 = vmul.f32 %v1382_v11, %v1920_v1  ;;  %v214_v22 = vmul.f32 %v1385_v14, %v1920_v1  ;;  %v215_v23 = vmul.f32 %v1386_v15, %v1920_v1 }
   0x6   :  { %v309_v20 = vadd.f32 %v1934_v7, %v208_v12  ;;  %v310_v21 = vadd.f32 %v1934_v7, %v209_v13  ;;  %v311_v24 = vadd.f32 %v1934_v7, %v210_v16  ;;  %v312_v25 = vadd.f32 %v1934_v7, %v211_v17 }
   0x7   :  { %v313_v26 = vadd.f32 %v1934_v7, %v212_v18  ;;  %v314_v27 = vadd.f32 %v1934_v7, %v213_v19  ;;  %v315_v42 = vadd.f32 %v1934_v7, %v214_v22  ;;  %v316_v43 = vadd.f32 %v1934_v7, %v215_v23 }
   0x8   :  { %vm405_vm0 = vcmp.gt.f32.partialorder %v309_v20, 0.0  ;;  %vm406_vm1 = vcmp.gt.f32.partialorder %v310_v21, 0.0  ;;  %v501_v28 = vmul.f32 0.1, %v309_v20  ;;  %v502_v29 = vmul.f32 0.1, %v310_v21 }
   0x9   :  { %vm407_vm2 = vcmp.gt.f32.partialorder %v311_v24, 0.0  ;;  %vm408_vm3 = vcmp.gt.f32.partialorder %v312_v25, 0.0  ;;  %v503_v30 = vmul.f32 0.1, %v311_v24  ;;  %v504_v31 = vmul.f32 0.1, %v312_v25 }
   0xa   :  { %v597_v32 = vsel %vm405_vm0, %v309_v20, %v501_v28  ;;  %v598_v33 = vsel %vm406_vm1, %v310_v21, %v502_v29  ;;  %vm409_vm4 = vcmp.gt.f32.partialorder %v313_v26, 0.0  ;;  %vm410_vm5 = vcmp.gt.f32.partialorder %v314_v27, 0.0 }
   0xb   :  { %v1566_v36 = vpack.c.bf16 %v598_v33, %v597_v32  ;;  %v599_v37 = vsel %vm407_vm2, %v311_v24, %v503_v30  ;;  %v600_v38 = vsel %vm408_vm3, %v312_v25, %v504_v31  ;;  %v505_v39 = vmul.f32 0.1, %v313_v26 }
   0xc   :  { %v1571_v40 = vpack.c.bf16 %v600_v38, %v599_v37  ;;  %v506_v41 = vmul.f32 0.1, %v314_v27  ;;  %v1389_v45 = vunpack.c.l.bf16 %v1806_v34  ;;  %v1390_v46 = vunpack.c.h.bf16 %v1806_v34 }
   0xd   :  { %1567 = vst [vmem:[%s2417_s2] sm:$0xff] %v1566_v36   ;;  %v601_v44 = vsel %vm409_vm4, %v313_v26, %v505_v39  ;;  %v1393_v47 = vunpack.c.l.bf16 %v1807_v35  ;;  %vm411_vm6 = vcmp.gt.f32.partialorder %v315_v42, 0.0  ;;  %vm412_vm7 = vcmp.gt.f32.partialorder %v316_v43, 0.0 }
   0xe   :  { %v602_v49 = vsel %vm410_vm5, %v314_v27, %v506_v41  ;;  %v507_v50 = vmul.f32 0.1, %v315_v42  ;;  %v508_v52 = vmul.f32 0.1, %v316_v43  ;;  %v216_v53 = vmul.f32 %v1389_v45, %v1920_v1 }
   0xf   :  { %v1576_v51 = vpack.c.bf16 %v602_v49, %v601_v44  ;;  %v217_v54 = vmul.f32 %v1390_v46, %v1920_v1  ;;  %v1394_v56 = vunpack.c.h.bf16 %v1807_v35  ;;  %v218_v57 = vmul.f32 %v1393_v47, %v1920_v1 }
  0x10   :  { %v603_v55 = vsel %vm411_vm6, %v315_v42, %v507_v50  ;;  %v604_v59 = vsel %vm412_vm7, %v316_v43, %v508_v52  ;;  %v317_v60 = vadd.f32 %v1934_v7, %v216_v53 }
  0x11   :  { %v318_v61 = vadd.f32 %v1934_v7, %v217_v54  ;;  %v1581_v63 = vpack.c.bf16 %v604_v59, %v603_v55  ;;  %v219_v0 = vmul.f32 %v1394_v56, %v1920_v1  ;;  %v319_v2 = vadd.f32 %v1934_v7, %v218_v57 }
  0x12   :  { %vm413_vm8 = vcmp.gt.f32.partialorder %v317_v60, 0.0  ;;  %v509_v5 = vmul.f32 0.1, %v317_v60 }
  0x13   :  { %vm414_vm9 = vcmp.gt.f32.partialorder %v318_v61, 0.0  ;;  %v510_v6 = vmul.f32 0.1, %v318_v61  ;;  %v320_v8 = vadd.f32 %v1934_v7, %v219_v0  ;;  %vm415_vm10 = vcmp.gt.f32.partialorder %v319_v2, 0.0 }
  0x14   :  { %v1808_v48 = vld [vmem:[%s2415_s0 + $0x30] sm:$0xff]   ;;  %v511_v9 = vmul.f32 0.1, %v319_v2  ;;  %v605_v11 = vsel %vm413_vm8, %v317_v60, %v509_v5 }
  0x15   :  { %1850 = vst [vmem:[%s2417_s2 + $0x8] sm:$0xff] %v1571_v40   ;;  %v1397_v58 = vunpack.c.l.bf16 %v1808_v48  ;;  %1851 = vst [vmem:[%s2417_s2 + $0x10] sm:$0xff] %v1576_v51   ;;  %v1398_v62 = vunpack.c.h.bf16 %v1808_v48  ;;  %v606_v12 = vsel %vm414_vm9, %v318_v61, %v510_v6  ;;  %vm416_vm11 = vcmp.gt.f32.partialorder %v320_v8, 0.0 }
  0x16   :  { %v1586_v16 = vpack.c.bf16 %v606_v12, %v605_v11  ;;  %v512_v17 = vmul.f32 0.1, %v320_v8  ;;  %v607_v18 = vsel %vm415_vm10, %v319_v2, %v511_v9 }
  0x17   :  { %v220_v3 = vmul.f32 %v1397_v58, %v1920_v1  ;;  %v221_v10 = vmul.f32 %v1398_v62, %v1920_v1 }
  0x18   :  { %v608_v22 = vsel %vm416_vm11, %v320_v8, %v512_v17 }
  0x19   :  { %v321_v13 = vadd.f32 %v1934_v7, %v220_v3  ;;  %v322_v19 = vadd.f32 %v1934_v7, %v221_v10  ;;  %v1591_v28 = vpack.c.bf16 %v608_v22, %v607_v18 }
  0x1b   :  { %vm417_vm12 = vcmp.gt.f32.partialorder %v321_v13, 0.0  ;;  %v513_v20 = vmul.f32 0.1, %v321_v13  ;;  %vm418_vm13 = vcmp.gt.f32.partialorder %v322_v19, 0.0  ;;  %v514_v29 = vmul.f32 0.1, %v322_v19 }
  0x1c   :  { %v1809_v4 = vld [vmem:[%s2415_s0 + $0x38] sm:$0xff]  }
  0x1d   :  { %1852 = vst [vmem:[%s2417_s2 + $0x18] sm:$0xff] %v1581_v63   ;;  %v1401_v14 = vunpack.c.l.bf16 %v1809_v4  ;;  %v1402_v21 = vunpack.c.h.bf16 %v1809_v4  ;;  %v609_v30 = vsel %vm417_vm12, %v321_v13, %v513_v20  ;;  %v610_v35 = vsel %vm418_vm13, %v322_v19, %v514_v29 }
  0x1e   :  { %v1596_v39 = vpack.c.bf16 %v610_v35, %v609_v30 }
  0x1f   :  { %v222_v23 = vmul.f32 %v1401_v14, %v1920_v1  ;;  %v223_v31 = vmul.f32 %v1402_v21, %v1920_v1 }
  0x21   :  { %v323_v32 = vadd.f32 %v1934_v7, %v222_v23  ;;  %v324_v40 = vadd.f32 %v1934_v7, %v223_v31 }
  0x23   :  { %vm419_vm14 = vcmp.gt.f32.partialorder %v323_v32, 0.0  ;;  %v515_v41 = vmul.f32 0.1, %v323_v32  ;;  %vm420_vm15 = vcmp.gt.f32.partialorder %v324_v40, 0.0  ;;  %v516_v46 = vmul.f32 0.1, %v324_v40 }
  0x24   :  { %v1810_v15 = vld [vmem:[%s2415_s0 + $0x40] sm:$0xff]  }
  0x25   :  { %1853 = vst [vmem:[%s2417_s2 + $0x20] sm:$0xff] %v1586_v16   ;;  %v1405_v24 = vunpack.c.l.bf16 %v1810_v15  ;;  %v1406_v25 = vunpack.c.h.bf16 %v1810_v15  ;;  %v611_v47 = vsel %vm419_vm14, %v323_v32, %v515_v41  ;;  %v612_v51 = vsel %vm420_vm15, %v324_v40, %v516_v46 }
  0x26   :  { %v1601_v56 = vpack.c.bf16 %v612_v51, %v611_v47 }
  0x27   :  { %v224_v33 = vmul.f32 %v1405_v24, %v1920_v1  ;;  %v225_v34 = vmul.f32 %v1406_v25, %v1920_v1 }
  0x29   :  { %v325_v42 = vadd.f32 %v1934_v7, %v224_v33  ;;  %v326_v43 = vadd.f32 %v1934_v7, %v225_v34 }
  0x2b   :  { %vm421_vm0 = vcmp.gt.f32.partialorder %v325_v42, 0.0  ;;  %vm422_vm1 = vcmp.gt.f32.partialorder %v326_v43, 0.0  ;;  %v517_v49 = vmul.f32 0.1, %v325_v42  ;;  %v518_v50 = vmul.f32 0.1, %v326_v43 }
  0x2c   :  { %v1811_v26 = vld [vmem:[%s2415_s0 + $0x48] sm:$0xff]   ;;  %v1812_v27 = vld [vmem:[%s2415_s0 + $0x50] sm:$0xff]  }
  0x2d   :  { %1854 = vst [vmem:[%s2417_s2 + $0x28] sm:$0xff] %v1591_v28   ;;  %v1409_v36 = vunpack.c.l.bf16 %v1811_v26  ;;  %v1410_v37 = vunpack.c.h.bf16 %v1811_v26  ;;  %v1413_v38 = vunpack.c.l.bf16 %v1812_v27  ;;  %1855 = vst [vmem:[%s2417_s2 + $0x30] sm:$0xff] %v1596_v39   ;;  %v1414_v48 = vunpack.c.h.bf16 %v1812_v27 }
  0x2e   :  { %v613_v57 = vsel %vm421_vm0, %v325_v42, %v517_v49  ;;  %v614_v58 = vsel %vm422_vm1, %v326_v43, %v518_v50 }
  0x2f   :  { %v226_v44 = vmul.f32 %v1409_v36, %v1920_v1  ;;  %v227_v45 = vmul.f32 %v1410_v37, %v1920_v1  ;;  %v228_v54 = vmul.f32 %v1413_v38, %v1920_v1  ;;  %v229_v59 = vmul.f32 %v1414_v48, %v1920_v1 }
  0x30   :  { %v1606_v61 = vpack.c.bf16 %v614_v58, %v613_v57 }
  0x31   :  { %v327_v52 = vadd.f32 %v1934_v7, %v226_v44  ;;  %v328_v53 = vadd.f32 %v1934_v7, %v227_v45  ;;  %v329_v0 = vadd.f32 %v1934_v7, %v228_v54  ;;  %v330_v2 = vadd.f32 %v1934_v7, %v229_v59 }
  0x33   :  { %vm423_vm2 = vcmp.gt.f32.partialorder %v327_v52, 0.0  ;;  %vm424_vm3 = vcmp.gt.f32.partialorder %v328_v53, 0.0  ;;  %v519_v62 = vmul.f32 0.1, %v327_v52  ;;  %v520_v63 = vmul.f32 0.1, %v328_v53 }
  0x34   :  { %v1813_v55 = vld [vmem:[%s2415_s0 + $0x58] sm:$0xff]   ;;  %v1814_v60 = vld [vmem:[%s2415_s0 + $0x60] sm:$0xff]   ;;  %vm425_vm4 = vcmp.gt.f32.partialorder %v329_v0, 0.0  ;;  %vm426_vm5 = vcmp.gt.f32.partialorder %v330_v2, 0.0  ;;  %v521_v11 = vmul.f32 0.1, %v329_v0 }
  0x35   :  { %1856 = vst [vmem:[%s2417_s2 + $0x38] sm:$0xff] %v1601_v56   ;;  %v1417_v3 = vunpack.c.l.bf16 %v1813_v55  ;;  %1857 = vst [vmem:[%s2417_s2 + $0x40] sm:$0xff] %v1606_v61   ;;  %v615_v4 = vsel %vm423_vm2, %v327_v52, %v519_v62  ;;  %v1418_v5 = vunpack.c.h.bf16 %v1813_v55  ;;  %v1421_v6 = vunpack.c.l.bf16 %v1814_v60 }
  0x36   :  { %v1422_v8 = vunpack.c.h.bf16 %v1814_v60  ;;  %v616_v10 = vsel %vm424_vm3, %v328_v53, %v520_v63  ;;  %v522_v13 = vmul.f32 0.1, %v330_v2  ;;  %v617_v16 = vsel %vm425_vm4, %v329_v0, %v521_v11 }
  0x37   :  { %v1611_v12 = vpack.c.bf16 %v616_v10, %v615_v4  ;;  %v230_v14 = vmul.f32 %v1417_v3, %v1920_v1  ;;  %v231_v15 = vmul.f32 %v1418_v5, %v1920_v1  ;;  %v232_v17 = vmul.f32 %v1421_v6, %v1920_v1 }
  0x38   :  { %v233_v18 = vmul.f32 %v1422_v8, %v1920_v1  ;;  %v618_v20 = vsel %vm426_vm5, %v330_v2, %v522_v13 }
  0x39   :  { %v331_v21 = vadd.f32 %v1934_v7, %v230_v14  ;;  %v332_v22 = vadd.f32 %v1934_v7, %v231_v15  ;;  %v1616_v24 = vpack.c.bf16 %v618_v20, %v617_v16  ;;  %v333_v25 = vadd.f32 %v1934_v7, %v232_v17 }
  0x3a   :  { %v334_v26 = vadd.f32 %v1934_v7, %v233_v18 }
  0x3b   :  { %vm427_vm6 = vcmp.gt.f32.partialorder %v331_v21, 0.0  ;;  %vm428_vm7 = vcmp.gt.f32.partialorder %v332_v22, 0.0  ;;  %v523_v29 = vmul.f32 0.1, %v331_v21  ;;  %v524_v30 = vmul.f32 0.1, %v332_v22 }
  0x3c   :  { %v1815_v9 = vld [vmem:[%s2415_s0 + $0x68] sm:$0xff]   ;;  %vm429_vm8 = vcmp.gt.f32.partialorder %v333_v25, 0.0  ;;  %vm430_vm9 = vcmp.gt.f32.partialorder %v334_v26, 0.0  ;;  %v525_v31 = vmul.f32 0.1, %v333_v25 }
  0x3d   :  { %v1425_v19 = vunpack.c.l.bf16 %v1815_v9  ;;  %1858 = vst [vmem:[%s2417_s2 + $0x48] sm:$0xff] %v1611_v12   ;;  %v1426_v23 = vunpack.c.h.bf16 %v1815_v9  ;;  %v526_v32 = vmul.f32 0.1, %v334_v26  ;;  %v619_v33 = vsel %vm427_vm6, %v331_v21, %v523_v29 }
  0x3e   :  { %v620_v34 = vsel %vm428_vm7, %v332_v22, %v524_v30  ;;  %v621_v39 = vsel %vm429_vm8, %v333_v25, %v525_v31 }
  0x3f   :  { %v234_v27 = vmul.f32 %v1425_v19, %v1920_v1  ;;  %v235_v35 = vmul.f32 %v1426_v23, %v1920_v1  ;;  %v1621_v38 = vpack.c.bf16 %v620_v34, %v619_v33  ;;  %v622_v40 = vsel %vm430_vm9, %v334_v26, %v526_v32 }
  0x40   :  { %v1626_v43 = vpack.c.bf16 %v622_v40, %v621_v39 }
  0x41   :  { %v335_v36 = vadd.f32 %v1934_v7, %v234_v27  ;;  %v336_v44 = vadd.f32 %v1934_v7, %v235_v35 }
  0x43   :  { %vm431_vm10 = vcmp.gt.f32.partialorder %v335_v36, 0.0  ;;  %v527_v45 = vmul.f32 0.1, %v335_v36  ;;  %vm432_vm11 = vcmp.gt.f32.partialorder %v336_v44, 0.0  ;;  %v528_v51 = vmul.f32 0.1, %v336_v44 }
  0x44   :  { %v1816_v28 = vld [vmem:[%s2415_s0 + $0x70] sm:$0xff]  }
  0x45   :  { %1859 = vst [vmem:[%s2417_s2 + $0x50] sm:$0xff] %v1616_v24   ;;  %v1429_v41 = vunpack.c.l.bf16 %v1816_v28  ;;  %v1430_v46 = vunpack.c.h.bf16 %v1816_v28  ;;  %v623_v52 = vsel %vm431_vm10, %v335_v36, %v527_v45  ;;  %v624_v58 = vsel %vm432_vm11, %v336_v44, %v528_v51 }
  0x46   :  { %v1631_v62 = vpack.c.bf16 %v624_v58, %v623_v52 }
  0x47   :  { %v236_v47 = vmul.f32 %v1429_v41, %v1920_v1  ;;  %v237_v54 = vmul.f32 %v1430_v46, %v1920_v1 }
  0x49   :  { %v337_v55 = vadd.f32 %v1934_v7, %v236_v47  ;;  %v338_v63 = vadd.f32 %v1934_v7, %v237_v54 }
  0x4b   :  { %vm433_vm12 = vcmp.gt.f32.partialorder %v337_v55, 0.0  ;;  %v529_v0 = vmul.f32 0.1, %v337_v55  ;;  %vm434_vm13 = vcmp.gt.f32.partialorder %v338_v63, 0.0  ;;  %v530_v6 = vmul.f32 0.1, %v338_v63 }
  0x4c   :  { %v1817_v37 = vld [vmem:[%s2415_s0 + $0x78] sm:$0xff]   ;;  %v1818_v42 = vld [vmem:[%s2415_s0 + $0x80] sm:$0xff]  }
  0x4d   :  { %1860 = vst [vmem:[%s2417_s2 + $0x58] sm:$0xff] %v1621_v38   ;;  %v1433_v48 = vunpack.c.l.bf16 %v1817_v37  ;;  %v1434_v49 = vunpack.c.h.bf16 %v1817_v37  ;;  %v1437_v53 = vunpack.c.l.bf16 %v1818_v42  ;;  %v1438_v59 = vunpack.c.h.bf16 %v1818_v42 }
  0x4e   :  { %v625_v8 = vsel %vm433_vm12, %v337_v55, %v529_v0  ;;  %v626_v12 = vsel %vm434_vm13, %v338_v63, %v530_v6 }
  0x4f   :  { %v238_v56 = vmul.f32 %v1433_v48, %v1920_v1  ;;  %v239_v57 = vmul.f32 %v1434_v49, %v1920_v1  ;;  %v240_v60 = vmul.f32 %v1437_v53, %v1920_v1  ;;  %v241_v4 = vmul.f32 %v1438_v59, %v1920_v1 }
  0x50   :  { %v1636_v16 = vpack.c.bf16 %v626_v12, %v625_v8 }
  0x51   :  { %v339_v2 = vadd.f32 %v1934_v7, %v238_v56  ;;  %v340_v3 = vadd.f32 %v1934_v7, %v239_v57  ;;  %v341_v5 = vadd.f32 %v1934_v7, %v240_v60  ;;  %v342_v13 = vadd.f32 %v1934_v7, %v241_v4 }
  0x53   :  { %vm435_vm14 = vcmp.gt.f32.partialorder %v339_v2, 0.0  ;;  %vm436_vm15 = vcmp.gt.f32.partialorder %v340_v3, 0.0  ;;  %v531_v10 = vmul.f32 0.1, %v339_v2  ;;  %v532_v11 = vmul.f32 0.1, %v340_v3 }
  0x54   :  { %v1819_v50 = vld [vmem:[%s2415_s0 + $0x88] sm:$0xff]   ;;  %vm437_vm0 = vcmp.gt.f32.partialorder %v341_v5, 0.0  ;;  %v533_v14 = vmul.f32 0.1, %v341_v5  ;;  %vm438_vm1 = vcmp.gt.f32.partialorder %v342_v13, 0.0 }
  0x55   :  { %1861 = vst [vmem:[%s2417_s2 + $0x60] sm:$0xff] %v1626_v43   ;;  %v1441_v61 = vunpack.c.l.bf16 %v1819_v50  ;;  %1862 = vst [vmem:[%s2417_s2 + $0x68] sm:$0xff] %v1631_v62   ;;  %v1442_v9 = vunpack.c.h.bf16 %v1819_v50  ;;  %v627_v17 = vsel %vm435_vm14, %v339_v2, %v531_v10  ;;  %v628_v18 = vsel %vm436_vm15, %v340_v3, %v532_v11 }
  0x56   :  { %v1641_v22 = vpack.c.bf16 %v628_v18, %v627_v17  ;;  %v534_v23 = vmul.f32 0.1, %v342_v13  ;;  %v629_v24 = vsel %vm437_vm0, %v341_v5, %v533_v14 }
  0x57   :  { %v242_v19 = vmul.f32 %v1441_v61, %v1920_v1  ;;  %v243_v25 = vmul.f32 %v1442_v9, %v1920_v1 }
  0x58   :  { %v630_v29 = vsel %vm438_vm1, %v342_v13, %v534_v23 }
  0x59   :  { %v343_v26 = vadd.f32 %v1934_v7, %v242_v19  ;;  %v1646_v33 = vpack.c.bf16 %v630_v29, %v629_v24  ;;  %v344_v34 = vadd.f32 %v1934_v7, %v243_v25 }
  0x5b   :  { %vm439_vm2 = vcmp.gt.f32.partialorder %v343_v26, 0.0  ;;  %v535_v35 = vmul.f32 0.1, %v343_v26  ;;  %vm440_vm3 = vcmp.gt.f32.partialorder %v344_v34, 0.0  ;;  %v536_v41 = vmul.f32 0.1, %v344_v34 }
  0x5c   :  { %v1820_v15 = vld [vmem:[%s2415_s0 + $0x90] sm:$0xff]   ;;  %v1821_v20 = vld [vmem:[%s2415_s0 + $0x98] sm:$0xff]   ;;  %v1822_v21 = vld [vmem:[%s2415_s0 + $0xa0] sm:$0xff]  }
  0x5d   :  { %1863 = vst [vmem:[%s2417_s2 + $0x70] sm:$0xff] %v1636_v16   ;;  %v1445_v27 = vunpack.c.l.bf16 %v1820_v15  ;;  %v1446_v28 = vunpack.c.h.bf16 %v1820_v15  ;;  %1864 = vst [vmem:[%s2417_s2 + $0x78] sm:$0xff] %v1641_v22   ;;  %v1449_v30 = vunpack.c.l.bf16 %v1821_v20  ;;  %v1450_v31 = vunpack.c.h.bf16 %v1821_v20 }
  0x5e   :  { %v1453_v32 = vunpack.c.l.bf16 %v1822_v21  ;;  %v631_v42 = vsel %vm439_vm2, %v343_v26, %v535_v35  ;;  %v1454_v43 = vunpack.c.h.bf16 %v1822_v21  ;;  %v632_v48 = vsel %vm440_vm3, %v344_v34, %v536_v41 }
  0x5f   :  { %v244_v36 = vmul.f32 %v1445_v27, %v1920_v1  ;;  %v245_v37 = vmul.f32 %v1446_v28, %v1920_v1  ;;  %v246_v38 = vmul.f32 %v1449_v30, %v1920_v1  ;;  %v247_v39 = vmul.f32 %v1450_v31, %v1920_v1 }
  0x60   :  { %v248_v49 = vmul.f32 %v1453_v32, %v1920_v1  ;;  %v249_v50 = vmul.f32 %v1454_v43, %v1920_v1  ;;  %v1651_v52 = vpack.c.bf16 %v632_v48, %v631_v42 }
  0x61   :  { %v345_v44 = vadd.f32 %v1934_v7, %v244_v36  ;;  %v346_v45 = vadd.f32 %v1934_v7, %v245_v37  ;;  %v347_v46 = vadd.f32 %v1934_v7, %v246_v38  ;;  %v348_v47 = vadd.f32 %v1934_v7, %v247_v39 }
  0x62   :  { %v349_v58 = vadd.f32 %v1934_v7, %v248_v49  ;;  %v350_v59 = vadd.f32 %v1934_v7, %v249_v50 }
  0x63   :  { %vm441_vm4 = vcmp.gt.f32.partialorder %v345_v44, 0.0  ;;  %vm442_vm5 = vcmp.gt.f32.partialorder %v346_v45, 0.0  ;;  %v537_v53 = vmul.f32 0.1, %v345_v44  ;;  %v538_v54 = vmul.f32 0.1, %v346_v45 }
  0x64   :  { %v1823_v40 = vld [vmem:[%s2415_s0 + $0xa8] sm:$0xff]   ;;  %vm443_vm6 = vcmp.gt.f32.partialorder %v347_v46, 0.0  ;;  %vm444_vm7 = vcmp.gt.f32.partialorder %v348_v47, 0.0  ;;  %v539_v55 = vmul.f32 0.1, %v347_v46  ;;  %vm445_vm8 = vcmp.gt.f32.partialorder %v349_v58, 0.0 }
  0x65   :  { %1865 = vst [vmem:[%s2417_s2 + $0x80] sm:$0xff] %v1646_v33   ;;  %v1457_v51 = vunpack.c.l.bf16 %v1823_v40  ;;  %1866 = vst [vmem:[%s2417_s2 + $0x88] sm:$0xff] %v1651_v52   ;;  %v633_v56 = vsel %vm441_vm4, %v345_v44, %v537_v53  ;;  %v540_v57 = vmul.f32 0.1, %v348_v47  ;;  %v634_v60 = vsel %vm442_vm5, %v346_v45, %v538_v54 }
  0x66   :  { %v635_v61 = vsel %vm443_vm6, %v347_v46, %v539_v55  ;;  %v1458_v62 = vunpack.c.h.bf16 %v1823_v40  ;;  %v1656_v3 = vpack.c.bf16 %v634_v60, %v633_v56  ;;  %vm446_vm9 = vcmp.gt.f32.partialorder %v350_v59, 0.0 }
  0x67   :  { %v250_v63 = vmul.f32 %v1457_v51, %v1920_v1  ;;  %v636_v4 = vsel %vm444_vm7, %v348_v47, %v540_v57  ;;  %v541_v6 = vmul.f32 0.1, %v349_v58  ;;  %v542_v8 = vmul.f32 0.1, %v350_v59 }
  0x68   :  { %v1661_v5 = vpack.c.bf16 %v636_v4, %v635_v61  ;;  %v251_v9 = vmul.f32 %v1458_v62, %v1920_v1 }
  0x69   :  { %v351_v10 = vadd.f32 %v1934_v7, %v250_v63  ;;  %v637_v14 = vsel %vm445_vm8, %v349_v58, %v541_v6  ;;  %v638_v15 = vsel %vm446_vm9, %v350_v59, %v542_v8 }
  0x6a   :  { %v352_v16 = vadd.f32 %v1934_v7, %v251_v9  ;;  %v1666_v19 = vpack.c.bf16 %v638_v15, %v637_v14 }
  0x6b   :  { %vm447_vm10 = vcmp.gt.f32.partialorder %v351_v10, 0.0  ;;  %v543_v20 = vmul.f32 0.1, %v351_v10 }
  0x6c   :  { %v1824_v0 = vld [vmem:[%s2415_s0 + $0xb0] sm:$0xff]   ;;  %v1825_v2 = vld [vmem:[%s2415_s0 + $0xb8] sm:$0xff]   ;;  %vm448_vm11 = vcmp.gt.f32.partialorder %v352_v16, 0.0  ;;  %v544_v22 = vmul.f32 0.1, %v352_v16 }
  0x6d   :  { %1867 = vst [vmem:[%s2417_s2 + $0x90] sm:$0xff] %v1656_v3   ;;  %v1461_v11 = vunpack.c.l.bf16 %v1824_v0  ;;  %v1462_v12 = vunpack.c.h.bf16 %v1824_v0  ;;  %v1465_v13 = vunpack.c.l.bf16 %v1825_v2  ;;  %1868 = vst [vmem:[%s2417_s2 + $0x98] sm:$0xff] %v1661_v5   ;;  %v1466_v17 = vunpack.c.h.bf16 %v1825_v2 }
  0x6e   :  { %v639_v25 = vsel %vm447_vm10, %v351_v10, %v543_v20  ;;  %v640_v29 = vsel %vm448_vm11, %v352_v16, %v544_v22 }
  0x6f   :  { %v252_v21 = vmul.f32 %v1461_v11, %v1920_v1  ;;  %v253_v23 = vmul.f32 %v1462_v12, %v1920_v1  ;;  %v254_v24 = vmul.f32 %v1465_v13, %v1920_v1  ;;  %v255_v27 = vmul.f32 %v1466_v17, %v1920_v1 }
  0x70   :  { %v1671_v33 = vpack.c.bf16 %v640_v29, %v639_v25 }
  0x71   :  { %v353_v26 = vadd.f32 %v1934_v7, %v252_v21  ;;  %v354_v30 = vadd.f32 %v1934_v7, %v253_v23  ;;  %v355_v31 = vadd.f32 %v1934_v7, %v254_v24  ;;  %v356_v35 = vadd.f32 %v1934_v7, %v255_v27 }
  0x73   :  { %vm449_vm12 = vcmp.gt.f32.partialorder %v353_v26, 0.0  ;;  %v545_v34 = vmul.f32 0.1, %v353_v26  ;;  %vm450_vm13 = vcmp.gt.f32.partialorder %v354_v30, 0.0  ;;  %v546_v37 = vmul.f32 0.1, %v354_v30 }
  0x74   :  { %v1826_v18 = vld [vmem:[%s2415_s0 + $0xc0] sm:$0xff]   ;;  %vm451_vm14 = vcmp.gt.f32.partialorder %v355_v31, 0.0  ;;  %v547_v38 = vmul.f32 0.1, %v355_v31  ;;  %vm452_vm15 = vcmp.gt.f32.partialorder %v356_v35, 0.0 }
  0x75   :  { %1869 = vst [vmem:[%s2417_s2 + $0xa0] sm:$0xff] %v1666_v19   ;;  %v1469_v28 = vunpack.c.l.bf16 %v1826_v18  ;;  %v1470_v32 = vunpack.c.h.bf16 %v1826_v18  ;;  %v641_v39 = vsel %vm449_vm12, %v353_v26, %v545_v34  ;;  %v548_v40 = vmul.f32 0.1, %v356_v35 }
  0x76   :  { %v642_v43 = vsel %vm450_vm13, %v354_v30, %v546_v37  ;;  %v643_v44 = vsel %vm451_vm14, %v355_v31, %v547_v38 }
  0x77   :  { %v256_v41 = vmul.f32 %v1469_v28, %v1920_v1  ;;  %v257_v45 = vmul.f32 %v1470_v32, %v1920_v1  ;;  %v1676_v47 = vpack.c.bf16 %v642_v43, %v641_v39  ;;  %v644_v48 = vsel %vm452_vm15, %v356_v35, %v548_v40 }
  0x78   :  { %v1681_v51 = vpack.c.bf16 %v644_v48, %v643_v44 }
  0x79   :  { %v357_v49 = vadd.f32 %v1934_v7, %v256_v41  ;;  %v358_v52 = vadd.f32 %v1934_v7, %v257_v45 }
  0x7b   :  { %vm453_vm0 = vcmp.gt.f32.partialorder %v357_v49, 0.0  ;;  %v549_v56 = vmul.f32 0.1, %v357_v49  ;;  %vm454_vm1 = vcmp.gt.f32.partialorder %v358_v52, 0.0  ;;  %v550_v59 = vmul.f32 0.1, %v358_v52 }
  0x7c   :  { %v1827_v36 = vld [vmem:[%s2415_s0 + $0xc8] sm:$0xff]  }
  0x7d   :  { %1870 = vst [vmem:[%s2417_s2 + $0xa8] sm:$0xff] %v1671_v33   ;;  %v1473_v46 = vunpack.c.l.bf16 %v1827_v36  ;;  %v1474_v50 = vunpack.c.h.bf16 %v1827_v36  ;;  %v645_v62 = vsel %vm453_vm0, %v357_v49, %v549_v56  ;;  %v646_v3 = vsel %vm454_vm1, %v358_v52, %v550_v59 }
  0x7e   :  { %v1686_v6 = vpack.c.bf16 %v646_v3, %v645_v62 }
  0x7f   :  { %v258_v53 = vmul.f32 %v1473_v46, %v1920_v1  ;;  %v259_v57 = vmul.f32 %v1474_v50, %v1920_v1 }
  0x81   :  { %v359_v60 = vadd.f32 %v1934_v7, %v258_v53  ;;  %v360_v63 = vadd.f32 %v1934_v7, %v259_v57 }
  0x83   :  { %vm455_vm2 = vcmp.gt.f32.partialorder %v359_v60, 0.0  ;;  %v551_v4 = vmul.f32 0.1, %v359_v60  ;;  %vm456_vm3 = vcmp.gt.f32.partialorder %v360_v63, 0.0  ;;  %v552_v8 = vmul.f32 0.1, %v360_v63 }
  0x84   :  { %v1828_v42 = vld [vmem:[%s2415_s0 + $0xd0] sm:$0xff]   ;;  %v1829_v55 = vld [vmem:[%s2415_s0 + $0xd8] sm:$0xff]  }
  0x85   :  { %v1477_v54 = vunpack.c.l.bf16 %v1828_v42  ;;  %1871 = vst [vmem:[%s2417_s2 + $0xb0] sm:$0xff] %v1676_v47   ;;  %v1478_v58 = vunpack.c.h.bf16 %v1828_v42  ;;  %1872 = vst [vmem:[%s2417_s2 + $0xb8] sm:$0xff] %v1681_v51   ;;  %v1481_v2 = vunpack.c.l.bf16 %v1829_v55  ;;  %v647_v11 = vsel %vm455_vm2, %v359_v60, %v551_v4 }
  0x86   :  { %v1482_v13 = vunpack.c.h.bf16 %v1829_v55  ;;  %v648_v15 = vsel %vm456_vm3, %v360_v63, %v552_v8 }
  0x87   :  { %v260_v61 = vmul.f32 %v1477_v54, %v1920_v1  ;;  %v261_v0 = vmul.f32 %v1478_v58, %v1920_v1  ;;  %v262_v17 = vmul.f32 %v1481_v2, %v1920_v1  ;;  %v1691_v18 = vpack.c.bf16 %v648_v15, %v647_v11 }
  0x88   :  { %v263_v20 = vmul.f32 %v1482_v13, %v1920_v1 }
  0x89   :  { %v361_v5 = vadd.f32 %v1934_v7, %v260_v61  ;;  %v362_v9 = vadd.f32 %v1934_v7, %v261_v0  ;;  %v363_v23 = vadd.f32 %v1934_v7, %v262_v17 }
  0x8a   :  { %v364_v27 = vadd.f32 %v1934_v7, %v263_v20 }
  0x8b   :  { %vm457_vm4 = vcmp.gt.f32.partialorder %v361_v5, 0.0  ;;  %v553_v12 = vmul.f32 0.1, %v361_v5  ;;  %vm458_vm5 = vcmp.gt.f32.partialorder %v362_v9, 0.0  ;;  %v554_v16 = vmul.f32 0.1, %v362_v9 }
  0x8c   :  { %v1830_v10 = vld [vmem:[%s2415_s0 + $0xe0] sm:$0xff]   ;;  %v1831_v14 = vld [vmem:[%s2415_s0 + $0xe8] sm:$0xff]   ;;  %vm459_vm6 = vcmp.gt.f32.partialorder %v363_v23, 0.0  ;;  %v555_v31 = vmul.f32 0.1, %v363_v23  ;;  %vm460_vm7 = vcmp.gt.f32.partialorder %v364_v27, 0.0 }
  0x8d   :  { %1873 = vst [vmem:[%s2417_s2 + $0xc0] sm:$0xff] %v1686_v6   ;;  %v649_v19 = vsel %vm457_vm4, %v361_v5, %v553_v12  ;;  %v1485_v21 = vunpack.c.l.bf16 %v1830_v10  ;;  %v650_v22 = vsel %vm458_vm5, %v362_v9, %v554_v16  ;;  %v1486_v24 = vunpack.c.h.bf16 %v1830_v10  ;;  %1874 = vst [vmem:[%s2417_s2 + $0xc8] sm:$0xff] %v1691_v18  }
  0x8e   :  { %v1489_v25 = vunpack.c.l.bf16 %v1831_v14  ;;  %v1696_v26 = vpack.c.bf16 %v650_v22, %v649_v19  ;;  %v1490_v29 = vunpack.c.h.bf16 %v1831_v14  ;;  %v556_v34 = vmul.f32 0.1, %v364_v27 }
  0x8f   :  { %v264_v28 = vmul.f32 %v1485_v21, %v1920_v1  ;;  %v265_v32 = vmul.f32 %v1486_v24, %v1920_v1  ;;  %v651_v37 = vsel %vm459_vm6, %v363_v23, %v555_v31 }
  0x90   :  { %v266_v33 = vmul.f32 %v1489_v25, %v1920_v1  ;;  %v267_v36 = vmul.f32 %v1490_v29, %v1920_v1  ;;  %v652_v41 = vsel %vm460_vm7, %v364_v27, %v556_v34 }
  0x91   :  { %v365_v35 = vadd.f32 %v1934_v7, %v264_v28  ;;  %v366_v38 = vadd.f32 %v1934_v7, %v265_v32  ;;  %v1701_v45 = vpack.c.bf16 %v652_v41, %v651_v37 }
  0x92   :  { %v367_v39 = vadd.f32 %v1934_v7, %v266_v33  ;;  %v368_v43 = vadd.f32 %v1934_v7, %v267_v36 }
  0x93   :  { %vm461_vm8 = vcmp.gt.f32.partialorder %v365_v35, 0.0  ;;  %v557_v42 = vmul.f32 0.1, %v365_v35  ;;  %vm462_vm9 = vcmp.gt.f32.partialorder %v366_v38, 0.0  ;;  %v558_v46 = vmul.f32 0.1, %v366_v38 }
  0x94   :  { %v1832_v30 = vld [vmem:[%s2415_s0 + $0xf0] sm:$0xff]   ;;  %vm463_vm10 = vcmp.gt.f32.partialorder %v367_v39, 0.0  ;;  %vm464_vm11 = vcmp.gt.f32.partialorder %v368_v43, 0.0  ;;  %v559_v48 = vmul.f32 0.1, %v367_v39 }
  0x95   :  { %1875 = vst [vmem:[%s2417_s2 + $0xd0] sm:$0xff] %v1696_v26   ;;  %v1493_v40 = vunpack.c.l.bf16 %v1832_v30  ;;  %v653_v47 = vsel %vm461_vm8, %v365_v35, %v557_v42  ;;  %v560_v49 = vmul.f32 0.1, %v368_v43  ;;  %v654_v50 = vsel %vm462_vm9, %v366_v38, %v558_v46 }
  0x96   :  { %v1494_v51 = vunpack.c.h.bf16 %v1832_v30  ;;  %v1706_v56 = vpack.c.bf16 %v654_v50, %v653_v47  ;;  %v655_v57 = vsel %vm463_vm10, %v367_v39, %v559_v48 }
  0x97   :  { %v268_v52 = vmul.f32 %v1493_v40, %v1920_v1  ;;  %v656_v58 = vsel %vm464_vm11, %v368_v43, %v560_v49  ;;  %v2283_v49 = vld [vmem:[%s2416_s1 + $0x1] ss:$0 sm:$0xff] }
  0x98   :  { %v1711_v60 = vpack.c.bf16 %v656_v58, %v655_v57  ;;  %v269_v61 = vmul.f32 %v1494_v51, %v1920_v1 }
  0x99   :  { %v369_v62 = vadd.f32 %v1934_v7, %v268_v52 }
  0x9a   :  { %v370_v5 = vadd.f32 %v1934_v7, %v269_v61 }
  0x9b   :  { %vm465_vm12 = vcmp.gt.f32.partialorder %v369_v62, 0.0  ;;  %v561_v6 = vmul.f32 0.1, %v369_v62 }
  0x9c   :  { %v1833_v44 = vld [vmem:[%s2415_s0 + $0xf8] sm:$0xff]   ;;  %vm466_vm13 = vcmp.gt.f32.partialorder %v370_v5, 0.0  ;;  %v562_v13 = vmul.f32 0.1, %v370_v5 }
  0x9d   :  { %1876 = vst [vmem:[%s2417_s2 + $0xd8] sm:$0xff] %v1701_v45   ;;  %v1497_v53 = vunpack.c.l.bf16 %v1833_v44  ;;  %v1498_v59 = vunpack.c.h.bf16 %v1833_v44  ;;  %v657_v14 = vsel %vm465_vm12, %v369_v62, %v561_v6 }
  0x9e   :  { %v658_v18 = vsel %vm466_vm13, %v370_v5, %v562_v13 }
  0x9f   :  { %v270_v63 = vmul.f32 %v1497_v53, %v1920_v1  ;;  %v271_v0 = vmul.f32 %v1498_v59, %v1920_v1  ;;  %v1716_v23 = vpack.c.bf16 %v658_v18, %v657_v14 }
  0xa1   :  { %v371_v8 = vadd.f32 %v1934_v7, %v270_v63  ;;  %v372_v9 = vadd.f32 %v1934_v7, %v271_v0 }
  0xa3   :  { %vm467_vm14 = vcmp.gt.f32.partialorder %v371_v8, 0.0  ;;  %vm468_vm15 = vcmp.gt.f32.partialorder %v372_v9, 0.0  ;;  %v563_v15 = vmul.f32 0.1, %v371_v8  ;;  %v564_v16 = vmul.f32 0.1, %v372_v9 }
  0xa4   :  { %v1834_v54 = vld [vmem:[%s2415_s0 + $0x100] sm:$0xff]   ;;  %v1835_v55 = vld [vmem:[%s2415_s0 + $0x108] sm:$0xff]  }
  0xa5   :  { %1877 = vst [vmem:[%s2417_s2 + $0xe0] sm:$0xff] %v1706_v56   ;;  %v1501_v2 = vunpack.c.l.bf16 %v1834_v54  ;;  %v1502_v3 = vunpack.c.h.bf16 %v1834_v54  ;;  %v1505_v4 = vunpack.c.l.bf16 %v1835_v55  ;;  %1878 = vst [vmem:[%s2417_s2 + $0xe8] sm:$0xff] %v1711_v60   ;;  %v1506_v12 = vunpack.c.h.bf16 %v1835_v55 }
  0xa6   :  { %v659_v24 = vsel %vm467_vm14, %v371_v8, %v563_v15  ;;  %v660_v25 = vsel %vm468_vm15, %v372_v9, %v564_v16 }
  0xa7   :  { %v272_v10 = vmul.f32 %v1501_v2, %v1920_v1  ;;  %v273_v11 = vmul.f32 %v1502_v3, %v1920_v1  ;;  %v274_v20 = vmul.f32 %v1505_v4, %v1920_v1  ;;  %v275_v21 = vmul.f32 %v1506_v12, %v1920_v1 }
  0xa8   :  { %v1721_v27 = vpack.c.bf16 %v660_v25, %v659_v24 }
  0xa9   :  { %v373_v17 = vadd.f32 %v1934_v7, %v272_v10  ;;  %v374_v19 = vadd.f32 %v1934_v7, %v273_v11  ;;  %v375_v1 = vadd.f32 %v1934_v7, %v274_v20  ;;  %v376_v30 = vadd.f32 %v1934_v7, %v275_v21  ;;  %v2271_v7 = vld [vmem:[%s2416_s1] ss:$0 sm:$0xff] }
  0xab   :  { %vm469_vm0 = vcmp.gt.f32.partialorder %v373_v17, 0.0  ;;  %vm470_vm1 = vcmp.gt.f32.partialorder %v374_v19, 0.0  ;;  %v565_v28 = vmul.f32 0.1, %v373_v17  ;;  %v566_v29 = vmul.f32 0.1, %v374_v19 }
  0xac   :  { %v1836_v22 = vld [vmem:[%s2415_s0 + $0x110] sm:$0xff]   ;;  %v1837_v26 = vld [vmem:[%s2415_s0 + $0x118] sm:$0xff]   ;;  %vm471_vm2 = vcmp.gt.f32.partialorder %v375_v1, 0.0  ;;  %vm472_vm3 = vcmp.gt.f32.partialorder %v376_v30, 0.0  ;;  %v567_v39 = vmul.f32 0.1, %v375_v1 }
  0xad   :  { %1879 = vst [vmem:[%s2417_s2 + $0xf0] sm:$0xff] %v1716_v23   ;;  %v1509_v31 = vunpack.c.l.bf16 %v1836_v22  ;;  %v1510_v32 = vunpack.c.h.bf16 %v1836_v22  ;;  %1880 = vst [vmem:[%s2417_s2 + $0xf8] sm:$0xff] %v1721_v27   ;;  %v661_v33 = vsel %vm469_vm0, %v373_v17, %v565_v28  ;;  %v662_v34 = vsel %vm470_vm1, %v374_v19, %v566_v29 }
  0xae   :  { %v1513_v35 = vunpack.c.l.bf16 %v1837_v26  ;;  %v1514_v36 = vunpack.c.h.bf16 %v1837_v26  ;;  %v1726_v38 = vpack.c.bf16 %v662_v34, %v661_v33  ;;  %v568_v40 = vmul.f32 0.1, %v376_v30 }
  0xaf   :  { %v276_v41 = vmul.f32 %v2271_v7, %v1509_v31  ;;  %v277_v42 = vmul.f32 %v2271_v7, %v1510_v32  ;;  %v663_v44 = vsel %vm471_vm2, %v375_v1, %v567_v39 }
  0xb0   :  { %v278_v43 = vmul.f32 %v2271_v7, %v1513_v35  ;;  %v279_v45 = vmul.f32 %v2271_v7, %v1514_v36  ;;  %v664_v48 = vsel %vm472_vm3, %v376_v30, %v568_v40 }
  0xb1   :  { %v377_v50 = vadd.f32 %v2283_v49, %v276_v41  ;;  %v378_v51 = vadd.f32 %v2283_v49, %v277_v42  ;;  %v1731_v53 = vpack.c.bf16 %v664_v48, %v663_v44 }
  0xb2   :  { %v379_v52 = vadd.f32 %v2283_v49, %v278_v43  ;;  %v380_v54 = vadd.f32 %v2283_v49, %v279_v45 }
  0xb3   :  { %vm473_vm4 = vcmp.gt.f32.partialorder %v377_v50, 0.0  ;;  %vm474_vm5 = vcmp.gt.f32.partialorder %v378_v51, 0.0  ;;  %v569_v58 = vmul.f32 0.1, %v377_v50  ;;  %v570_v59 = vmul.f32 0.1, %v378_v51 }
  0xb4   :  { %v1838_v37 = vld [vmem:[%s2415_s0 + $0x120] sm:$0xff]   ;;  %vm475_vm6 = vcmp.gt.f32.partialorder %v379_v52, 0.0  ;;  %vm476_vm7 = vcmp.gt.f32.partialorder %v380_v54, 0.0  ;;  %v571_v60 = vmul.f32 0.1, %v379_v52 }
  0xb5   :  { %1881 = vst [vmem:[%s2417_s2 + $0x100] sm:$0xff] %v1726_v38   ;;  %v1517_v46 = vunpack.c.l.bf16 %v1838_v37  ;;  %v1518_v47 = vunpack.c.h.bf16 %v1838_v37  ;;  %v572_v61 = vmul.f32 0.1, %v380_v54  ;;  %v665_v62 = vsel %vm473_vm4, %v377_v50, %v569_v58 }
  0xb6   :  { %v666_v63 = vsel %vm474_vm5, %v378_v51, %v570_v59  ;;  %v667_v5 = vsel %vm475_vm6, %v379_v52, %v571_v60 }
  0xb7   :  { %v280_v55 = vmul.f32 %v2271_v7, %v1517_v46  ;;  %v281_v56 = vmul.f32 %v2271_v7, %v1518_v47  ;;  %v1736_v4 = vpack.c.bf16 %v666_v63, %v665_v62  ;;  %v668_v6 = vsel %vm476_vm7, %v380_v54, %v572_v61 }
  0xb8   :  { %v1741_v10 = vpack.c.bf16 %v668_v6, %v667_v5 }
  0xb9   :  { %v381_v0 = vadd.f32 %v2283_v49, %v280_v55  ;;  %v382_v2 = vadd.f32 %v2283_v49, %v281_v56 }
  0xbb   :  { %vm477_vm8 = vcmp.gt.f32.partialorder %v381_v0, 0.0  ;;  %vm478_vm9 = vcmp.gt.f32.partialorder %v382_v2, 0.0  ;;  %v573_v11 = vmul.f32 0.1, %v381_v0  ;;  %v574_v12 = vmul.f32 0.1, %v382_v2 }
  0xbc   :  { %v1839_v57 = vld [vmem:[%s2415_s0 + $0x128] sm:$0xff]  }
  0xbd   :  { %1882 = vst [vmem:[%s2417_s2 + $0x108] sm:$0xff] %v1731_v53   ;;  %v1521_v8 = vunpack.c.l.bf16 %v1839_v57  ;;  %v1522_v13 = vunpack.c.h.bf16 %v1839_v57  ;;  %v669_v16 = vsel %vm477_vm8, %v381_v0, %v573_v11  ;;  %v670_v20 = vsel %vm478_vm9, %v382_v2, %v574_v12 }
  0xbe   :  { %v1746_v25 = vpack.c.bf16 %v670_v20, %v669_v16 }
  0xbf   :  { %v282_v14 = vmul.f32 %v2271_v7, %v1521_v8  ;;  %v283_v21 = vmul.f32 %v2271_v7, %v1522_v13 }
  0xc1   :  { %v383_v22 = vadd.f32 %v2283_v49, %v282_v14  ;;  %v384_v29 = vadd.f32 %v2283_v49, %v283_v21 }
  0xc3   :  { %vm479_vm10 = vcmp.gt.f32.partialorder %v383_v22, 0.0  ;;  %v575_v1 = vmul.f32 0.1, %v383_v22  ;;  %vm480_vm11 = vcmp.gt.f32.partialorder %v384_v29, 0.0  ;;  %v576_v35 = vmul.f32 0.1, %v384_v29 }
  0xc4   :  { %v1840_v3 = vld [vmem:[%s2415_s0 + $0x130] sm:$0xff]   ;;  %v1841_v9 = vld [vmem:[%s2415_s0 + $0x138] sm:$0xff]  }
  0xc5   :  { %1883 = vst [vmem:[%s2417_s2 + $0x110] sm:$0xff] %v1736_v4   ;;  %v1525_v15 = vunpack.c.l.bf16 %v1840_v3  ;;  %1884 = vst [vmem:[%s2417_s2 + $0x118] sm:$0xff] %v1741_v10   ;;  %v1526_v17 = vunpack.c.h.bf16 %v1840_v3  ;;  %v1529_v18 = vunpack.c.l.bf16 %v1841_v9  ;;  %v1530_v19 = vunpack.c.h.bf16 %v1841_v9 }
  0xc6   :  { %v671_v36 = vsel %vm479_vm10, %v383_v22, %v575_v1  ;;  %v672_v39 = vsel %vm480_vm11, %v384_v29, %v576_v35 }
  0xc7   :  { %v284_v23 = vmul.f32 %v2271_v7, %v1525_v15  ;;  %v285_v26 = vmul.f32 %v2271_v7, %v1526_v17  ;;  %v286_v27 = vmul.f32 %v2271_v7, %v1529_v18  ;;  %v287_v28 = vmul.f32 %v2271_v7, %v1530_v19 }
  0xc8   :  { %v1751_v43 = vpack.c.bf16 %v672_v39, %v671_v36 }
  0xc9   :  { %v385_v30 = vadd.f32 %v2283_v49, %v284_v23  ;;  %v386_v31 = vadd.f32 %v2283_v49, %v285_v26  ;;  %v387_v32 = vadd.f32 %v2283_v49, %v286_v27  ;;  %v388_v33 = vadd.f32 %v2283_v49, %v287_v28 }
  0xcb   :  { %vm481_vm12 = vcmp.gt.f32.partialorder %v385_v30, 0.0  ;;  %vm482_vm13 = vcmp.gt.f32.partialorder %v386_v31, 0.0  ;;  %v577_v37 = vmul.f32 0.1, %v385_v30  ;;  %v578_v38 = vmul.f32 0.1, %v386_v31 }
  0xcc   :  { %v1842_v24 = vld [vmem:[%s2415_s0 + $0x140] sm:$0xff]   ;;  %vm483_vm14 = vcmp.gt.f32.partialorder %v387_v32, 0.0  ;;  %vm484_vm15 = vcmp.gt.f32.partialorder %v388_v33, 0.0  ;;  %v579_v40 = vmul.f32 0.1, %v387_v32 }
  0xcd   :  { %1885 = vst [vmem:[%s2417_s2 + $0x120] sm:$0xff] %v1746_v25   ;;  %v1533_v34 = vunpack.c.l.bf16 %v1842_v24  ;;  %v580_v41 = vmul.f32 0.1, %v388_v33  ;;  %v673_v44 = vsel %vm481_vm12, %v385_v30, %v577_v37  ;;  %v674_v45 = vsel %vm482_vm13, %v386_v31, %v578_v38 }
  0xce   :  { %v1534_v46 = vunpack.c.h.bf16 %v1842_v24  ;;  %v1756_v50 = vpack.c.bf16 %v674_v45, %v673_v44  ;;  %v675_v51 = vsel %vm483_vm14, %v387_v32, %v579_v40 }
  0xcf   :  { %v676_v52 = vsel %vm484_vm15, %v388_v33, %v580_v41  ;;  %v288_v53 = vmul.f32 %v2271_v7, %v1533_v34 }
  0xd0   :  { %v1761_v54 = vpack.c.bf16 %v676_v52, %v675_v51  ;;  %v289_v55 = vmul.f32 %v2271_v7, %v1534_v46 }
  0xd1   :  { %v389_v58 = vadd.f32 %v2283_v49, %v288_v53 }
  0xd2   :  { %v390_v62 = vadd.f32 %v2283_v49, %v289_v55 }
  0xd3   :  { %vm485_vm0 = vcmp.gt.f32.partialorder %v389_v58, 0.0  ;;  %v581_v3 = vmul.f32 0.1, %v389_v58 }
  0xd4   :  { %v1843_v42 = vld [vmem:[%s2415_s0 + $0x148] sm:$0xff]   ;;  %v1844_v47 = vld [vmem:[%s2415_s0 + $0x150] sm:$0xff]   ;;  %v1845_v48 = vld [vmem:[%s2415_s0 + $0x158] sm:$0xff]   ;;  %vm486_vm1 = vcmp.gt.f32.partialorder %v390_v62, 0.0  ;;  %v582_v6 = vmul.f32 0.1, %v390_v62 }
  0xd5   :  { %1886 = vst [vmem:[%s2417_s2 + $0x128] sm:$0xff] %v1751_v43   ;;  %v1537_v56 = vunpack.c.l.bf16 %v1843_v42  ;;  %v1538_v57 = vunpack.c.h.bf16 %v1843_v42  ;;  %1887 = vst [vmem:[%s2417_s2 + $0x130] sm:$0xff] %v1756_v50   ;;  %v1541_v59 = vunpack.c.l.bf16 %v1844_v47  ;;  %v1542_v60 = vunpack.c.h.bf16 %v1844_v47 }
  0xd6   :  { %v1545_v61 = vunpack.c.l.bf16 %v1845_v48  ;;  %1888 = vst [vmem:[%s2417_s2 + $0x138] sm:$0xff] %v1761_v54   ;;  %v1546_v2 = vunpack.c.h.bf16 %v1845_v48  ;;  %v677_v10 = vsel %vm485_vm0, %v389_v58, %v581_v3  ;;  %v678_v14 = vsel %vm486_vm1, %v390_v62, %v582_v6 }
  0xd7   :  { %v290_v63 = vmul.f32 %v2271_v7, %v1537_v56  ;;  %v291_v0 = vmul.f32 %v2271_v7, %v1538_v57  ;;  %v292_v4 = vmul.f32 %v2271_v7, %v1541_v59  ;;  %v293_v5 = vmul.f32 %v2271_v7, %v1542_v60 }
  0xd8   :  { %v294_v13 = vmul.f32 %v2271_v7, %v1545_v61  ;;  %v1766_v17 = vpack.c.bf16 %v678_v14, %v677_v10  ;;  %v295_v22 = vmul.f32 %v2271_v7, %v1546_v2 }
  0xd9   :  { %v391_v8 = vadd.f32 %v2283_v49, %v290_v63  ;;  %v392_v9 = vadd.f32 %v2283_v49, %v291_v0  ;;  %v393_v11 = vadd.f32 %v2283_v49, %v292_v4  ;;  %v394_v12 = vadd.f32 %v2283_v49, %v293_v5 }
  0xda   :  { %v395_v24 = vadd.f32 %v2283_v49, %v294_v13  ;;  %v396_v30 = vadd.f32 %v2283_v49, %v295_v22 }
  0xdb   :  { %vm487_vm2 = vcmp.gt.f32.partialorder %v391_v8, 0.0  ;;  %vm488_vm3 = vcmp.gt.f32.partialorder %v392_v9, 0.0  ;;  %v583_v15 = vmul.f32 0.1, %v391_v8  ;;  %v584_v18 = vmul.f32 0.1, %v392_v9 }
  0xdc   :  { %vm489_vm4 = vcmp.gt.f32.partialorder %v393_v11, 0.0  ;;  %vm490_vm5 = vcmp.gt.f32.partialorder %v394_v12, 0.0  ;;  %v585_v20 = vmul.f32 0.1, %v393_v11  ;;  %v586_v21 = vmul.f32 0.1, %v394_v12 }
  0xdd   :  { %v1846_v16 = vld [vmem:[%s2415_s0 + $0x160] sm:$0xff]   ;;  %v679_v19 = vsel %vm487_vm2, %v391_v8, %v583_v15  ;;  %v680_v23 = vsel %vm488_vm3, %v392_v9, %v584_v18  ;;  %vm491_vm6 = vcmp.gt.f32.partialorder %v395_v24, 0.0  ;;  %v587_v33 = vmul.f32 0.1, %v395_v24 }
  0xde   :  { %1889 = vst [vmem:[%s2417_s2 + $0x140] sm:$0xff] %v1766_v17   ;;  %v1549_v25 = vunpack.c.l.bf16 %v1846_v16  ;;  %v1550_v26 = vunpack.c.h.bf16 %v1846_v16  ;;  %v1771_v28 = vpack.c.bf16 %v680_v23, %v679_v19  ;;  %v681_v29 = vsel %vm489_vm4, %v393_v11, %v585_v20 }
  0xdf   :  { %v682_v1 = vsel %vm490_vm5, %v394_v12, %v586_v21  ;;  %vm492_vm7 = vcmp.gt.f32.partialorder %v396_v30, 0.0  ;;  %v588_v35 = vmul.f32 0.1, %v396_v30  ;;  %v683_v38 = vsel %vm491_vm6, %v395_v24, %v587_v33 }
  0xe0   :  { %v1776_v32 = vpack.c.bf16 %v682_v1, %v681_v29  ;;  %v296_v34 = vmul.f32 %v2271_v7, %v1549_v25  ;;  %v297_v36 = vmul.f32 %v2271_v7, %v1550_v26 }
  0xe1   :  { %v684_v42 = vsel %vm492_vm7, %v396_v30, %v588_v35 }
  0xe2   :  { %v397_v39 = vadd.f32 %v2283_v49, %v296_v34  ;;  %v398_v43 = vadd.f32 %v2283_v49, %v297_v36  ;;  %v1781_v47 = vpack.c.bf16 %v684_v42, %v683_v38 }
  0xe4   :  { %vm493_vm8 = vcmp.gt.f32.partialorder %v397_v39, 0.0  ;;  %v589_v48 = vmul.f32 0.1, %v397_v39  ;;  %vm494_vm9 = vcmp.gt.f32.partialorder %v398_v43, 0.0  ;;  %v590_v51 = vmul.f32 0.1, %v398_v43 }
  0xe5   :  { %v1847_v27 = vld [vmem:[%s2415_s0 + $0x168] sm:$0xff]   ;;  %v1848_v31 = vld [vmem:[%s2415_s0 + $0x170] sm:$0xff]  }
  0xe6   :  { %1890 = vst [vmem:[%s2417_s2 + $0x148] sm:$0xff] %v1771_v28   ;;  %v1553_v37 = vunpack.c.l.bf16 %v1847_v27  ;;  %1891 = vst [vmem:[%s2417_s2 + $0x150] sm:$0xff] %v1776_v32   ;;  %v1554_v40 = vunpack.c.h.bf16 %v1847_v27  ;;  %v1557_v41 = vunpack.c.l.bf16 %v1848_v31  ;;  %v1558_v45 = vunpack.c.h.bf16 %v1848_v31 }
  0xe7   :  { %v685_v54 = vsel %vm493_vm8, %v397_v39, %v589_v48  ;;  %v686_v58 = vsel %vm494_vm9, %v398_v43, %v590_v51 }
  0xe8   :  { %v298_v44 = vmul.f32 %v2271_v7, %v1553_v37  ;;  %v299_v50 = vmul.f32 %v2271_v7, %v1554_v40  ;;  %v300_v53 = vmul.f32 %v2271_v7, %v1557_v41  ;;  %v301_v56 = vmul.f32 %v2271_v7, %v1558_v45 }
  0xe9   :  { %v1786_v61 = vpack.c.bf16 %v686_v58, %v685_v54 }
  0xea   :  { %v399_v52 = vadd.f32 %v2283_v49, %v298_v44  ;;  %v400_v55 = vadd.f32 %v2283_v49, %v299_v50  ;;  %v401_v60 = vadd.f32 %v2283_v49, %v300_v53  ;;  %v402_v63 = vadd.f32 %v2283_v49, %v301_v56 }
  0xec   :  { %vm495_vm10 = vcmp.gt.f32.partialorder %v399_v52, 0.0  ;;  %v591_v59 = vmul.f32 0.1, %v399_v52  ;;  %vm496_vm11 = vcmp.gt.f32.partialorder %v400_v55, 0.0  ;;  %v592_v62 = vmul.f32 0.1, %v400_v55 }
  0xed   :  { %v1849_v46 = vld [vmem:[%s2415_s0 + $0x178] sm:$0xff]   ;;  %vm497_vm12 = vcmp.gt.f32.partialorder %v401_v60, 0.0  ;;  %v593_v2 = vmul.f32 0.1, %v401_v60  ;;  %vm498_vm13 = vcmp.gt.f32.partialorder %v402_v63, 0.0 }
  0xee   :  { %1892 = vst [vmem:[%s2417_s2 + $0x158] sm:$0xff] %v1781_v47   ;;  %v1561_v57 = vunpack.c.l.bf16 %v1849_v46  ;;  %v687_v0 = vsel %vm495_vm10, %v399_v52, %v591_v59  ;;  %v1562_v3 = vunpack.c.h.bf16 %v1849_v46  ;;  %1893 = vst [vmem:[%s2417_s2 + $0x160] sm:$0xff] %v1786_v61   ;;  %v688_v4 = vsel %vm496_vm11, %v400_v55, %v592_v62 }
  0xef   :  { %v594_v5 = vmul.f32 0.1, %v402_v63  ;;  %v1791_v8 = vpack.c.bf16 %v688_v4, %v687_v0  ;;  %v689_v9 = vsel %vm497_vm12, %v401_v60, %v593_v2 }
  0xf0   :  { %v302_v6 = vmul.f32 %v2271_v7, %v1561_v57  ;;  %v303_v10 = vmul.f32 %v2271_v7, %v1562_v3 }
  0xf1   :  { %v690_v11 = vsel %vm498_vm13, %v402_v63, %v594_v5  ;;  %1894 = vst [vmem:[%s2417_s2 + $0x168] sm:$0xff] %v1791_v8  }
  0xf2   :  { %v403_v12 = vadd.f32 %v2283_v49, %v302_v6  ;;  %v1796_v13 = vpack.c.bf16 %v690_v11, %v689_v9  ;;  %v404_v14 = vadd.f32 %v2283_v49, %v303_v10 }
  0xf4   :  { %vm499_vm14 = vcmp.gt.f32.partialorder %v403_v12, 0.0  ;;  %v595_v15 = vmul.f32 0.1, %v403_v12  ;;  %1895 = vst [vmem:[%s2417_s2 + $0x170] sm:$0xff] %v1796_v13   ;;  %vm500_vm15 = vcmp.gt.f32.partialorder %v404_v14, 0.0 }
  0xf5   :  { %v596_v16 = vmul.f32 0.1, %v404_v14 }
  0xf6   :  { %v691_v17 = vsel %vm499_vm14, %v403_v12, %v595_v15 }
  0xf7   :  { %v692_v7 = vsel %vm500_vm15, %v404_v14, %v596_v16 }
  0xf8   :  { %v1801_v18 = vpack.c.bf16 %v692_v7, %v691_v17 }
  0xfa   :  { %1896 = vst [vmem:[%s2417_s2 + $0x178] sm:$0xff] %v1801_v18  }

// kernel: cnn_block_forward.2
= control target key start
LH: loop header
LB: loop body
LE: loop exit
PB: predicated region body
PF: predicated region fallthrough
CT: control target
= control target key end

     0   :  { %s7070_s12 = smov 0   ;;  %s7072_s13 = smov 0   ;;  %s10423_s0 = inlined_call_operand.vmem [shape: bf16[880,4], index: 0, kind: input, shape index: {}]   ;;  %s10424_s1 = inlined_call_operand.vmem [shape: bf16[36,128], index: 1, kind: input, shape index: {}]   ;;  %s10425_s2 = inlined_call_operand.vmem [shape: bf16[768,128], index: 2, kind: output, shape index: {0}]   ;;  %s10426_s3 = inlined_call_operand.vmem [shape: f32[2,2,128], index: 3, kind: output, shape index: {1}]  }
   0x1   :  { %s7074_s14 = smov 0  }
   0x2 LB: > { %s26_s15 = sadd.s32 1, %s7035_s13  ;;  %p6424_p0 = scmp.ge.s32.totalorder %s7039_s14, 1  ;;  %s7039_s14 = sphi %s7074_s14, %s14_s14   ;;  %s7035_s13 = sphi %s7072_s13, %s10560_s13   ;;  %s7031_s12 = sphi %s7070_s12, %s10559_s12  }
   0x3   : > { %p28_p1 = scmp.ge.s32.totalorder %s26_s15, 2  ;;  %p157_p2 = scmp.lt.s32.totalorder %s7039_s14, 3 }
   0x5   : > { %s10562_s15 = smov (%p28_p1, %s26_s15), 0  ;;  %p158_p3 = pnand %p6424_p0, %p157_p2 }
   0x6   : > { %s187_s16 = smul.u32 (!%p158_p3), 55, %s7031_s12  ;;  %s7041_s21 = smov (!%p158_p3), 4  }
   0x7   : > { %161 = sbr.rel (%p158_p3) target bundleno = 1141 (0x475), region = 28  ;;  %s7042_s22 = smov (!%p158_p3), 8  }
   0x8   : > { %p188_p4 = scmp.lt.s32.totalorder (!%p158_p3), %s187_s16, 109  ;;  %s7043_s23 = smov (!%p158_p3), 12  }
   0x9   : > { %s7044_s24 = smov (!%p158_p3), 16   ;;  %s7045_s25 = smov (!%p158_p3), 20  }
   0xa   : > { %s7046_s26 = smov (!%p158_p3), 24   ;;  %s7047_s29 = smov (!%p158_p3), 28  }
   0xb   : > { %s7048_s7 = smov (!%p158_p3), 32   ;;  %s194_s8 = smul.u32 (!%p158_p3), 48, %s7031_s12 }
   0xc   : > { %s10564_s16 = smov (!%p188_p4, %s187_s16), 109  ;;  %vm354_vm0 = vsmask.f32 3328  ;;  %vm355_vm1 = vsmask.f32 7440  ;;  %vm256_vm3 = vcmask 27648  }
   0xd   : > { %s6425_s17 = sshll.u32 %s10564_s16, 2  ;;  %vm7105_vm2 = vmor %vm354_vm0, %vm355_vm1  ;;  %vm1132_vm4 = vcmask 1042432   ;;  %vm1133_vm5 = vcmask 1046532   ;;  %vm985_vm7 = vcmask 60448   ;;  %vm1424_vm8 = vcmask 93248   ;;  %p9350_p5 = scmp.lt.s32.totalorder %s194_s8, 95 }
   0xe   : > { %s7094_s20 = scalar_lea.vmem %s10423_s0, %s6425_s17  ;;  %vm7456_vm6 = vmor %vm1132_vm4, %vm1133_vm5  ;;  %vm1713_vm9 = vcmask 126048   ;;  %vm4636_vm10 = vcmask 1041408   ;;  %vm10427_vm11 = vcmask 158848   ;;  %vm2875_vm12 = vcmask 191648   ;;  %p202_p6 = scmp.lt.s32.totalorder %s7031_s12, 1 }
   0xf   : > { %v307_v0 = vld [vmem:[%s7094_s20 + $0x8] sm:$0xf]  ;;  %v308_v1 = vld [vmem:[%s7094_s20 + $0xc] sm:$0xf]  ;;  %v305_v2 = vld [vmem:[%s7094_s20] sm:$0xf] }
  0x10   : > { %v377_v3 = vshll.u32 %v307_v0, 16  ;;  %v381_v4 = vshrl.u32 %v307_v0, 16  ;;  %v387_v5 = vshll.u32 %v308_v1, 16  ;;  %v391_v6 = vshrl.u32 %v308_v1, 16  ;;  %v306_v7 = vld [vmem:[%s7094_s20 + $0x4] sm:$0xf] }
  0x11   : > { %v358_v8 = vshrl.u32 %v305_v2, 16  ;;  %v361_v9 = vshll.u32 %v305_v2, 16  ;;  %v367_v10 = vshll.u32 %v306_v7, 16  ;;  %v371_v11 = vshrl.u32 %v306_v7, 16  ;;  %v309_v12 = vld [vmem:[%s7094_s20 + $0x10] sm:$0xf] }
  0x12   : > { %v379_v13 = vrot.slane %v377_v3, 5  ;;  %v383_v14 = vrot.slane %v381_v4, 4  ;;  %v389_v15 = vrot.slane %v387_v5, 5  ;;  %v393_v16 = vrot.slane %v391_v6, 4  ;;  %v310_v17 = vld [vmem:[%s7094_s20 + $0x14] sm:$0xf] }
  0x13   : > { %v360_v18 = vrot.slane %v358_v8, 4  ;;  %v363_v19 = vrot.slane %v361_v9, 5  ;;  %v369_v20 = vrot.slane %v367_v10, 5  ;;  %v373_v21 = vrot.slane %v371_v11, 4  ;;  %v311_v22 = vld [vmem:[%s7094_s20 + $0x18] sm:$0xf] }
  0x14   : > { %v384_v23 = vor.u32 %v383_v14, %v379_v13  ;;  %v394_v24 = vor.u32 %v393_v16, %v389_v15  ;;  %v397_v25 = vshll.u32 %v309_v12, 16  ;;  %v401_v26 = vshrl.u32 %v309_v12, 16  ;;  %v312_v36 = vld [vmem:[%s7094_s20 + $0x1c] sm:$0xf]  ;;  %v313_v41 = vld [vmem:[%s7094_s20 + $0x20] sm:$0xf] }
  0x15   : > { %v364_v28 = vor.u32 %v363_v19, %v360_v18  ;;  %v374_v29 = vor.u32 %v373_v21, %v369_v20  ;;  %v407_v30 = vshll.u32 %v310_v17, 16  ;;  %v411_v31 = vshrl.u32 %v310_v17, 16  ;;  %v314_v46 = vld [vmem:[%s7094_s20 + $0x24] sm:$0xf]  ;;  %v315_v58 = vld [vmem:[%s7094_s20 + $0x28] sm:$0xf] }
  0x16   : > { %v385_v32 = vrot.slane %v384_v23, 4  ;;  %v395_v33 = vrot.slane %v394_v24, 4  ;;  %v399_v34 = vrot.slane %v397_v25, 5  ;;  %v417_v35 = vshll.u32 %v311_v22, 16  ;;  %v316_v0 = vld [vmem:[%s7094_s20 + $0x2c] sm:$0xf] }
  0x17   : > { %v365_v37 = vrot.slane %v364_v28, 4  ;;  %v375_v38 = vrot.slane %v374_v29, 4  ;;  %v409_v39 = vrot.slane %v407_v30, 5  ;;  %v413_v40 = vrot.slane %v411_v31, 4  ;;  %v317_v9 = vld [vmem:[%s7094_s20 + $0x30] sm:$0xf] }
  0x18   : > { %v390_v42 = vsel %vm7105_vm2, %v385_v32, %v389_v15  ;;  %v400_v43 = vsel %vm7105_vm2, %v395_v33, %v399_v34  ;;  %v419_v44 = vrot.slane %v417_v35, 5  ;;  %v421_v45 = vshrl.u32 %v311_v22, 16  ;;  %v318_v17 = vld [vmem:[%s7094_s20 + $0x34] sm:$0xf]  ;;  %v319_v22 = vld [vmem:[%s7094_s20 + $0x38] sm:$0xf] }
  0x19   : > { %845 = vrot.lane.b32.xlu1 %v390_v42, %s7041_s21  ;;  %v370_v47 = vsel %vm7105_vm2, %v365_v37, %v369_v20  ;;  %v380_v48 = vsel %vm7105_vm2, %v375_v38, %v379_v13  ;;  %v414_v49 = vor.u32 %v413_v40, %v409_v39  ;;  %v403_v50 = vrot.slane %v401_v26, 4  ;;  %v320_v32 = vld [vmem:[%s7094_s20 + $0x3c] sm:$0xf]  ;;  %v321_v37 = vld [vmem:[%s7094_s20 + $0x40] sm:$0xf]  ;;  %s10566_s8 = smov (!%p9350_p5, %s194_s8), 95 }
  0x1a   : > { %841 = vrot.lane.b32.xlu0 %v370_v47, %s7041_s21  ;;  %v427_v51 = vshll.u32 %v312_v36, 16  ;;  %v431_v52 = vshrl.u32 %v312_v36, 16  ;;  %v437_v53 = vshll.u32 %v313_v41, 16  ;;  %v441_v54 = vshrl.u32 %v313_v41, 16  ;;  %s6426_s10 = sshll.u32 %s10566_s8, 2  ;;  %s10568_s12 = smov (!%p202_p6, %s7031_s12), 1 }
  0x1b   : > { %v415_v55 = vrot.slane %v414_v49, 4  ;;  %v404_v56 = vor.u32 %v403_v50, %v399_v34  ;;  %v423_v57 = vrot.slane %v421_v45, 4  ;;  %v447_v59 = vshll.u32 %v314_v46, 16  ;;  %v322_v50 = vld [vmem:[%s7094_s20 + $0x44] sm:$0xf]  ;;  %s9479_s17 = scalar_lea.vmem %s10425_s2, %s6426_s10  ;;  %s6427_s18 = sshll.u32 %s10568_s12, 1 }
  0x1c   : > { %v429_v60 = vrot.slane %v427_v51, 5  ;;  %v433_v61 = vrot.slane %v431_v52, 4  ;;  %v439_v62 = vrot.slane %v437_v53, 5  ;;  %v451_v63 = vshrl.u32 %v314_v46, 16 }
  0x1d   : > { %847 = vrot.lane.b32.xlu1 %v400_v43, %s7041_s21  ;;  %v420_v1 = vsel %vm7105_vm2, %v415_v55, %v419_v44  ;;  %v405_v2 = vrot.slane %v404_v56, 4  ;;  %v424_v3 = vor.u32 %v423_v57, %v419_v44  ;;  %v449_v4 = vrot.slane %v447_v59, 5  ;;  %v323_v55 = vld [vmem:[%s7094_s20 + $0x48] sm:$0xf] }
  0x1e   : > { %843 = vrot.lane.b32.xlu0 %v380_v48, %s7041_s21  ;;  %v434_v5 = vor.u32 %v433_v61, %v429_v60  ;;  %v453_v6 = vrot.slane %v451_v63, 4  ;;  %v457_v7 = vshll.u32 %v315_v58, 16  ;;  %v461_v8 = vshrl.u32 %v315_v58, 16 }
  0x1f   : > { %v410_v10 = vsel %vm7105_vm2, %v405_v2, %v409_v39  ;;  %v425_v11 = vrot.slane %v424_v3, 4  ;;  %v443_v12 = vrot.slane %v441_v54, 4  ;;  %v467_v13 = vshll.u32 %v316_v0, 16 }
  0x20   : > { %v435_v14 = vrot.slane %v434_v5, 4  ;;  %v454_v15 = vor.u32 %v453_v6, %v449_v4  ;;  %v471_v16 = vshrl.u32 %v316_v0, 16  ;;  %v459_v18 = vrot.slane %v457_v7, 5  ;;  %v324_v0 = vld [vmem:[%s7094_s20 + $0x4c] sm:$0xf] }
  0x21   : > { %851 = vrot.lane.b32.xlu1 %v420_v1, %s7041_s21  ;;  %v444_v19 = vor.u32 %v443_v12, %v439_v62  ;;  %v469_v20 = vrot.slane %v467_v13, 5  ;;  %v477_v21 = vshll.u32 %v317_v9, 16  ;;  %v481_v26 = vshrl.u32 %v317_v9, 16  ;;  %v325_v5 = vld [vmem:[%s7094_s20 + $0x50] sm:$0xf] }
  0x22   : > { %849 = vrot.lane.b32.xlu0 %v410_v10, %s7041_s21  ;;  %v440_v23 = vsel %vm7105_vm2, %v435_v14, %v439_v62  ;;  %v455_v24 = vrot.slane %v454_v15, 4  ;;  %v473_v25 = vrot.slane %v471_v16, 4  ;;  %v430_v28 = vsel %vm7105_vm2, %v425_v11, %v429_v60 }
  0x23   : > { %v445_v29 = vrot.slane %v444_v19, 4  ;;  %v463_v30 = vrot.slane %v461_v8, 4  ;;  %v487_v31 = vshll.u32 %v318_v17, 16  ;;  %v479_v34 = vrot.slane %v477_v21, 5 }
  0x24   : > { %v474_v33 = vor.u32 %v473_v25, %v469_v20  ;;  %v491_v35 = vshrl.u32 %v318_v17, 16  ;;  %v497_v36 = vshll.u32 %v319_v22, 16  ;;  %v460_v38 = vsel %vm7105_vm2, %v455_v24, %v459_v18  ;;  %v326_v17 = vld [vmem:[%s7094_s20 + $0x54] sm:$0xf] }
  0x25   : > { %855 = vrot.lane.b32.xlu1 %v440_v23, %s7041_s21  ;;  %v450_v39 = vsel %vm7105_vm2, %v445_v29, %v449_v4  ;;  %v464_v40 = vor.u32 %v463_v30, %v459_v18  ;;  %v489_v41 = vrot.slane %v487_v31, 5  ;;  %v501_v44 = vshrl.u32 %v319_v22, 16  ;;  %v327_v22 = vld [vmem:[%s7094_s20 + $0x58] sm:$0xf] }
  0x26   : > { %853 = vrot.lane.b32.xlu0 %v430_v28, %s7041_s21  ;;  %v475_v42 = vrot.slane %v474_v33, 4  ;;  %v493_v43 = vrot.slane %v491_v35, 4  ;;  %v483_v45 = vrot.slane %v481_v26, 4  ;;  %v507_v47 = vshll.u32 %v320_v32, 16  ;;  %v328_v35 = vld [vmem:[%s7094_s20 + $0x5c] sm:$0xf] }
  0x27   : > { %v465_v46 = vrot.slane %v464_v40, 4  ;;  %v511_v48 = vshrl.u32 %v320_v32, 16  ;;  %v517_v49 = vshll.u32 %v321_v37, 16  ;;  %v499_v53 = vrot.slane %v497_v36, 5  ;;  %v329_v40 = vld [vmem:[%s7094_s20 + $0x60] sm:$0xf] }
  0x28   : > { %v480_v51 = vsel %vm7105_vm2, %v475_v42, %v479_v34  ;;  %v494_v52 = vor.u32 %v493_v43, %v489_v41  ;;  %v484_v54 = vor.u32 %v483_v45, %v479_v34  ;;  %v509_v57 = vrot.slane %v507_v47, 5 }
  0x29   : > { %859 = vrot.lane.b32.xlu1 %v460_v38, %s7041_s21  ;;  %v470_v56 = vsel %vm7105_vm2, %v465_v46, %v469_v20  ;;  %v513_v58 = vrot.slane %v511_v48, 4  ;;  %v521_v59 = vshrl.u32 %v321_v37, 16  ;;  %v503_v62 = vrot.slane %v501_v44, 4 }
  0x2a   : > { %857 = vrot.lane.b32.xlu0 %v450_v39, %s7041_s21  ;;  %v495_v60 = vrot.slane %v494_v52, 4  ;;  %v485_v61 = vrot.slane %v484_v54, 4  ;;  %v527_v63 = vshll.u32 %v322_v50, 16  ;;  %v519_v2 = vrot.slane %v517_v49, 5  ;;  %v330_v49 = vld [vmem:[%s7094_s20 + $0x64] sm:$0xf] }
  0x2b   : > { %v514_v1 = vor.u32 %v513_v58, %v509_v57  ;;  %v531_v3 = vshrl.u32 %v322_v50, 16  ;;  %v537_v4 = vshll.u32 %v323_v55, 16  ;;  %v504_v6 = vor.u32 %v503_v62, %v499_v53 }
  0x2c   : > { %v7157_v7 = vrot.slane %v527_v63, 5  ;;  %v541_v8 = vshrl.u32 %v323_v55, 16  ;;  %v500_v9 = vsel %vm7105_vm2, %v495_v60, %v499_v53  ;;  %v523_v12 = vrot.slane %v521_v59, 4  ;;  %v331_v60 = vld [vmem:[%s7094_s20 + $0x68] sm:$0xf] }
  0x2d   : > { %863 = vrot.lane.b32.xlu1 %v480_v51, %s7041_s21  ;;  %v515_v10 = vrot.slane %v514_v1, 4  ;;  %v533_v11 = vrot.slane %v531_v3, 4  ;;  %v490_v13 = vsel %vm7105_vm2, %v485_v61, %v489_v41  ;;  %v547_v14 = vshll.u32 %v324_v0, 16  ;;  %v333_v3 = vld [vmem:[%s7094_s20 + $0x70] sm:$0xf] }
  0x2e   : > { %861 = vrot.lane.b32.xlu0 %v470_v56, %s7041_s21  ;;  %v551_v15 = vshrl.u32 %v324_v0, 16  ;;  %v557_v16 = vshll.u32 %v325_v5, 16  ;;  %v505_v18 = vrot.slane %v504_v6, 4  ;;  %v539_v20 = vrot.slane %v537_v4, 5 }
  0x2f   : > { %v534_v19 = vor.u32 %v533_v11, %v7157_v7  ;;  %v524_v21 = vor.u32 %v523_v12, %v519_v2  ;;  %v7168_v23 = vrot.slane %v547_v14, 5  ;;  %v561_v25 = vshrl.u32 %v325_v5, 16 }
  0x30   : > { %v553_v24 = vrot.slane %v551_v15, 4  ;;  %v520_v26 = vsel %vm7105_vm2, %v515_v10, %v519_v2  ;;  %v543_v29 = vrot.slane %v541_v8, 4  ;;  %v567_v30 = vshll.u32 %v326_v17, 16  ;;  %v332_v2 = vld [vmem:[%s7094_s20 + $0x6c] sm:$0xf] }
  0x31   : > { %867 = vrot.lane.b32.xlu1 %v500_v9, %s7041_s21  ;;  %v535_v28 = vrot.slane %v534_v19, 4  ;;  %v559_v32 = vrot.slane %v557_v16, 5  ;;  %v571_v33 = vshrl.u32 %v326_v17, 16  ;;  %v577_v34 = vshll.u32 %v327_v22, 16  ;;  %v334_v8 = vld [vmem:[%s7094_s20 + $0x74] sm:$0xf] }
  0x32   : > { %865 = vrot.lane.b32.xlu0 %v490_v13, %s7041_s21  ;;  %v554_v31 = vor.u32 %v553_v24, %v7168_v23  ;;  %v510_v36 = vsel %vm7105_vm2, %v505_v18, %v509_v57  ;;  %v525_v37 = vrot.slane %v524_v21, 4  ;;  %v544_v38 = vor.u32 %v543_v29, %v539_v20  ;;  %v210_v13 = vld [vmem:[%s7094_s20 + $0x8] sm:$0xf]  ;;  %v208_v17 = vld [vmem:[%s7094_s20] sm:$0xf] }
  0x33   : > { %v7178_v39 = vrot.slane %v567_v30, 5  ;;  %v573_v42 = vrot.slane %v571_v33, 4  ;;  %v581_v43 = vshrl.u32 %v327_v22, 16  ;;  %v563_v44 = vrot.slane %v561_v25, 4  ;;  %259 = vst.msk [vmem:[#allocation2 + $0x8] sm:$0xf] %vm256_vm3, %v210_v13 }
  0x34   : > { %v555_v41 = vrot.slane %v554_v31, 4  ;;  %v540_v45 = vsel %vm7105_vm2, %v535_v28, %v539_v20  ;;  %v545_v46 = vrot.slane %v544_v38, 4  ;;  %v587_v47 = vshll.u32 %v328_v35, 16  ;;  %v335_v22 = vld [vmem:[%s7094_s20 + $0x78] sm:$0xf] }
  0x35   : > { %871 = vrot.lane.b32.xlu1 %v520_v26, %s7041_s21  ;;  %v591_v48 = vshrl.u32 %v328_v35, 16  ;;  %v574_v50 = vor.u32 %v573_v42, %v7178_v39  ;;  %v579_v51 = vrot.slane %v577_v34, 5  ;;  %v564_v52 = vor.u32 %v563_v44, %v559_v32  ;;  %257 = vst.msk [vmem:[#allocation2] sm:$0xf] %vm256_vm3, %v208_v17  ;;  %v211_v28 = vld [vmem:[%s7094_s20 + $0xc] sm:$0xf] }
  0x36   : > { %869 = vrot.lane.b32.xlu0 %v510_v36, %s7041_s21  ;;  %v597_v53 = vshll.u32 %v329_v40, 16  ;;  %v530_v54 = vsel %vm7105_vm2, %v525_v37, %v7157_v7  ;;  %v7190_v55 = vrot.slane %v587_v47, 5  ;;  %v601_v57 = vshrl.u32 %v329_v40, 16  ;;  %260 = vst.msk [vmem:[#allocation2 + $0xc] sm:$0xf] %vm256_vm3, %v211_v28 }
  0x37   : > { %v593_v56 = vrot.slane %v591_v48, 4  ;;  %v560_v58 = vsel %vm7105_vm2, %v555_v41, %v559_v32  ;;  %v583_v59 = vrot.slane %v581_v43, 4  ;;  %v607_v61 = vshll.u32 %v330_v49, 16  ;;  %v209_v33 = vld [vmem:[%s7094_s20 + $0x4] sm:$0xf] }
  0x38   : > { %v550_v62 = vsel %vm7105_vm2, %v545_v46, %v7168_v23  ;;  %v575_v63 = vrot.slane %v574_v50, 4  ;;  %v611_v1 = vshrl.u32 %v330_v49, 16  ;;  %v565_v4 = vrot.slane %v564_v52, 4  ;;  %v336_v37 = vld [vmem:[%s7094_s20 + $0x7c] sm:$0xf] }
  0x39   : > { %875 = vrot.lane.b32.xlu1 %v540_v45, %s7041_s21  ;;  %v594_v0 = vor.u32 %v593_v56, %v7190_v55  ;;  %v599_v5 = vrot.slane %v597_v53, 5  ;;  %v584_v6 = vor.u32 %v583_v59, %v579_v51  ;;  %v7203_v7 = vrot.slane %v607_v61, 5  ;;  %v337_v38 = vld [vmem:[%s7094_s20 + $0x80] sm:$0xf]  ;;  %258 = vst.msk [vmem:[#allocation2 + $0x4] sm:$0xf] %vm256_vm3, %v209_v33 }
  0x3a   : > { %873 = vrot.lane.b32.xlu0 %v530_v54, %s7041_s21  ;;  %v613_v9 = vrot.slane %v611_v1, 4  ;;  %v617_v10 = vshll.u32 %v331_v60, 16  ;;  %v621_v11 = vshrl.u32 %v331_v60, 16  ;;  %v603_v12 = vrot.slane %v601_v57, 4  ;;  %v213_v43 = vld [vmem:[%s7094_s20 + $0x14] sm:$0xf] }
  0x3b   : > { %v595_v14 = vrot.slane %v594_v0, 4  ;;  %v627_v15 = vshll.u32 %v332_v2, 16  ;;  %v631_v16 = vshrl.u32 %v332_v2, 16  ;;  %v580_v18 = vsel %vm7105_vm2, %v575_v63, %v579_v51  ;;  %262 = vst.msk [vmem:[#allocation2 + $0x14] sm:$0xf] %vm256_vm3, %v213_v43 }
  0x3c   : > { %v585_v19 = vrot.slane %v584_v6, 4  ;;  %v614_v20 = vor.u32 %v613_v9, %v7203_v7  ;;  %v637_v21 = vshll.u32 %v333_v3, 16  ;;  %v570_v23 = vsel %vm7105_vm2, %v565_v4, %v7178_v39  ;;  %v212_v48 = vld [vmem:[%s7094_s20 + $0x10] sm:$0xf]  ;;  %v338_v53 = vld [vmem:[%s7094_s20 + $0x84] sm:$0xf] }
  0x3d   : > { %879 = vrot.lane.b32.xlu1 %v560_v58, %s7041_s21  ;;  %v7219_v24 = vrot.slane %v627_v15, 5  ;;  %v633_v25 = vrot.slane %v631_v16, 4  ;;  %v641_v26 = vshrl.u32 %v333_v3, 16  ;;  %v619_v29 = vrot.slane %v617_v10, 5  ;;  %261 = vst.msk [vmem:[#allocation2 + $0x10] sm:$0xf] %vm256_vm3, %v212_v48 }
  0x3e   : > { %877 = vrot.lane.b32.xlu0 %v550_v62, %s7041_s21  ;;  %v604_v30 = vor.u32 %v603_v12, %v599_v5  ;;  %v623_v31 = vrot.slane %v621_v11, 4  ;;  %v647_v32 = vshll.u32 %v334_v8, 16  ;;  %v600_v34 = vsel %vm7105_vm2, %v595_v14, %v599_v5  ;;  %v215_v57 = vld [vmem:[%s7094_s20 + $0x1c] sm:$0xf]  ;;  %v214_v62 = vld [vmem:[%s7094_s20 + $0x18] sm:$0xf] }
  0x3f   : > { %v651_v35 = vshrl.u32 %v334_v8, 16  ;;  %v657_v36 = vshll.u32 %v335_v22, 16  ;;  %v590_v39 = vsel %vm7105_vm2, %v585_v19, %v7190_v55  ;;  %v615_v40 = vrot.slane %v614_v20, 4  ;;  %264 = vst.msk [vmem:[#allocation2 + $0x1c] sm:$0xf] %vm256_vm3, %v215_v57 }
  0x40   : > { %v7233_v41 = vrot.slane %v637_v21, 5  ;;  %v7235_v42 = vrot.slane %v647_v32, 5  ;;  %v634_v44 = vor.u32 %v633_v25, %v7219_v24  ;;  %v661_v46 = vshrl.u32 %v335_v22, 16  ;;  %263 = vst.msk [vmem:[#allocation2 + $0x18] sm:$0xf] %vm256_vm3, %v214_v62 }
  0x41   : > { %883 = vrot.lane.b32.xlu1 %v580_v18, %s7041_s21  ;;  %v653_v45 = vrot.slane %v651_v35, 4  ;;  %v643_v47 = vrot.slane %v641_v26, 4  ;;  %v605_v49 = vrot.slane %v604_v30, 4  ;;  %v624_v50 = vor.u32 %v623_v31, %v619_v29  ;;  %v339_v5 = vld [vmem:[%s7094_s20 + $0x88] sm:$0xf] }
  0x42   : > { %881 = vrot.lane.b32.xlu0 %v570_v23, %s7041_s21  ;;  %v667_v51 = vshll.u32 %v336_v37, 16  ;;  %v671_v52 = vshrl.u32 %v336_v37, 16  ;;  %v7245_v55 = vrot.slane %v657_v36, 5  ;;  %v677_v56 = vshll.u32 %v337_v38, 16  ;;  %v340_v8 = vld [vmem:[%s7094_s20 + $0x8c] sm:$0xf] }
  0x43   : > { %v654_v54 = vor.u32 %v653_v45, %v7235_v42  ;;  %v644_v58 = vor.u32 %v643_v47, %v7233_v41  ;;  %v681_v61 = vshrl.u32 %v337_v38, 16  ;;  %v620_v63 = vsel %vm7105_vm2, %v615_v40, %v619_v29  ;;  %v217_v13 = vld [vmem:[%s7094_s20 + $0x24] sm:$0xf]  ;;  %v216_v14 = vld [vmem:[%s7094_s20 + $0x20] sm:$0xf] }
  0x44   : > { %v7250_v59 = vrot.slane %v667_v51, 5  ;;  %v673_v60 = vrot.slane %v671_v52, 4  ;;  %v635_v0 = vrot.slane %v634_v44, 4  ;;  %v663_v1 = vrot.slane %v661_v46, 4  ;;  %266 = vst.msk [vmem:[#allocation2 + $0x24] sm:$0xf] %vm256_vm3, %v217_v13 }
  0x45   : > { %887 = vrot.lane.b32.xlu1 %v600_v34, %s7041_s21  ;;  %v687_v2 = vshll.u32 %v338_v53, 16  ;;  %v610_v3 = vsel %vm7105_vm2, %v605_v49, %v7203_v7  ;;  %v625_v4 = vrot.slane %v624_v50, 4  ;;  %v691_v6 = vshrl.u32 %v338_v53, 16  ;;  %265 = vst.msk [vmem:[#allocation2 + $0x20] sm:$0xf] %vm256_vm3, %v216_v14 }
  0x46   : > { %885 = vrot.lane.b32.xlu0 %v590_v39, %s7041_s21  ;;  %v655_v9 = vrot.slane %v654_v54, 4  ;;  %v674_v10 = vor.u32 %v673_v60, %v7250_v59  ;;  %v7264_v11 = vrot.slane %v677_v56, 5  ;;  %v664_v12 = vor.u32 %v663_v1, %v7245_v55  ;;  %v341_v19 = vld [vmem:[%s7094_s20 + $0x90] sm:$0xf]  ;;  %v342_v22 = vld [vmem:[%s7094_s20 + $0x94] sm:$0xf] }
  0x47   : > { %v645_v15 = vrot.slane %v644_v58, 4  ;;  %v7270_v7 = vrot.slane %v687_v2, 5  ;;  %v693_v16 = vrot.slane %v691_v6, 4  ;;  %v683_v17 = vrot.slane %v681_v61, 4  ;;  %v219_v28 = vld [vmem:[%s7094_s20 + $0x2c] sm:$0xf] }
  0x48   : > { %v640_v18 = vsel %vm7105_vm2, %v635_v0, %v7233_v41  ;;  %v707_v20 = vshll.u32 %v340_v8, 16  ;;  %v711_v21 = vshrl.u32 %v340_v8, 16  ;;  %v630_v23 = vsel %vm7105_vm2, %v625_v4, %v7219_v24  ;;  %v218_v29 = vld [vmem:[%s7094_s20 + $0x28] sm:$0xf]  ;;  %v343_v33 = vld [vmem:[%s7094_s20 + $0x98] sm:$0xf] }
  0x49   : > { %891 = vrot.lane.b32.xlu1 %v620_v63, %s7041_s21  ;;  %v697_v25 = vshll.u32 %v339_v5, 16  ;;  %v701_v26 = vshrl.u32 %v339_v5, 16  ;;  %v660_v30 = vsel %vm7105_vm2, %v655_v9, %v7245_v55  ;;  %v675_v31 = vrot.slane %v674_v10, 4  ;;  %268 = vst.msk [vmem:[#allocation2 + $0x2c] sm:$0xf] %vm256_vm3, %v219_v28 }
  0x4a   : > { %889 = vrot.lane.b32.xlu0 %v610_v3, %s7041_s21  ;;  %v665_v32 = vrot.slane %v664_v12, 4  ;;  %267 = vst.msk [vmem:[#allocation2 + $0x28] sm:$0xf] %vm256_vm3, %v218_v29  ;;  %v650_v24 = vsel %vm7105_vm2, %v645_v15, %v7235_v42  ;;  %v694_v34 = vor.u32 %v693_v16, %v7270_v7  ;;  %v684_v35 = vor.u32 %v683_v17, %v7264_v11  ;;  %v344_v37 = vld [vmem:[%s7094_s20 + $0x9c] sm:$0xf] }
  0x4b   : > { %v717_v36 = vshll.u32 %v341_v19, 16  ;;  %v7299_v38 = vrot.slane %v707_v20, 5  ;;  %v713_v39 = vrot.slane %v711_v21, 4  ;;  %v727_v40 = vshll.u32 %v342_v22, 16  ;;  %v221_v43 = vld [vmem:[%s7094_s20 + $0x34] sm:$0xf] }
  0x4c   : > { %v731_v41 = vshrl.u32 %v342_v22, 16  ;;  %v699_v44 = vrot.slane %v697_v25, 5  ;;  %v721_v45 = vshrl.u32 %v341_v19, 16  ;;  %v703_v42 = vrot.slane %v701_v26, 4  ;;  %270 = vst.msk [vmem:[#allocation2 + $0x34] sm:$0xf] %vm256_vm3, %v221_v43 }
  0x4d   : > { %895 = vrot.lane.b32.xlu1 %v640_v18, %s7041_s21  ;;  %v737_v46 = vshll.u32 %v343_v33, 16  ;;  %v220_v47 = vld [vmem:[%s7094_s20 + $0x30] sm:$0xf]  ;;  %v680_v48 = vsel %vm7105_vm2, %v675_v31, %v7264_v11  ;;  %v670_v49 = vsel %vm7105_vm2, %v665_v32, %v7250_v59  ;;  %v741_v50 = vshrl.u32 %v343_v33, 16  ;;  %v345_v51 = vld [vmem:[%s7094_s20 + $0xa0] sm:$0xf] }
  0x4e   : > { %893 = vrot.lane.b32.xlu0 %v630_v23, %s7041_s21  ;;  %v346_v52 = vld [vmem:[%s7094_s20 + $0xa4] sm:$0xf]  ;;  %269 = vst.msk [vmem:[#allocation2 + $0x30] sm:$0xf] %vm256_vm3, %v220_v47  ;;  %v695_v53 = vrot.slane %v694_v34, 4  ;;  %v7314_v54 = vrot.slane %v717_v36, 5  ;;  %v714_v59 = vor.u32 %v713_v39, %v7299_v38  ;;  %v704_v63 = vor.u32 %v703_v42, %v699_v44 }
  0x4f   : > { %v747_v55 = vshll.u32 %v344_v37, 16  ;;  %v751_v56 = vshrl.u32 %v344_v37, 16  ;;  %v223_v57 = vld [vmem:[%s7094_s20 + $0x3c] sm:$0xf]  ;;  %v685_v58 = vrot.slane %v684_v35, 4  ;;  %v7319_v60 = vrot.slane %v727_v40, 5 }
  0x50   : > { %v733_v61 = vrot.slane %v731_v41, 4  ;;  %272 = vst.msk [vmem:[#allocation2 + $0x3c] sm:$0xf] %vm256_vm3, %v223_v57  ;;  %v222_v62 = vld [vmem:[%s7094_s20 + $0x38] sm:$0xf]  ;;  %v7323_v0 = vrot.slane %v737_v46, 5  ;;  %v700_v12 = vsel %vm7105_vm2, %v695_v53, %v699_v44 }
  0x51   : > { %899 = vrot.lane.b32.xlu1 %v660_v30, %s7041_s21  ;;  %v723_v1 = vrot.slane %v721_v45, 4  ;;  %v757_v2 = vshll.u32 %v345_v51, 16  ;;  %271 = vst.msk [vmem:[#allocation2 + $0x38] sm:$0xf] %vm256_vm3, %v222_v62  ;;  %v7326_v3 = vrot.slane %v747_v55, 5  ;;  %v753_v4 = vrot.slane %v751_v56, 4 }
  0x52   : > { %897 = vrot.lane.b32.xlu0 %v650_v24, %s7041_s21  ;;  %v743_v5 = vrot.slane %v741_v50, 4  ;;  %v767_v6 = vshll.u32 %v346_v52, 16  ;;  %v225_v8 = vld [vmem:[%s7094_s20 + $0x44] sm:$0xf]  ;;  %v761_v9 = vshrl.u32 %v345_v51, 16  ;;  %v771_v10 = vshrl.u32 %v346_v52, 16 }
  0x53   : > { %274 = vst.msk [vmem:[#allocation2 + $0x44] sm:$0xf] %vm256_vm3, %v225_v8  ;;  %v224_v11 = vld [vmem:[%s7094_s20 + $0x40] sm:$0xf]  ;;  %v715_v13 = vrot.slane %v714_v59, 4  ;;  %v734_v14 = vor.u32 %v733_v61, %v7319_v60  ;;  %v690_v16 = vsel %vm7105_vm2, %v685_v58, %v7270_v7  ;;  %v705_v17 = vrot.slane %v704_v63, 4 }
  0x54   : > { %v348_v15 = vld [vmem:[%s7094_s20 + $0xac] sm:$0xf]  ;;  %273 = vst.msk [vmem:[#allocation2 + $0x40] sm:$0xf] %vm256_vm3, %v224_v11  ;;  %v724_v18 = vor.u32 %v723_v1, %v7314_v54  ;;  %v754_v20 = vor.u32 %v753_v4, %v7326_v3  ;;  %v7344_v21 = vrot.slane %v757_v2, 5  ;;  %v744_v22 = vor.u32 %v743_v5, %v7323_v0 }
  0x55   : > { %903 = vrot.lane.b32.xlu1 %v680_v48, %s7041_s21  ;;  %v227_v19 = vld [vmem:[%s7094_s20 + $0x4c] sm:$0xf]  ;;  %v347_v23 = vld [vmem:[%s7094_s20 + $0xa8] sm:$0xf]  ;;  %v7348_v25 = vrot.slane %v767_v6, 5  ;;  %v773_v7 = vrot.slane %v771_v10, 4  ;;  %v720_v32 = vsel %vm7105_vm2, %v715_v13, %v7314_v54  ;;  %v710_v35 = vsel %vm7105_vm2, %v705_v17, %v7299_v38 }
  0x56   : > { %901 = vrot.lane.b32.xlu0 %v670_v49, %s7041_s21  ;;  %276 = vst.msk [vmem:[#allocation2 + $0x4c] sm:$0xf] %vm256_vm3, %v227_v19  ;;  %v226_v26 = vld [vmem:[%s7094_s20 + $0x48] sm:$0xf]  ;;  %v763_v28 = vrot.slane %v761_v9, 4  ;;  %v787_v30 = vshll.u32 %v348_v15, 16 }
  0x57   : > { %v349_v29 = vld [vmem:[%s7094_s20 + $0xb0] sm:$0xf]  ;;  %v791_v31 = vshrl.u32 %v348_v15, 16  ;;  %275 = vst.msk [vmem:[#allocation2 + $0x48] sm:$0xf] %vm256_vm3, %v226_v26  ;;  %v735_v33 = vrot.slane %v734_v14, 4  ;;  %v774_v45 = vor.u32 %v773_v7, %v7348_v25 }
  0x58   : > { %v350_v24 = vld [vmem:[%s7094_s20 + $0xb4] sm:$0xf]  ;;  %v725_v36 = vrot.slane %v724_v18, 4  ;;  %v777_v37 = vshll.u32 %v347_v23, 16  ;;  %v781_v39 = vshrl.u32 %v347_v23, 16  ;;  %v755_v41 = vrot.slane %v754_v20, 4 }
  0x59   : > { %907 = vrot.lane.b32.xlu1 %v700_v12, %s7041_s21  ;;  %v229_v34 = vld [vmem:[%s7094_s20 + $0x54] sm:$0xf]  ;;  %v228_v40 = vld [vmem:[%s7094_s20 + $0x50] sm:$0xf]  ;;  %v745_v43 = vrot.slane %v744_v22, 4  ;;  %v797_v44 = vshll.u32 %v349_v29, 16  ;;  %v764_v42 = vor.u32 %v763_v28, %v7344_v21  ;;  %v740_v48 = vsel %vm7105_vm2, %v735_v33, %v7323_v0 }
  0x5a   : > { %905 = vrot.lane.b32.xlu0 %v690_v16, %s7041_s21  ;;  %278 = vst.msk [vmem:[#allocation2 + $0x54] sm:$0xf] %vm256_vm3, %v229_v34  ;;  %277 = vst.msk [vmem:[#allocation2 + $0x50] sm:$0xf] %vm256_vm3, %v228_v40  ;;  %v7370_v38 = vrot.slane %v787_v30, 5  ;;  %v793_v46 = vrot.slane %v791_v31, 4  ;;  %v730_v52 = vsel %vm7105_vm2, %v725_v36, %v7319_v60  ;;  %v760_v57 = vsel %vm7105_vm2, %v755_v41, %v7344_v21 }
  0x5b   : > { %v231_v47 = vld [vmem:[%s7094_s20 + $0x5c] sm:$0xf]  ;;  %v807_v49 = vshll.u32 %v350_v24, 16  ;;  %v811_v50 = vshrl.u32 %v350_v24, 16  ;;  %v230_v51 = vld [vmem:[%s7094_s20 + $0x58] sm:$0xf]  ;;  %v750_v58 = vsel %vm7105_vm2, %v745_v43, %v7326_v3 }
  0x5c   : > { %280 = vst.msk [vmem:[#allocation2 + $0x5c] sm:$0xf] %vm256_vm3, %v231_v47  ;;  %v779_v53 = vrot.slane %v777_v37, 5  ;;  %v801_v54 = vshrl.u32 %v349_v29, 16  ;;  %v783_v55 = vrot.slane %v781_v39, 4  ;;  %v775_v60 = vrot.slane %v774_v45, 4 }
  0x5d   : > { %911 = vrot.lane.b32.xlu1 %v720_v32, %s7041_s21  ;;  %v352_v56 = vld [vmem:[%s7094_s20 + $0xbc] sm:$0xf]  ;;  %279 = vst.msk [vmem:[#allocation2 + $0x58] sm:$0xf] %vm256_vm3, %v230_v51  ;;  %v351_v59 = vld [vmem:[%s7094_s20 + $0xb8] sm:$0xf]  ;;  %v794_v63 = vor.u32 %v793_v46, %v7370_v38 }
  0x5e   : > { %909 = vrot.lane.b32.xlu0 %v710_v35, %s7041_s21  ;;  %v233_v61 = vld [vmem:[%s7094_s20 + $0x64] sm:$0xf]  ;;  %v765_v62 = vrot.slane %v764_v42, 4  ;;  %v799_v0 = vrot.slane %v797_v44, 5  ;;  %v232_v1 = vld [vmem:[%s7094_s20 + $0x60] sm:$0xf]  ;;  %v784_v6 = vor.u32 %v783_v55, %v779_v53  ;;  %v780_v13 = vsel %vm7105_vm2, %v775_v60, %v779_v53 }
  0x5f   : > { %282 = vst.msk [vmem:[#allocation2 + $0x64] sm:$0xf] %vm256_vm3, %v233_v61  ;;  %v7397_v2 = vrot.slane %v807_v49, 5  ;;  %v813_v3 = vrot.slane %v811_v50, 4  ;;  %v827_v4 = vshll.u32 %v352_v56, 16  ;;  %v831_v5 = vshrl.u32 %v352_v56, 16 }
  0x60   : > { %281 = vst.msk [vmem:[#allocation2 + $0x60] sm:$0xf] %vm256_vm3, %v232_v1  ;;  %v817_v8 = vshll.u32 %v351_v59, 16  ;;  %v821_v9 = vshrl.u32 %v351_v59, 16  ;;  %v803_v10 = vrot.slane %v801_v54, 4  ;;  %v770_v14 = vsel %vm7105_vm2, %v765_v62, %v7348_v25 }
  0x61   : > { %915 = vrot.lane.b32.xlu1 %v740_v48, %s7041_s21  ;;  %v235_v11 = vld [vmem:[%s7094_s20 + $0x6c] sm:$0xf]  ;;  %v234_v12 = vld [vmem:[%s7094_s20 + $0x68] sm:$0xf]  ;;  %v353_v15 = vld [vmem:[%s7094_s20 + $0xc0] sm:$0x1]  ;;  %v814_v17 = vor.u32 %v813_v3, %v7397_v2 }
  0x62   : > { %913 = vrot.lane.b32.xlu0 %v730_v52, %s7041_s21  ;;  %284 = vst.msk [vmem:[#allocation2 + $0x6c] sm:$0xf] %vm256_vm3, %v235_v11  ;;  %283 = vst.msk [vmem:[#allocation2 + $0x68] sm:$0xf] %vm256_vm3, %v234_v12  ;;  %v795_v16 = vrot.slane %v794_v63, 4  ;;  %v829_v18 = vrot.slane %v827_v4, 5  ;;  %v804_v23 = vor.u32 %v803_v10, %v799_v0 }
  0x63   : > { %v833_v19 = vrot.slane %v831_v5, 4  ;;  %v237_v20 = vld [vmem:[%s7094_s20 + $0x74] sm:$0xf]  ;;  %v785_v21 = vrot.slane %v784_v6, 4  ;;  %v819_v22 = vrot.slane %v817_v8, 5  ;;  %v823_v26 = vrot.slane %v821_v9, 4 }
  0x64   : > { %286 = vst.msk [vmem:[#allocation2 + $0x74] sm:$0xf] %vm256_vm3, %v237_v20  ;;  %v236_v25 = vld [vmem:[%s7094_s20 + $0x70] sm:$0xf]  ;;  %v239_v7 = vld [vmem:[%s7094_s20 + $0x7c] sm:$0xf]  ;;  %v800_v28 = vsel %vm7105_vm2, %v795_v16, %v799_v0 }
  0x65   : > { %919 = vrot.lane.b32.xlu1 %v760_v57, %s7041_s21  ;;  %285 = vst.msk [vmem:[#allocation2 + $0x70] sm:$0xf] %vm256_vm3, %v236_v25  ;;  %v815_v29 = vrot.slane %v814_v17, 4  ;;  %v834_v30 = vor.u32 %v833_v19, %v829_v18  ;;  %v837_v31 = vshll.u32 %v353_v15, 16  ;;  %288 = vst.msk [vmem:[#allocation2 + $0x7c] sm:$0xf] %vm256_vm3, %v239_v7  ;;  %v790_v33 = vsel %vm7105_vm2, %v785_v21, %v7370_v38 }
  0x66   : > { %917 = vrot.lane.b32.xlu0 %v750_v58, %s7041_s21  ;;  %v238_v32 = vld [vmem:[%s7094_s20 + $0x78] sm:$0xf]  ;;  %v805_v24 = vrot.slane %v804_v23, 4  ;;  %v824_v34 = vor.u32 %v823_v26, %v819_v22  ;;  %v1035_v35 = vld [vmem:[%s7094_s20 + $0x4] sm:$0xf]  ;;  %vm3164_vm13 = vcmask 224448  }
  0x67   : > { %287 = vst.msk [vmem:[#allocation2 + $0x78] sm:$0xf] %vm256_vm3, %v238_v32  ;;  %v241_v36 = vld [vmem:[%s7094_s20 + $0x84] sm:$0xf]  ;;  %v240_v37 = vld [vmem:[%s7094_s20 + $0x80] sm:$0xf]  ;;  %v820_v39 = vsel %vm7105_vm2, %v815_v29, %v819_v22 }
  0x68   : > { %290 = vst.msk [vmem:[#allocation2 + $0x84] sm:$0xf] %vm256_vm3, %v241_v36  ;;  %v835_v40 = vrot.slane %v834_v30, 4  ;;  %v839_v41 = vrot.slane %v837_v31, 5  ;;  %v1036_v43 = vld [vmem:[%s7094_s20 + $0x8] sm:$0xf]  ;;  %v810_v45 = vsel %vm7105_vm2, %v805_v24, %v7397_v2 }
  0x69   : > { %923 = vrot.lane.b32.xlu1 %v780_v13, %s7041_s21  ;;  %v1137_v44 = vrot.slane %v1035_v35, 5  ;;  %289 = vst.msk [vmem:[#allocation2 + $0x80] sm:$0xf] %vm256_vm3, %v240_v37  ;;  %v825_v42 = vrot.slane %v824_v34, 4  ;;  %v1037_v38 = vld [vmem:[%s7094_s20 + $0xc] sm:$0xf] }
  0x6a   : > { %921 = vrot.lane.b32.xlu0 %v770_v14, %s7041_s21  ;;  %v243_v46 = vld [vmem:[%s7094_s20 + $0x8c] sm:$0xf]  ;;  %v1034_v47 = vld [vmem:[%s7094_s20] sm:$0xe]  ;;  %v242_v48 = vld [vmem:[%s7094_s20 + $0x88] sm:$0xf]  ;;  %v840_v50 = vsel %vm7105_vm2, %v835_v40, %v839_v41 }
  0x6b   : > { %292 = vst.msk [vmem:[#allocation2 + $0x8c] sm:$0xf] %vm256_vm3, %v243_v46  ;;  %v1038_v49 = vld [vmem:[%s7094_s20 + $0x10] sm:$0xf]  ;;  %291 = vst.msk [vmem:[#allocation2 + $0x88] sm:$0xf] %vm256_vm3, %v242_v48  ;;  %v830_v55 = vsel %vm7105_vm2, %v825_v42, %v829_v18 }
  0x6c   : > { %v1139_v51 = vrot.slane %v1137_v44, 4  ;;  %v1140_v52 = vrot.slane %v1036_v43, 5  ;;  %v1143_v53 = vrot.slane %v1037_v38, 5  ;;  %v245_v54 = vld [vmem:[%s7094_s20 + $0x94] sm:$0xf]  ;;  %v6428_v57 = vrot.slane %v1034_v47, 9 }
  0x6d   : > { %927 = vrot.lane.b32.xlu1 %v800_v28, %s7041_s21  ;;  %v1039_v58 = vld [vmem:[%s7094_s20 + $0x14] sm:$0xf]  ;;  %294 = vst.msk [vmem:[#allocation2 + $0x94] sm:$0xf] %vm256_vm3, %v245_v54  ;;  %v244_v59 = vld [vmem:[%s7094_s20 + $0x90] sm:$0xf] }
  0x6e   : > { %925 = vrot.lane.b32.xlu0 %v790_v33, %s7041_s21  ;;  %293 = vst.msk [vmem:[#allocation2 + $0x90] sm:$0xf] %vm256_vm3, %v244_v59  ;;  %v247_v61 = vld [vmem:[%s7094_s20 + $0x9c] sm:$0xf]  ;;  %v1141_v60 = vsel %vm7456_vm6, %v1139_v51, %v1140_v52  ;;  %v1145_v62 = vrot.slane %v1143_v53, 4  ;;  %v1146_v63 = vrot.slane %v1038_v49, 5  ;;  %v1138_v2 = vsel %vm7456_vm6, %v6428_v57, %v1137_v44 }
  0x6f   : > { %v1149_v0 = vrot.slane %v1039_v58, 5  ;;  %296 = vst.msk [vmem:[#allocation2 + $0x9c] sm:$0xf] %vm256_vm3, %v247_v61  ;;  %v246_v1 = vld [vmem:[%s7094_s20 + $0x98] sm:$0xf]  ;;  %v1142_v3 = vrot.slane %v1140_v52, 4 }
  0x70   : > { %v1040_v4 = vld [vmem:[%s7094_s20 + $0x18] sm:$0xf]  ;;  %v1041_v5 = vld [vmem:[%s7094_s20 + $0x1c] sm:$0xf]  ;;  %295 = vst.msk [vmem:[#allocation2 + $0x98] sm:$0xf] %vm256_vm3, %v246_v1  ;;  %v1147_v9 = vsel %vm7456_vm6, %v1145_v62, %v1146_v63 }
  0x71   : > { %931 = vrot.lane.b32.xlu1 %v820_v39, %s7041_s21  ;;  %v249_v6 = vld [vmem:[%s7094_s20 + $0xa4] sm:$0xf]  ;;  %v248_v8 = vld [vmem:[%s7094_s20 + $0xa0] sm:$0xf]  ;;  %v1151_v10 = vrot.slane %v1149_v0, 4  ;;  %v1152_v11 = vrot.slane %v1040_v4, 5  ;;  %v1144_v14 = vsel %vm7456_vm6, %v1142_v3, %v1143_v53 }
  0x72   : > { %929 = vrot.lane.b32.xlu0 %v810_v45, %s7041_s21  ;;  %298 = vst.msk [vmem:[#allocation2 + $0xa4] sm:$0xf] %vm256_vm3, %v249_v6  ;;  %v1042_v12 = vld [vmem:[%s7094_s20 + $0x20] sm:$0xf]  ;;  %v1155_v13 = vrot.slane %v1041_v5, 5  ;;  %v1148_v15 = vrot.slane %v1146_v63, 4 }
  0x73   : > { %297 = vst.msk [vmem:[#allocation2 + $0xa0] sm:$0xf] %vm256_vm3, %v248_v8  ;;  %v1043_v16 = vld [vmem:[%s7094_s20 + $0x24] sm:$0xf]  ;;  %v251_v17 = vld [vmem:[%s7094_s20 + $0xac] sm:$0xf]  ;;  %v1153_v20 = vsel %vm7456_vm6, %v1151_v10, %v1152_v11 }
  0x74   : > { %300 = vst.msk [vmem:[#allocation2 + $0xac] sm:$0xf] %vm256_vm3, %v251_v17  ;;  %v250_v18 = vld [vmem:[%s7094_s20 + $0xa8] sm:$0xf]  ;;  %v1157_v21 = vrot.slane %v1155_v13, 4  ;;  %v1158_v22 = vrot.slane %v1042_v12, 5  ;;  %v1150_v25 = vsel %vm7456_vm6, %v1148_v15, %v1149_v0 }
  0x75   : > { %935 = vrot.lane.b32.xlu1 %v840_v50, %s7041_s21  ;;  %v1044_v19 = vld [vmem:[%s7094_s20 + $0x28] sm:$0xf]  ;;  %299 = vst.msk [vmem:[#allocation2 + $0xa8] sm:$0xf] %vm256_vm3, %v250_v18  ;;  %v1161_v23 = vrot.slane %v1043_v16, 5  ;;  %v1154_v7 = vrot.slane %v1152_v11, 4 }
  0x76   : > { %933 = vrot.lane.b32.xlu0 %v830_v55, %s7041_s21  ;;  %v253_v26 = vld [vmem:[%s7094_s20 + $0xb4] sm:$0xf]  ;;  %v1045_v28 = vld [vmem:[%s7094_s20 + $0x2c] sm:$0xf]  ;;  %v252_v29 = vld [vmem:[%s7094_s20 + $0xb0] sm:$0xf]  ;;  %v1159_v31 = vsel %vm7456_vm6, %v1157_v21, %v1158_v22  ;;  %s205_s21 = scalar_lea.vmem %s10426_s3, %s6427_s18 }
  0x77   : > { %302 = vst.msk [vmem:[#allocation2 + $0xb4] sm:$0xf] %vm256_vm3, %v253_v26  ;;  %301 = vst.msk [vmem:[#allocation2 + $0xb0] sm:$0xf] %vm256_vm3, %v252_v29  ;;  %v255_v30 = vld [vmem:[%s7094_s20 + $0xbc] sm:$0xf]  ;;  %v1156_v35 = vsel %vm7456_vm6, %v1154_v7, %v1155_v13 }
  0x78   : > { %v1163_v32 = vrot.slane %v1161_v23, 4  ;;  %v1164_v33 = vrot.slane %v1044_v19, 5  ;;  %v1167_v24 = vrot.slane %v1045_v28, 5  ;;  %304 = vst.msk [vmem:[#allocation2 + $0xbc] sm:$0xf] %vm256_vm3, %v255_v30  ;;  %v1160_v36 = vrot.slane %v1158_v22, 4 }
  0x79   : > { %1282 = vrot.lane.b32.xlu1 %v1141_v60, %s7042_s22  ;;  %v254_v34 = vld [vmem:[%s7094_s20 + $0xb8] sm:$0xf]  ;;  %v1046_v37 = vld [vmem:[%s7094_s20 + $0x30] sm:$0xf]  ;;  %v1047_v39 = vld [vmem:[%s7094_s20 + $0x34] sm:$0xf] }
  0x7a   : > { %1280 = vrot.lane.b32.xlu0 %v1138_v2, %s7042_s22  ;;  %303 = vst.msk [vmem:[#allocation2 + $0xb8] sm:$0xf] %vm256_vm3, %v254_v34  ;;  %v1165_v40 = vsel %vm7456_vm6, %v1163_v32, %v1164_v33  ;;  %v1169_v41 = vrot.slane %v1167_v24, 4  ;;  %v1170_v43 = vrot.slane %v1046_v37, 5  ;;  %v1173_v44 = vrot.slane %v1047_v39, 5 }
  0x7b   : > { %v1162_v45 = vsel %vm7456_vm6, %v1160_v36, %v1161_v23  ;;  %v1166_v42 = vrot.slane %v1164_v33, 4  ;;  %v1048_v38 = vld [vmem:[%s7094_s20 + $0x38] sm:$0xf]  ;;  %v1049_v46 = vld [vmem:[%s7094_s20 + $0x3c] sm:$0xf]  ;;  %vm3890_vm14 = vcmask 257248  }
  0x7c   : > { %v1171_v47 = vsel %vm7456_vm6, %v1169_v41, %v1170_v43  ;;  %v1175_v48 = vrot.slane %v1173_v44, 4  ;;  %v1176_v49 = vrot.slane %v1048_v38, 5  ;;  %v1179_v50 = vrot.slane %v1049_v46, 5  ;;  %v1050_v54 = vld [vmem:[%s7094_s20 + $0x40] sm:$0xf] }
  0x7d   : > { %1286 = vrot.lane.b32.xlu1 %v1147_v9, %s7042_s22  ;;  %v1168_v52 = vsel %vm7456_vm6, %v1166_v42, %v1167_v24  ;;  %v1172_v53 = vrot.slane %v1170_v43, 4  ;;  %v1051_v55 = vld [vmem:[%s7094_s20 + $0x44] sm:$0xf]  ;;  %v1182_v61 = vrot.slane %v1050_v54, 5  ;;  %v1052_v1 = vld [vmem:[%s7094_s20 + $0x48] sm:$0xf] }
  0x7e   : > { %1284 = vrot.lane.b32.xlu0 %v1144_v14, %s7042_s22  ;;  %v1177_v58 = vsel %vm7456_vm6, %v1175_v48, %v1176_v49  ;;  %v1181_v59 = vrot.slane %v1179_v50, 4  ;;  %v1185_v60 = vrot.slane %v1051_v55, 5  ;;  %v1178_v0 = vrot.slane %v1176_v49, 4  ;;  %v1053_v2 = vld [vmem:[%s7094_s20 + $0x4c] sm:$0xf] }
  0x7f   : > { %v1174_v63 = vsel %vm7456_vm6, %v1172_v53, %v1173_v44  ;;  %v1188_v6 = vrot.slane %v1052_v1, 5  ;;  %v1191_v8 = vrot.slane %v1053_v2, 5  ;;  %v1184_v11 = vrot.slane %v1182_v61, 4  ;;  %v1054_v12 = vld [vmem:[%s7094_s20 + $0x50] sm:$0xf] }
  0x80   : > { %v1183_v4 = vsel %vm7456_vm6, %v1181_v59, %v1182_v61  ;;  %v1187_v5 = vrot.slane %v1185_v60, 4  ;;  %v1180_v10 = vsel %vm7456_vm6, %v1178_v0, %v1179_v50  ;;  %v1055_v13 = vld [vmem:[%s7094_s20 + $0x54] sm:$0xf]  ;;  %v1194_v17 = vrot.slane %v1054_v12, 5  ;;  %v1056_v22 = vld [vmem:[%s7094_s20 + $0x58] sm:$0xf] }
  0x81   : > { %1290 = vrot.lane.b32.xlu1 %v1153_v20, %s7042_s22  ;;  %v1193_v16 = vrot.slane %v1191_v8, 4  ;;  %v1197_v18 = vrot.slane %v1055_v13, 5  ;;  %v1186_v20 = vsel %vm7456_vm6, %v1184_v11, %v1185_v60  ;;  %v1190_v21 = vrot.slane %v1188_v6, 4  ;;  %v1057_v23 = vld [vmem:[%s7094_s20 + $0x5c] sm:$0xf] }
  0x82   : > { %1288 = vrot.lane.b32.xlu0 %v1150_v25, %s7042_s22  ;;  %v1189_v15 = vsel %vm7456_vm6, %v1187_v5, %v1188_v6  ;;  %v1200_v28 = vrot.slane %v1056_v22, 5  ;;  %v1203_v29 = vrot.slane %v1057_v23, 5  ;;  %v1196_v32 = vrot.slane %v1194_v17, 4  ;;  %v1058_v33 = vld [vmem:[%s7094_s20 + $0x60] sm:$0xf] }
  0x83   : > { %v1195_v25 = vsel %vm7456_vm6, %v1193_v16, %v1194_v17  ;;  %v1199_v7 = vrot.slane %v1197_v18, 4  ;;  %v1059_v24 = vld [vmem:[%s7094_s20 + $0x64] sm:$0xf]  ;;  %v1206_v37 = vrot.slane %v1058_v33, 5  ;;  %v1060_v44 = vld [vmem:[%s7094_s20 + $0x68] sm:$0xf] }
  0x84   : > { %v1205_v36 = vrot.slane %v1203_v29, 4  ;;  %v1209_v39 = vrot.slane %v1059_v24, 5  ;;  %v1198_v41 = vsel %vm7456_vm6, %v1196_v32, %v1197_v18  ;;  %v1202_v43 = vrot.slane %v1200_v28, 4  ;;  %v1063_v53 = vld [vmem:[%s7094_s20 + $0x74] sm:$0xf] }
  0x85   : > { %1294 = vrot.lane.b32.xlu1 %v1159_v31, %s7042_s22  ;;  %v1192_v31 = vsel %vm7456_vm6, %v1190_v21, %v1191_v8  ;;  %v1221_v59 = vrot.slane %v1063_v53, 5  ;;  %v1065_v0 = vld [vmem:[%s7094_s20 + $0x7c] sm:$0xf]  ;;  %v1067_v11 = vld [vmem:[%s7094_s20 + $0x84] sm:$0xf]  ;;  %vm10428_vm15 = vcmask 290048  }
  0x86   : > { %1292 = vrot.lane.b32.xlu0 %v1156_v35, %s7042_s22  ;;  %v1201_v35 = vsel %vm7456_vm6, %v1199_v7, %v1200_v28  ;;  %v1207_v38 = vsel %vm7456_vm6, %v1205_v36, %v1206_v37  ;;  %v1211_v46 = vrot.slane %v1209_v39, 4  ;;  %v1204_v50 = vsel %vm7456_vm6, %v1202_v43, %v1203_v29  ;;  %v1069_v21 = vld [vmem:[%s7094_s20 + $0x8c] sm:$0xf]  ;;  %v1071_v32 = vld [vmem:[%s7094_s20 + $0x94] sm:$0xf] }
  0x87   : > { %v1227_v5 = vrot.slane %v1065_v0, 5  ;;  %v1233_v16 = vrot.slane %v1067_v11, 5  ;;  %v1239_v7 = vrot.slane %v1069_v21, 5  ;;  %v1245_v36 = vrot.slane %v1071_v32, 5  ;;  %v1073_v43 = vld [vmem:[%s7094_s20 + $0x9c] sm:$0xf] }
  0x88   : > { %vm4563_vm0 = vcmask 293888  }
  0x89   : > { %1298 = vrot.lane.b32.xlu1 %v1165_v40, %s7042_s22 }
  0x8a   : > { %1296 = vrot.lane.b32.xlu0 %v1162_v45, %s7042_s22  ;;  %v1061_v45 = vld [vmem:[%s7094_s20 + $0x6c] sm:$0xf] }
  0x8b   : > { %v846_v51 = vpop.permute.xlu1 %845  ;;  %v1215_v48 = vrot.slane %v1061_v45, 5 }
  0x8c   : > { %988 = vst.msk [vmem:[#allocation2 + $0x8] sm:$0xf] %vm985_vm7, %v846_v51  ;;  %v842_v57 = vpop.permute.xlu0 %841  ;;  %v1208_v51 = vrot.slane %v1206_v37, 4 }
  0x8d   : > { %986 = vst.msk [vmem:[#allocation2] sm:$0xf] %vm985_vm7, %v842_v57  ;;  %1302 = vrot.lane.b32.xlu1 %v1171_v47, %s7042_s22  ;;  %v1212_v47 = vrot.slane %v1060_v44, 5  ;;  %v1217_v57 = vrot.slane %v1215_v48, 4 }
  0x8e   : > { %1300 = vrot.lane.b32.xlu0 %v1168_v52, %s7042_s22  ;;  %v1062_v52 = vld [vmem:[%s7094_s20 + $0x70] sm:$0xf]  ;;  %v1210_v60 = vsel %vm7456_vm6, %v1208_v51, %v1209_v39  ;;  %v1075_v51 = vld [vmem:[%s7094_s20 + $0xa4] sm:$0xf] }
  0x8f   : > { %v848_v62 = vpop.permute.xlu1 %847  ;;  %v1213_v55 = vsel %vm7456_vm6, %v1211_v46, %v1212_v47  ;;  %v1251_v46 = vrot.slane %v1073_v43, 5  ;;  %v1474_v43 = vld [vmem:[%s7094_s20 + $0x10] sm:$0xf] }
  0x90   : > { %989 = vst.msk [vmem:[#allocation2 + $0xc] sm:$0xf] %vm985_vm7, %v848_v62  ;;  %v844_v3 = vpop.permute.xlu0 %843  ;;  %v1214_v62 = vrot.slane %v1212_v47, 4 }
  0x91   : > { %987 = vst.msk [vmem:[#allocation2 + $0x4] sm:$0xf] %vm985_vm7, %v844_v3  ;;  %1306 = vrot.lane.b32.xlu1 %v1177_v58, %s7042_s22  ;;  %v1218_v58 = vrot.slane %v1062_v52, 5  ;;  %v1223_v3 = vrot.slane %v1221_v59, 4 }
  0x92   : > { %1304 = vrot.lane.b32.xlu0 %v1174_v63, %s7042_s22  ;;  %v1064_v63 = vld [vmem:[%s7094_s20 + $0x78] sm:$0xf]  ;;  %v1216_v8 = vsel %vm7456_vm6, %v1214_v62, %v1215_v48  ;;  %v1077_v62 = vld [vmem:[%s7094_s20 + $0xac] sm:$0xf] }
  0x93   : > { %v852_v9 = vpop.permute.xlu1 %851  ;;  %v1219_v2 = vsel %vm7456_vm6, %v1217_v57, %v1218_v58  ;;  %v1257_v57 = vrot.slane %v1075_v51, 5  ;;  %v1477_v51 = vld [vmem:[%s7094_s20 + $0x1c] sm:$0xf] }
  0x94   : > { %991 = vst.msk [vmem:[#allocation2 + $0x14] sm:$0xf] %vm985_vm7, %v852_v9  ;;  %v850_v14 = vpop.permute.xlu0 %849  ;;  %v1220_v9 = vrot.slane %v1218_v58, 4 }
  0x95   : > { %990 = vst.msk [vmem:[#allocation2 + $0x10] sm:$0xf] %vm985_vm7, %v850_v14  ;;  %1310 = vrot.lane.b32.xlu1 %v1183_v4, %s7042_s22  ;;  %v1224_v4 = vrot.slane %v1064_v63, 5  ;;  %v1229_v14 = vrot.slane %v1227_v5, 4 }
  0x96   : > { %1308 = vrot.lane.b32.xlu0 %v1180_v10, %s7042_s22  ;;  %v1066_v10 = vld [vmem:[%s7094_s20 + $0x80] sm:$0xf]  ;;  %v1222_v18 = vsel %vm7456_vm6, %v1220_v9, %v1221_v59  ;;  %v1079_v9 = vld [vmem:[%s7094_s20 + $0xb4] sm:$0xf] }
  0x97   : > { %v856_v19 = vpop.permute.xlu1 %855  ;;  %v1225_v13 = vsel %vm7456_vm6, %v1223_v3, %v1224_v4  ;;  %v1263_v3 = vrot.slane %v1077_v62, 5  ;;  %v1484_v62 = vld [vmem:[%s7094_s20 + $0x38] sm:$0xf] }
  0x98   : > { %993 = vst.msk [vmem:[#allocation2 + $0x1c] sm:$0xf] %vm985_vm7, %v856_v19  ;;  %v854_v26 = vpop.permute.xlu0 %853  ;;  %v1226_v19 = vrot.slane %v1224_v4, 4 }
  0x99   : > { %992 = vst.msk [vmem:[#allocation2 + $0x18] sm:$0xf] %vm985_vm7, %v854_v26  ;;  %1314 = vrot.lane.b32.xlu1 %v1189_v15, %s7042_s22  ;;  %v1230_v15 = vrot.slane %v1066_v10, 5  ;;  %v1235_v26 = vrot.slane %v1233_v16, 4 }
  0x9a   : > { %1312 = vrot.lane.b32.xlu0 %v1186_v20, %s7042_s22  ;;  %v1068_v20 = vld [vmem:[%s7094_s20 + $0x88] sm:$0xf]  ;;  %v1228_v29 = vsel %vm7456_vm6, %v1226_v19, %v1227_v5  ;;  %v1081_v19 = vld [vmem:[%s7094_s20 + $0xbc] sm:$0xf] }
  0x9b   : > { %v860_v30 = vpop.permute.xlu1 %859  ;;  %v1231_v23 = vsel %vm7456_vm6, %v1229_v14, %v1230_v15  ;;  %v1269_v14 = vrot.slane %v1079_v9, 5  ;;  %v1487_v9 = vld [vmem:[%s7094_s20 + $0x44] sm:$0xf] }
  0x9c   : > { %995 = vst.msk [vmem:[#allocation2 + $0x24] sm:$0xf] %vm985_vm7, %v860_v30  ;;  %v858_v34 = vpop.permute.xlu0 %857  ;;  %v1232_v30 = vrot.slane %v1230_v15, 4 }
  0x9d   : > { %994 = vst.msk [vmem:[#allocation2 + $0x20] sm:$0xf] %vm985_vm7, %v858_v34  ;;  %1318 = vrot.lane.b32.xlu1 %v1195_v25, %s7042_s22  ;;  %v1236_v25 = vrot.slane %v1068_v20, 5  ;;  %v1241_v34 = vrot.slane %v1239_v7, 4 }
  0x9e   : > { %1316 = vrot.lane.b32.xlu0 %v1192_v31, %s7042_s22  ;;  %v1070_v31 = vld [vmem:[%s7094_s20 + $0x90] sm:$0xf]  ;;  %v1234_v39 = vsel %vm7456_vm6, %v1232_v30, %v1233_v16 }
  0x9f   : > { %v864_v40 = vpop.permute.xlu1 %863  ;;  %v1237_v24 = vsel %vm7456_vm6, %v1235_v26, %v1236_v25  ;;  %v1275_v26 = vrot.slane %v1081_v19, 5  ;;  %v1494_v19 = vld [vmem:[%s7094_s20 + $0x60] sm:$0xf] }
  0xa0   : > { %997 = vst.msk [vmem:[#allocation2 + $0x2c] sm:$0xf] %vm985_vm7, %v864_v40  ;;  %v862_v42 = vpop.permute.xlu0 %861  ;;  %v1238_v40 = vrot.slane %v1236_v25, 4 }
  0xa1   : > { %996 = vst.msk [vmem:[#allocation2 + $0x28] sm:$0xf] %vm985_vm7, %v862_v42  ;;  %1322 = vrot.lane.b32.xlu1 %v1201_v35, %s7042_s22  ;;  %v1242_v35 = vrot.slane %v1070_v31, 5  ;;  %v1247_v42 = vrot.slane %v1245_v36, 4  ;;  %v1277_v32 = vrot.slane %v1275_v26, 4 }
  0xa2   : > { %1320 = vrot.lane.b32.xlu0 %v1198_v41, %s7042_s22  ;;  %v1072_v41 = vld [vmem:[%s7094_s20 + $0x98] sm:$0xf]  ;;  %v1240_v48 = vsel %vm7456_vm6, %v1238_v40, %v1239_v7 }
  0xa3   : > { %v868_v49 = vpop.permute.xlu1 %867  ;;  %v1243_v45 = vsel %vm7456_vm6, %v1241_v34, %v1242_v35 }
  0xa4   : > { %999 = vst.msk [vmem:[#allocation2 + $0x34] sm:$0xf] %vm985_vm7, %v868_v49  ;;  %v866_v54 = vpop.permute.xlu0 %865  ;;  %v1244_v49 = vrot.slane %v1242_v35, 4 }
  0xa5   : > { %998 = vst.msk [vmem:[#allocation2 + $0x30] sm:$0xf] %vm985_vm7, %v866_v54  ;;  %1326 = vrot.lane.b32.xlu1 %v1207_v38, %s7042_s22  ;;  %v1248_v38 = vrot.slane %v1072_v41, 5  ;;  %v1253_v54 = vrot.slane %v1251_v46, 4 }
  0xa6   : > { %1324 = vrot.lane.b32.xlu0 %v1204_v50, %s7042_s22  ;;  %v1074_v50 = vld [vmem:[%s7094_s20 + $0xa0] sm:$0xf]  ;;  %v1246_v59 = vsel %vm7456_vm6, %v1244_v49, %v1245_v36 }
  0xa7   : > { %v872_v61 = vpop.permute.xlu1 %871  ;;  %v1249_v53 = vsel %vm7456_vm6, %v1247_v42, %v1248_v38  ;;  %v1478_v49 = vld [vmem:[%s7094_s20 + $0x20] sm:$0xf] }
  0xa8   : > { %1001 = vst.msk [vmem:[#allocation2 + $0x3c] sm:$0xf] %vm985_vm7, %v872_v61  ;;  %v870_v1 = vpop.permute.xlu0 %869  ;;  %v1250_v61 = vrot.slane %v1248_v38, 4  ;;  %v1476_v38 = vld [vmem:[%s7094_s20 + $0x18] sm:$0xf] }
  0xa9   : > { %1000 = vst.msk [vmem:[#allocation2 + $0x38] sm:$0xf] %vm985_vm7, %v870_v1  ;;  %1330 = vrot.lane.b32.xlu1 %v1213_v55, %s7042_s22  ;;  %v1254_v55 = vrot.slane %v1074_v50, 5  ;;  %v1259_v1 = vrot.slane %v1257_v57, 4 }
  0xaa   : > { %1328 = vrot.lane.b32.xlu0 %v1210_v60, %s7042_s22  ;;  %v1076_v60 = vld [vmem:[%s7094_s20 + $0xa8] sm:$0xf]  ;;  %v1252_v5 = vsel %vm7456_vm6, %v1250_v61, %v1251_v46  ;;  %v1481_v61 = vld [vmem:[%s7094_s20 + $0x2c] sm:$0xf] }
  0xab   : > { %v876_v6 = vpop.permute.xlu1 %875  ;;  %v1255_v0 = vsel %vm7456_vm6, %v1253_v54, %v1254_v55 }
  0xac   : > { %1003 = vst.msk [vmem:[#allocation2 + $0x44] sm:$0xf] %vm985_vm7, %v876_v6  ;;  %v874_v12 = vpop.permute.xlu0 %873  ;;  %v1256_v6 = vrot.slane %v1254_v55, 4  ;;  %v1479_v55 = vld [vmem:[%s7094_s20 + $0x24] sm:$0xf] }
  0xad   : > { %1002 = vst.msk [vmem:[#allocation2 + $0x40] sm:$0xf] %vm985_vm7, %v874_v12  ;;  %1334 = vrot.lane.b32.xlu1 %v1219_v2, %s7042_s22  ;;  %v1260_v2 = vrot.slane %v1076_v60, 5  ;;  %v1265_v12 = vrot.slane %v1263_v3, 4 }
  0xae   : > { %1332 = vrot.lane.b32.xlu0 %v1216_v8, %s7042_s22  ;;  %v1078_v8 = vld [vmem:[%s7094_s20 + $0xb0] sm:$0xf]  ;;  %v1258_v16 = vsel %vm7456_vm6, %v1256_v6, %v1257_v57  ;;  %v1488_v6 = vld [vmem:[%s7094_s20 + $0x48] sm:$0xf] }
  0xaf   : > { %v880_v17 = vpop.permute.xlu1 %879  ;;  %v1261_v11 = vsel %vm7456_vm6, %v1259_v1, %v1260_v2 }
  0xb0   : > { %1005 = vst.msk [vmem:[#allocation2 + $0x4c] sm:$0xf] %vm985_vm7, %v880_v17  ;;  %v878_v22 = vpop.permute.xlu0 %877  ;;  %v1262_v17 = vrot.slane %v1260_v2, 4  ;;  %v1486_v2 = vld [vmem:[%s7094_s20 + $0x40] sm:$0xf] }
  0xb1   : > { %1004 = vst.msk [vmem:[#allocation2 + $0x48] sm:$0xf] %vm985_vm7, %v878_v22  ;;  %1338 = vrot.lane.b32.xlu1 %v1225_v13, %s7042_s22  ;;  %v1266_v13 = vrot.slane %v1078_v8, 5  ;;  %v1271_v22 = vrot.slane %v1269_v14, 4 }
  0xb2   : > { %1336 = vrot.lane.b32.xlu0 %v1222_v18, %s7042_s22  ;;  %v1080_v18 = vld [vmem:[%s7094_s20 + $0xb8] sm:$0xf]  ;;  %v1264_v7 = vsel %vm7456_vm6, %v1262_v17, %v1263_v3  ;;  %v1491_v17 = vld [vmem:[%s7094_s20 + $0x54] sm:$0xf] }
  0xb3   : > { %v884_v28 = vpop.permute.xlu1 %883  ;;  %v1267_v21 = vsel %vm7456_vm6, %v1265_v12, %v1266_v13 }
  0xb4   : > { %1007 = vst.msk [vmem:[#allocation2 + $0x54] sm:$0xf] %vm985_vm7, %v884_v28  ;;  %v882_v33 = vpop.permute.xlu0 %881  ;;  %v1268_v28 = vrot.slane %v1266_v13, 4  ;;  %v1489_v13 = vld [vmem:[%s7094_s20 + $0x4c] sm:$0xf] }
  0xb5   : > { %1006 = vst.msk [vmem:[#allocation2 + $0x50] sm:$0xf] %vm985_vm7, %v882_v33  ;;  %1342 = vrot.lane.b32.xlu1 %v1231_v23, %s7042_s22  ;;  %v1272_v23 = vrot.slane %v1080_v18, 5 }
  0xb6   : > { %1340 = vrot.lane.b32.xlu0 %v1228_v29, %s7042_s22  ;;  %v1082_v29 = vld [vmem:[%s7094_s20 + $0xc0] sm:$0x1]  ;;  %v1270_v34 = vsel %vm7456_vm6, %v1268_v28, %v1269_v14  ;;  %v1498_v28 = vld [vmem:[%s7094_s20 + $0x70] sm:$0xf] }
  0xb7   : > { %v888_v37 = vpop.permute.xlu1 %887  ;;  %v1273_v31 = vsel %vm7456_vm6, %v1271_v22, %v1272_v23  ;;  %v1278_v33 = vrot.slane %v1082_v29, 5  ;;  %v1274_v35 = vrot.slane %v1272_v23, 4  ;;  %v1496_v23 = vld [vmem:[%s7094_s20 + $0x68] sm:$0xf] }
  0xb8   : > { %1009 = vst.msk [vmem:[#allocation2 + $0x5c] sm:$0xf] %vm985_vm7, %v888_v37  ;;  %v886_v44 = vpop.permute.xlu0 %885 }
  0xb9   : > { %1008 = vst.msk [vmem:[#allocation2 + $0x58] sm:$0xf] %vm985_vm7, %v886_v44  ;;  %1346 = vrot.lane.b32.xlu1 %v1237_v24, %s7042_s22  ;;  %v1279_v37 = vsel %vm7456_vm6, %v1277_v32, %v1278_v33  ;;  %v1276_v40 = vsel %vm7456_vm6, %v1274_v35, %v1275_v26  ;;  %v1500_v32 = vld [vmem:[%s7094_s20 + $0x78] sm:$0xf]  ;;  %v1502_v35 = vld [vmem:[%s7094_s20 + $0x80] sm:$0xf] }
  0xba   : > { %1344 = vrot.lane.b32.xlu0 %v1234_v39, %s7042_s22 }
  0xbb   : > { %v892_v47 = vpop.permute.xlu1 %891 }
  0xbc   : > { %1011 = vst.msk [vmem:[#allocation2 + $0x64] sm:$0xf] %vm985_vm7, %v892_v47  ;;  %v890_v52 = vpop.permute.xlu0 %889  ;;  %v1475_v47 = vld [vmem:[%s7094_s20 + $0x14] sm:$0xf] }
  0xbd   : > { %1010 = vst.msk [vmem:[#allocation2 + $0x60] sm:$0xf] %vm985_vm7, %v890_v52  ;;  %1350 = vrot.lane.b32.xlu1 %v1243_v45, %s7042_s22  ;;  %v1473_v45 = vld [vmem:[%s7094_s20 + $0xc] sm:$0xf] }
  0xbe   : > { %1348 = vrot.lane.b32.xlu0 %v1240_v48, %s7042_s22 }
  0xbf   : > { %v896_v58 = vpop.permute.xlu1 %895 }
  0xc0   : > { %1013 = vst.msk [vmem:[#allocation2 + $0x6c] sm:$0xf] %vm985_vm7, %v896_v58  ;;  %v894_v63 = vpop.permute.xlu0 %893  ;;  %v1482_v58 = vld [vmem:[%s7094_s20 + $0x30] sm:$0xf] }
  0xc1   : > { %1012 = vst.msk [vmem:[#allocation2 + $0x68] sm:$0xf] %vm985_vm7, %v894_v63  ;;  %1354 = vrot.lane.b32.xlu1 %v1249_v53, %s7042_s22  ;;  %v1480_v53 = vld [vmem:[%s7094_s20 + $0x28] sm:$0xf] }
  0xc2   : > { %1352 = vrot.lane.b32.xlu0 %v1246_v59, %s7042_s22 }
  0xc3   : > { %v900_v4 = vpop.permute.xlu1 %899 }
  0xc4   : > { %1015 = vst.msk [vmem:[#allocation2 + $0x74] sm:$0xf] %vm985_vm7, %v900_v4  ;;  %v898_v10 = vpop.permute.xlu0 %897  ;;  %v1485_v4 = vld [vmem:[%s7094_s20 + $0x3c] sm:$0xf] }
  0xc5   : > { %1014 = vst.msk [vmem:[#allocation2 + $0x70] sm:$0xf] %vm985_vm7, %v898_v10  ;;  %1358 = vrot.lane.b32.xlu1 %v1255_v0, %s7042_s22  ;;  %v1483_v0 = vld [vmem:[%s7094_s20 + $0x34] sm:$0xf] }
  0xc6   : > { %1356 = vrot.lane.b32.xlu0 %v1252_v5, %s7042_s22 }
  0xc7   : > { %v904_v15 = vpop.permute.xlu1 %903 }
  0xc8   : > { %1017 = vst.msk [vmem:[#allocation2 + $0x7c] sm:$0xf] %vm985_vm7, %v904_v15  ;;  %v902_v20 = vpop.permute.xlu0 %901  ;;  %v1492_v15 = vld [vmem:[%s7094_s20 + $0x58] sm:$0xf] }
  0xc9   : > { %1016 = vst.msk [vmem:[#allocation2 + $0x78] sm:$0xf] %vm985_vm7, %v902_v20  ;;  %1362 = vrot.lane.b32.xlu1 %v1261_v11, %s7042_s22  ;;  %v1490_v11 = vld [vmem:[%s7094_s20 + $0x50] sm:$0xf] }
  0xca   : > { %1360 = vrot.lane.b32.xlu0 %v1258_v16, %s7042_s22 }
  0xcb   : > { %v908_v25 = vpop.permute.xlu1 %907 }
  0xcc   : > { %1019 = vst.msk [vmem:[#allocation2 + $0x84] sm:$0xf] %vm985_vm7, %v908_v25  ;;  %v906_v30 = vpop.permute.xlu0 %905  ;;  %v1495_v25 = vld [vmem:[%s7094_s20 + $0x64] sm:$0xf] }
  0xcd   : > { %1018 = vst.msk [vmem:[#allocation2 + $0x80] sm:$0xf] %vm985_vm7, %v906_v30  ;;  %1366 = vrot.lane.b32.xlu1 %v1267_v21, %s7042_s22  ;;  %v1493_v21 = vld [vmem:[%s7094_s20 + $0x5c] sm:$0xf]  ;;  %v1497_v30 = vld [vmem:[%s7094_s20 + $0x6c] sm:$0xf] }
  0xce   : > { %1364 = vrot.lane.b32.xlu0 %v1264_v7, %s7042_s22 }
  0xcf   : > { %v912_v24 = vpop.permute.xlu1 %911 }
  0xd0   : > { %1021 = vst.msk [vmem:[#allocation2 + $0x8c] sm:$0xf] %vm985_vm7, %v912_v24  ;;  %v910_v36 = vpop.permute.xlu0 %909  ;;  %v1499_v24 = vld [vmem:[%s7094_s20 + $0x74] sm:$0xf] }
  0xd1   : > { %1020 = vst.msk [vmem:[#allocation2 + $0x88] sm:$0xf] %vm985_vm7, %v910_v36  ;;  %1370 = vrot.lane.b32.xlu1 %v1273_v31, %s7042_s22 }
  0xd2   : > { %1368 = vrot.lane.b32.xlu0 %v1270_v34, %s7042_s22 }
  0xd3   : > { %v916_v39 = vpop.permute.xlu1 %915 }
  0xd4   : > { %1023 = vst.msk [vmem:[#allocation2 + $0x94] sm:$0xf] %vm985_vm7, %v916_v39  ;;  %v914_v41 = vpop.permute.xlu0 %913 }
  0xd5   : > { %1022 = vst.msk [vmem:[#allocation2 + $0x90] sm:$0xf] %vm985_vm7, %v914_v41  ;;  %1374 = vrot.lane.b32.xlu1 %v1279_v37, %s7042_s22  ;;  %v1501_v37 = vld [vmem:[%s7094_s20 + $0x7c] sm:$0xf] }
  0xd6   : > { %1372 = vrot.lane.b32.xlu0 %v1276_v40, %s7042_s22  ;;  %v1504_v40 = vld [vmem:[%s7094_s20 + $0x88] sm:$0xf] }
  0xd7   : > { %v920_v44 = vpop.permute.xlu1 %919 }
  0xd8   : > { %1025 = vst.msk [vmem:[#allocation2 + $0x9c] sm:$0xf] %vm985_vm7, %v920_v44  ;;  %v918_v42 = vpop.permute.xlu0 %917 }
  0xd9   : > { %1024 = vst.msk [vmem:[#allocation2 + $0x98] sm:$0xf] %vm985_vm7, %v918_v42  ;;  %1571 = vrot.lane.b32.xlu1 %v1474_v43, %s7043_s23  ;;  %v1503_v43 = vld [vmem:[%s7094_s20 + $0x84] sm:$0xf] }
  0xda   : > { %1569 = vrot.lane.b32.xlu0 %v1473_v45, %s7043_s23  ;;  %v1506_v45 = vld [vmem:[%s7094_s20 + $0x90] sm:$0xf] }
  0xdb   : > { %v924_v46 = vpop.permute.xlu1 %923 }
  0xdc   : > { %1027 = vst.msk [vmem:[#allocation2 + $0xa4] sm:$0xf] %vm985_vm7, %v924_v46  ;;  %v922_v48 = vpop.permute.xlu0 %921 }
  0xdd   : > { %1026 = vst.msk [vmem:[#allocation2 + $0xa0] sm:$0xf] %vm985_vm7, %v922_v48  ;;  %1575 = vrot.lane.b32.xlu1 %v1476_v38, %s7043_s23  ;;  %v1505_v38 = vld [vmem:[%s7094_s20 + $0x8c] sm:$0xf] }
  0xde   : > { %1573 = vrot.lane.b32.xlu0 %v1475_v47, %s7043_s23  ;;  %v1508_v47 = vld [vmem:[%s7094_s20 + $0x98] sm:$0xf] }
  0xdf   : > { %v928_v50 = vpop.permute.xlu1 %927 }
  0xe0   : > { %1029 = vst.msk [vmem:[#allocation2 + $0xac] sm:$0xf] %vm985_vm7, %v928_v50  ;;  %v926_v52 = vpop.permute.xlu0 %925 }
  0xe1   : > { %1028 = vst.msk [vmem:[#allocation2 + $0xa8] sm:$0xf] %vm985_vm7, %v926_v52  ;;  %1579 = vrot.lane.b32.xlu1 %v1478_v49, %s7043_s23  ;;  %v1507_v49 = vld [vmem:[%s7094_s20 + $0x94] sm:$0xf] }
  0xe2   : > { %1577 = vrot.lane.b32.xlu0 %v1477_v51, %s7043_s23  ;;  %v1510_v51 = vld [vmem:[%s7094_s20 + $0xa0] sm:$0xf] }
  0xe3   : > { %v932_v54 = vpop.permute.xlu1 %931 }
  0xe4   : > { %1031 = vst.msk [vmem:[#allocation2 + $0xb4] sm:$0xf] %vm985_vm7, %v932_v54  ;;  %v930_v57 = vpop.permute.xlu0 %929 }
  0xe5   : > { %1030 = vst.msk [vmem:[#allocation2 + $0xb0] sm:$0xf] %vm985_vm7, %v930_v57  ;;  %1583 = vrot.lane.b32.xlu1 %v1480_v53, %s7043_s23  ;;  %v1509_v53 = vld [vmem:[%s7094_s20 + $0x9c] sm:$0xf]  ;;  %v1512_v57 = vld [vmem:[%s7094_s20 + $0xa8] sm:$0xf] }
  0xe6   : > { %1581 = vrot.lane.b32.xlu0 %v1479_v55, %s7043_s23  ;;  %v1763_v55 = vld [vmem:[%s7094_s20 + $0x10] sm:$0xf] }
  0xe7   : > { %v936_v59 = vpop.permute.xlu1 %935 }
  0xe8   : > { %1033 = vst.msk [vmem:[#allocation2 + $0xbc] sm:$0xf] %vm985_vm7, %v936_v59  ;;  %v934_v60 = vpop.permute.xlu0 %933 }
  0xe9   : > { %1032 = vst.msk [vmem:[#allocation2 + $0xb8] sm:$0xf] %vm985_vm7, %v934_v60  ;;  %1587 = vrot.lane.b32.xlu1 %v1482_v58, %s7043_s23  ;;  %v1762_v58 = vld [vmem:[%s7094_s20 + $0xc] sm:$0xf]  ;;  %v1765_v60 = vld [vmem:[%s7094_s20 + $0x18] sm:$0xf] }
  0xea   : > { %1585 = vrot.lane.b32.xlu0 %v1481_v61, %s7043_s23  ;;  %v1511_v61 = vld [vmem:[%s7094_s20 + $0xa4] sm:$0xf] }
  0xeb   : > { %v1283_v63 = vpop.permute.xlu1 %1282 }
  0xec   : > { %1426 = vst.msk [vmem:[#allocation2 + $0x4] sm:$0xf] %vm1424_vm8, %v1283_v63  ;;  %v1281_v1 = vpop.permute.xlu0 %1280  ;;  %v1821_v63 = vshll.u32 %v1763_v55, 16 }
  0xed   : > { %1425 = vst.msk [vmem:[#allocation2] sm:$0xf] %vm1424_vm8, %v1281_v1  ;;  %1591 = vrot.lane.b32.xlu1 %v1484_v62, %s7043_s23  ;;  %v1812_v1 = vshrl.u32 %v1762_v58, 16 }
  0xee   : > { %1589 = vrot.lane.b32.xlu0 %v1483_v0, %s7043_s23  ;;  %v1825_v0 = vshrl.u32 %v1763_v55, 16 }
  0xef   : > { %v1287_v3 = vpop.permute.xlu1 %1286 }
  0xf0   : > { %1428 = vst.msk [vmem:[#allocation2 + $0xc] sm:$0xf] %vm1424_vm8, %v1287_v3  ;;  %v1285_v5 = vpop.permute.xlu0 %1284  ;;  %v1514_v3 = vld [vmem:[%s7094_s20 + $0xb0] sm:$0xf] }
  0xf1   : > { %1427 = vst.msk [vmem:[#allocation2 + $0x8] sm:$0xf] %vm1424_vm8, %v1285_v5  ;;  %1595 = vrot.lane.b32.xlu1 %v1486_v2, %s7043_s23  ;;  %v1815_v2 = vshll.u32 %v1762_v58, 16  ;;  %v1841_v5 = vshll.u32 %v1765_v60, 16 }
  0xf2   : > { %1593 = vrot.lane.b32.xlu0 %v1485_v4, %s7043_s23  ;;  %v1764_v4 = vld [vmem:[%s7094_s20 + $0x14] sm:$0xf] }
  0xf3   : > { %v1291_v8 = vpop.permute.xlu1 %1290 }
  0xf4   : > { %1430 = vst.msk [vmem:[#allocation2 + $0x14] sm:$0xf] %vm1424_vm8, %v1291_v8  ;;  %v1289_v10 = vpop.permute.xlu0 %1288 }
  0xf5   : > { %1429 = vst.msk [vmem:[#allocation2 + $0x10] sm:$0xf] %vm1424_vm8, %v1289_v10  ;;  %1599 = vrot.lane.b32.xlu1 %v1488_v6, %s7043_s23  ;;  %v1845_v6 = vshrl.u32 %v1765_v60, 16  ;;  %v1766_v10 = vld [vmem:[%s7094_s20 + $0x1c] sm:$0xf] }
  0xf6   : > { %1597 = vrot.lane.b32.xlu0 %v1487_v9, %s7043_s23  ;;  %v1513_v9 = vld [vmem:[%s7094_s20 + $0xac] sm:$0xf] }
  0xf7   : > { %v1295_v12 = vpop.permute.xlu1 %1294 }
  0xf8   : > { %1432 = vst.msk [vmem:[#allocation2 + $0x1c] sm:$0xf] %vm1424_vm8, %v1295_v12  ;;  %v1293_v14 = vpop.permute.xlu0 %1292  ;;  %v7839_v12 = vrot.slane %v1821_v63, 5 }
  0xf9   : > { %1431 = vst.msk [vmem:[#allocation2 + $0x18] sm:$0xf] %vm1424_vm8, %v1293_v14  ;;  %1603 = vrot.lane.b32.xlu1 %v1490_v11, %s7043_s23  ;;  %v1767_v14 = vld [vmem:[%s7094_s20 + $0x20] sm:$0xf] }
  0xfa   : > { %1601 = vrot.lane.b32.xlu0 %v1489_v13, %s7043_s23  ;;  %v1827_v13 = vrot.slane %v1825_v0, 4 }
  0xfb   : > { %v1299_v16 = vpop.permute.xlu1 %1298 }
  0xfc   : > { %1434 = vst.msk [vmem:[#allocation2 + $0x24] sm:$0xf] %vm1424_vm8, %v1299_v16  ;;  %v1297_v18 = vpop.permute.xlu0 %1296  ;;  %v1835_v16 = vshrl.u32 %v1764_v4, 16 }
  0xfd   : > { %1433 = vst.msk [vmem:[#allocation2 + $0x20] sm:$0xf] %vm1424_vm8, %v1297_v18  ;;  %1607 = vrot.lane.b32.xlu1 %v1492_v15, %s7043_s23  ;;  %v1831_v15 = vshll.u32 %v1764_v4, 16  ;;  %v1817_v18 = vrot.slane %v1815_v2, 5 }
  0xfe   : > { %1605 = vrot.lane.b32.xlu0 %v1491_v17, %s7043_s23  ;;  %v1814_v17 = vrot.slane %v1812_v1, 4 }
  0xff   : > { %v1303_v20 = vpop.permute.xlu1 %1302 }
 0x100   : > { %1436 = vst.msk [vmem:[#allocation2 + $0x2c] sm:$0xf] %vm1424_vm8, %v1303_v20  ;;  %v1301_v22 = vpop.permute.xlu0 %1300  ;;  %v7846_v20 = vrot.slane %v1841_v5, 5 }
 0x101   : > { %1435 = vst.msk [vmem:[#allocation2 + $0x28] sm:$0xf] %vm1424_vm8, %v1301_v22  ;;  %1611 = vrot.lane.b32.xlu1 %v1494_v19, %s7043_s23  ;;  %v1516_v19 = vld [vmem:[%s7094_s20 + $0xb8] sm:$0xf]  ;;  %v1851_v22 = vshll.u32 %v1766_v10, 16 }
 0x102   : > { %1609 = vrot.lane.b32.xlu0 %v1493_v21, %s7043_s23  ;;  %v1847_v21 = vrot.slane %v1845_v6, 4 }
 0x103   : > { %v1307_v26 = vpop.permute.xlu1 %1306 }
 0x104   : > { %1438 = vst.msk [vmem:[#allocation2 + $0x34] sm:$0xf] %vm1424_vm8, %v1307_v26  ;;  %v1305_v7 = vpop.permute.xlu0 %1304 }
 0x105   : > { %1437 = vst.msk [vmem:[#allocation2 + $0x30] sm:$0xf] %vm1424_vm8, %v1305_v7  ;;  %1615 = vrot.lane.b32.xlu1 %v1496_v23, %s7043_s23  ;;  %v1855_v23 = vshrl.u32 %v1766_v10, 16  ;;  %v1861_v7 = vshll.u32 %v1767_v14, 16 }
 0x106   : > { %1613 = vrot.lane.b32.xlu0 %v1495_v25, %s7043_s23  ;;  %v1515_v25 = vld [vmem:[%s7094_s20 + $0xb4] sm:$0xf] }
 0x107   : > { %v1311_v29 = vpop.permute.xlu1 %1310 }
 0x108   : > { %1440 = vst.msk [vmem:[#allocation2 + $0x3c] sm:$0xf] %vm1424_vm8, %v1311_v29  ;;  %v1309_v31 = vpop.permute.xlu0 %1308 }
 0x109   : > { %1439 = vst.msk [vmem:[#allocation2 + $0x38] sm:$0xf] %vm1424_vm8, %v1309_v31  ;;  %1619 = vrot.lane.b32.xlu1 %v1498_v28, %s7043_s23  ;;  %v1865_v28 = vshrl.u32 %v1767_v14, 16  ;;  %v1828_v31 = vor.u32 %v1827_v13, %v7839_v12 }
 0x10a   : > { %1617 = vrot.lane.b32.xlu0 %v1497_v30, %s7043_s23  ;;  %v1768_v30 = vld [vmem:[%s7094_s20 + $0x24] sm:$0xf] }
 0x10b   : > { %v1315_v33 = vpop.permute.xlu1 %1314 }
 0x10c   : > { %1442 = vst.msk [vmem:[#allocation2 + $0x44] sm:$0xf] %vm1424_vm8, %v1315_v33  ;;  %v1313_v34 = vpop.permute.xlu0 %1312  ;;  %v1818_v33 = vor.u32 %v1817_v18, %v1814_v17  ;;  %v1774_v18 = vld [vmem:[%s7094_s20 + $0x3c] sm:$0xf] }
 0x10d   : > { %1441 = vst.msk [vmem:[#allocation2 + $0x40] sm:$0xf] %vm1424_vm8, %v1313_v34  ;;  %1623 = vrot.lane.b32.xlu1 %v1500_v32, %s7043_s23  ;;  %v7854_v32 = vrot.slane %v1831_v15, 5  ;;  %v1518_v34 = vld [vmem:[%s7094_s20 + $0xc0] sm:$0xf] }
 0x10e   : > { %1621 = vrot.lane.b32.xlu0 %v1499_v24, %s7043_s23  ;;  %v1769_v24 = vld [vmem:[%s7094_s20 + $0x28] sm:$0xf] }
 0x10f   : > { %v1319_v36 = vpop.permute.xlu1 %1318 }
 0x110   : > { %1444 = vst.msk [vmem:[#allocation2 + $0x4c] sm:$0xf] %vm1424_vm8, %v1319_v36  ;;  %v1317_v39 = vpop.permute.xlu0 %1316  ;;  %v7860_v36 = vrot.slane %v1851_v22, 5 }
 0x111   : > { %1443 = vst.msk [vmem:[#allocation2 + $0x48] sm:$0xf] %vm1424_vm8, %v1317_v39  ;;  %1627 = vrot.lane.b32.xlu1 %v1502_v35, %s7043_s23  ;;  %v1848_v35 = vor.u32 %v1847_v21, %v7846_v20  ;;  %v1857_v39 = vrot.slane %v1855_v23, 4 }
 0x112   : > { %1625 = vrot.lane.b32.xlu0 %v1501_v37, %s7043_s23  ;;  %v1837_v37 = vrot.slane %v1835_v16, 4 }
 0x113   : > { %v1323_v41 = vpop.permute.xlu1 %1322 }
 0x114   : > { %1446 = vst.msk [vmem:[#allocation2 + $0x54] sm:$0xf] %vm1424_vm8, %v1323_v41  ;;  %v1321_v44 = vpop.permute.xlu0 %1320  ;;  %v1517_v41 = vld [vmem:[%s7094_s20 + $0xbc] sm:$0xf] }
 0x115   : > { %1445 = vst.msk [vmem:[#allocation2 + $0x50] sm:$0xf] %vm1424_vm8, %v1321_v44  ;;  %1631 = vrot.lane.b32.xlu1 %v1504_v40, %s7043_s23  ;;  %v1867_v44 = vrot.slane %v1865_v28, 4 }
 0x116   : > { %1629 = vrot.lane.b32.xlu0 %v1503_v43, %s7043_s23  ;;  %v7863_v43 = vrot.slane %v1861_v7, 5 }
 0x117   : > { %v1327_v42 = vpop.permute.xlu1 %1326 }
 0x118   : > { %1448 = vst.msk [vmem:[#allocation2 + $0x5c] sm:$0xf] %vm1424_vm8, %v1327_v42  ;;  %v1325_v46 = vpop.permute.xlu0 %1324  ;;  %v1875_v42 = vshrl.u32 %v1768_v30, 16  ;;  %v1868_v58 = vor.u32 %v1867_v44, %v7863_v43  ;;  %v1776_v44 = vld [vmem:[%s7094_s20 + $0x44] sm:$0xf] }
 0x119   : > { %1447 = vst.msk [vmem:[#allocation2 + $0x58] sm:$0xf] %vm1424_vm8, %v1325_v46  ;;  %1635 = vrot.lane.b32.xlu1 %v1506_v45, %s7043_s23  ;;  %v1871_v45 = vshll.u32 %v1768_v30, 16  ;;  %v1881_v46 = vshll.u32 %v1769_v24, 16 }
 0x11a   : > { %1633 = vrot.lane.b32.xlu0 %v1505_v38, %s7043_s23  ;;  %v1877_v60 = vrot.slane %v1875_v42, 4  ;;  %v1869_v16 = vrot.slane %v1868_v58, 4 }
 0x11b   : > { %v1331_v48 = vpop.permute.xlu1 %1330  ;;  %v7880_v0 = vrot.slane %v1881_v46, 5  ;;  %v1777_v46 = vld [vmem:[%s7094_s20 + $0x48] sm:$0xf] }
 0x11c   : > { %1450 = vst.msk [vmem:[#allocation2 + $0x64] sm:$0xf] %vm1424_vm8, %v1331_v48  ;;  %v1329_v50 = vpop.permute.xlu0 %1328  ;;  %v1520_v48 = vld [vmem:[%s7094_s20 + $0xc8] sm:$0xf]  ;;  %v1965_v58 = vshrl.u32 %v1777_v46, 16 }
 0x11d   : > { %1449 = vst.msk [vmem:[#allocation2 + $0x60] sm:$0xf] %vm1424_vm8, %v1329_v50  ;;  %1639 = vrot.lane.b32.xlu1 %v1508_v47, %s7043_s23  ;;  %v1885_v47 = vshrl.u32 %v1769_v24, 16  ;;  %v1829_v50 = vrot.slane %v1828_v31, 4 }
 0x11e   : > { %1637 = vrot.lane.b32.xlu0 %v1507_v49, %s7043_s23  ;;  %v1770_v49 = vld [vmem:[%s7094_s20 + $0x2c] sm:$0xf] }
 0x11f   : > { %v1335_v52 = vpop.permute.xlu1 %1334  ;;  %v1887_v1 = vrot.slane %v1885_v47, 4  ;;  %v1891_v2 = vshll.u32 %v1770_v49, 16  ;;  %v1834_v6 = vsel %vm7105_vm2, %v1829_v50, %v7854_v32 }
 0x120   : > { %1452 = vst.msk [vmem:[#allocation2 + $0x6c] sm:$0xf] %vm1424_vm8, %v1335_v52  ;;  %v1333_v54 = vpop.permute.xlu0 %1332  ;;  %v1849_v52 = vrot.slane %v1848_v35, 4 }
 0x121   : > { %1451 = vst.msk [vmem:[#allocation2 + $0x68] sm:$0xf] %vm1424_vm8, %v1333_v54  ;;  %1643 = vrot.lane.b32.xlu1 %v1510_v51, %s7043_s23  ;;  %v1819_v51 = vrot.slane %v1818_v33, 4  ;;  %v1771_v54 = vld [vmem:[%s7094_s20 + $0x30] sm:$0xf]  ;;  %v1888_v21 = vor.u32 %v1887_v1, %v7880_v0  ;;  %v7898_v22 = vrot.slane %v1891_v2, 5 }
 0x122   : > { %1641 = vrot.lane.b32.xlu0 %v1509_v53, %s7043_s23  ;;  %v1838_v53 = vor.u32 %v1837_v37, %v7854_v32  ;;  %v1901_v4 = vshll.u32 %v1771_v54, 16  ;;  %v1905_v5 = vshrl.u32 %v1771_v54, 16  ;;  %v1854_v14 = vsel %vm7105_vm2, %v1849_v52, %v7860_v36 }
 0x123   : > { %v1339_v59 = vpop.permute.xlu1 %1338  ;;  %v1931_v32 = vshll.u32 %v1774_v18, 16  ;;  %v1935_v33 = vshrl.u32 %v1774_v18, 16  ;;  %v1955_v54 = vshrl.u32 %v1776_v44, 16 }
 0x124   : > { %1454 = vst.msk [vmem:[#allocation2 + $0x74] sm:$0xf] %vm1424_vm8, %v1339_v59  ;;  %v1337_v62 = vpop.permute.xlu0 %1336  ;;  %v7875_v59 = vrot.slane %v1871_v45, 5  ;;  %v1839_v15 = vrot.slane %v1838_v53, 4  ;;  %v1907_v7 = vrot.slane %v1905_v5, 4  ;;  %v1951_v53 = vshll.u32 %v1776_v44, 16 }
 0x125   : > { %1453 = vst.msk [vmem:[#allocation2 + $0x70] sm:$0xf] %vm1424_vm8, %v1337_v62  ;;  %1647 = vrot.lane.b32.xlu1 %v1512_v57, %s7043_s23  ;;  %v1519_v57 = vld [vmem:[%s7094_s20 + $0xc4] sm:$0xf]  ;;  %v1773_v62 = vld [vmem:[%s7094_s20 + $0x38] sm:$0xf] }
 0x126   : > { %1645 = vrot.lane.b32.xlu0 %v1511_v61, %s7043_s23  ;;  %v1858_v61 = vor.u32 %v1857_v39, %v7860_v36  ;;  %v1921_v10 = vshll.u32 %v1773_v62, 16  ;;  %v1874_v39 = vsel %vm7105_vm2, %v1869_v16, %v7875_v59 }
 0x127   : > { %v1343_v8 = vpop.permute.xlu1 %1342 }
 0x128   : > { %1456 = vst.msk [vmem:[#allocation2 + $0x7c] sm:$0xf] %vm1424_vm8, %v1343_v8  ;;  %v1341_v11 = vpop.permute.xlu0 %1340  ;;  %v1824_v8 = vsel %vm7105_vm2, %v1819_v51, %v7839_v12  ;;  %v1859_v17 = vrot.slane %v1858_v61, 4  ;;  %v1878_v12 = vor.u32 %v1877_v60, %v7875_v59  ;;  %v7907_v30 = vrot.slane %v1921_v10, 5  ;;  %v1778_v60 = vld [vmem:[%s7094_s20 + $0x4c] sm:$0xf] }
 0x129   : > { %1455 = vst.msk [vmem:[#allocation2 + $0x78] sm:$0xf] %vm1424_vm8, %v1341_v11  ;;  %1651 = vrot.lane.b32.xlu1 %v1514_v3, %s7043_s23  ;;  %v1895_v3 = vshrl.u32 %v1770_v49, 16  ;;  %v1925_v11 = vshrl.u32 %v1773_v62, 16  ;;  %v1937_v49 = vrot.slane %v1935_v33, 4 }
 0x12a   : > { %1649 = vrot.lane.b32.xlu0 %v1513_v9, %s7043_s23  ;;  %v1772_v9 = vld [vmem:[%s7094_s20 + $0x34] sm:$0xf] }
 0x12b   : > { %v1347_v26 = vpop.permute.xlu1 %1346  ;;  %v1897_v23 = vrot.slane %v1895_v3, 4  ;;  %v1911_v28 = vshll.u32 %v1772_v9, 16  ;;  %v1927_v31 = vrot.slane %v1925_v11, 4  ;;  %v1779_v3 = vld [vmem:[%s7094_s20 + $0x50] sm:$0xf] }
 0x12c   : > { %1458 = vst.msk [vmem:[#allocation2 + $0x84] sm:$0xf] %vm1424_vm8, %v1347_v26  ;;  %v1345_v29 = vpop.permute.xlu0 %1344  ;;  %v1775_v26 = vld [vmem:[%s7094_s20 + $0x40] sm:$0xf]  ;;  %v1985_v18 = vshrl.u32 %v1779_v3, 16 }
 0x12d   : > { %1457 = vst.msk [vmem:[#allocation2 + $0x80] sm:$0xf] %vm1424_vm8, %v1345_v29  ;;  %1655 = vrot.lane.b32.xlu1 %v1516_v19, %s7043_s23  ;;  %v1915_v29 = vshrl.u32 %v1772_v9, 16  ;;  %v1941_v35 = vshll.u32 %v1775_v26, 16  ;;  %v1945_v36 = vshrl.u32 %v1775_v26, 16  ;;  %v7923_v42 = vrot.slane %v1911_v28, 5 }
 0x12e   : > { %1653 = vrot.lane.b32.xlu0 %v1515_v25, %s7043_s23  ;;  %v7904_v25 = vrot.slane %v1901_v4, 5  ;;  %v1928_v47 = vor.u32 %v1927_v31, %v7907_v30  ;;  %v1781_v9 = vld [vmem:[%s7094_s20 + $0x58] sm:$0xf] }
 0x12f   : > { %v1351_v40 = vpop.permute.xlu1 %1350  ;;  %v7931_v51 = vrot.slane %v1941_v35, 5  ;;  %v1947_v52 = vrot.slane %v1945_v36, 4  ;;  %v1783_v35 = vld [vmem:[%s7094_s20 + $0x60] sm:$0xf] }
 0x130   : > { %1460 = vst.msk [vmem:[#allocation2 + $0x8c] sm:$0xf] %vm1424_vm8, %v1351_v40  ;;  %v1349_v38 = vpop.permute.xlu0 %1348  ;;  %v1864_v40 = vsel %vm7105_vm2, %v1859_v17, %v7863_v43  ;;  %v1908_v45 = vor.u32 %v1907_v7, %v7904_v25  ;;  %v1917_v43 = vrot.slane %v1915_v29, 4  ;;  %v1929_v1 = vrot.slane %v1928_v47, 4  ;;  %v1782_v29 = vld [vmem:[%s7094_s20 + $0x5c] sm:$0xf] }
 0x131   : > { %1459 = vst.msk [vmem:[#allocation2 + $0x88] sm:$0xf] %vm1424_vm8, %v1349_v38  ;;  %1659 = vrot.lane.b32.xlu1 %v1518_v34, %s7043_s23  ;;  %v1844_v34 = vsel %vm7105_vm2, %v1839_v15, %v7846_v20  ;;  %v1889_v20 = vrot.slane %v1888_v21, 4  ;;  %v1898_v38 = vor.u32 %v1897_v23, %v7898_v22  ;;  %v1948_v5 = vor.u32 %v1947_v52, %v7931_v51  ;;  %v1780_v21 = vld [vmem:[%s7094_s20 + $0x54] sm:$0xf] }
 0x132   : > { %1657 = vrot.lane.b32.xlu0 %v1517_v41, %s7043_s23  ;;  %v1879_v41 = vrot.slane %v1878_v12, 4  ;;  %v1918_v2 = vor.u32 %v1917_v43, %v7923_v42  ;;  %v1975_v15 = vshrl.u32 %v1778_v60, 16  ;;  %v1981_v17 = vshll.u32 %v1779_v3, 16  ;;  %v1784_v52 = vld [vmem:[%s7094_s20 + $0x64] sm:$0xf] }
 0x133   : > { %v1355_v55 = vpop.permute.xlu1 %1354  ;;  %v1899_v61 = vrot.slane %v1898_v38, 4  ;;  %v1894_v62 = vsel %vm7105_vm2, %v1889_v20, %v7898_v22  ;;  %v2001_v22 = vshll.u32 %v1781_v9, 16  ;;  %v2005_v12 = vshrl.u32 %v1781_v9, 16 }
 0x134   : > { %1462 = vst.msk [vmem:[#allocation2 + $0x94] sm:$0xf] %vm1424_vm8, %v1355_v55  ;;  %v1353_v63 = vpop.permute.xlu0 %1352  ;;  %v1884_v59 = vsel %vm7105_vm2, %v1879_v41, %v7880_v0  ;;  %v1919_v7 = vrot.slane %v1918_v2, 4  ;;  %v7976_v36 = vrot.slane %v1981_v17, 5  ;;  %v2011_v20 = vshll.u32 %v1782_v29, 16 }
 0x135   : > { %1461 = vst.msk [vmem:[#allocation2 + $0x90] sm:$0xf] %vm1424_vm8, %v1353_v63  ;;  %1663 = vrot.lane.b32.xlu1 %v1520_v48, %s7043_s23  ;;  %v7929_v48 = vrot.slane %v1931_v32, 5  ;;  %v1909_v63 = vrot.slane %v1908_v45, 4  ;;  %v1904_v16 = vsel %vm7105_vm2, %v1899_v61, %v7904_v25  ;;  %v1949_v25 = vrot.slane %v1948_v5, 4 }
 0x136   : > { %1661 = vrot.lane.b32.xlu0 %v1519_v57, %s7043_s23  ;;  %v1961_v57 = vshll.u32 %v1777_v46, 16  ;;  %v7979_v41 = vrot.slane %v2001_v22, 5  ;;  %v2007_v44 = vrot.slane %v2005_v12, 4  ;;  %v2015_v45 = vshrl.u32 %v1782_v29, 16 }
 0x137   : > { %v1359_v13 = vpop.permute.xlu1 %1358  ;;  %v1938_v0 = vor.u32 %v1937_v49, %v7929_v48  ;;  %v1934_v26 = vsel %vm7105_vm2, %v1929_v1, %v7929_v48  ;;  %v1924_v38 = vsel %vm7105_vm2, %v1919_v7, %v7907_v30  ;;  %v2021_v46 = vshll.u32 %v1783_v35, 16 }
 0x138   : > { %1464 = vst.msk [vmem:[#allocation2 + $0x9c] sm:$0xf] %vm1424_vm8, %v1359_v13  ;;  %v1357_v19 = vpop.permute.xlu0 %1356  ;;  %v7952_v11 = vrot.slane %v1961_v57, 5  ;;  %v1967_v13 = vrot.slane %v1965_v58, 4  ;;  %v2025_v47 = vshrl.u32 %v1783_v35, 16  ;;  %v2008_v58 = vor.u32 %v2007_v44, %v7979_v41 }
 0x139   : > { %1463 = vst.msk [vmem:[#allocation2 + $0x98] sm:$0xf] %vm1424_vm8, %v1357_v19  ;;  %2297 = vrot.lane.b32.xlu1 %v1834_v6, %s7044_s24  ;;  %v7947_v6 = vrot.slane %v1951_v53, 5  ;;  %v1914_v19 = vsel %vm7105_vm2, %v1909_v63, %v7923_v42  ;;  %v1939_v28 = vrot.slane %v1938_v0, 4  ;;  %v1785_v57 = vld [vmem:[%s7094_s20 + $0x68] sm:$0xf] }
 0x13a   : > { %2295 = vrot.lane.b32.xlu0 %v1824_v8, %s7044_s24  ;;  %v1957_v8 = vrot.slane %v1955_v54, 4  ;;  %v1968_v32 = vor.u32 %v1967_v13, %v7952_v11  ;;  %v2017_v61 = vrot.slane %v2015_v45, 4  ;;  %v2027_v63 = vrot.slane %v2025_v47, 4 }
 0x13b   : > { %v1363_v24 = vpop.permute.xlu1 %1362  ;;  %v1954_v43 = vsel %vm7105_vm2, %v1949_v25, %v7947_v6  ;;  %v1944_v49 = vsel %vm7105_vm2, %v1939_v28, %v7931_v51  ;;  %v2031_v1 = vshll.u32 %v1784_v52, 16  ;;  %v2035_v2 = vshrl.u32 %v1784_v52, 16 }
 0x13c   : > { %1466 = vst.msk [vmem:[#allocation2 + $0xa4] sm:$0xf] %vm1424_vm8, %v1363_v24  ;;  %v1361_v37 = vpop.permute.xlu0 %1360  ;;  %v1958_v24 = vor.u32 %v1957_v8, %v7947_v6  ;;  %v1969_v30 = vrot.slane %v1968_v32, 4  ;;  %v2045_v5 = vshrl.u32 %v1785_v57, 16  ;;  %v1786_v8 = vld [vmem:[%s7094_s20 + $0x6c] sm:$0xf] }
 0x13d   : > { %1465 = vst.msk [vmem:[#allocation2 + $0xa0] sm:$0xf] %vm1424_vm8, %v1361_v37  ;;  %2301 = vrot.lane.b32.xlu1 %v1854_v14, %s7044_s24  ;;  %v1971_v14 = vshll.u32 %v1778_v60, 16  ;;  %v1987_v37 = vrot.slane %v1985_v18, 4  ;;  %v2009_v13 = vrot.slane %v2008_v58, 4  ;;  %v8016_v18 = vrot.slane %v2031_v1, 5 }
 0x13e   : > { %2299 = vrot.lane.b32.xlu0 %v1844_v34, %s7044_s24  ;;  %v1977_v34 = vrot.slane %v1975_v15, 4  ;;  %v1787_v15 = vld [vmem:[%s7094_s20 + $0x70] sm:$0xf]  ;;  %v2047_v12 = vrot.slane %v2045_v5, 4 }
 0x13f   : > { %v1367_v50 = vpop.permute.xlu1 %1366  ;;  %v7970_v33 = vrot.slane %v1971_v14, 5  ;;  %v1988_v53 = vor.u32 %v1987_v37, %v7976_v36  ;;  %v2061_v7 = vshll.u32 %v1787_v15, 16  ;;  %v2065_v25 = vshrl.u32 %v1787_v15, 16  ;;  %v1789_v37 = vld [vmem:[%s7094_s20 + $0x78] sm:$0xf] }
 0x140   : > { %1468 = vst.msk [vmem:[#allocation2 + $0xac] sm:$0xf] %vm1424_vm8, %v1367_v50  ;;  %v1365_v55 = vpop.permute.xlu0 %1364  ;;  %v1959_v50 = vrot.slane %v1958_v24, 4 }
 0x141   : > { %1467 = vst.msk [vmem:[#allocation2 + $0xa8] sm:$0xf] %vm1424_vm8, %v1365_v55  ;;  %2305 = vrot.lane.b32.xlu1 %v1874_v39, %s7044_s24  ;;  %v1991_v39 = vshll.u32 %v1780_v21, 16  ;;  %v1978_v55 = vor.u32 %v1977_v34, %v7970_v33  ;;  %v1974_v6 = vsel %vm7105_vm2, %v1969_v30, %v7970_v33  ;;  %v1989_v9 = vrot.slane %v1988_v53, 4 }
 0x142   : > { %2303 = vrot.lane.b32.xlu0 %v1864_v40, %s7044_s24  ;;  %v1995_v40 = vshrl.u32 %v1780_v21, 16  ;;  %v1964_v0 = vsel %vm7105_vm2, %v1959_v50, %v7952_v11  ;;  %v2037_v21 = vrot.slane %v2035_v2, 4 }
 0x143   : > { %v1371_v4 = vpop.permute.xlu1 %1370  ;;  %v1993_v54 = vrot.slane %v1991_v39, 5  ;;  %v1790_v39 = vld [vmem:[%s7094_s20 + $0x7c] sm:$0xf] }
 0x144   : > { %1470 = vst.msk [vmem:[#allocation2 + $0xb4] sm:$0xf] %vm1424_vm8, %v1371_v4  ;;  %v1369_v10 = vpop.permute.xlu0 %1368  ;;  %v1997_v51 = vrot.slane %v1995_v40, 4  ;;  %v2041_v4 = vshll.u32 %v1785_v57, 16  ;;  %v2038_v45 = vor.u32 %v2037_v21, %v8016_v18  ;;  %v2091_v50 = vshll.u32 %v1790_v39, 16 }
 0x145   : > { %1469 = vst.msk [vmem:[#allocation2 + $0xb0] sm:$0xf] %vm1424_vm8, %v1369_v10  ;;  %2309 = vrot.lane.b32.xlu1 %v1894_v62, %s7044_s24  ;;  %v8001_v62 = vrot.slane %v2021_v46, 5  ;;  %v1979_v10 = vrot.slane %v1978_v55, 4  ;;  %v1994_v28 = vsel %vm7105_vm2, %v1989_v9, %v1993_v54  ;;  %v2067_v46 = vrot.slane %v2065_v25, 4 }
 0x146   : > { %2307 = vrot.lane.b32.xlu0 %v1884_v59, %s7044_s24  ;;  %v7999_v59 = vrot.slane %v2011_v20, 5  ;;  %v1998_v14 = vor.u32 %v1997_v51, %v1993_v54  ;;  %v8020_v22 = vrot.slane %v2041_v4, 5  ;;  %v2095_v52 = vshrl.u32 %v1790_v39, 16 }
 0x147   : > { %v1375_v23 = vpop.permute.xlu1 %1374  ;;  %v2028_v17 = vor.u32 %v2027_v63, %v8001_v62  ;;  %v1984_v33 = vsel %vm7105_vm2, %v1979_v10, %v7976_v36  ;;  %v8044_v36 = vrot.slane %v2061_v7, 5 }
 0x148   : > { %1472 = vst.msk [vmem:[#allocation2 + $0xbc] sm:$0xf] %vm1424_vm8, %v1375_v23  ;;  %v1373_v31 = vpop.permute.xlu0 %1372  ;;  %v2051_v23 = vshll.u32 %v1786_v8, 16  ;;  %v1999_v29 = vrot.slane %v1998_v14, 4  ;;  %v2014_v24 = vsel %vm7105_vm2, %v2009_v13, %v7999_v59  ;;  %v2048_v44 = vor.u32 %v2047_v12, %v8020_v22 }
 0x149   : > { %1471 = vst.msk [vmem:[#allocation2 + $0xb8] sm:$0xf] %vm1424_vm8, %v1373_v31  ;;  %2313 = vrot.lane.b32.xlu1 %v1914_v19, %s7044_s24  ;;  %v2018_v19 = vor.u32 %v2017_v61, %v7999_v59  ;;  %v1788_v31 = vld [vmem:[%s7094_s20 + $0x74] sm:$0xf]  ;;  %v2029_v34 = vrot.slane %v2028_v17, 4  ;;  %v2039_v61 = vrot.slane %v2038_v45, 4 }
 0x14a   : > { %2311 = vrot.lane.b32.xlu0 %v1904_v16, %s7044_s24  ;;  %v8038_v20 = vrot.slane %v2051_v23, 5  ;;  %v2071_v47 = vshll.u32 %v1788_v31, 16  ;;  %v2004_v53 = vsel %vm7105_vm2, %v1999_v29, %v7979_v41  ;;  %v2049_v51 = vrot.slane %v2048_v44, 4  ;;  %v1796_v44 = vld [vmem:[%s7094_s20 + $0x94] sm:$0xf] }
 0x14b   : > { %v1572_v42 = vpop.permute.xlu1 %1571  ;;  %v2019_v35 = vrot.slane %v2018_v19, 4  ;;  %v2034_v58 = vsel %vm7105_vm2, %v2029_v34, %v8016_v18  ;;  %v2068_v41 = vor.u32 %v2067_v46, %v8044_v36  ;;  %v2044_v18 = vsel %vm7105_vm2, %v2039_v61, %v8020_v22  ;;  %v1794_v19 = vld [vmem:[%s7094_s20 + $0x8c] sm:$0xf] }
 0x14c   : > { %1715 = vst.msk [vmem:[#allocation2 + $0x4] sm:$0xf] %vm1713_vm9, %v1572_v42  ;;  %v1570_v48 = vpop.permute.xlu0 %1569  ;;  %v2073_v63 = vrot.slane %v2071_v47, 5  ;;  %v2054_v17 = vsel %vm7105_vm2, %v2049_v51, %v8038_v20  ;;  %v2135_v34 = vshrl.u32 %v1794_v19, 16  ;;  %v1797_v47 = vld [vmem:[%s7094_s20 + $0x98] sm:$0xf] }
 0x14d   : > { %1714 = vst.msk [vmem:[#allocation2] sm:$0xf] %vm1713_vm9, %v1570_v48  ;;  %2317 = vrot.lane.b32.xlu1 %v1934_v26, %s7044_s24  ;;  %v2055_v26 = vshrl.u32 %v1786_v8, 16  ;;  %v2075_v48 = vshrl.u32 %v1788_v31, 16  ;;  %v2024_v59 = vsel %vm7105_vm2, %v2019_v35, %v8001_v62  ;;  %v8066_v62 = vrot.slane %v2091_v50, 5 }
 0x14e   : > { %2315 = vrot.lane.b32.xlu0 %v1924_v38, %s7044_s24  ;;  %v1791_v38 = vld [vmem:[%s7094_s20 + $0x80] sm:$0xf]  ;;  %v2069_v21 = vrot.slane %v2068_v41, 4 }
 0x14f   : > { %v1576_v60 = vpop.permute.xlu1 %1575  ;;  %v2057_v42 = vrot.slane %v2055_v26, 4  ;;  %v2101_v54 = vshll.u32 %v1791_v38, 16  ;;  %v2105_v55 = vshrl.u32 %v1791_v38, 16  ;;  %v2077_v2 = vrot.slane %v2075_v48, 4  ;;  %v1795_v26 = vld [vmem:[%s7094_s20 + $0x90] sm:$0xf] }
 0x150   : > { %1717 = vst.msk [vmem:[#allocation2 + $0xc] sm:$0xf] %vm1713_vm9, %v1576_v60  ;;  %v1574_v3 = vpop.permute.xlu0 %1573  ;;  %v1792_v60 = vld [vmem:[%s7094_s20 + $0x84] sm:$0xf]  ;;  %v2141_v35 = vshll.u32 %v1795_v26, 16  ;;  %v2074_v39 = vsel %vm7105_vm2, %v2069_v21, %v2073_v63 }
 0x151   : > { %1716 = vst.msk [vmem:[#allocation2 + $0x8] sm:$0xf] %vm1713_vm9, %v1574_v3  ;;  %2321 = vrot.lane.b32.xlu1 %v1954_v43, %s7044_s24  ;;  %v2081_v43 = vshll.u32 %v1789_v37, 16  ;;  %v2058_v1 = vor.u32 %v2057_v42, %v8038_v20  ;;  %v1793_v3 = vld [vmem:[%s7094_s20 + $0x88] sm:$0xf]  ;;  %v8068_v8 = vrot.slane %v2101_v54, 5  ;;  %v2078_v23 = vor.u32 %v2077_v2, %v2073_v63 }
 0x152   : > { %2319 = vrot.lane.b32.xlu0 %v1944_v49, %s7044_s24  ;;  %v2085_v49 = vshrl.u32 %v1789_v37, 16  ;;  %v2107_v9 = vrot.slane %v2105_v55, 4  ;;  %v2111_v10 = vshll.u32 %v1792_v60, 16  ;;  %v2115_v13 = vshrl.u32 %v1792_v60, 16  ;;  %v1798_v60 = vld [vmem:[%s7094_s20 + $0x9c] sm:$0xf] }
 0x153   : > { %v1580_v16 = vpop.permute.xlu1 %1579  ;;  %v8064_v4 = vrot.slane %v2081_v43, 5  ;;  %v2121_v15 = vshll.u32 %v1793_v3, 16  ;;  %v2145_v37 = vshrl.u32 %v1795_v26, 16  ;;  %v2079_v42 = vrot.slane %v2078_v23, 4 }
 0x154   : > { %1719 = vst.msk [vmem:[#allocation2 + $0x14] sm:$0xf] %vm1713_vm9, %v1580_v16  ;;  %v1578_v11 = vpop.permute.xlu0 %1577  ;;  %v2087_v5 = vrot.slane %v2085_v49, 4  ;;  %v2125_v16 = vshrl.u32 %v1793_v3, 16  ;;  %v2108_v25 = vor.u32 %v2107_v9, %v8068_v8  ;;  %v2117_v31 = vrot.slane %v2115_v13, 4 }
 0x155   : > { %1718 = vst.msk [vmem:[#allocation2 + $0x10] sm:$0xf] %vm1713_vm9, %v1578_v11  ;;  %2325 = vrot.lane.b32.xlu1 %v1974_v6, %s7044_s24  ;;  %v2097_v6 = vrot.slane %v2095_v52, 4  ;;  %v2059_v11 = vrot.slane %v2058_v1, 4  ;;  %v2137_v52 = vrot.slane %v2135_v34, 4  ;;  %v2151_v54 = vshll.u32 %v1796_v44, 16 }
 0x156   : > { %2323 = vrot.lane.b32.xlu0 %v1964_v0, %s7044_s24  ;;  %v2088_v12 = vor.u32 %v2087_v5, %v8064_v4  ;;  %v2109_v38 = vrot.slane %v2108_v25, 4  ;;  %v2155_v55 = vshrl.u32 %v1796_v44, 16  ;;  %v2084_v61 = vsel %vm7105_vm2, %v2079_v42, %v8064_v4  ;;  %v1801_v13 = vld [vmem:[%s7094_s20 + $0xa8] sm:$0xf]  ;;  %v1803_v34 = vld [vmem:[%s7094_s20 + $0xb0] sm:$0xf] }
 0x157   : > { %v1584_v32 = vpop.permute.xlu1 %1583  ;;  %v2098_v29 = vor.u32 %v2097_v6, %v8066_v62  ;;  %v2064_v45 = vsel %vm7105_vm2, %v2059_v11, %v8044_v36  ;;  %v8108_v36 = vrot.slane %v2141_v35, 5  ;;  %v1800_v6 = vld [vmem:[%s7094_s20 + $0xa4] sm:$0xf]  ;;  %v2201_v23 = vshll.u32 %v1801_v13, 16 }
 0x158   : > { %1721 = vst.msk [vmem:[#allocation2 + $0x1c] sm:$0xf] %vm1713_vm9, %v1584_v32  ;;  %v1582_v40 = vpop.permute.xlu0 %1581  ;;  %v8088_v32 = vrot.slane %v2121_v15, 5  ;;  %v2191_v21 = vshll.u32 %v1800_v6, 16  ;;  %v2195_v11 = vshrl.u32 %v1800_v6, 16  ;;  %v2205_v26 = vshrl.u32 %v1801_v13, 16 }
 0x159   : > { %1720 = vst.msk [vmem:[#allocation2 + $0x18] sm:$0xf] %vm1713_vm9, %v1582_v40  ;;  %2329 = vrot.lane.b32.xlu1 %v1994_v28, %s7044_s24  ;;  %v8084_v28 = vrot.slane %v2111_v10, 5  ;;  %v2089_v40 = vrot.slane %v2088_v12, 4  ;;  %v2099_v46 = vrot.slane %v2098_v29, 4  ;;  %v2157_v10 = vrot.slane %v2155_v55, 4 }
 0x15a   : > { %2327 = vrot.lane.b32.xlu0 %v1984_v33, %s7044_s24  ;;  %v2127_v33 = vrot.slane %v2125_v16, 4  ;;  %v2175_v16 = vshrl.u32 %v1798_v60, 16  ;;  %v1802_v29 = vld [vmem:[%s7094_s20 + $0xac] sm:$0xf]  ;;  %v2197_v44 = vrot.slane %v2195_v11, 4 }
 0x15b   : > { %v1588_v30 = vpop.permute.xlu1 %1587  ;;  %v2118_v50 = vor.u32 %v2117_v31, %v8084_v28  ;;  %v2114_v2 = vsel %vm7105_vm2, %v2109_v38, %v8084_v28  ;;  %v2104_v3 = vsel %vm7105_vm2, %v2099_v46, %v8068_v8  ;;  %v2171_v8 = vshll.u32 %v1798_v60, 16  ;;  %v1805_v55 = vld [vmem:[%s7094_s20 + $0xb8] sm:$0xf] }
 0x15c   : > { %1723 = vst.msk [vmem:[#allocation2 + $0x24] sm:$0xf] %vm1713_vm9, %v1588_v30  ;;  %v1586_v57 = vpop.permute.xlu0 %1585  ;;  %v2128_v43 = vor.u32 %v2127_v33, %v8088_v32  ;;  %v1799_v30 = vld [vmem:[%s7094_s20 + $0xa0] sm:$0xf]  ;;  %v2211_v42 = vshll.u32 %v1802_v29, 16  ;;  %v2215_v38 = vshrl.u32 %v1802_v29, 16 }
 0x15d   : > { %1722 = vst.msk [vmem:[#allocation2 + $0x20] sm:$0xf] %vm1713_vm9, %v1586_v57  ;;  %2333 = vrot.lane.b32.xlu1 %v2014_v24, %s7044_s24  ;;  %v2131_v24 = vshll.u32 %v1794_v19, 16  ;;  %v2094_v57 = vsel %vm7105_vm2, %v2089_v40, %v8066_v62  ;;  %v2181_v41 = vshll.u32 %v1799_v30, 16  ;;  %v2185_v63 = vshrl.u32 %v1799_v30, 16 }
 0x15e   : > { %2331 = vrot.lane.b32.xlu0 %v2004_v53, %s7044_s24  ;;  %v2147_v53 = vrot.slane %v2145_v37, 4  ;;  %v2129_v5 = vrot.slane %v2128_v43, 4  ;;  %v2119_v62 = vrot.slane %v2118_v50, 4  ;;  %v2173_v33 = vrot.slane %v2171_v8, 5  ;;  %v1808_v29 = vld [vmem:[%s7094_s20 + $0xc4] sm:$0xf] }
 0x15f   : > { %v1592_v0 = vpop.permute.xlu1 %1591  ;;  %v8102_v49 = vrot.slane %v2131_v24, 5  ;;  %v2187_v19 = vrot.slane %v2185_v63, 4  ;;  %v2177_v40 = vrot.slane %v2175_v16, 4  ;;  %v2221_v46 = vshll.u32 %v1803_v34, 16 }
 0x160   : > { %1725 = vst.msk [vmem:[#allocation2 + $0x2c] sm:$0xf] %vm1713_vm9, %v1592_v0  ;;  %v1590_v14 = vpop.permute.xlu0 %1589  ;;  %v2148_v4 = vor.u32 %v2147_v53, %v8108_v36  ;;  %v2153_v0 = vrot.slane %v2151_v54, 5  ;;  %v2124_v25 = vsel %vm7105_vm2, %v2119_v62, %v8088_v32 }
 0x161   : > { %1724 = vst.msk [vmem:[#allocation2 + $0x28] sm:$0xf] %vm1713_vm9, %v1590_v14  ;;  %2337 = vrot.lane.b32.xlu1 %v2034_v58, %s7044_s24  ;;  %v2161_v58 = vshll.u32 %v1797_v47, 16  ;;  %v2138_v9 = vor.u32 %v2137_v52, %v8102_v49  ;;  %v2178_v54 = vor.u32 %v2177_v40, %v2173_v33  ;;  %v8170_v60 = vrot.slane %v2221_v46, 5 }
 0x162   : > { %2335 = vrot.lane.b32.xlu0 %v2024_v59, %s7044_s24  ;;  %v2165_v59 = vshrl.u32 %v1797_v47, 16  ;;  %v2149_v31 = vrot.slane %v2148_v4, 4  ;;  %v2158_v24 = vor.u32 %v2157_v10, %v2153_v0  ;;  %v2225_v47 = vshrl.u32 %v1803_v34, 16  ;;  %v1807_v4 = vld [vmem:[%s7094_s20 + $0xc0] sm:$0xf] }
 0x163   : > { %v1596_v7 = vpop.permute.xlu1 %1595  ;;  %v8132_v14 = vrot.slane %v2161_v58, 5  ;;  %v2139_v28 = vrot.slane %v2138_v9, 4  ;;  %v2179_v6 = vrot.slane %v2178_v54, 4  ;;  %v2261_v11 = vshll.u32 %v1807_v4, 16 }
 0x164   : > { %1727 = vst.msk [vmem:[#allocation2 + $0x34] sm:$0xf] %vm1713_vm9, %v1596_v7  ;;  %v1594_v22 = vpop.permute.xlu0 %1593  ;;  %v2167_v15 = vrot.slane %v2165_v59, 4  ;;  %v2134_v7 = vsel %vm7105_vm2, %v2129_v5, %v8102_v49  ;;  %v1804_v49 = vld [vmem:[%s7094_s20 + $0xb4] sm:$0xf]  ;;  %v2159_v30 = vrot.slane %v2158_v24, 4 }
 0x165   : > { %1726 = vst.msk [vmem:[#allocation2 + $0x30] sm:$0xf] %vm1713_vm9, %v1594_v22  ;;  %2341 = vrot.lane.b32.xlu1 %v2054_v17, %s7044_s24  ;;  %v2144_v52 = vsel %vm7105_vm2, %v2139_v28, %v8108_v36  ;;  %v2213_v59 = vrot.slane %v2211_v42, 5  ;;  %v2227_v36 = vrot.slane %v2225_v47, 4  ;;  %v2235_v63 = vshrl.u32 %v1804_v49, 16 }
 0x166   : > { %2339 = vrot.lane.b32.xlu0 %v2044_v18, %s7044_s24  ;;  %v8134_v18 = vrot.slane %v2181_v41, 5  ;;  %v2168_v22 = vor.u32 %v2167_v15, %v8132_v14  ;;  %v2231_v41 = vshll.u32 %v1804_v49, 16  ;;  %v2164_v62 = vsel %vm7105_vm2, %v2159_v30, %v8132_v14  ;;  %v1806_v15 = vld [vmem:[%s7094_s20 + $0xbc] sm:$0xf] }
 0x167   : > { %v1600_v20 = vpop.permute.xlu1 %1599  ;;  %v2228_v8 = vor.u32 %v2227_v36, %v8170_v60 }
 0x168   : > { %1729 = vst.msk [vmem:[#allocation2 + $0x3c] sm:$0xf] %vm1713_vm9, %v1600_v20  ;;  %v1598_v48 = vpop.permute.xlu0 %1597  ;;  %v2188_v37 = vor.u32 %v2187_v19, %v8134_v18  ;;  %v8153_v20 = vrot.slane %v2201_v23, 5  ;;  %v2169_v43 = vrot.slane %v2168_v22, 4  ;;  %v2233_v14 = vrot.slane %v2231_v41, 5 }
 0x169   : > { %1728 = vst.msk [vmem:[#allocation2 + $0x38] sm:$0xf] %vm1713_vm9, %v1598_v48  ;;  %2345 = vrot.lane.b32.xlu1 %v2074_v39, %s7044_s24  ;;  %v8150_v39 = vrot.slane %v2191_v21, 5  ;;  %v2154_v48 = vsel %vm7105_vm2, %v2149_v31, %v2153_v0 }
 0x16a   : > { %2343 = vrot.lane.b32.xlu0 %v2064_v45, %s7044_s24  ;;  %v2207_v45 = vrot.slane %v2205_v26, 4  ;;  %v2189_v53 = vrot.slane %v2188_v37, 4  ;;  %v2184_v26 = vsel %vm7105_vm2, %v2179_v6, %v8134_v18 }
 0x16b   : > { %v1604_v51 = vpop.permute.xlu1 %1603 }
 0x16c   : > { %1731 = vst.msk [vmem:[#allocation2 + $0x44] sm:$0xf] %vm1713_vm9, %v1604_v51  ;;  %v1602_v1 = vpop.permute.xlu0 %1601  ;;  %v2208_v58 = vor.u32 %v2207_v45, %v8153_v20  ;;  %v2198_v51 = vor.u32 %v2197_v44, %v8150_v39  ;;  %v2194_v9 = vsel %vm7105_vm2, %v2189_v53, %v8150_v39  ;;  %v2271_v44 = vshll.u32 %v1808_v29, 16  ;;  %v1809_v53 = vld [vmem:[%s7094_s20 + $0xc8] sm:$0xf] }
 0x16d   : > { %1730 = vst.msk [vmem:[#allocation2 + $0x40] sm:$0xf] %vm1713_vm9, %v1602_v1  ;;  %2349 = vrot.lane.b32.xlu1 %v2094_v57, %s7044_s24  ;;  %v2174_v1 = vsel %vm7105_vm2, %v2169_v43, %v2173_v33  ;;  %v2229_v33 = vrot.slane %v2228_v8, 4  ;;  %v2281_v41 = vshll.u32 %v1809_v53, 16 }
 0x16e   : > { %2347 = vrot.lane.b32.xlu0 %v2084_v61, %s7044_s24  ;;  %v2217_v61 = vrot.slane %v2215_v38, 4  ;;  %v2209_v10 = vrot.slane %v2208_v58, 4  ;;  %v2199_v13 = vrot.slane %v2198_v51, 4  ;;  %v2273_v49 = vrot.slane %v2271_v44, 5 }
 0x16f   : > { %v1608_v17 = vpop.permute.xlu1 %1607 }
 0x170   : > { %1733 = vst.msk [vmem:[#allocation2 + $0x4c] sm:$0xf] %vm1713_vm9, %v1608_v17  ;;  %v1606_v12 = vpop.permute.xlu0 %1605  ;;  %v2218_v16 = vor.u32 %v2217_v61, %v2213_v59  ;;  %v2237_v17 = vrot.slane %v2235_v63, 4  ;;  %v2214_v31 = vsel %vm7105_vm2, %v2209_v10, %v2213_v59  ;;  %v2204_v22 = vsel %vm7105_vm2, %v2199_v13, %v8153_v20  ;;  %v2488_v61 = vld [vmem:[%s7094_s20 + $0xc] sm:$0xe] }
 0x171   : > { %1732 = vst.msk [vmem:[#allocation2 + $0x48] sm:$0xf] %vm1713_vm9, %v1606_v12  ;;  %2353 = vrot.lane.b32.xlu1 %v2114_v2, %s7044_s24  ;;  %v2241_v2 = vshll.u32 %v1805_v55, 16  ;;  %v2265_v12 = vshrl.u32 %v1807_v4, 16  ;;  %v2234_v20 = vsel %vm7105_vm2, %v2229_v33, %v2233_v14  ;;  %v3213_v10 = vld [vmem:[%s7094_s20 + $0x18] sm:$0xf] }
 0x172   : > { %2351 = vrot.lane.b32.xlu0 %v2104_v3, %s7044_s24  ;;  %v2245_v3 = vshrl.u32 %v1805_v55, 16  ;;  %v2219_v24 = vrot.slane %v2218_v16, 4  ;;  %v2238_v34 = vor.u32 %v2237_v17, %v2233_v14  ;;  %v3263_v16 = vshrl.u32 %v3213_v10, 16 }
 0x173   : > { %v1612_v35 = vpop.permute.xlu1 %1611  ;;  %v2243_v19 = vrot.slane %v2241_v2, 5  ;;  %v2267_v37 = vrot.slane %v2265_v12, 4  ;;  %v3266_v17 = vshll.u32 %v3213_v10, 16 }
 0x174   : > { %1735 = vst.msk [vmem:[#allocation2 + $0x54] sm:$0xf] %vm1713_vm9, %v1612_v35  ;;  %v1610_v32 = vpop.permute.xlu0 %1609  ;;  %v2247_v21 = vrot.slane %v2245_v3, 4  ;;  %v2263_v35 = vrot.slane %v2261_v11, 5  ;;  %v2224_v38 = vsel %vm7105_vm2, %v2219_v24, %v8170_v60  ;;  %v2239_v43 = vrot.slane %v2238_v34, 4 }
 0x175   : > { %1734 = vst.msk [vmem:[#allocation2 + $0x50] sm:$0xf] %vm1713_vm9, %v1610_v32  ;;  %2357 = vrot.lane.b32.xlu1 %v2134_v7, %s7044_s24  ;;  %v2251_v7 = vshll.u32 %v1806_v15, 16  ;;  %v2275_v32 = vshrl.u32 %v1808_v29, 16  ;;  %v2489_v60 = vld [vmem:[%s7094_s20 + $0x10] sm:$0xf] }
 0x176   : > { %2355 = vrot.lane.b32.xlu0 %v2124_v25, %s7044_s24  ;;  %v2255_v25 = vshrl.u32 %v1806_v15, 16  ;;  %v2248_v18 = vor.u32 %v2247_v21, %v2243_v19  ;;  %v2268_v47 = vor.u32 %v2267_v37, %v2263_v35  ;;  %v2244_v59 = vsel %vm7105_vm2, %v2239_v43, %v2243_v19  ;;  %v3215_v19 = vld [vmem:[%s7094_s20 + $0x20] sm:$0xf] }
 0x177   : > { %v1616_v50 = vpop.permute.xlu1 %1615  ;;  %v2253_v40 = vrot.slane %v2251_v7, 5  ;;  %v6429_v3 = vrot.slane %v2488_v61, 9  ;;  %v8247_v7 = vld [vmem:[%s7094_s20 + $0x1c] sm:$0xf]  ;;  %v3286_v29 = vshrl.u32 %v3215_v19, 16 }
 0x178   : > { %1737 = vst.msk [vmem:[#allocation2 + $0x5c] sm:$0xf] %vm1713_vm9, %v1616_v50  ;;  %v1614_v57 = vpop.permute.xlu0 %1613  ;;  %v2257_v45 = vrot.slane %v2255_v25, 4  ;;  %v2249_v46 = vrot.slane %v2248_v18, 4  ;;  %v2269_v55 = vrot.slane %v2268_v47, 4  ;;  %v2597_v37 = vrot.slane %v8247_v7, 5 }
 0x179   : > { %1736 = vst.msk [vmem:[#allocation2 + $0x58] sm:$0xf] %vm1713_vm9, %v1614_v57  ;;  %2361 = vrot.lane.b32.xlu1 %v2154_v48, %s7044_s24  ;;  %v2490_v57 = vld [vmem:[%s7094_s20 + $0x14] sm:$0xf] }
 0x17a   : > { %2359 = vrot.lane.b32.xlu0 %v2144_v52, %s7044_s24  ;;  %v2258_v50 = vor.u32 %v2257_v45, %v2253_v40  ;;  %v2277_v52 = vrot.slane %v2275_v32, 4  ;;  %v2254_v54 = vsel %vm7105_vm2, %v2249_v46, %v2253_v40  ;;  %v2274_v2 = vsel %vm7105_vm2, %v2269_v55, %v2273_v49  ;;  %v3216_v40 = vld [vmem:[%s7094_s20 + $0x24] sm:$0xf]  ;;  %v2924_v45 = vld [vmem:[%s7094_s20 + $0x18] sm:$0xf] }
 0x17b   : > { %v1620_v5 = vpop.permute.xlu1 %1619  ;;  %v3288_v32 = vrot.slane %v3286_v29, 4  ;;  %v3296_v43 = vshrl.u32 %v3216_v40, 16  ;;  %v2925_v55 = vld [vmem:[%s7094_s20 + $0x1c] sm:$0xf] }
 0x17c   : > { %1739 = vst.msk [vmem:[#allocation2 + $0x64] sm:$0xf] %vm1713_vm9, %v1620_v5  ;;  %v1618_v0 = vpop.permute.xlu0 %1617  ;;  %v2259_v51 = vrot.slane %v2258_v50, 4  ;;  %v2278_v36 = vor.u32 %v2277_v52, %v2273_v49  ;;  %v2588_v5 = vrot.slane %v2489_v60, 5  ;;  %v2926_v52 = vld [vmem:[%s7094_s20 + $0x20] sm:$0xf] }
 0x17d   : > { %1738 = vst.msk [vmem:[#allocation2 + $0x60] sm:$0xf] %vm1713_vm9, %v1618_v0  ;;  %2365 = vrot.lane.b32.xlu1 %v2174_v1, %s7044_s24  ;;  %v2591_v1 = vrot.slane %v2490_v57, 5 }
 0x17e   : > { %2363 = vrot.lane.b32.xlu0 %v2164_v62, %s7044_s24  ;;  %v2491_v62 = vld [vmem:[%s7094_s20 + $0x18] sm:$0xf]  ;;  %v2264_v4 = vsel %vm7105_vm2, %v2259_v51, %v2263_v35  ;;  %v2279_v0 = vrot.slane %v2278_v36, 4  ;;  %v2589_v14 = vsel %vm7456_vm6, %v6429_v3, %v2588_v5  ;;  %v2590_v12 = vrot.slane %v2588_v5, 4  ;;  %v2927_v36 = vld [vmem:[%s7094_s20 + $0x24] sm:$0xf] }
 0x17f   : > { %v1624_v23 = vpop.permute.xlu1 %1623  ;;  %v2593_v15 = vrot.slane %v2591_v1, 4  ;;  %v2594_v8 = vrot.slane %v2491_v62, 5  ;;  %v3940_v3 = vld [vmem:[%s7094_s20 + $0x1c] sm:$0xf]  ;;  %v3941_v62 = vld [vmem:[%s7094_s20 + $0x20] sm:$0xf] }
 0x180   : > { %1741 = vst.msk [vmem:[#allocation2 + $0x6c] sm:$0xf] %vm1713_vm9, %v1624_v23  ;;  %v1622_v28 = vpop.permute.xlu0 %1621  ;;  %v3214_v23 = vld [vmem:[%s7094_s20 + $0x1c] sm:$0xf]  ;;  %v2592_v34 = vsel %vm7456_vm6, %v2590_v12, %v2591_v1  ;;  %v6990_v12 = vld [vmem:[%s10424_s1 + $0x8] sm:$0xff]  }
 0x181   : > { %1740 = vst.msk [vmem:[#allocation2 + $0x68] sm:$0xf] %vm1713_vm9, %v1622_v28  ;;  %2369 = vrot.lane.b32.xlu1 %v2194_v9, %s7044_s24  ;;  %v8231_v9 = vrot.slane %v2281_v41, 5  ;;  %v2595_v25 = vsel %vm7456_vm6, %v2593_v15, %v2594_v8  ;;  %v3282_v28 = vshll.u32 %v3215_v19, 16  ;;  %v3272_v33 = vshll.u32 %v3214_v23, 16 }
 0x182   : > { %2367 = vrot.lane.b32.xlu0 %v2184_v26, %s7044_s24  ;;  %v3276_v24 = vshrl.u32 %v3214_v23, 16  ;;  %v2596_v35 = vrot.slane %v2594_v8, 4  ;;  %v4042_v15 = vrot.slane %v3941_v62, 5 }
 0x183   : > { %v1628_v39 = vpop.permute.xlu1 %1627  ;;  %v2284_v11 = vsel %vm7105_vm2, %v2279_v0, %v8231_v9  ;;  %v8261_v44 = vrot.slane %v3282_v28, 5  ;;  %v2494_v28 = vld [vmem:[%s7094_s20 + $0x24] sm:$0xf] }
 0x184   : > { %1743 = vst.msk [vmem:[#allocation2 + $0x74] sm:$0xf] %vm1713_vm9, %v1628_v39  ;;  %v1626_v42 = vpop.permute.xlu0 %1625  ;;  %v2598_v47 = vsel %vm7456_vm6, %v2596_v35, %v2597_v37  ;;  %v2603_v35 = vrot.slane %v2494_v28, 5  ;;  %v8381_v28 = vld [vmem:[%s7094_s20 + $0x38] sm:$0xf] }
 0x185   : > { %1742 = vst.msk [vmem:[#allocation2 + $0x70] sm:$0xf] %vm1713_vm9, %v1626_v42  ;;  %2373 = vrot.lane.b32.xlu1 %v2214_v31, %s7044_s24  ;;  %v3265_v31 = vrot.slane %v3263_v16, 4  ;;  %v3289_v50 = vor.u32 %v3288_v32, %v8261_v44  ;;  %v2495_v32 = vld [vmem:[%s7094_s20 + $0x28] sm:$0xf] }
 0x186   : > { %2371 = vrot.lane.b32.xlu0 %v2204_v22, %s7044_s24  ;;  %v3268_v22 = vrot.slane %v3266_v17, 5  ;;  %v2605_v7 = vrot.slane %v2603_v35, 4 }
 0x187   : > { %v1632_v48 = vpop.permute.xlu1 %1631  ;;  %v3290_v61 = vrot.slane %v3289_v50, 4 }
 0x188   : > { %1745 = vst.msk [vmem:[#allocation2 + $0x7c] sm:$0xf] %vm1713_vm9, %v1632_v48  ;;  %v1630_v30 = vpop.permute.xlu0 %1629  ;;  %v3269_v42 = vor.u32 %v3268_v22, %v3265_v31  ;;  %v3292_v48 = vshll.u32 %v3216_v40, 16  ;;  %v2599_v40 = vrot.slane %v2597_v37, 4  ;;  %v2606_v37 = vrot.slane %v2495_v32, 5 }
 0x189   : > { %1744 = vst.msk [vmem:[#allocation2 + $0x78] sm:$0xf] %vm1713_vm9, %v1630_v30  ;;  %2377 = vrot.lane.b32.xlu1 %v2234_v20, %s7044_s24  ;;  %v3274_v20 = vrot.slane %v3272_v33, 5  ;;  %v2493_v33 = vld [vmem:[%s7094_s20 + $0x20] sm:$0xf] }
 0x18a   : > { %2375 = vrot.lane.b32.xlu0 %v2224_v38, %s7044_s24  ;;  %v3278_v38 = vrot.slane %v3276_v24, 4  ;;  %v3270_v30 = vrot.slane %v3269_v42, 4  ;;  %v3294_v57 = vrot.slane %v3292_v48, 5 }
 0x18b   : > { %v1636_v58 = vpop.permute.xlu1 %1635 }
 0x18c   : > { %1747 = vst.msk [vmem:[#allocation2 + $0x84] sm:$0xf] %vm1713_vm9, %v1636_v58  ;;  %v1634_v63 = vpop.permute.xlu0 %1633  ;;  %v3279_v53 = vor.u32 %v3278_v38, %v3274_v20  ;;  %v8277_v58 = vld [vmem:[%s7094_s20 + $0x28] sm:$0xf]  ;;  %v3275_v60 = vsel %vm7105_vm2, %v3270_v30, %v3274_v20  ;;  %v3295_v0 = vsel %vm7105_vm2, %v3290_v61, %v3294_v57  ;;  %v3219_v30 = vld [vmem:[%s7094_s20 + $0x30] sm:$0xf] }
 0x18d   : > { %1746 = vst.msk [vmem:[#allocation2 + $0x80] sm:$0xf] %vm1713_vm9, %v1634_v63  ;;  %2381 = vrot.lane.b32.xlu1 %v2254_v54, %s7044_s24  ;;  %v3302_v63 = vshll.u32 %v8277_v58, 16  ;;  %v3326_v61 = vshrl.u32 %v3219_v30, 16 }
 0x18e   : > { %2379 = vrot.lane.b32.xlu0 %v2244_v59, %s7044_s24  ;;  %v3298_v59 = vrot.slane %v3296_v43, 4  ;;  %v3280_v41 = vrot.slane %v3279_v53, 4 }
 0x18f   : > { %v1640_v6 = vpop.permute.xlu1 %1639  ;;  %v8302_v19 = vrot.slane %v3302_v63, 5 }
 0x190   : > { %1749 = vst.msk [vmem:[#allocation2 + $0x8c] sm:$0xf] %vm1713_vm9, %v1640_v6  ;;  %v1638_v13 = vpop.permute.xlu0 %1637  ;;  %v3299_v5 = vor.u32 %v3298_v59, %v3294_v57  ;;  %v3285_v16 = vsel %vm7105_vm2, %v3280_v41, %v8261_v44  ;;  %v2600_v44 = vrot.slane %v2493_v33, 5  ;;  %v2608_v57 = vrot.slane %v2606_v37, 4 }
 0x191   : > { %1748 = vst.msk [vmem:[#allocation2 + $0x88] sm:$0xf] %vm1713_vm9, %v1638_v13  ;;  %2385 = vrot.lane.b32.xlu1 %v2274_v2, %s7044_s24  ;;  %v3939_v2 = vld [vmem:[%s7094_s20 + $0x18] sm:$0xe]  ;;  %v4039_v13 = vrot.slane %v3940_v3, 5 }
 0x192   : > { %2383 = vrot.lane.b32.xlu0 %v2264_v4, %s7044_s24  ;;  %v6989_v4 = vld [vmem:[%s10424_s1 + $0x10] ss:$0 sps:$4 sm:$0x33]   ;;  %v6430_v10 = vrot.slane %v3939_v2, 9  ;;  %v3300_v17 = vrot.slane %v3299_v5, 4  ;;  %v2601_v48 = vsel %vm7456_vm6, %v2599_v40, %v2600_v44  ;;  %v2602_v50 = vrot.slane %v2600_v44, 4 }
 0x193   : > { %v1644_v21 = vpop.permute.xlu1 %1643  ;;  %6858 = vmatprep.subr.msk.bf16.mxu0 %vm4636_vm10, %v6989_v4  ;;  %v4638_v8 = vsel %vm4636_vm10, %v6989_v4, 0  ;;  %6859 = vmatprep.subr.msk.bf16.mxu1 %vm4636_vm10, %v6989_v4  ;;  %v4041_v22 = vrot.slane %v4039_v13, 4  ;;  %v3220_v2 = vld [vmem:[%s7094_s20 + $0x34] sm:$0xf]  ;;  %v2928_v3 = vld [vmem:[%s7094_s20 + $0x28] sm:$0xf] }
 0x194   : > { %1751 = vst.msk [vmem:[#allocation2 + $0x94] sm:$0xf] %vm1713_vm9, %v1644_v21  ;;  %v1642_v26 = vpop.permute.xlu0 %1641  ;;  %v3942_v21 = vld [vmem:[%s7094_s20 + $0x24] sm:$0xf]  ;;  %6799 = vmatpush3.bf16.msra.mxu0 %v4638_v8  ;;  %6855 = vmatpush3.bf16.msra.mxu1 %v4638_v8  ;;  %v4040_v23 = vsel %vm7456_vm6, %v6430_v10, %v4039_v13  ;;  %v3305_v31 = vsel %vm7105_vm2, %v3300_v17, %v8302_v19  ;;  %v3328_v4 = vrot.slane %v3326_v61, 4  ;;  %v3332_v13 = vshll.u32 %v3220_v2, 16 }
 0x195   : > { %1750 = vst.msk [vmem:[#allocation2 + $0x90] sm:$0xf] %vm1713_vm9, %v1642_v26  ;;  %2731 = vrot.lane.b32.xlu1 %v2589_v14, %s7045_s25  ;;  %v4044_v26 = vrot.slane %v4042_v15, 4  ;;  %6800 = vmatprep.subr.bf16.mxu0 %v6990_v12  ;;  %v4043_v42 = vsel %vm7456_vm6, %v4041_v22, %v4042_v15  ;;  %v3336_v15 = vshrl.u32 %v3220_v2, 16  ;;  %v3945_v40 = vld [vmem:[%s7094_s20 + $0x30] sm:$0xf] }
 0x196   : > { %2387 = vrot.lane.b32.xlu0 %v2284_v11, %s7044_s24  ;;  %6853 = vmatprep.subr.bf16.mxu1 %v6990_v12 }
 0x197   : > { %v1648_v18 = vpop.permute.xlu1 %1647 }
 0x198   : > { %1753 = vst.msk [vmem:[#allocation2 + $0x9c] sm:$0xf] %vm1713_vm9, %v1648_v18  ;;  %v1646_v39 = vpop.permute.xlu0 %1645  ;;  %6801 = vmatpush3.bf16.msra.mxu0 %v6990_v12  ;;  %v8321_v18 = vld [vmem:[%s7094_s20 + $0x28] sm:$0xf]  ;;  %6856 = vmatpush3.bf16.msra.mxu1 %v6990_v12  ;;  %v3334_v12 = vrot.slane %v3332_v13, 5 }
 0x199   : > { %1752 = vst.msk [vmem:[#allocation2 + $0x98] sm:$0xf] %vm1713_vm9, %v1646_v39  ;;  %2735 = vrot.lane.b32.xlu1 %v2595_v25, %s7045_s25  ;;  %v4045_v25 = vrot.slane %v3942_v21, 5  ;;  %v4048_v38 = vrot.slane %v8321_v18, 5  ;;  %v8443_v13 = vld [vmem:[%s7094_s20 + $0x3c] sm:$0xf] }
 0x19a   : > { %2733 = vrot.lane.b32.xlu0 %v2592_v34, %s7045_s25  ;;  %v6991_v34 = vld [vmem:[%s10424_s1] sm:$0xff]  }
 0x19b   : > { %v1652_v46 = vpop.permute.xlu1 %1651  ;;  %v4046_v39 = vsel %vm7456_vm6, %v4044_v26, %v4045_v25  ;;  %6802 = vmatprep.subr.bf16.mxu0 %v6991_v34  ;;  %v4047_v20 = vrot.slane %v4045_v25, 4  ;;  %6854 = vmatprep.subr.bf16.mxu1 %v6991_v34  ;;  %v3338_v26 = vrot.slane %v3336_v15, 4  ;;  %v3223_v15 = vld [vmem:[%s7094_s20 + $0x40] sm:$0xf] }
 0x19c   : > { %1755 = vst.msk [vmem:[#allocation2 + $0xa4] sm:$0xf] %vm1713_vm9, %v1652_v46  ;;  %v1650_v49 = vpop.permute.xlu0 %1649  ;;  %6803 = vmatpush3.bf16.msra.mxu0 %v6991_v34  ;;  %6857 = vmatpush3.bf16.msra.mxu1 %v6991_v34  ;;  %v3944_v34 = vld [vmem:[%s7094_s20 + $0x2c] sm:$0xf] }
 0x19d   : > { %1754 = vst.msk [vmem:[#allocation2 + $0xa0] sm:$0xf] %vm1713_vm9, %v1650_v49  ;;  %3020 = vrot.lane.b32.xlu1 %v2924_v45, %s7046_s26  ;;  %v4049_v49 = vsel %vm7456_vm6, %v4047_v20, %v4048_v38  ;;  %v4054_v20 = vrot.slane %v3945_v40, 5 }
 0x19e   : > { %2737 = vrot.lane.b32.xlu0 %v2598_v47, %s7045_s25  ;;  %v3306_v47 = vshrl.u32 %v8277_v58, 16 }
 0x19f   : > { %v1656_v54 = vpop.permute.xlu1 %1655 }
 0x1a0   : > { %1757 = vst.msk [vmem:[#allocation2 + $0xac] sm:$0xf] %vm1713_vm9, %v1656_v54  ;;  %v1654_v51 = vpop.permute.xlu0 %1653  ;;  %v3218_v54 = vld [vmem:[%s7094_s20 + $0x2c] sm:$0xf]  ;;  %v3308_v59 = vrot.slane %v3306_v47, 4 }
 0x1a1   : > { %1756 = vst.msk [vmem:[#allocation2 + $0xa8] sm:$0xf] %vm1713_vm9, %v1654_v51  ;;  %3024 = vrot.lane.b32.xlu1 %v2926_v52, %s7046_s26  ;;  %v8349_v52 = vld [vmem:[%s7094_s20 + $0x2c] sm:$0xf]  ;;  %v3322_v51 = vshll.u32 %v3219_v30, 16  ;;  %v3312_v41 = vshll.u32 %v3218_v54, 16 }
 0x1a2   : > { %3022 = vrot.lane.b32.xlu0 %v2925_v55, %s7046_s26  ;;  %v2607_v55 = vsel %vm7456_vm6, %v2605_v7, %v2606_v37  ;;  %v2609_v58 = vrot.slane %v8349_v52, 5  ;;  %v3316_v63 = vshrl.u32 %v3218_v54, 16  ;;  %v3309_v62 = vor.u32 %v3308_v59, %v8302_v19  ;;  %v8418_v59 = vld [vmem:[%s7094_s20 + $0x38] sm:$0xf] }
 0x1a3   : > { %v1660_v1 = vpop.permute.xlu1 %1659  ;;  %v3314_v10 = vrot.slane %v3312_v41, 5  ;;  %v2499_v41 = vld [vmem:[%s7094_s20 + $0x38] sm:$0xf] }
 0x1a4   : > { %1759 = vst.msk [vmem:[#allocation2 + $0xb4] sm:$0xf] %vm1713_vm9, %v1660_v1  ;;  %v1658_v6 = vpop.permute.xlu0 %1657  ;;  %v2610_v5 = vsel %vm7456_vm6, %v2608_v57, %v2609_v58  ;;  %v3318_v8 = vrot.slane %v3316_v63, 4  ;;  %v3310_v17 = vrot.slane %v3309_v62, 4  ;;  %v3346_v62 = vshrl.u32 %v8381_v28, 16 }
 0x1a5   : > { %1758 = vst.msk [vmem:[#allocation2 + $0xb0] sm:$0xf] %vm1713_vm9, %v1658_v6  ;;  %3746 = vrot.lane.b32.xlu1 %v3275_v60, %s7047_s29  ;;  %v3324_v6 = vrot.slane %v3322_v51, 5 }
 0x1a6   : > { %3026 = vrot.lane.b32.xlu0 %v2927_v36, %s7046_s26  ;;  %v2604_v36 = vsel %vm7456_vm6, %v2602_v50, %v2603_v35  ;;  %v3339_v35 = vor.u32 %v3338_v26, %v3334_v12  ;;  %v2498_v50 = vld [vmem:[%s7094_s20 + $0x34] sm:$0xf] }
 0x1a7   : > { %v1664_v14 = vpop.permute.xlu1 %1663  ;;  %v3329_v19 = vor.u32 %v3328_v4, %v3324_v6  ;;  %v2615_v51 = vrot.slane %v2498_v50, 5 }
 0x1a8   : > { %1761 = vst.msk [vmem:[#allocation2 + $0xbc] sm:$0xf] %vm1713_vm9, %v1664_v14  ;;  %v1662_v11 = vpop.permute.xlu0 %1661  ;;  %v3340_v37 = vrot.slane %v3339_v35, 4 }
 0x1a9   : > { %1760 = vst.msk [vmem:[#allocation2 + $0xb8] sm:$0xf] %vm1713_vm9, %v1662_v11  ;;  %3750 = vrot.lane.b32.xlu1 %v3295_v0, %s7047_s29  ;;  %v2929_v11 = vld [vmem:[%s7094_s20 + $0x2c] sm:$0xf]  ;;  %v3330_v22 = vrot.slane %v3329_v19, 4  ;;  %v2617_v52 = vrot.slane %v2615_v51, 4 }
 0x1aa   : > { %3748 = vrot.lane.b32.xlu0 %v3285_v16, %s7047_s29  ;;  %v2930_v16 = vld [vmem:[%s7094_s20 + $0x30] sm:$0xf]  ;;  %v2621_v19 = vrot.slane %v8443_v13, 5 }
 0x1ab   : > { %v2298_v29 = vpop.permute.xlu1 %2297  ;;  %v3335_v32 = vsel %vm7105_vm2, %v3330_v22, %v3334_v12  ;;  %v3366_v12 = vshrl.u32 %v3223_v15, 16  ;;  %v2932_v22 = vld [vmem:[%s7094_s20 + $0x38] sm:$0xf] }
 0x1ac   : > { %2441 = vst.msk [vmem:[#allocation2 + $0x4] sm:$0xf] %vm10427_vm11, %v2298_v29  ;;  %v2296_v24 = vpop.permute.xlu0 %2295  ;;  %v3315_v29 = vsel %vm7105_vm2, %v3310_v17, %v3314_v10 }
 0x1ad   : > { %2440 = vst.msk [vmem:[#allocation2] sm:$0xf] %vm10427_vm11, %v2296_v24  ;;  %4182 = vrot.lane.b32.xlu1 %v4040_v23, %s7048_s7  ;;  %v3319_v23 = vor.u32 %v3318_v8, %v3314_v10  ;;  %v3368_v35 = vrot.slane %v3366_v12, 4 }
 0x1ae   : > { %3752 = vrot.lane.b32.xlu0 %v3305_v31, %s7047_s29  ;;  %v2931_v31 = vld [vmem:[%s7094_s20 + $0x34] sm:$0xf] }
 0x1af   : > { %v2302_v45 = vpop.permute.xlu1 %2301  ;;  %v3320_v24 = vrot.slane %v3319_v23, 4 }
 0x1b0   : > { %2443 = vst.msk [vmem:[#allocation2 + $0xc] sm:$0xf] %vm10427_vm11, %v2302_v45  ;;  %v2300_v46 = vpop.permute.xlu0 %2299  ;;  %v4050_v45 = vrot.slane %v4048_v38, 4  ;;  %v4056_v38 = vrot.slane %v4054_v20, 4 }
 0x1b1   : > { %2442 = vst.msk [vmem:[#allocation2 + $0x8] sm:$0xf] %vm10427_vm11, %v2300_v46  ;;  %4186 = vrot.lane.b32.xlu1 %v4046_v39, %s7048_s7  ;;  %v3342_v39 = vshll.u32 %v8381_v28, 16  ;;  %v3325_v7 = vsel %vm7105_vm2, %v3320_v24, %v3324_v6 }
 0x1b2   : > { %4184 = vrot.lane.b32.xlu0 %v4043_v42, %s7048_s7  ;;  %v4051_v42 = vrot.slane %v3944_v34, 5 }
 0x1b3   : > { %v2306_v43 = vpop.permute.xlu1 %2305  ;;  %v8402_v47 = vrot.slane %v3342_v39, 5 }
 0x1b4   : > { %2445 = vst.msk [vmem:[#allocation2 + $0x14] sm:$0xf] %vm10427_vm11, %v2306_v43  ;;  %v2304_v53 = vpop.permute.xlu0 %2303  ;;  %v4052_v18 = vsel %vm7456_vm6, %v4050_v45, %v4051_v42  ;;  %v4053_v54 = vrot.slane %v4051_v42, 4 }
 0x1b5   : > { %2444 = vst.msk [vmem:[#allocation2 + $0x10] sm:$0xf] %vm10427_vm11, %v2304_v53  ;;  %2739 = vrot.lane.b32.xlu1 %v2601_v48, %s7045_s25  ;;  %v3946_v48 = vld [vmem:[%s7094_s20 + $0x34] sm:$0xf]  ;;  %v3345_v53 = vsel %vm7105_vm2, %v3340_v37, %v8402_v47 }
 0x1b6   : > { %4188 = vrot.lane.b32.xlu0 %v4049_v49, %s7048_s7  ;;  %v4057_v49 = vrot.slane %v3946_v48, 5 }
 0x1b7   : > { %v2310_v60 = vpop.permute.xlu1 %2309 }
 0x1b8   : > { %2447 = vst.msk [vmem:[#allocation2 + $0x1c] sm:$0xf] %vm10427_vm11, %v2310_v60  ;;  %v2308_v1 = vpop.permute.xlu0 %2307  ;;  %v4058_v61 = vsel %vm7456_vm6, %v4056_v38, %v4057_v49  ;;  %v2611_v60 = vrot.slane %v2609_v58, 4  ;;  %v4059_v2 = vrot.slane %v4057_v49, 4  ;;  %v2618_v58 = vrot.slane %v2499_v41, 5 }
 0x1b9   : > { %2446 = vst.msk [vmem:[#allocation2 + $0x18] sm:$0xf] %vm10427_vm11, %v2308_v1  ;;  %2743 = vrot.lane.b32.xlu1 %v2607_v55, %s7045_s25  ;;  %v2497_v55 = vld [vmem:[%s7094_s20 + $0x30] sm:$0xf]  ;;  %v4055_v1 = vsel %vm7456_vm6, %v4053_v54, %v4054_v20  ;;  %v2934_v20 = vld [vmem:[%s7094_s20 + $0x40] sm:$0xf] }
 0x1ba   : > { %2741 = vrot.lane.b32.xlu0 %v2604_v36, %s7045_s25  ;;  %v2612_v36 = vrot.slane %v2497_v55, 5  ;;  %v2620_v17 = vrot.slane %v2618_v58, 4  ;;  %v8475_v49 = vld [vmem:[%s7094_s20 + $0x48] sm:$0xf] }
 0x1bb   : > { %v2314_v0 = vpop.permute.xlu1 %2313 }
 0x1bc   : > { %2449 = vst.msk [vmem:[#allocation2 + $0x24] sm:$0xf] %vm10427_vm11, %v2314_v0  ;;  %v2312_v14 = vpop.permute.xlu0 %2311  ;;  %v2613_v6 = vsel %vm7456_vm6, %v2611_v60, %v2612_v36  ;;  %v2614_v10 = vrot.slane %v2612_v36, 4  ;;  %v3949_v60 = vld [vmem:[%s7094_s20 + $0x40] sm:$0xf] }
 0x1bd   : > { %2448 = vst.msk [vmem:[#allocation2 + $0x20] sm:$0xf] %vm10427_vm11, %v2312_v14  ;;  %3028 = vrot.lane.b32.xlu1 %v2928_v3, %s7046_s26  ;;  %v4060_v3 = vrot.slane %v8418_v59, 5  ;;  %v3222_v14 = vld [vmem:[%s7094_s20 + $0x3c] sm:$0xf] }
 0x1be   : > { %2745 = vrot.lane.b32.xlu0 %v2610_v5, %s7045_s25  ;;  %v2616_v26 = vsel %vm7456_vm6, %v2614_v10, %v2615_v51  ;;  %v3356_v28 = vshrl.u32 %v3222_v14, 16  ;;  %v2502_v10 = vld [vmem:[%s7094_s20 + $0x44] sm:$0xf] }
 0x1bf   : > { %v2318_v21 = vpop.permute.xlu1 %2317  ;;  %v4061_v0 = vsel %vm7456_vm6, %v4059_v2, %v4060_v3  ;;  %v4066_v2 = vrot.slane %v3949_v60, 5 }
 0x1c0   : > { %2451 = vst.msk [vmem:[#allocation2 + $0x2c] sm:$0xf] %vm10427_vm11, %v2318_v21  ;;  %v2316_v25 = vpop.permute.xlu0 %2315  ;;  %v3348_v21 = vrot.slane %v3346_v62, 4  ;;  %v3358_v45 = vrot.slane %v3356_v28, 4 }
 0x1c1   : > { %2450 = vst.msk [vmem:[#allocation2 + $0x28] sm:$0xf] %vm10427_vm11, %v2316_v25  ;;  %3032 = vrot.lane.b32.xlu1 %v2930_v16, %s7046_s26  ;;  %v2619_v16 = vsel %vm7456_vm6, %v2617_v52, %v2618_v58  ;;  %v3352_v25 = vshll.u32 %v3222_v14, 16 }
 0x1c2   : > { %3030 = vrot.lane.b32.xlu0 %v2929_v11, %s7046_s26  ;;  %v3362_v11 = vshll.u32 %v3223_v15, 16  ;;  %v3349_v24 = vor.u32 %v3348_v21, %v8402_v47  ;;  %v2933_v47 = vld [vmem:[%s7094_s20 + $0x3c] sm:$0xf]  ;;  %v8512_v21 = vld [vmem:[%s7094_s20 + $0x48] sm:$0xf] }
 0x1c3   : > { %v2322_v33 = vpop.permute.xlu1 %2321  ;;  %v3354_v40 = vrot.slane %v3352_v25, 5  ;;  %v2503_v25 = vld [vmem:[%s7094_s20 + $0x48] sm:$0xf] }
 0x1c4   : > { %2453 = vst.msk [vmem:[#allocation2 + $0x34] sm:$0xf] %vm10427_vm11, %v2322_v33  ;;  %v2320_v44 = vpop.permute.xlu0 %2319  ;;  %v2622_v33 = vsel %vm7456_vm6, %v2620_v17, %v2621_v19  ;;  %v3364_v34 = vrot.slane %v3362_v11, 5  ;;  %v2627_v11 = vrot.slane %v2502_v10, 5 }
 0x1c5   : > { %2452 = vst.msk [vmem:[#allocation2 + $0x30] sm:$0xf] %vm10427_vm11, %v2320_v44  ;;  %3754 = vrot.lane.b32.xlu1 %v3315_v29, %s7047_s29 }
 0x1c6   : > { %3034 = vrot.lane.b32.xlu0 %v2931_v31, %s7046_s26  ;;  %v3224_v31 = vld [vmem:[%s7094_s20 + $0x44] sm:$0xf]  ;;  %v2629_v13 = vrot.slane %v2627_v11, 4 }
 0x1c7   : > { %v2326_v46 = vpop.permute.xlu1 %2325  ;;  %v3372_v44 = vshll.u32 %v3224_v31, 16 }
 0x1c8   : > { %2455 = vst.msk [vmem:[#allocation2 + $0x3c] sm:$0xf] %vm10427_vm11, %v2326_v46  ;;  %v2324_v43 = vpop.permute.xlu0 %2323  ;;  %v3350_v46 = vrot.slane %v3349_v24, 4  ;;  %v3386_v24 = vshrl.u32 %v8475_v49, 16 }
 0x1c9   : > { %2454 = vst.msk [vmem:[#allocation2 + $0x38] sm:$0xf] %vm10427_vm11, %v2324_v43  ;;  %3758 = vrot.lane.b32.xlu1 %v3335_v32, %s7047_s29  ;;  %v3376_v32 = vshrl.u32 %v3224_v31, 16  ;;  %v3374_v48 = vrot.slane %v3372_v44, 5  ;;  %v3359_v43 = vor.u32 %v3358_v45, %v3354_v40  ;;  %v8537_v44 = vld [vmem:[%s7094_s20 + $0x4c] sm:$0xf] }
 0x1ca   : > { %3756 = vrot.lane.b32.xlu0 %v3325_v7, %s7047_s29  ;;  %v3369_v7 = vor.u32 %v3368_v35, %v3364_v34  ;;  %v3355_v50 = vsel %vm7105_vm2, %v3350_v46, %v3354_v40 }
 0x1cb   : > { %v2330_v30 = vpop.permute.xlu1 %2329  ;;  %v3360_v55 = vrot.slane %v3359_v43, 4 }
 0x1cc   : > { %2457 = vst.msk [vmem:[#allocation2 + $0x44] sm:$0xf] %vm10427_vm11, %v2330_v30  ;;  %v2328_v57 = vpop.permute.xlu0 %2327  ;;  %v2935_v30 = vld [vmem:[%s7094_s20 + $0x44] sm:$0xf] }
 0x1cd   : > { %2456 = vst.msk [vmem:[#allocation2 + $0x40] sm:$0xf] %vm10427_vm11, %v2328_v57  ;;  %4190 = vrot.lane.b32.xlu1 %v4052_v18, %s7048_s7  ;;  %v3378_v18 = vrot.slane %v3376_v32, 4  ;;  %v3948_v57 = vld [vmem:[%s7094_s20 + $0x3c] sm:$0xf]  ;;  %v3365_v52 = vsel %vm7105_vm2, %v3360_v55, %v3364_v34 }
 0x1ce   : > { %3760 = vrot.lane.b32.xlu0 %v3345_v53, %s7047_s29  ;;  %v3370_v53 = vrot.slane %v3369_v7, 4  ;;  %v3227_v32 = vld [vmem:[%s7094_s20 + $0x50] sm:$0xf]  ;;  %v2633_v7 = vrot.slane %v8537_v44, 5 }
 0x1cf   : > { %v2334_v63 = vpop.permute.xlu1 %2333  ;;  %v3379_v51 = vor.u32 %v3378_v18, %v3374_v48 }
 0x1d0   : > { %2459 = vst.msk [vmem:[#allocation2 + $0x4c] sm:$0xf] %vm10427_vm11, %v2334_v63  ;;  %v2332_v5 = vpop.permute.xlu0 %2331  ;;  %v3375_v41 = vsel %vm7105_vm2, %v3370_v53, %v3374_v48  ;;  %v4062_v63 = vrot.slane %v4060_v3, 4  ;;  %v4068_v3 = vrot.slane %v4066_v2, 4  ;;  %v3406_v48 = vshrl.u32 %v3227_v32, 16 }
 0x1d1   : > { %2458 = vst.msk [vmem:[#allocation2 + $0x48] sm:$0xf] %vm10427_vm11, %v2332_v5  ;;  %4194 = vrot.lane.b32.xlu1 %v4058_v61, %s7048_s7  ;;  %v3382_v61 = vshll.u32 %v8475_v49, 16  ;;  %v3380_v58 = vrot.slane %v3379_v51, 4  ;;  %v2936_v53 = vld [vmem:[%s7094_s20 + $0x48] sm:$0xf] }
 0x1d2   : > { %4192 = vrot.lane.b32.xlu0 %v4055_v1, %s7048_s7  ;;  %v4063_v1 = vrot.slane %v3948_v57, 5  ;;  %v3408_v51 = vrot.slane %v3406_v48, 4 }
 0x1d3   : > { %v2338_v4 = vpop.permute.xlu1 %2337  ;;  %v8496_v62 = vrot.slane %v3382_v61, 5 }
 0x1d4   : > { %2461 = vst.msk [vmem:[#allocation2 + $0x54] sm:$0xf] %vm10427_vm11, %v2338_v4  ;;  %v2336_v8 = vpop.permute.xlu0 %2335  ;;  %v4064_v59 = vsel %vm7456_vm6, %v4062_v63, %v4063_v1  ;;  %v4065_v14 = vrot.slane %v4063_v1, 4 }
 0x1d5   : > { %2460 = vst.msk [vmem:[#allocation2 + $0x50] sm:$0xf] %vm10427_vm11, %v2336_v8  ;;  %2747 = vrot.lane.b32.xlu1 %v2613_v6, %s7045_s25  ;;  %v3950_v6 = vld [vmem:[%s7094_s20 + $0x44] sm:$0xf]  ;;  %v3385_v8 = vsel %vm7105_vm2, %v3380_v58, %v8496_v62 }
 0x1d6   : > { %4196 = vrot.lane.b32.xlu0 %v4061_v0, %s7048_s7  ;;  %v4069_v0 = vrot.slane %v3950_v6, 5 }
 0x1d7   : > { %v2342_v23 = vpop.permute.xlu1 %2341 }
 0x1d8   : > { %2463 = vst.msk [vmem:[#allocation2 + $0x5c] sm:$0xf] %vm10427_vm11, %v2342_v23  ;;  %v2340_v29 = vpop.permute.xlu0 %2339  ;;  %v4070_v12 = vsel %vm7456_vm6, %v4068_v3, %v4069_v0  ;;  %v2623_v23 = vrot.slane %v2621_v19, 4  ;;  %v4071_v31 = vrot.slane %v4069_v0, 4  ;;  %v2630_v19 = vrot.slane %v2503_v25, 5 }
 0x1d9   : > { %2462 = vst.msk [vmem:[#allocation2 + $0x58] sm:$0xf] %vm10427_vm11, %v2340_v29  ;;  %2751 = vrot.lane.b32.xlu1 %v2619_v16, %s7045_s25  ;;  %v2501_v16 = vld [vmem:[%s7094_s20 + $0x40] sm:$0xf]  ;;  %v4067_v29 = vsel %vm7456_vm6, %v4065_v14, %v4066_v2  ;;  %v2938_v2 = vld [vmem:[%s7094_s20 + $0x50] sm:$0xf] }
 0x1da   : > { %2749 = vrot.lane.b32.xlu0 %v2616_v26, %s7045_s25  ;;  %v2624_v26 = vrot.slane %v2501_v16, 5  ;;  %v2632_v46 = vrot.slane %v2630_v19, 4  ;;  %v8569_v0 = vld [vmem:[%s7094_s20 + $0x58] sm:$0xf] }
 0x1db   : > { %v2346_v39 = vpop.permute.xlu1 %2345 }
 0x1dc   : > { %2465 = vst.msk [vmem:[#allocation2 + $0x64] sm:$0xf] %vm10427_vm11, %v2346_v39  ;;  %v2344_v42 = vpop.permute.xlu0 %2343  ;;  %v2625_v34 = vsel %vm7456_vm6, %v2623_v23, %v2624_v26  ;;  %v2626_v40 = vrot.slane %v2624_v26, 4  ;;  %v3953_v23 = vld [vmem:[%s7094_s20 + $0x50] sm:$0xf] }
 0x1dd   : > { %2464 = vst.msk [vmem:[#allocation2 + $0x60] sm:$0xf] %vm10427_vm11, %v2344_v42  ;;  %3036 = vrot.lane.b32.xlu1 %v2932_v22, %s7046_s26  ;;  %v4072_v22 = vrot.slane %v8512_v21, 5  ;;  %v3226_v42 = vld [vmem:[%s7094_s20 + $0x4c] sm:$0xf] }
 0x1de   : > { %2753 = vrot.lane.b32.xlu0 %v2622_v33, %s7045_s25  ;;  %v2628_v18 = vsel %vm7456_vm6, %v2626_v40, %v2627_v11  ;;  %v3396_v49 = vshrl.u32 %v3226_v42, 16  ;;  %v2506_v40 = vld [vmem:[%s7094_s20 + $0x54] sm:$0xf] }
 0x1df   : > { %v2350_v37 = vpop.permute.xlu1 %2349  ;;  %v4073_v39 = vsel %vm7456_vm6, %v4071_v31, %v4072_v22  ;;  %v4078_v31 = vrot.slane %v3953_v23, 5 }
 0x1e0   : > { %2467 = vst.msk [vmem:[#allocation2 + $0x6c] sm:$0xf] %vm10427_vm11, %v2350_v37  ;;  %v2348_v38 = vpop.permute.xlu0 %2347  ;;  %v3388_v37 = vrot.slane %v3386_v24, 4  ;;  %v3398_v63 = vrot.slane %v3396_v49, 4 }
 0x1e1   : > { %2466 = vst.msk [vmem:[#allocation2 + $0x68] sm:$0xf] %vm10427_vm11, %v2348_v38  ;;  %3040 = vrot.lane.b32.xlu1 %v2934_v20, %s7046_s26  ;;  %v2631_v20 = vsel %vm7456_vm6, %v2629_v13, %v2630_v19  ;;  %v3392_v38 = vshll.u32 %v3226_v42, 16 }
 0x1e2   : > { %3038 = vrot.lane.b32.xlu0 %v2933_v47, %s7046_s26  ;;  %v3402_v47 = vshll.u32 %v3227_v32, 16  ;;  %v3389_v55 = vor.u32 %v3388_v37, %v8496_v62  ;;  %v2937_v62 = vld [vmem:[%s7094_s20 + $0x4c] sm:$0xf]  ;;  %v8606_v37 = vld [vmem:[%s7094_s20 + $0x58] sm:$0xf] }
 0x1e3   : > { %v2354_v54 = vpop.permute.xlu1 %2353  ;;  %v3394_v60 = vrot.slane %v3392_v38, 5  ;;  %v2507_v38 = vld [vmem:[%s7094_s20 + $0x58] sm:$0xf] }
 0x1e4   : > { %2469 = vst.msk [vmem:[#allocation2 + $0x74] sm:$0xf] %vm10427_vm11, %v2354_v54  ;;  %v2352_v36 = vpop.permute.xlu0 %2351  ;;  %v2634_v54 = vsel %vm7456_vm6, %v2632_v46, %v2633_v7  ;;  %v3404_v57 = vrot.slane %v3402_v47, 5  ;;  %v2639_v47 = vrot.slane %v2506_v40, 5 }
 0x1e5   : > { %2468 = vst.msk [vmem:[#allocation2 + $0x70] sm:$0xf] %vm10427_vm11, %v2352_v36  ;;  %3762 = vrot.lane.b32.xlu1 %v3355_v50, %s7047_s29 }
 0x1e6   : > { %3042 = vrot.lane.b32.xlu0 %v2935_v30, %s7046_s26  ;;  %v3228_v30 = vld [vmem:[%s7094_s20 + $0x54] sm:$0xf]  ;;  %v2641_v44 = vrot.slane %v2639_v47, 4 }
 0x1e7   : > { %v2358_v5 = vpop.permute.xlu1 %2357  ;;  %v3412_v36 = vshll.u32 %v3228_v30, 16 }
 0x1e8   : > { %2471 = vst.msk [vmem:[#allocation2 + $0x7c] sm:$0xf] %vm10427_vm11, %v2358_v5  ;;  %v2356_v4 = vpop.permute.xlu0 %2355  ;;  %v3390_v5 = vrot.slane %v3389_v55, 4  ;;  %v3426_v55 = vshrl.u32 %v8569_v0, 16 }
 0x1e9   : > { %2470 = vst.msk [vmem:[#allocation2 + $0x78] sm:$0xf] %vm10427_vm11, %v2356_v4  ;;  %3766 = vrot.lane.b32.xlu1 %v3375_v41, %s7047_s29  ;;  %v3416_v41 = vshrl.u32 %v3228_v30, 16  ;;  %v3414_v6 = vrot.slane %v3412_v36, 5  ;;  %v3399_v4 = vor.u32 %v3398_v63, %v3394_v60  ;;  %v8631_v36 = vld [vmem:[%s7094_s20 + $0x5c] sm:$0xf] }
 0x1ea   : > { %3764 = vrot.lane.b32.xlu0 %v3365_v52, %s7047_s29  ;;  %v3409_v52 = vor.u32 %v3408_v51, %v3404_v57  ;;  %v3395_v10 = vsel %vm7105_vm2, %v3390_v5, %v3394_v60 }
 0x1eb   : > { %v2362_v15 = vpop.permute.xlu1 %2361  ;;  %v3400_v16 = vrot.slane %v3399_v4, 4 }
 0x1ec   : > { %2473 = vst.msk [vmem:[#allocation2 + $0x84] sm:$0xf] %vm10427_vm11, %v2362_v15  ;;  %v2360_v17 = vpop.permute.xlu0 %2359  ;;  %v2939_v15 = vld [vmem:[%s7094_s20 + $0x54] sm:$0xf] }
 0x1ed   : > { %2472 = vst.msk [vmem:[#allocation2 + $0x80] sm:$0xf] %vm10427_vm11, %v2360_v17  ;;  %4198 = vrot.lane.b32.xlu1 %v4064_v59, %s7048_s7  ;;  %v3418_v59 = vrot.slane %v3416_v41, 4  ;;  %v3952_v17 = vld [vmem:[%s7094_s20 + $0x4c] sm:$0xf]  ;;  %v3405_v13 = vsel %vm7105_vm2, %v3400_v16, %v3404_v57 }
 0x1ee   : > { %3768 = vrot.lane.b32.xlu0 %v3385_v8, %s7047_s29  ;;  %v3410_v8 = vrot.slane %v3409_v52, 4  ;;  %v3231_v41 = vld [vmem:[%s7094_s20 + $0x60] sm:$0xf]  ;;  %v2645_v52 = vrot.slane %v8631_v36, 5 }
 0x1ef   : > { %v2366_v28 = vpop.permute.xlu1 %2365  ;;  %v3419_v11 = vor.u32 %v3418_v59, %v3414_v6 }
 0x1f0   : > { %2475 = vst.msk [vmem:[#allocation2 + $0x8c] sm:$0xf] %vm10427_vm11, %v2366_v28  ;;  %v2364_v33 = vpop.permute.xlu0 %2363  ;;  %v3415_v25 = vsel %vm7105_vm2, %v3410_v8, %v3414_v6  ;;  %v4074_v28 = vrot.slane %v4072_v22, 4  ;;  %v4080_v22 = vrot.slane %v4078_v31, 4  ;;  %v3446_v6 = vshrl.u32 %v3231_v41, 16 }
 0x1f1   : > { %2474 = vst.msk [vmem:[#allocation2 + $0x88] sm:$0xf] %vm10427_vm11, %v2364_v33  ;;  %4202 = vrot.lane.b32.xlu1 %v4070_v12, %s7048_s7  ;;  %v3422_v12 = vshll.u32 %v8569_v0, 16  ;;  %v3420_v19 = vrot.slane %v3419_v11, 4  ;;  %v2940_v8 = vld [vmem:[%s7094_s20 + $0x58] sm:$0xf] }
 0x1f2   : > { %4200 = vrot.lane.b32.xlu0 %v4067_v29, %s7048_s7  ;;  %v4075_v29 = vrot.slane %v3952_v17, 5  ;;  %v3448_v11 = vrot.slane %v3446_v6, 4 }
 0x1f3   : > { %v2370_v35 = vpop.permute.xlu1 %2369  ;;  %v8590_v24 = vrot.slane %v3422_v12, 5 }
 0x1f4   : > { %2477 = vst.msk [vmem:[#allocation2 + $0x94] sm:$0xf] %vm10427_vm11, %v2370_v35  ;;  %v2368_v45 = vpop.permute.xlu0 %2367  ;;  %v4076_v21 = vsel %vm7456_vm6, %v4074_v28, %v4075_v29  ;;  %v4077_v42 = vrot.slane %v4075_v29, 4 }
 0x1f5   : > { %2476 = vst.msk [vmem:[#allocation2 + $0x90] sm:$0xf] %vm10427_vm11, %v2368_v45  ;;  %2755 = vrot.lane.b32.xlu1 %v2625_v34, %s7045_s25  ;;  %v3954_v34 = vld [vmem:[%s7094_s20 + $0x54] sm:$0xf]  ;;  %v3425_v45 = vsel %vm7105_vm2, %v3420_v19, %v8590_v24 }
 0x1f6   : > { %4204 = vrot.lane.b32.xlu0 %v4073_v39, %s7048_s7  ;;  %v4081_v39 = vrot.slane %v3954_v34, 5 }
 0x1f7   : > { %v2374_v43 = vpop.permute.xlu1 %2373 }
 0x1f8   : > { %2479 = vst.msk [vmem:[#allocation2 + $0x9c] sm:$0xf] %vm10427_vm11, %v2374_v43  ;;  %v2372_v50 = vpop.permute.xlu0 %2371  ;;  %v4082_v48 = vsel %vm7456_vm6, %v4080_v22, %v4081_v39  ;;  %v2635_v43 = vrot.slane %v2633_v7, 4  ;;  %v4083_v30 = vrot.slane %v4081_v39, 4  ;;  %v2642_v7 = vrot.slane %v2507_v38, 5 }
 0x1f9   : > { %2478 = vst.msk [vmem:[#allocation2 + $0x98] sm:$0xf] %vm10427_vm11, %v2372_v50  ;;  %2759 = vrot.lane.b32.xlu1 %v2631_v20, %s7045_s25  ;;  %v2505_v20 = vld [vmem:[%s7094_s20 + $0x50] sm:$0xf]  ;;  %v4079_v50 = vsel %vm7456_vm6, %v4077_v42, %v4078_v31  ;;  %v2942_v31 = vld [vmem:[%s7094_s20 + $0x60] sm:$0xf] }
 0x1fa   : > { %2757 = vrot.lane.b32.xlu0 %v2628_v18, %s7045_s25  ;;  %v2636_v18 = vrot.slane %v2505_v20, 5  ;;  %v2644_v5 = vrot.slane %v2642_v7, 4  ;;  %v8663_v39 = vld [vmem:[%s7094_s20 + $0x68] sm:$0xf] }
 0x1fb   : > { %v2378_v61 = vpop.permute.xlu1 %2377 }
 0x1fc   : > { %2481 = vst.msk [vmem:[#allocation2 + $0xa4] sm:$0xf] %vm10427_vm11, %v2378_v61  ;;  %v2376_v1 = vpop.permute.xlu0 %2375  ;;  %v2637_v57 = vsel %vm7456_vm6, %v2635_v43, %v2636_v18  ;;  %v2638_v60 = vrot.slane %v2636_v18, 4  ;;  %v3957_v43 = vld [vmem:[%s7094_s20 + $0x60] sm:$0xf] }
 0x1fd   : > { %2480 = vst.msk [vmem:[#allocation2 + $0xa0] sm:$0xf] %vm10427_vm11, %v2376_v1  ;;  %3044 = vrot.lane.b32.xlu1 %v2936_v53, %s7046_s26  ;;  %v4084_v53 = vrot.slane %v8606_v37, 5  ;;  %v3230_v1 = vld [vmem:[%s7094_s20 + $0x5c] sm:$0xf] }
 0x1fe   : > { %2761 = vrot.lane.b32.xlu0 %v2634_v54, %s7045_s25  ;;  %v2640_v59 = vsel %vm7456_vm6, %v2638_v60, %v2639_v47  ;;  %v3436_v0 = vshrl.u32 %v3230_v1, 16  ;;  %v2510_v60 = vld [vmem:[%s7094_s20 + $0x64] sm:$0xf] }
 0x1ff   : > { %v2382_v58 = vpop.permute.xlu1 %2381  ;;  %v4085_v61 = vsel %vm7456_vm6, %v4083_v30, %v4084_v53  ;;  %v4090_v30 = vrot.slane %v3957_v43, 5  ;;  %v2651_v6 = vrot.slane %v2510_v60, 5 }
 0x200   : > { %2483 = vst.msk [vmem:[#allocation2 + $0xac] sm:$0xf] %vm10427_vm11, %v2382_v58  ;;  %v2380_v3 = vpop.permute.xlu0 %2379  ;;  %v3428_v58 = vrot.slane %v3426_v55, 4  ;;  %v3438_v28 = vrot.slane %v3436_v0, 4  ;;  %v2511_v0 = vld [vmem:[%s7094_s20 + $0x68] sm:$0xf] }
 0x201   : > { %2482 = vst.msk [vmem:[#allocation2 + $0xa8] sm:$0xf] %vm10427_vm11, %v2380_v3  ;;  %3048 = vrot.lane.b32.xlu1 %v2938_v2, %s7046_s26  ;;  %v2643_v2 = vsel %vm7456_vm6, %v2641_v44, %v2642_v7  ;;  %v3432_v3 = vshll.u32 %v3230_v1, 16  ;;  %v2653_v36 = vrot.slane %v2651_v6, 4 }
 0x202   : > { %3046 = vrot.lane.b32.xlu0 %v2937_v62, %s7046_s26  ;;  %v3442_v62 = vshll.u32 %v3231_v41, 16  ;;  %v3429_v16 = vor.u32 %v3428_v58, %v8590_v24  ;;  %v2941_v24 = vld [vmem:[%s7094_s20 + $0x5c] sm:$0xf] }
 0x203   : > { %v2386_v14 = vpop.permute.xlu1 %2385  ;;  %v3434_v23 = vrot.slane %v3432_v3, 5 }
 0x204   : > { %2485 = vst.msk [vmem:[#allocation2 + $0xb4] sm:$0xf] %vm10427_vm11, %v2386_v14  ;;  %v2384_v26 = vpop.permute.xlu0 %2383  ;;  %v2646_v14 = vsel %vm7456_vm6, %v2644_v5, %v2645_v52  ;;  %v3444_v17 = vrot.slane %v3442_v62, 5  ;;  %v8700_v62 = vld [vmem:[%s7094_s20 + $0x68] sm:$0xf] }
 0x205   : > { %2484 = vst.msk [vmem:[#allocation2 + $0xb0] sm:$0xf] %vm10427_vm11, %v2384_v26  ;;  %3770 = vrot.lane.b32.xlu1 %v3395_v10, %s7047_s29 }
 0x206   : > { %3050 = vrot.lane.b32.xlu0 %v2939_v15, %s7046_s26  ;;  %v3232_v15 = vld [vmem:[%s7094_s20 + $0x64] sm:$0xf] }
 0x207   : > { %v2732_v33 = vpop.permute.xlu1 %2731  ;;  %v3452_v26 = vshll.u32 %v3232_v15, 16 }
 0x208   : > { %2876 = vst.msk [vmem:[#allocation2] sm:$0xf] %vm2875_vm12, %v2732_v33  ;;  %v2388_v35 = vpop.permute.xlu0 %2387  ;;  %v3430_v33 = vrot.slane %v3429_v16, 4 }
 0x209   : > { %2486 = vst.msk [vmem:[#allocation2 + $0xb8] sm:$0xf] %vm10427_vm11, %v2388_v35  ;;  %3774 = vrot.lane.b32.xlu1 %v3415_v25, %s7047_s29  ;;  %v3456_v25 = vshrl.u32 %v3232_v15, 16  ;;  %v3454_v34 = vrot.slane %v3452_v26, 5  ;;  %v3439_v35 = vor.u32 %v3438_v28, %v3434_v23  ;;  %v8727_v28 = vld [vmem:[%s7094_s20 + $0x6c] sm:$0xf] }
 0x20a   : > { %3772 = vrot.lane.b32.xlu0 %v3405_v13, %s7047_s29  ;;  %v3449_v13 = vor.u32 %v3448_v11, %v3444_v17  ;;  %v3435_v40 = vsel %vm7105_vm2, %v3430_v33, %v3434_v23  ;;  %v3466_v11 = vshrl.u32 %v8663_v39, 16  ;;  %v3234_v33 = vld [vmem:[%s7094_s20 + $0x6c] sm:$0xf] }
 0x20b   : > { %v2736_v32 = vpop.permute.xlu1 %2735  ;;  %v3440_v20 = vrot.slane %v3439_v35, 4 }
 0x20c   : > { %2878 = vst.msk [vmem:[#allocation2 + $0x8] sm:$0xf] %vm2875_vm12, %v2736_v32  ;;  %v2734_v46 = vpop.permute.xlu0 %2733  ;;  %v2943_v32 = vld [vmem:[%s7094_s20 + $0x64] sm:$0xf] }
 0x20d   : > { %2877 = vst.msk [vmem:[#allocation2 + $0x4] sm:$0xf] %vm2875_vm12, %v2734_v46  ;;  %4206 = vrot.lane.b32.xlu1 %v4076_v21, %s7048_s7  ;;  %v3458_v21 = vrot.slane %v3456_v25, 4  ;;  %v3956_v46 = vld [vmem:[%s7094_s20 + $0x5c] sm:$0xf]  ;;  %v3445_v44 = vsel %vm7105_vm2, %v3440_v20, %v3444_v17 }
 0x20e   : > { %3776 = vrot.lane.b32.xlu0 %v3425_v45, %s7047_s29  ;;  %v3450_v45 = vrot.slane %v3449_v13, 4  ;;  %v2944_v20 = vld [vmem:[%s7094_s20 + $0x68] sm:$0xf] }
 0x20f   : > { %v3021_v49 = vpop.permute.xlu1 %3020  ;;  %v3459_v47 = vor.u32 %v3458_v21, %v3454_v34 }
 0x210   : > { %3165 = vst.msk [vmem:[#allocation2] sm:$0xf] %vm3164_vm13, %v3021_v49  ;;  %v2738_v54 = vpop.permute.xlu0 %2737  ;;  %v3455_v38 = vsel %vm7105_vm2, %v3450_v45, %v3454_v34  ;;  %v4086_v49 = vrot.slane %v4084_v53, 4  ;;  %v4092_v53 = vrot.slane %v4090_v30, 4  ;;  %v3468_v34 = vrot.slane %v3466_v11, 4 }
 0x211   : > { %2879 = vst.msk [vmem:[#allocation2 + $0xc] sm:$0xf] %vm2875_vm12, %v2738_v54  ;;  %4210 = vrot.lane.b32.xlu1 %v4082_v48, %s7048_s7  ;;  %v3462_v48 = vshll.u32 %v8663_v39, 16  ;;  %v3460_v7 = vrot.slane %v3459_v47, 4 }
 0x212   : > { %4208 = vrot.lane.b32.xlu0 %v4079_v50, %s7048_s7  ;;  %v4087_v50 = vrot.slane %v3956_v46, 5 }
 0x213   : > { %v3025_v51 = vpop.permute.xlu1 %3024  ;;  %v8684_v55 = vrot.slane %v3462_v48, 5 }
 0x214   : > { %3167 = vst.msk [vmem:[#allocation2 + $0x8] sm:$0xf] %vm3164_vm13, %v3025_v51  ;;  %v3023_v63 = vpop.permute.xlu0 %3022  ;;  %v4088_v37 = vsel %vm7456_vm6, %v4086_v49, %v4087_v50  ;;  %v4089_v1 = vrot.slane %v4087_v50, 4 }
 0x215   : > { %3166 = vst.msk [vmem:[#allocation2 + $0x4] sm:$0xf] %vm3164_vm13, %v3023_v63  ;;  %2763 = vrot.lane.b32.xlu1 %v2637_v57, %s7045_s25  ;;  %v3958_v57 = vld [vmem:[%s7094_s20 + $0x64] sm:$0xf]  ;;  %v3465_v63 = vsel %vm7105_vm2, %v3460_v7, %v8684_v55  ;;  %v3469_v47 = vor.u32 %v3468_v34, %v8684_v55 }
 0x216   : > { %4212 = vrot.lane.b32.xlu0 %v4085_v61, %s7048_s7  ;;  %v4093_v61 = vrot.slane %v3958_v57, 5  ;;  %v4091_v15 = vsel %vm7456_vm6, %v4089_v1, %v4090_v30  ;;  %v2947_v1 = vld [vmem:[%s7094_s20 + $0x74] sm:$0xf] }
 0x217   : > { %v3747_v4 = vpop.permute.xlu1 %3746  ;;  %v3470_v7 = vrot.slane %v3469_v47, 4 }
 0x218   : > { %3891 = vst.msk [vmem:[#allocation2] sm:$0xf] %vm3890_vm14, %v3747_v4  ;;  %v3027_v10 = vpop.permute.xlu0 %3026  ;;  %v4094_v4 = vsel %vm7456_vm6, %v4092_v53, %v4093_v61 }
 0x219   : > { %3168 = vst.msk [vmem:[#allocation2 + $0xc] sm:$0xf] %vm3164_vm13, %v3027_v10  ;;  %2767 = vrot.lane.b32.xlu1 %v2643_v2, %s7045_s25  ;;  %v2509_v2 = vld [vmem:[%s7094_s20 + $0x60] sm:$0xf] }
 0x21a   : > { %2765 = vrot.lane.b32.xlu0 %v2640_v59, %s7045_s25  ;;  %v2647_v59 = vrot.slane %v2645_v52, 4  ;;  %v2648_v3 = vrot.slane %v2509_v2, 5  ;;  %v2654_v52 = vrot.slane %v2511_v0, 5 }
 0x21b   : > { %v3751_v12 = vpop.permute.xlu1 %3750 }
 0x21c   : > { %3893 = vst.msk [vmem:[#allocation2 + $0x8] sm:$0xf] %vm3890_vm14, %v3751_v12  ;;  %v3749_v29 = vpop.permute.xlu0 %3748  ;;  %v2649_v12 = vsel %vm7456_vm6, %v2647_v59, %v2648_v3  ;;  %v2650_v25 = vrot.slane %v2648_v3, 4  ;;  %v2655_v13 = vsel %vm7456_vm6, %v2653_v36, %v2654_v52  ;;  %v3961_v3 = vld [vmem:[%s7094_s20 + $0x70] sm:$0xf] }
 0x21d   : > { %3892 = vst.msk [vmem:[#allocation2 + $0x4] sm:$0xf] %vm3890_vm14, %v3749_v29  ;;  %3052 = vrot.lane.b32.xlu1 %v2940_v8, %s7046_s26  ;;  %v4095_v8 = vrot.slane %v4093_v61, 4  ;;  %v3235_v29 = vld [vmem:[%s7094_s20 + $0x70] sm:$0xf] }
 0x21e   : > { %2769 = vrot.lane.b32.xlu0 %v2646_v14, %s7045_s25  ;;  %v4096_v14 = vrot.slane %v8700_v62, 5  ;;  %v3482_v35 = vshll.u32 %v3235_v29, 16  ;;  %v3486_v21 = vshrl.u32 %v3235_v29, 16  ;;  %v2652_v39 = vsel %vm7456_vm6, %v2650_v25, %v2651_v6  ;;  %v3960_v6 = vld [vmem:[%s7094_s20 + $0x6c] sm:$0xf] }
 0x21f   : > { %v4183_v19 = vpop.permute.xlu1 %4182  ;;  %v2514_v25 = vld [vmem:[%s7094_s20 + $0x74] sm:$0xf] }
 0x220   : > { %4327 = vst.msk [vmem:[#allocation2] sm:$0xf] %vm10428_vm15, %v4183_v19  ;;  %v3753_v22 = vpop.permute.xlu0 %3752  ;;  %v4097_v26 = vsel %vm7456_vm6, %v4095_v8, %v4096_v14  ;;  %v2656_v19 = vrot.slane %v2654_v52, 4  ;;  %v3484_v48 = vrot.slane %v3482_v35, 5  ;;  %v3488_v43 = vrot.slane %v3486_v21, 4 }
 0x221   : > { %3894 = vst.msk [vmem:[#allocation2 + $0xc] sm:$0xf] %vm3890_vm14, %v3753_v22  ;;  %3056 = vrot.lane.b32.xlu1 %v2942_v31, %s7046_s26  ;;  %v4099_v8 = vrot.slane %v3960_v6, 5  ;;  %v8796_v35 = vld [vmem:[%s7094_s20 + $0x78] sm:$0xf]  ;;  %v2663_v21 = vrot.slane %v2514_v25, 5 }
 0x222   : > { %3054 = vrot.lane.b32.xlu0 %v2941_v24, %s7046_s26  ;;  %v2657_v24 = vrot.slane %v8727_v28, 5  ;;  %v3489_v55 = vor.u32 %v3488_v43, %v3484_v48 }
 0x223   : > { %v4187_v42 = vpop.permute.xlu1 %4186  ;;  %v2665_v28 = vrot.slane %v2663_v21, 4 }
 0x224   : > { %4329 = vst.msk [vmem:[#allocation2 + $0x8] sm:$0xf] %vm10428_vm15, %v4187_v42  ;;  %v4185_v18 = vpop.permute.xlu0 %4184  ;;  %v3236_v42 = vld [vmem:[%s7094_s20 + $0x74] sm:$0xf]  ;;  %v2658_v46 = vsel %vm7456_vm6, %v2656_v19, %v2657_v24  ;;  %v3490_v2 = vrot.slane %v3489_v55, 4 }
 0x225   : > { %4328 = vst.msk [vmem:[#allocation2 + $0x4] sm:$0xf] %vm10428_vm15, %v4185_v18  ;;  %3778 = vrot.lane.b32.xlu1 %v3435_v40, %s7047_s29  ;;  %v3472_v40 = vshll.u32 %v3234_v33, 16  ;;  %v3492_v49 = vshll.u32 %v3236_v42, 16  ;;  %v3496_v50 = vshrl.u32 %v3236_v42, 16 }
 0x226   : > { %3058 = vrot.lane.b32.xlu0 %v2943_v32, %s7046_s26  ;;  %v3476_v32 = vshrl.u32 %v3234_v33, 16  ;;  %v4101_v33 = vrot.slane %v4099_v8, 4 }
 0x227   : > { %v2740_v54 = vpop.permute.xlu1 %2739  ;;  %v3498_v61 = vrot.slane %v3496_v50, 4 }
 0x228   : > { %2880 = vst.msk [vmem:[#allocation2 + $0x10] sm:$0xf] %vm2875_vm12, %v2740_v54  ;;  %v4189_v51 = vpop.permute.xlu0 %4188  ;;  %v3478_v30 = vrot.slane %v3476_v32, 4  ;;  %v2515_v32 = vld [vmem:[%s7094_s20 + $0x78] sm:$0xf] }
 0x229   : > { %4330 = vst.msk [vmem:[#allocation2 + $0xc] sm:$0xf] %vm10428_vm15, %v4189_v51  ;;  %3782 = vrot.lane.b32.xlu1 %v3455_v38, %s7047_s29  ;;  %v3474_v38 = vrot.slane %v3472_v40, 5  ;;  %v2945_v51 = vld [vmem:[%s7094_s20 + $0x6c] sm:$0xf] }
 0x22a   : > { %3780 = vrot.lane.b32.xlu0 %v3445_v44, %s7047_s29  ;;  %v2946_v44 = vld [vmem:[%s7094_s20 + $0x70] sm:$0xf] }
 0x22b   : > { %v2744_v41 = vpop.permute.xlu1 %2743  ;;  %v3479_v53 = vor.u32 %v3478_v30, %v3474_v38  ;;  %v8823_v30 = vld [vmem:[%s7094_s20 + $0x7c] sm:$0xf] }
 0x22c   : > { %2882 = vst.msk [vmem:[#allocation2 + $0x18] sm:$0xf] %vm2875_vm12, %v2744_v41  ;;  %v2742_v5 = vpop.permute.xlu0 %2741  ;;  %v6992_v58 = vld [vmem:[#allocation2] sm:$0xff]   ;;  %v8759_v41 = vld [vmem:[%s7094_s20 + $0x78] sm:$0xf] }
 0x22d   : > { %2881 = vst.msk [vmem:[#allocation2 + $0x14] sm:$0xf] %vm2875_vm12, %v2742_v5  ;;  %4214 = vrot.lane.b32.xlu1 %v4088_v37, %s7048_s7  ;;  %6804 = vmatprep.mubr.msk.bf16.mxu0 %vm4563_vm0, %v6992_v58  ;;  %v3494_v37 = vrot.slane %v3492_v49, 5  ;;  %v3480_v58 = vrot.slane %v3479_v53, 4  ;;  %v3502_v59 = vshll.u32 %v8759_v41, 16  ;;  %v3506_v43 = vshrl.u32 %v8759_v41, 16 }
 0x22e   : > { %3784 = vrot.lane.b32.xlu0 %v3465_v63, %s7047_s29  ;;  %v3475_v63 = vsel %vm7105_vm2, %v3470_v7, %v3474_v38  ;;  %v3238_v7 = vld [vmem:[%s7094_s20 + $0x7c] sm:$0xf] }
 0x22f   : > { %v3029_v10 = vpop.permute.xlu1 %3028  ;;  %v3485_v36 = vsel %vm7105_vm2, %v3480_v58, %v3484_v48  ;;  %v8780_v11 = vrot.slane %v3502_v59, 5  ;;  %v2948_v58 = vld [vmem:[%s7094_s20 + $0x78] sm:$0xf] }
 0x230   : > { %3169 = vst.msk [vmem:[#allocation2 + $0x10] sm:$0xf] %vm3164_vm13, %v3029_v10  ;;  %v2746_v16 = vpop.permute.xlu0 %2745  ;;  %v6993_v17 = vld [vmem:[#allocation2 + $0x8] sm:$0xff]   ;;  %v3495_v10 = vsel %vm7105_vm2, %v3490_v2, %v3494_v37 }
 0x231   : > { %2883 = vst.msk [vmem:[#allocation2 + $0x1c] sm:$0xf] %vm2875_vm12, %v2746_v16  ;;  %4218 = vrot.lane.b32.xlu1 %v4094_v4, %s7048_s7  ;;  %6805 = vmatmul.mubr.msk.bf16.vlgmr.msra.gmra.mxu0 %vm4563_vm0, %v6993_v17  ;;  %v3499_v4 = vor.u32 %v3498_v61, %v3494_v37  ;;  %v4102_v16 = vrot.slane %v3961_v3, 5  ;;  %v3508_v37 = vrot.slane %v3506_v43, 4 }
 0x232   : > { %4216 = vrot.lane.b32.xlu0 %v4091_v15, %s7048_s7  ;;  %v4098_v15 = vrot.slane %v4096_v14, 4 }
 0x233   : > { %v3033_v23 = vpop.permute.xlu1 %3032  ;;  %v3500_v52 = vrot.slane %v3499_v4, 4  ;;  %v4104_v14 = vrot.slane %v4102_v16, 4  ;;  %v4103_v42 = vsel %vm7456_vm6, %v4101_v33, %v4102_v16  ;;  %v3509_v4 = vor.u32 %v3508_v37, %v8780_v11  ;;  %v2951_v33 = vld [vmem:[%s7094_s20 + $0x84] sm:$0xf] }
 0x234   : > { %3171 = vst.msk [vmem:[#allocation2 + $0x18] sm:$0xf] %vm3164_vm13, %v3033_v23  ;;  %v3031_v31 = vpop.permute.xlu0 %3030  ;;  %v4100_v62 = vsel %vm7456_vm6, %v4098_v15, %v4099_v8 }
 0x235   : > { %3170 = vst.msk [vmem:[#allocation2 + $0x14] sm:$0xf] %vm3164_vm13, %v3031_v31  ;;  %2771 = vrot.lane.b32.xlu1 %v2649_v12, %s7045_s25  ;;  %v3962_v12 = vld [vmem:[%s7094_s20 + $0x74] sm:$0xf]  ;;  %v3505_v31 = vsel %vm7105_vm2, %v3500_v52, %v8780_v11  ;;  %v3510_v52 = vrot.slane %v3509_v4, 4 }
 0x236   : > { %4220 = vrot.lane.b32.xlu0 %v4097_v26, %s7048_s7  ;;  %v4105_v26 = vrot.slane %v3962_v12, 5 }
 0x237   : > { %v3755_v22 = vpop.permute.xlu1 %3754 }
 0x238   : > { %3895 = vst.msk [vmem:[#allocation2 + $0x10] sm:$0xf] %vm3890_vm14, %v3755_v22  ;;  %v3035_v45 = vpop.permute.xlu0 %3034  ;;  %v4106_v22 = vsel %vm7456_vm6, %v4104_v14, %v4105_v26 }
 0x239   : > { %3172 = vst.msk [vmem:[#allocation2 + $0x1c] sm:$0xf] %vm3164_vm13, %v3035_v45  ;;  %2775 = vrot.lane.b32.xlu1 %v2655_v13, %s7045_s25  ;;  %v2513_v13 = vld [vmem:[%s7094_s20 + $0x70] sm:$0xf] }
 0x23a   : > { %2773 = vrot.lane.b32.xlu0 %v2652_v39, %s7045_s25  ;;  %v2659_v39 = vrot.slane %v2657_v24, 4  ;;  %v2660_v40 = vrot.slane %v2513_v13, 5  ;;  %v2666_v24 = vrot.slane %v2515_v32, 5 }
 0x23b   : > { %v3759_v18 = vpop.permute.xlu1 %3758 }
 0x23c   : > { %3897 = vst.msk [vmem:[#allocation2 + $0x18] sm:$0xf] %vm3890_vm14, %v3759_v18  ;;  %v3757_v54 = vpop.permute.xlu0 %3756  ;;  %v2661_v18 = vsel %vm7456_vm6, %v2659_v39, %v2660_v40  ;;  %v2662_v50 = vrot.slane %v2660_v40, 4  ;;  %v2667_v55 = vsel %vm7456_vm6, %v2665_v28, %v2666_v24  ;;  %v3965_v40 = vld [vmem:[%s7094_s20 + $0x80] sm:$0xf] }
 0x23d   : > { %3896 = vst.msk [vmem:[#allocation2 + $0x14] sm:$0xf] %vm3890_vm14, %v3757_v54  ;;  %3060 = vrot.lane.b32.xlu1 %v2944_v20, %s7046_s26  ;;  %v4107_v20 = vrot.slane %v4105_v26, 4  ;;  %v3239_v54 = vld [vmem:[%s7094_s20 + $0x80] sm:$0xf] }
 0x23e   : > { %2777 = vrot.lane.b32.xlu0 %v2658_v46, %s7045_s25  ;;  %v4108_v46 = vrot.slane %v8796_v35, 5  ;;  %v3522_v53 = vshll.u32 %v3239_v54, 16  ;;  %v3526_v61 = vshrl.u32 %v3239_v54, 16  ;;  %v2664_v41 = vsel %vm7456_vm6, %v2662_v50, %v2663_v21  ;;  %v3964_v21 = vld [vmem:[%s7094_s20 + $0x7c] sm:$0xf] }
 0x23f   : > { %v4191_v57 = vpop.permute.xlu1 %4190  ;;  %v2518_v50 = vld [vmem:[%s7094_s20 + $0x84] sm:$0xf] }
 0x240   : > { %4331 = vst.msk [vmem:[#allocation2 + $0x10] sm:$0xf] %vm10428_vm15, %v4191_v57  ;;  %v3761_v60 = vpop.permute.xlu0 %3760  ;;  %v4109_v49 = vsel %vm7456_vm6, %v4107_v20, %v4108_v46  ;;  %v2668_v57 = vrot.slane %v2666_v24, 4  ;;  %v3524_v59 = vrot.slane %v3522_v53, 5  ;;  %v3528_v3 = vrot.slane %v3526_v61, 4 }
 0x241   : > { %3898 = vst.msk [vmem:[#allocation2 + $0x1c] sm:$0xf] %vm3890_vm14, %v3761_v60  ;;  %3064 = vrot.lane.b32.xlu1 %v2946_v44, %s7046_s26  ;;  %v4111_v20 = vrot.slane %v3964_v21, 5  ;;  %v8892_v53 = vld [vmem:[%s7094_s20 + $0x88] sm:$0xf]  ;;  %v2675_v61 = vrot.slane %v2518_v50, 5 }
 0x242   : > { %3062 = vrot.lane.b32.xlu0 %v2945_v51, %s7046_s26  ;;  %v2669_v51 = vrot.slane %v8823_v30, 5  ;;  %v3529_v11 = vor.u32 %v3528_v3, %v3524_v59 }
 0x243   : > { %v4195_v5 = vpop.permute.xlu1 %4194  ;;  %v2677_v30 = vrot.slane %v2675_v61, 4 }
 0x244   : > { %4333 = vst.msk [vmem:[#allocation2 + $0x18] sm:$0xf] %vm10428_vm15, %v4195_v5  ;;  %v4193_v0 = vpop.permute.xlu0 %4192  ;;  %v3240_v5 = vld [vmem:[%s7094_s20 + $0x84] sm:$0xf]  ;;  %v2670_v6 = vsel %vm7456_vm6, %v2668_v57, %v2669_v51  ;;  %v3530_v13 = vrot.slane %v3529_v11, 4 }
 0x245   : > { %4332 = vst.msk [vmem:[#allocation2 + $0x14] sm:$0xf] %vm10428_vm15, %v4193_v0  ;;  %3786 = vrot.lane.b32.xlu1 %v3475_v63, %s7047_s29  ;;  %v3512_v63 = vshll.u32 %v3238_v7, 16  ;;  %v3532_v15 = vshll.u32 %v3240_v5, 16  ;;  %v3536_v8 = vshrl.u32 %v3240_v5, 16 }
 0x246   : > { %3066 = vrot.lane.b32.xlu0 %v2947_v1, %s7046_s26  ;;  %v3516_v1 = vshrl.u32 %v3238_v7, 16  ;;  %v4113_v7 = vrot.slane %v4111_v20, 4 }
 0x247   : > { %v2748_v17 = vpop.permute.xlu1 %2747  ;;  %v3538_v26 = vrot.slane %v3536_v8, 4 }
 0x248   : > { %2884 = vst.msk [vmem:[#allocation2 + $0x20] sm:$0xf] %vm2875_vm12, %v2748_v17  ;;  %v4197_v23 = vpop.permute.xlu0 %4196  ;;  %v3518_v16 = vrot.slane %v3516_v1, 4  ;;  %v2519_v1 = vld [vmem:[%s7094_s20 + $0x88] sm:$0xf] }
 0x249   : > { %4334 = vst.msk [vmem:[#allocation2 + $0x1c] sm:$0xf] %vm10428_vm15, %v4197_v23  ;;  %3790 = vrot.lane.b32.xlu1 %v3495_v10, %s7047_s29  ;;  %v3514_v10 = vrot.slane %v3512_v63, 5  ;;  %v2949_v23 = vld [vmem:[%s7094_s20 + $0x7c] sm:$0xf] }
 0x24a   : > { %3788 = vrot.lane.b32.xlu0 %v3485_v36, %s7047_s29  ;;  %v2950_v36 = vld [vmem:[%s7094_s20 + $0x80] sm:$0xf] }
 0x24b   : > { %v2752_v29 = vpop.permute.xlu1 %2751  ;;  %v3519_v14 = vor.u32 %v3518_v16, %v3514_v10  ;;  %v8919_v16 = vld [vmem:[%s7094_s20 + $0x8c] sm:$0xf] }
 0x24c   : > { %2886 = vst.msk [vmem:[#allocation2 + $0x28] sm:$0xf] %vm2875_vm12, %v2752_v29  ;;  %v2750_v19 = vpop.permute.xlu0 %2749  ;;  %v6994_v34 = vld [vmem:[#allocation2 + $0x10] sm:$0xff]   ;;  %v8855_v29 = vld [vmem:[%s7094_s20 + $0x88] sm:$0xf] }
 0x24d   : > { %2885 = vst.msk [vmem:[#allocation2 + $0x24] sm:$0xf] %vm2875_vm12, %v2750_v19  ;;  %4222 = vrot.lane.b32.xlu1 %v4100_v62, %s7048_s7  ;;  %6808 = vmatprep.mubr.msk.bf16.mxu0 %vm4563_vm0, %v6994_v34  ;;  %v3534_v62 = vrot.slane %v3532_v15, 5  ;;  %v3520_v34 = vrot.slane %v3519_v14, 4  ;;  %v3542_v39 = vshll.u32 %v8855_v29, 16  ;;  %v3546_v3 = vshrl.u32 %v8855_v29, 16 }
 0x24e   : > { %3792 = vrot.lane.b32.xlu0 %v3505_v31, %s7047_s29  ;;  %v3515_v31 = vsel %vm7105_vm2, %v3510_v52, %v3514_v10  ;;  %v3242_v52 = vld [vmem:[%s7094_s20 + $0x8c] sm:$0xf] }
 0x24f   : > { %v3037_v45 = vpop.permute.xlu1 %3036  ;;  %v3525_v28 = vsel %vm7105_vm2, %v3520_v34, %v3524_v59  ;;  %v8876_v43 = vrot.slane %v3542_v39, 5  ;;  %v2952_v34 = vld [vmem:[%s7094_s20 + $0x88] sm:$0xf] }
 0x250   : > { %3173 = vst.msk [vmem:[#allocation2 + $0x20] sm:$0xf] %vm3164_vm13, %v3037_v45  ;;  %v2754_v47 = vpop.permute.xlu0 %2753  ;;  %v6995_v48 = vld [vmem:[#allocation2 + $0x18] sm:$0xff]   ;;  %v3535_v45 = vsel %vm7105_vm2, %v3530_v13, %v3534_v62 }
 0x251   : > { %2887 = vst.msk [vmem:[#allocation2 + $0x2c] sm:$0xf] %vm2875_vm12, %v2754_v47  ;;  %4226 = vrot.lane.b32.xlu1 %v4106_v22, %s7048_s7  ;;  %6809 = vmatmul.mubr.msk.bf16.gmra.mxu0 %vm4563_vm0, %v6995_v48  ;;  %v3539_v22 = vor.u32 %v3538_v26, %v3534_v62  ;;  %v4114_v47 = vrot.slane %v3965_v40, 5  ;;  %v3548_v62 = vrot.slane %v3546_v3, 4 }
 0x252   : > { %4224 = vrot.lane.b32.xlu0 %v4103_v42, %s7048_s7  ;;  %v4110_v42 = vrot.slane %v4108_v46, 4 }
 0x253   : > { %v3041_v38 = vpop.permute.xlu1 %3040  ;;  %v3540_v24 = vrot.slane %v3539_v22, 4  ;;  %v4116_v46 = vrot.slane %v4114_v47, 4  ;;  %v4115_v5 = vsel %vm7456_vm6, %v4113_v7, %v4114_v47  ;;  %v3549_v22 = vor.u32 %v3548_v62, %v8876_v43  ;;  %v2955_v7 = vld [vmem:[%s7094_s20 + $0x94] sm:$0xf] }
 0x254   : > { %3175 = vst.msk [vmem:[#allocation2 + $0x28] sm:$0xf] %vm3164_vm13, %v3041_v38  ;;  %v3039_v44 = vpop.permute.xlu0 %3038  ;;  %v4112_v35 = vsel %vm7456_vm6, %v4110_v42, %v4111_v20 }
 0x255   : > { %3174 = vst.msk [vmem:[#allocation2 + $0x24] sm:$0xf] %vm3164_vm13, %v3039_v44  ;;  %2779 = vrot.lane.b32.xlu1 %v2661_v18, %s7045_s25  ;;  %v3966_v18 = vld [vmem:[%s7094_s20 + $0x84] sm:$0xf]  ;;  %v3545_v44 = vsel %vm7105_vm2, %v3540_v24, %v8876_v43  ;;  %v3550_v24 = vrot.slane %v3549_v22, 4 }
 0x256   : > { %4228 = vrot.lane.b32.xlu0 %v4109_v49, %s7048_s7  ;;  %v4117_v49 = vrot.slane %v3966_v18, 5 }
 0x257   : > { %v3763_v60 = vpop.permute.xlu1 %3762 }
 0x258   : > { %3899 = vst.msk [vmem:[#allocation2 + $0x20] sm:$0xf] %vm3890_vm14, %v3763_v60  ;;  %v3043_v2 = vpop.permute.xlu0 %3042  ;;  %v4118_v60 = vsel %vm7456_vm6, %v4116_v46, %v4117_v49 }
 0x259   : > { %3176 = vst.msk [vmem:[#allocation2 + $0x2c] sm:$0xf] %vm3164_vm13, %v3043_v2  ;;  %2783 = vrot.lane.b32.xlu1 %v2667_v55, %s7045_s25  ;;  %v2517_v55 = vld [vmem:[%s7094_s20 + $0x80] sm:$0xf] }
 0x25a   : > { %2781 = vrot.lane.b32.xlu0 %v2664_v41, %s7045_s25  ;;  %v2671_v41 = vrot.slane %v2669_v51, 4  ;;  %v2672_v63 = vrot.slane %v2517_v55, 5  ;;  %v2678_v51 = vrot.slane %v2519_v1, 5 }
 0x25b   : > { %v3767_v0 = vpop.permute.xlu1 %3766 }
 0x25c   : > { %3901 = vst.msk [vmem:[#allocation2 + $0x28] sm:$0xf] %vm3890_vm14, %v3767_v0  ;;  %v3765_v17 = vpop.permute.xlu0 %3764  ;;  %v2673_v0 = vsel %vm7456_vm6, %v2671_v41, %v2672_v63  ;;  %v2674_v8 = vrot.slane %v2672_v63, 4  ;;  %v2679_v11 = vsel %vm7456_vm6, %v2677_v30, %v2678_v51  ;;  %v3969_v63 = vld [vmem:[%s7094_s20 + $0x90] sm:$0xf] }
 0x25d   : > { %3900 = vst.msk [vmem:[#allocation2 + $0x24] sm:$0xf] %vm3890_vm14, %v3765_v17  ;;  %3068 = vrot.lane.b32.xlu1 %v2948_v58, %s7046_s26  ;;  %v4119_v58 = vrot.slane %v4117_v49, 4  ;;  %v3243_v17 = vld [vmem:[%s7094_s20 + $0x90] sm:$0xf] }
 0x25e   : > { %2785 = vrot.lane.b32.xlu0 %v2670_v6, %s7045_s25  ;;  %v4120_v6 = vrot.slane %v8892_v53, 5  ;;  %v3562_v14 = vshll.u32 %v3243_v17, 16  ;;  %v3566_v26 = vshrl.u32 %v3243_v17, 16  ;;  %v2676_v29 = vsel %vm7456_vm6, %v2674_v8, %v2675_v61  ;;  %v3968_v61 = vld [vmem:[%s7094_s20 + $0x8c] sm:$0xf] }
 0x25f   : > { %v4199_v12 = vpop.permute.xlu1 %4198  ;;  %v2522_v8 = vld [vmem:[%s7094_s20 + $0x94] sm:$0xf] }
 0x260   : > { %4335 = vst.msk [vmem:[#allocation2 + $0x20] sm:$0xf] %vm10428_vm15, %v4199_v12  ;;  %v3769_v25 = vpop.permute.xlu0 %3768  ;;  %v4121_v15 = vsel %vm7456_vm6, %v4119_v58, %v4120_v6  ;;  %v2680_v12 = vrot.slane %v2678_v51, 4  ;;  %v3564_v39 = vrot.slane %v3562_v14, 5  ;;  %v3568_v40 = vrot.slane %v3566_v26, 4 }
 0x261   : > { %3902 = vst.msk [vmem:[#allocation2 + $0x2c] sm:$0xf] %vm3890_vm14, %v3769_v25  ;;  %3072 = vrot.lane.b32.xlu1 %v2950_v36, %s7046_s26  ;;  %v4123_v58 = vrot.slane %v3968_v61, 5  ;;  %v8988_v14 = vld [vmem:[%s7094_s20 + $0x98] sm:$0xf]  ;;  %v2687_v26 = vrot.slane %v2522_v8, 5 }
 0x262   : > { %3070 = vrot.lane.b32.xlu0 %v2949_v23, %s7046_s26  ;;  %v2681_v23 = vrot.slane %v8919_v16, 5  ;;  %v3569_v43 = vor.u32 %v3568_v40, %v3564_v39 }
 0x263   : > { %v4203_v19 = vpop.permute.xlu1 %4202  ;;  %v2689_v16 = vrot.slane %v2687_v26, 4 }
 0x264   : > { %4337 = vst.msk [vmem:[#allocation2 + $0x28] sm:$0xf] %vm10428_vm15, %v4203_v19  ;;  %v4201_v32 = vpop.permute.xlu0 %4200  ;;  %v3244_v19 = vld [vmem:[%s7094_s20 + $0x94] sm:$0xf]  ;;  %v2682_v21 = vsel %vm7456_vm6, %v2680_v12, %v2681_v23  ;;  %v3570_v55 = vrot.slane %v3569_v43, 4 }
 0x265   : > { %4336 = vst.msk [vmem:[#allocation2 + $0x24] sm:$0xf] %vm10428_vm15, %v4201_v32  ;;  %3794 = vrot.lane.b32.xlu1 %v3515_v31, %s7047_s29  ;;  %v3552_v31 = vshll.u32 %v3242_v52, 16  ;;  %v3572_v42 = vshll.u32 %v3244_v19, 16  ;;  %v3576_v20 = vshrl.u32 %v3244_v19, 16 }
 0x266   : > { %3074 = vrot.lane.b32.xlu0 %v2951_v33, %s7046_s26  ;;  %v3556_v33 = vshrl.u32 %v3242_v52, 16  ;;  %v4125_v52 = vrot.slane %v4123_v58, 4 }
 0x267   : > { %v2756_v48 = vpop.permute.xlu1 %2755  ;;  %v3578_v49 = vrot.slane %v3576_v20, 4 }
 0x268   : > { %2888 = vst.msk [vmem:[#allocation2 + $0x30] sm:$0xf] %vm2875_vm12, %v2756_v48  ;;  %v4205_v38 = vpop.permute.xlu0 %4204  ;;  %v3558_v47 = vrot.slane %v3556_v33, 4  ;;  %v2523_v33 = vld [vmem:[%s7094_s20 + $0x98] sm:$0xf] }
 0x269   : > { %4338 = vst.msk [vmem:[#allocation2 + $0x2c] sm:$0xf] %vm10428_vm15, %v4205_v38  ;;  %3798 = vrot.lane.b32.xlu1 %v3535_v45, %s7047_s29  ;;  %v3554_v45 = vrot.slane %v3552_v31, 5  ;;  %v2953_v38 = vld [vmem:[%s7094_s20 + $0x8c] sm:$0xf] }
 0x26a   : > { %3796 = vrot.lane.b32.xlu0 %v3525_v28, %s7047_s29  ;;  %v2954_v28 = vld [vmem:[%s7094_s20 + $0x90] sm:$0xf] }
 0x26b   : > { %v2760_v54 = vpop.permute.xlu1 %2759  ;;  %v3559_v46 = vor.u32 %v3558_v47, %v3554_v45  ;;  %v9015_v47 = vld [vmem:[%s7094_s20 + $0x9c] sm:$0xf] }
 0x26c   : > { %2890 = vst.msk [vmem:[#allocation2 + $0x38] sm:$0xf] %vm2875_vm12, %v2760_v54  ;;  %v2758_v57 = vpop.permute.xlu0 %2757  ;;  %v6996_v37 = vld [vmem:[#allocation2 + $0x20] sm:$0xff]   ;;  %v8951_v54 = vld [vmem:[%s7094_s20 + $0x98] sm:$0xf] }
 0x26d   : > { %2889 = vst.msk [vmem:[#allocation2 + $0x34] sm:$0xf] %vm2875_vm12, %v2758_v57  ;;  %4230 = vrot.lane.b32.xlu1 %v4112_v35, %s7048_s7  ;;  %6812 = vmatprep.mubr.msk.bf16.mxu0 %vm4563_vm0, %v6996_v37  ;;  %v3574_v35 = vrot.slane %v3572_v42, 5  ;;  %v3560_v37 = vrot.slane %v3559_v46, 4  ;;  %v3582_v41 = vshll.u32 %v8951_v54, 16  ;;  %v3586_v40 = vshrl.u32 %v8951_v54, 16 }
 0x26e   : > { %3800 = vrot.lane.b32.xlu0 %v3545_v44, %s7047_s29  ;;  %v3555_v44 = vsel %vm7105_vm2, %v3550_v24, %v3554_v45  ;;  %v3246_v24 = vld [vmem:[%s7094_s20 + $0x9c] sm:$0xf] }
 0x26f   : > { %v3045_v2 = vpop.permute.xlu1 %3044  ;;  %v3565_v30 = vsel %vm7105_vm2, %v3560_v37, %v3564_v39  ;;  %v8972_v3 = vrot.slane %v3582_v41, 5  ;;  %v2956_v37 = vld [vmem:[%s7094_s20 + $0x98] sm:$0xf] }
 0x270   : > { %3177 = vst.msk [vmem:[#allocation2 + $0x30] sm:$0xf] %vm3164_vm13, %v3045_v2  ;;  %v2762_v4 = vpop.permute.xlu0 %2761  ;;  %v6997_v59 = vld [vmem:[#allocation2 + $0x28] sm:$0xff]   ;;  %v3575_v2 = vsel %vm7105_vm2, %v3570_v55, %v3574_v35 }
 0x271   : > { %2891 = vst.msk [vmem:[#allocation2 + $0x3c] sm:$0xf] %vm2875_vm12, %v2762_v4  ;;  %4234 = vrot.lane.b32.xlu1 %v4118_v60, %s7048_s7  ;;  %6813 = vmatmul.mubr.msk.bf16.gmra.mxu0 %vm4563_vm0, %v6997_v59  ;;  %v3579_v60 = vor.u32 %v3578_v49, %v3574_v35  ;;  %v4126_v4 = vrot.slane %v3969_v63, 5  ;;  %v3588_v35 = vrot.slane %v3586_v40, 4 }
 0x272   : > { %4232 = vrot.lane.b32.xlu0 %v4115_v5, %s7048_s7  ;;  %v4122_v5 = vrot.slane %v4120_v6, 4 }
 0x273   : > { %v3049_v10 = vpop.permute.xlu1 %3048  ;;  %v3580_v51 = vrot.slane %v3579_v60, 4  ;;  %v4128_v6 = vrot.slane %v4126_v4, 4  ;;  %v4127_v19 = vsel %vm7456_vm6, %v4125_v52, %v4126_v4  ;;  %v3589_v60 = vor.u32 %v3588_v35, %v8972_v3  ;;  %v2959_v52 = vld [vmem:[%s7094_s20 + $0xa4] sm:$0xf] }
 0x274   : > { %3179 = vst.msk [vmem:[#allocation2 + $0x38] sm:$0xf] %vm3164_vm13, %v3049_v10  ;;  %v3047_v36 = vpop.permute.xlu0 %3046  ;;  %v4124_v53 = vsel %vm7456_vm6, %v4122_v5, %v4123_v58 }
 0x275   : > { %3178 = vst.msk [vmem:[#allocation2 + $0x34] sm:$0xf] %vm3164_vm13, %v3047_v36  ;;  %2787 = vrot.lane.b32.xlu1 %v2673_v0, %s7045_s25  ;;  %v3970_v0 = vld [vmem:[%s7094_s20 + $0x94] sm:$0xf]  ;;  %v3585_v36 = vsel %vm7105_vm2, %v3580_v51, %v8972_v3  ;;  %v3590_v51 = vrot.slane %v3589_v60, 4 }
 0x276   : > { %4236 = vrot.lane.b32.xlu0 %v4121_v15, %s7048_s7  ;;  %v4129_v15 = vrot.slane %v3970_v0, 5 }
 0x277   : > { %v3771_v25 = vpop.permute.xlu1 %3770 }
 0x278   : > { %3903 = vst.msk [vmem:[#allocation2 + $0x30] sm:$0xf] %vm3890_vm14, %v3771_v25  ;;  %v3051_v13 = vpop.permute.xlu0 %3050  ;;  %v4130_v25 = vsel %vm7456_vm6, %v4128_v6, %v4129_v15 }
 0x279   : > { %3180 = vst.msk [vmem:[#allocation2 + $0x3c] sm:$0xf] %vm3164_vm13, %v3051_v13  ;;  %2791 = vrot.lane.b32.xlu1 %v2679_v11, %s7045_s25  ;;  %v2521_v11 = vld [vmem:[%s7094_s20 + $0x90] sm:$0xf] }
 0x27a   : > { %2789 = vrot.lane.b32.xlu0 %v2676_v29, %s7045_s25  ;;  %v2683_v29 = vrot.slane %v2681_v23, 4  ;;  %v2684_v31 = vrot.slane %v2521_v11, 5  ;;  %v2690_v23 = vrot.slane %v2523_v33, 5 }
 0x27b   : > { %v3775_v32 = vpop.permute.xlu1 %3774 }
 0x27c   : > { %3905 = vst.msk [vmem:[#allocation2 + $0x38] sm:$0xf] %vm3890_vm14, %v3775_v32  ;;  %v3773_v48 = vpop.permute.xlu0 %3772  ;;  %v2685_v32 = vsel %vm7456_vm6, %v2683_v29, %v2684_v31  ;;  %v2686_v20 = vrot.slane %v2684_v31, 4  ;;  %v2691_v43 = vsel %vm7456_vm6, %v2689_v16, %v2690_v23  ;;  %v3973_v31 = vld [vmem:[%s7094_s20 + $0xa0] sm:$0xf] }
 0x27d   : > { %3904 = vst.msk [vmem:[#allocation2 + $0x34] sm:$0xf] %vm3890_vm14, %v3773_v48  ;;  %3076 = vrot.lane.b32.xlu1 %v2952_v34, %s7046_s26  ;;  %v4131_v34 = vrot.slane %v4129_v15, 4  ;;  %v3247_v48 = vld [vmem:[%s7094_s20 + $0xa0] sm:$0xf] }
 0x27e   : > { %2793 = vrot.lane.b32.xlu0 %v2682_v21, %s7045_s25  ;;  %v4132_v21 = vrot.slane %v8988_v14, 5  ;;  %v3602_v46 = vshll.u32 %v3247_v48, 16  ;;  %v3606_v49 = vshrl.u32 %v3247_v48, 16  ;;  %v2688_v54 = vsel %vm7456_vm6, %v2686_v20, %v2687_v26  ;;  %v3972_v26 = vld [vmem:[%s7094_s20 + $0x9c] sm:$0xf] }
 0x27f   : > { %v4207_v18 = vpop.permute.xlu1 %4206  ;;  %v2526_v20 = vld [vmem:[%s7094_s20 + $0xa4] sm:$0xf] }
 0x280   : > { %4339 = vst.msk [vmem:[#allocation2 + $0x30] sm:$0xf] %vm10428_vm15, %v4207_v18  ;;  %v3777_v50 = vpop.permute.xlu0 %3776  ;;  %v4133_v42 = vsel %vm7456_vm6, %v4131_v34, %v4132_v21  ;;  %v2692_v18 = vrot.slane %v2690_v23, 4  ;;  %v3604_v41 = vrot.slane %v3602_v46, 5  ;;  %v3608_v63 = vrot.slane %v3606_v49, 4 }
 0x281   : > { %3906 = vst.msk [vmem:[#allocation2 + $0x3c] sm:$0xf] %vm3890_vm14, %v3777_v50  ;;  %3080 = vrot.lane.b32.xlu1 %v2954_v28, %s7046_s26  ;;  %v4135_v34 = vrot.slane %v3972_v26, 5  ;;  %v9084_v46 = vld [vmem:[%s7094_s20 + $0xa8] sm:$0xf]  ;;  %v2699_v49 = vrot.slane %v2526_v20, 5 }
 0x282   : > { %3078 = vrot.lane.b32.xlu0 %v2953_v38, %s7046_s26  ;;  %v2693_v38 = vrot.slane %v9015_v47, 5  ;;  %v3609_v3 = vor.u32 %v3608_v63, %v3604_v41 }
 0x283   : > { %v4211_v57 = vpop.permute.xlu1 %4210  ;;  %v2701_v47 = vrot.slane %v2699_v49, 4 }
 0x284   : > { %4341 = vst.msk [vmem:[#allocation2 + $0x38] sm:$0xf] %vm10428_vm15, %v4211_v57  ;;  %v4209_v1 = vpop.permute.xlu0 %4208  ;;  %v3248_v57 = vld [vmem:[%s7094_s20 + $0xa4] sm:$0xf]  ;;  %v2694_v61 = vsel %vm7456_vm6, %v2692_v18, %v2693_v38  ;;  %v3610_v11 = vrot.slane %v3609_v3, 4 }
 0x285   : > { %4340 = vst.msk [vmem:[#allocation2 + $0x34] sm:$0xf] %vm10428_vm15, %v4209_v1  ;;  %3802 = vrot.lane.b32.xlu1 %v3555_v44, %s7047_s29  ;;  %v3592_v44 = vshll.u32 %v3246_v24, 16  ;;  %v3612_v5 = vshll.u32 %v3248_v57, 16  ;;  %v3616_v58 = vshrl.u32 %v3248_v57, 16 }
 0x286   : > { %3082 = vrot.lane.b32.xlu0 %v2955_v7, %s7046_s26  ;;  %v3596_v7 = vshrl.u32 %v3246_v24, 16  ;;  %v4137_v24 = vrot.slane %v4135_v34, 4 }
 0x287   : > { %v2764_v59 = vpop.permute.xlu1 %2763  ;;  %v3618_v15 = vrot.slane %v3616_v58, 4 }
 0x288   : > { %2892 = vst.msk [vmem:[#allocation2 + $0x40] sm:$0xf] %vm2875_vm12, %v2764_v59  ;;  %v4213_v10 = vpop.permute.xlu0 %4212  ;;  %v3598_v4 = vrot.slane %v3596_v7, 4  ;;  %v2527_v7 = vld [vmem:[%s7094_s20 + $0xa8] sm:$0xf] }
 0x289   : > { %4342 = vst.msk [vmem:[#allocation2 + $0x3c] sm:$0xf] %vm10428_vm15, %v4213_v10  ;;  %3806 = vrot.lane.b32.xlu1 %v3575_v2, %s7047_s29  ;;  %v3594_v2 = vrot.slane %v3592_v44, 5  ;;  %v2957_v10 = vld [vmem:[%s7094_s20 + $0x9c] sm:$0xf] }
 0x28a   : > { %3804 = vrot.lane.b32.xlu0 %v3565_v30, %s7047_s29  ;;  %v2958_v30 = vld [vmem:[%s7094_s20 + $0xa0] sm:$0xf] }
 0x28b   : > { %v2768_v17 = vpop.permute.xlu1 %2767  ;;  %v3599_v6 = vor.u32 %v3598_v4, %v3594_v2  ;;  %v9111_v4 = vld [vmem:[%s7094_s20 + $0xac] sm:$0xf] }
 0x28c   : > { %2894 = vst.msk [vmem:[#allocation2 + $0x48] sm:$0xf] %vm2875_vm12, %v2768_v17  ;;  %v2766_v12 = vpop.permute.xlu0 %2765  ;;  %v6998_v62 = vld [vmem:[#allocation2 + $0x30] sm:$0xff]   ;;  %v9047_v17 = vld [vmem:[%s7094_s20 + $0xa8] sm:$0xf] }
 0x28d   : > { %2893 = vst.msk [vmem:[#allocation2 + $0x44] sm:$0xf] %vm2875_vm12, %v2766_v12  ;;  %4238 = vrot.lane.b32.xlu1 %v4124_v53, %s7048_s7  ;;  %6816 = vmatprep.mubr.msk.bf16.mxu0 %vm4563_vm0, %v6998_v62  ;;  %v3614_v53 = vrot.slane %v3612_v5, 5  ;;  %v3600_v62 = vrot.slane %v3599_v6, 4  ;;  %v3622_v29 = vshll.u32 %v9047_v17, 16  ;;  %v3626_v63 = vshrl.u32 %v9047_v17, 16 }
 0x28e   : > { %3808 = vrot.lane.b32.xlu0 %v3585_v36, %s7047_s29  ;;  %v3595_v36 = vsel %vm7105_vm2, %v3590_v51, %v3594_v2  ;;  %v3250_v51 = vld [vmem:[%s7094_s20 + $0xac] sm:$0xf] }
 0x28f   : > { %v3053_v13 = vpop.permute.xlu1 %3052  ;;  %v3605_v16 = vsel %vm7105_vm2, %v3600_v62, %v3604_v41  ;;  %v9068_v40 = vrot.slane %v3622_v29, 5  ;;  %v2960_v62 = vld [vmem:[%s7094_s20 + $0xa8] sm:$0xf] }
 0x290   : > { %3181 = vst.msk [vmem:[#allocation2 + $0x40] sm:$0xf] %vm3164_vm13, %v3053_v13  ;;  %v2770_v22 = vpop.permute.xlu0 %2769  ;;  %v6999_v39 = vld [vmem:[#allocation2 + $0x38] sm:$0xff]   ;;  %v3615_v13 = vsel %vm7105_vm2, %v3610_v11, %v3614_v53 }
 0x291   : > { %2895 = vst.msk [vmem:[#allocation2 + $0x4c] sm:$0xf] %vm2875_vm12, %v2770_v22  ;;  %4242 = vrot.lane.b32.xlu1 %v4130_v25, %s7048_s7  ;;  %6817 = vmatmul.mubr.msk.bf16.gmra.mxu0 %vm4563_vm0, %v6999_v39  ;;  %v3619_v25 = vor.u32 %v3618_v15, %v3614_v53  ;;  %v4138_v22 = vrot.slane %v3973_v31, 5  ;;  %v3628_v53 = vrot.slane %v3626_v63, 4 }
 0x292   : > { %4240 = vrot.lane.b32.xlu0 %v4127_v19, %s7048_s7  ;;  %v4134_v19 = vrot.slane %v4132_v21, 4 }
 0x293   : > { %v3057_v45 = vpop.permute.xlu1 %3056  ;;  %v3620_v23 = vrot.slane %v3619_v25, 4  ;;  %v4140_v21 = vrot.slane %v4138_v22, 4  ;;  %v4139_v57 = vsel %vm7456_vm6, %v4137_v24, %v4138_v22  ;;  %v3629_v25 = vor.u32 %v3628_v53, %v9068_v40  ;;  %v2963_v24 = vld [vmem:[%s7094_s20 + $0xb4] sm:$0xf]  ;;  %v9179_v53 = vld [vmem:[%s7094_s20 + $0xb8] sm:$0xf] }
 0x294   : > { %3183 = vst.msk [vmem:[#allocation2 + $0x48] sm:$0xf] %vm3164_vm13, %v3057_v45  ;;  %v3055_v28 = vpop.permute.xlu0 %3054  ;;  %v4136_v14 = vsel %vm7456_vm6, %v4134_v19, %v4135_v34 }
 0x295   : > { %3182 = vst.msk [vmem:[#allocation2 + $0x44] sm:$0xf] %vm3164_vm13, %v3055_v28  ;;  %2795 = vrot.lane.b32.xlu1 %v2685_v32, %s7045_s25  ;;  %v3974_v32 = vld [vmem:[%s7094_s20 + $0xa4] sm:$0xf]  ;;  %v3625_v28 = vsel %vm7105_vm2, %v3620_v23, %v9068_v40  ;;  %v3630_v23 = vrot.slane %v3629_v25, 4 }
 0x296   : > { %4244 = vrot.lane.b32.xlu0 %v4133_v42, %s7048_s7  ;;  %v4141_v42 = vrot.slane %v3974_v32, 5 }
 0x297   : > { %v3779_v50 = vpop.permute.xlu1 %3778 }
 0x298   : > { %3907 = vst.msk [vmem:[#allocation2 + $0x40] sm:$0xf] %vm3890_vm14, %v3779_v50  ;;  %v3059_v55 = vpop.permute.xlu0 %3058  ;;  %v4142_v50 = vsel %vm7456_vm6, %v4140_v21, %v4141_v42 }
 0x299   : > { %3184 = vst.msk [vmem:[#allocation2 + $0x4c] sm:$0xf] %vm3164_vm13, %v3059_v55  ;;  %2799 = vrot.lane.b32.xlu1 %v2691_v43, %s7045_s25  ;;  %v2525_v43 = vld [vmem:[%s7094_s20 + $0xa0] sm:$0xf] }
 0x29a   : > { %2797 = vrot.lane.b32.xlu0 %v2688_v54, %s7045_s25  ;;  %v2695_v54 = vrot.slane %v2693_v38, 4  ;;  %v2696_v44 = vrot.slane %v2525_v43, 5  ;;  %v2702_v38 = vrot.slane %v2527_v7, 5 }
 0x29b   : > { %v3783_v1 = vpop.permute.xlu1 %3782 }
 0x29c   : > { %3909 = vst.msk [vmem:[#allocation2 + $0x48] sm:$0xf] %vm3890_vm14, %v3783_v1  ;;  %v3781_v59 = vpop.permute.xlu0 %3780  ;;  %v2697_v1 = vsel %vm7456_vm6, %v2695_v54, %v2696_v44  ;;  %v2698_v58 = vrot.slane %v2696_v44, 4  ;;  %v2703_v3 = vsel %vm7456_vm6, %v2701_v47, %v2702_v38  ;;  %v3977_v44 = vld [vmem:[%s7094_s20 + $0xb0] sm:$0xf] }
 0x29d   : > { %3908 = vst.msk [vmem:[#allocation2 + $0x44] sm:$0xf] %vm3890_vm14, %v3781_v59  ;;  %3084 = vrot.lane.b32.xlu1 %v2956_v37, %s7046_s26  ;;  %v4143_v37 = vrot.slane %v4141_v42, 4  ;;  %v3251_v59 = vld [vmem:[%s7094_s20 + $0xb0] sm:$0xf] }
 0x29e   : > { %2801 = vrot.lane.b32.xlu0 %v2694_v61, %s7045_s25  ;;  %v4144_v61 = vrot.slane %v9084_v46, 5  ;;  %v3642_v6 = vshll.u32 %v3251_v59, 16  ;;  %v3646_v15 = vshrl.u32 %v3251_v59, 16  ;;  %v2700_v17 = vsel %vm7456_vm6, %v2698_v58, %v2699_v49  ;;  %v3976_v49 = vld [vmem:[%s7094_s20 + $0xac] sm:$0xf] }
 0x29f   : > { %v4215_v0 = vpop.permute.xlu1 %4214  ;;  %v5153_v58 = vlaneseq }
 0x2a0   : > { %4343 = vst.msk [vmem:[#allocation2 + $0x40] sm:$0xf] %vm10428_vm15, %v4215_v0  ;;  %v3785_v8 = vpop.permute.xlu0 %3784  ;;  %v4145_v5 = vsel %vm7456_vm6, %v4143_v37, %v4144_v61  ;;  %v2704_v0 = vrot.slane %v2702_v38, 4  ;;  %v3644_v29 = vrot.slane %v3642_v6, 5  ;;  %v3648_v31 = vrot.slane %v3646_v15, 4 }
 0x2a1   : > { %3910 = vst.msk [vmem:[#allocation2 + $0x4c] sm:$0xf] %vm3890_vm14, %v3785_v8  ;;  %3088 = vrot.lane.b32.xlu1 %v2958_v30, %s7046_s26  ;;  %v4147_v37 = vrot.slane %v3976_v49, 5 }
 0x2a2   : > { %3086 = vrot.lane.b32.xlu0 %v2957_v10, %s7046_s26  ;;  %v2705_v10 = vrot.slane %v9111_v4, 5  ;;  %v3649_v40 = vor.u32 %v3648_v31, %v3644_v29 }
 0x2a3   : > { %v4219_v12 = vpop.permute.xlu1 %4218 }
 0x2a4   : > { %4345 = vst.msk [vmem:[#allocation2 + $0x48] sm:$0xf] %vm10428_vm15, %v4219_v12  ;;  %v4217_v33 = vpop.permute.xlu0 %4216  ;;  %v3252_v12 = vld [vmem:[%s7094_s20 + $0xb4] sm:$0xf]  ;;  %v2706_v26 = vsel %vm7456_vm6, %v2704_v0, %v2705_v10  ;;  %v3650_v43 = vrot.slane %v3649_v40, 4 }
 0x2a5   : > { %4344 = vst.msk [vmem:[#allocation2 + $0x44] sm:$0xf] %vm10428_vm15, %v4217_v33  ;;  %3810 = vrot.lane.b32.xlu1 %v3595_v36, %s7047_s29  ;;  %v3632_v36 = vshll.u32 %v3250_v51, 16  ;;  %v3652_v19 = vshll.u32 %v3252_v12, 16  ;;  %v3656_v34 = vshrl.u32 %v3252_v12, 16  ;;  %v2707_v12 = vrot.slane %v2705_v10, 4 }
 0x2a6   : > { %3090 = vrot.lane.b32.xlu0 %v2959_v52, %s7046_s26  ;;  %v3636_v52 = vshrl.u32 %v3250_v51, 16  ;;  %v2529_v51 = vld [vmem:[%s7094_s20 + $0xb0] sm:$0xf] }
 0x2a7   : > { %v2772_v39 = vpop.permute.xlu1 %2771  ;;  %v3658_v42 = vrot.slane %v3656_v34, 4 }
 0x2a8   : > { %2896 = vst.msk [vmem:[#allocation2 + $0x50] sm:$0xf] %vm2875_vm12, %v2772_v39  ;;  %v4221_v45 = vpop.permute.xlu0 %4220  ;;  %v3638_v22 = vrot.slane %v3636_v52, 4 }
 0x2a9   : > { %4346 = vst.msk [vmem:[#allocation2 + $0x4c] sm:$0xf] %vm10428_vm15, %v4221_v45  ;;  %3814 = vrot.lane.b32.xlu1 %v3615_v13, %s7047_s29  ;;  %v3634_v13 = vrot.slane %v3632_v36, 5  ;;  %v2961_v45 = vld [vmem:[%s7094_s20 + $0xac] sm:$0xf]  ;;  %v9183_v36 = vshrl.u32 %v5153_v58, 7 }
 0x2aa   : > { %3812 = vrot.lane.b32.xlu0 %v3605_v16, %s7047_s29  ;;  %v2962_v16 = vld [vmem:[%s7094_s20 + $0xb0] sm:$0xf]  ;;  %v2964_v58 = vld [vmem:[%s7094_s20 + $0xb8] sm:$0xf] }
 0x2ab   : > { %v2776_v48 = vpop.permute.xlu1 %2775  ;;  %v3639_v21 = vor.u32 %v3638_v22, %v3634_v13  ;;  %v9204_v4 = vadd.s32 24, %v9183_v36  ;;  %v9642_v56 = vadd.s32 64, %v9183_v36 }
 0x2ac   : > { %2898 = vst.msk [vmem:[#allocation2 + $0x58] sm:$0xf] %vm2875_vm12, %v2776_v48  ;;  %v2774_v18 = vpop.permute.xlu0 %2773  ;;  %v7000_v35 = vld [vmem:[#allocation2 + $0x40] sm:$0xff]   ;;  %v9143_v48 = vld [vmem:[%s7094_s20 + $0xb8] sm:$0xf] }
 0x2ad   : > { %2897 = vst.msk [vmem:[#allocation2 + $0x54] sm:$0xf] %vm2875_vm12, %v2774_v18  ;;  %4246 = vrot.lane.b32.xlu1 %v4136_v14, %s7048_s7  ;;  %6820 = vmatprep.mubr.msk.bf16.mxu0 %vm4563_vm0, %v7000_v35  ;;  %v3654_v14 = vrot.slane %v3652_v19, 5  ;;  %v3640_v35 = vrot.slane %v3639_v21, 4  ;;  %v3662_v54 = vshll.u32 %v9143_v48, 16 }
 0x2ae   : > { %3816 = vrot.lane.b32.xlu0 %v3625_v28, %s7047_s29  ;;  %v3635_v28 = vsel %vm7105_vm2, %v3630_v23, %v3634_v13  ;;  %v3666_v13 = vshrl.u32 %v9143_v48, 16 }
 0x2af   : > { %v3061_v55 = vpop.permute.xlu1 %3060  ;;  %v3645_v47 = vsel %vm7105_vm2, %v3640_v35, %v3644_v29  ;;  %v9164_v63 = vrot.slane %v3662_v54, 5  ;;  %v4156_v29 = vrot.slane %v9179_v53, 5  ;;  %v9297_v53 = vld [vmem:[%s7094_s20 + $0xc4] sm:$0xf] }
 0x2b0   : > { %3185 = vst.msk [vmem:[#allocation2 + $0x50] sm:$0xf] %vm3164_vm13, %v3061_v55  ;;  %v2778_v60 = vpop.permute.xlu0 %2777  ;;  %v7001_v41 = vld [vmem:[#allocation2 + $0x48] sm:$0xff]   ;;  %v3655_v55 = vsel %vm7105_vm2, %v3650_v43, %v3654_v14  ;;  %v3668_v48 = vrot.slane %v3666_v13, 4  ;;  %v9234_v35 = vmul.u32.u64.low 2863311531, %v9204_v4  ;;  %v9235_v49 = vmul.u32.u64.high 2863311531, %v9204_v4, %v9234_v35 }
 0x2b1   : > { %2899 = vst.msk [vmem:[#allocation2 + $0x5c] sm:$0xf] %vm2875_vm12, %v2778_v60  ;;  %4250 = vrot.lane.b32.xlu1 %v4142_v50, %s7048_s7  ;;  %6821 = vmatmul.mubr.msk.bf16.gmra.mxu0 %vm4563_vm0, %v7001_v41  ;;  %v3659_v50 = vor.u32 %v3658_v42, %v3654_v14  ;;  %v4150_v60 = vrot.slane %v3977_v44, 5  ;;  %v9219_v14 = vadd.s32 8, %v9183_v36  ;;  %v3980_v13 = vld [vmem:[%s7094_s20 + $0xbc] sm:$0xf] }
 0x2b2   : > { %4248 = vrot.lane.b32.xlu0 %v4139_v57, %s7048_s7  ;;  %v4146_v57 = vrot.slane %v4144_v61, 4 }
 0x2b3   : > { %v3065_v2 = vpop.permute.xlu1 %3064  ;;  %v3660_v38 = vrot.slane %v3659_v50, 4  ;;  %v4152_v61 = vrot.slane %v4150_v60, 4 }
 0x2b4   : > { %3187 = vst.msk [vmem:[#allocation2 + $0x58] sm:$0xf] %vm3164_vm13, %v3065_v2  ;;  %v3063_v30 = vpop.permute.xlu0 %3062  ;;  %v4148_v46 = vsel %vm7456_vm6, %v4146_v57, %v4147_v37 }
 0x2b5   : > { %3186 = vst.msk [vmem:[#allocation2 + $0x54] sm:$0xf] %vm3164_vm13, %v3063_v30  ;;  %2803 = vrot.lane.b32.xlu1 %v2697_v1, %s7045_s25  ;;  %v3978_v1 = vld [vmem:[%s7094_s20 + $0xb4] sm:$0xf]  ;;  %v4149_v30 = vrot.slane %v4147_v37, 4  ;;  %v3665_v0 = vsel %vm7105_vm2, %v3660_v38, %v9164_v63 }
 0x2b6   : > { %4252 = vrot.lane.b32.xlu0 %v4145_v5, %s7048_s7  ;;  %v2530_v5 = vld [vmem:[%s7094_s20 + $0xb4] sm:$0xf]  ;;  %v4153_v59 = vrot.slane %v3978_v1, 5  ;;  %v3669_v1 = vor.u32 %v3668_v48, %v9164_v63 }
 0x2b7   : > { %v3787_v8 = vpop.permute.xlu1 %3786  ;;  %v2711_v6 = vrot.slane %v2530_v5, 5 }
 0x2b8   : > { %3911 = vst.msk [vmem:[#allocation2 + $0x50] sm:$0xf] %vm3890_vm14, %v3787_v8  ;;  %v3067_v11 = vpop.permute.xlu0 %3066  ;;  %v4154_v52 = vsel %vm7456_vm6, %v4152_v61, %v4153_v59  ;;  %v4155_v25 = vrot.slane %v4153_v59, 4 }
 0x2b9   : > { %3188 = vst.msk [vmem:[#allocation2 + $0x5c] sm:$0xf] %vm3164_vm13, %v3067_v11  ;;  %2807 = vrot.lane.b32.xlu1 %v2703_v3, %s7045_s25  ;;  %v4151_v11 = vsel %vm7456_vm6, %v4149_v30, %v4150_v60  ;;  %v2713_v31 = vrot.slane %v2711_v6, 4  ;;  %v3256_v60 = vld [vmem:[%s7094_s20 + $0xc4] sm:$0xf] }
 0x2ba   : > { %2805 = vrot.lane.b32.xlu0 %v2700_v17, %s7045_s25  ;;  %v2531_v17 = vld [vmem:[%s7094_s20 + $0xb8] sm:$0xf]  ;;  %v4157_v40 = vsel %vm7456_vm6, %v4155_v25, %v4156_v29  ;;  %v3692_v59 = vshll.u32 %v3256_v60, 16  ;;  %v3696_v30 = vshrl.u32 %v3256_v60, 16  ;;  %v2965_v25 = vld [vmem:[%s7094_s20 + $0xbc] sm:$0xf] }
 0x2bb   : > { %v3791_v33 = vpop.permute.xlu1 %3790 }
 0x2bc   : > { %3913 = vst.msk [vmem:[#allocation2 + $0x58] sm:$0xf] %vm3890_vm14, %v3791_v33  ;;  %v3789_v39 = vpop.permute.xlu0 %3788  ;;  %v2714_v33 = vrot.slane %v2531_v17, 5  ;;  %v2966_v17 = vld [vmem:[%s7094_s20 + $0xc0] sm:$0xf] }
 0x2bd   : > { %3912 = vst.msk [vmem:[#allocation2 + $0x54] sm:$0xf] %vm3890_vm14, %v3789_v39  ;;  %3092 = vrot.lane.b32.xlu1 %v2960_v62, %s7046_s26  ;;  %v2708_v62 = vrot.slane %v2529_v51, 5  ;;  %v9199_v39 = vadd.s32 16, %v9183_v36 }
 0x2be   : > { %2809 = vrot.lane.b32.xlu0 %v2706_v26, %s7045_s25  ;;  %v2716_v57 = vrot.slane %v2714_v33, 4 }
 0x2bf   : > { %v4223_v32 = vpop.permute.xlu1 %4222  ;;  %v2710_v22 = vrot.slane %v2708_v62, 4  ;;  %v2709_v10 = vsel %vm7456_vm6, %v2707_v12, %v2708_v62  ;;  %v3698_v12 = vrot.slane %v3696_v30, 4 }
 0x2c0   : > { %4347 = vst.msk [vmem:[#allocation2 + $0x50] sm:$0xf] %vm10428_vm15, %v4223_v32  ;;  %v3793_v20 = vpop.permute.xlu0 %3792  ;;  %v2715_v32 = vsel %vm7456_vm6, %v2713_v31, %v2714_v33 }
 0x2c1   : > { %3914 = vst.msk [vmem:[#allocation2 + $0x5c] sm:$0xf] %vm3890_vm14, %v3793_v20  ;;  %3096 = vrot.lane.b32.xlu1 %v2962_v16, %s7046_s26  ;;  %v3254_v16 = vld [vmem:[%s7094_s20 + $0xbc] sm:$0xf]  ;;  %v2712_v42 = vsel %vm7456_vm6, %v2710_v22, %v2711_v6  ;;  %v3670_v6 = vrot.slane %v3669_v1, 4 }
 0x2c2   : > { %3094 = vrot.lane.b32.xlu0 %v2961_v45, %s7046_s26  ;;  %v3255_v45 = vld [vmem:[%s7094_s20 + $0xc0] sm:$0xf]  ;;  %v9225_v20 = vld [vmem:[%s7094_s20 + $0xbc] sm:$0xf]  ;;  %v3672_v43 = vshll.u32 %v3254_v16, 16 }
 0x2c3   : > { %v4227_v18 = vpop.permute.xlu1 %4226  ;;  %v3682_v50 = vshll.u32 %v3255_v45, 16  ;;  %v3686_v54 = vshrl.u32 %v3255_v45, 16  ;;  %v2717_v37 = vrot.slane %v9225_v20, 5  ;;  %v7016_v22 = vld [vmem:[%s7094_s20 + $0xc8] sm:$0xf] }
 0x2c4   : > { %4349 = vst.msk [vmem:[#allocation2 + $0x58] sm:$0xf] %vm10428_vm15, %v4227_v18  ;;  %v4225_v7 = vpop.permute.xlu0 %4224  ;;  %v3676_v18 = vshrl.u32 %v3254_v16, 16 }
 0x2c5   : > { %4348 = vst.msk [vmem:[#allocation2 + $0x54] sm:$0xf] %vm10428_vm15, %v4225_v7  ;;  %3818 = vrot.lane.b32.xlu1 %v3635_v28, %s7047_s29  ;;  %v9239_v44 = vmul.u32.u64.low 2863311531, %v9183_v36  ;;  %v9240_v7 = vmul.u32.u64.high 2863311531, %v9183_v36, %v9239_v44  ;;  %v3688_v61 = vrot.slane %v3686_v54, 4 }
 0x2c6   : > { %3098 = vrot.lane.b32.xlu0 %v2963_v24, %s7046_s26  ;;  %v9228_v28 = vmul.u32.u64.low 2863311531, %v9199_v39  ;;  %v9229_v24 = vmul.u32.u64.high 2863311531, %v9199_v39, %v9228_v28  ;;  %v3678_v5 = vrot.slane %v3676_v18, 4 }
 0x2c7   : > { %v2780_v41 = vpop.permute.xlu1 %2779  ;;  %v5208_v62 = vshrl.u32 %v9240_v7, 4  ;;  %v2967_v28 = vld [vmem:[%s7094_s20 + $0xc4] sm:$0xf] }
 0x2c8   : > { %2900 = vst.msk [vmem:[#allocation2 + $0x60] sm:$0xf] %vm2875_vm12, %v2780_v41  ;;  %v4229_v2 = vpop.permute.xlu0 %4228 }
 0x2c9   : > { %4350 = vst.msk [vmem:[#allocation2 + $0x5c] sm:$0xf] %vm10428_vm15, %v4229_v2  ;;  %3822 = vrot.lane.b32.xlu1 %v3655_v55, %s7047_s29  ;;  %v3674_v2 = vrot.slane %v3672_v43, 5  ;;  %v4159_v43 = vrot.slane %v3980_v13, 5 }
 0x2ca   : > { %3820 = vrot.lane.b32.xlu0 %v3645_v47, %s7047_s29  ;;  %v9245_v41 = vmul.u32.u64.low 2863311531, %v9219_v14  ;;  %v9246_v47 = vmul.u32.u64.high 2863311531, %v9219_v14, %v9245_v41 }
 0x2cb   : > { %v2784_v3 = vpop.permute.xlu1 %2783  ;;  %v3675_v16 = vsel %vm7105_vm2, %v3670_v6, %v3674_v2 }
 0x2cc   : > { %2902 = vst.msk [vmem:[#allocation2 + $0x68] sm:$0xf] %vm2875_vm12, %v2784_v3  ;;  %v2782_v15 = vpop.permute.xlu0 %2781  ;;  %v7002_v8 = vld [vmem:[#allocation2 + $0x50] sm:$0xff]   ;;  %v2718_v3 = vsel %vm7456_vm6, %v2716_v57, %v2717_v37  ;;  %v5219_v31 = vshrl.u32 %v9246_v47, 4 }
 0x2cd   : > { %2901 = vst.msk [vmem:[#allocation2 + $0x64] sm:$0xf] %vm2875_vm12, %v2782_v15  ;;  %4254 = vrot.lane.b32.xlu1 %v4148_v46, %s7048_s7  ;;  %6824 = vmatprep.mubr.msk.bf16.mxu0 %vm4563_vm0, %v7002_v8  ;;  %v9254_v46 = vrot.slane %v3682_v50, 5  ;;  %v3679_v15 = vor.u32 %v3678_v5, %v3674_v2  ;;  %v5241_v8 = vshrl.u32 %v9235_v49, 4  ;;  %v4165_v5 = vrot.slane %v9297_v53, 5 }
 0x2ce   : > { %3824 = vrot.lane.b32.xlu0 %v3665_v0, %s7047_s29  ;;  %v5230_v0 = vshrl.u32 %v9229_v24, 4  ;;  %v4158_v24 = vrot.slane %v4156_v29, 4  ;;  %v5220_v35 = vmul.u32 24, %v5219_v31 }
 0x2cf   : > { %v3069_v26 = vpop.permute.xlu1 %3068  ;;  %v3680_v45 = vrot.slane %v3679_v15, 4 }
 0x2d0   : > { %3189 = vst.msk [vmem:[#allocation2 + $0x60] sm:$0xf] %vm3164_vm13, %v3069_v26  ;;  %v2786_v19 = vpop.permute.xlu0 %2785  ;;  %v7003_v34 = vld [vmem:[#allocation2 + $0x58] sm:$0xff]   ;;  %v4160_v41 = vsel %vm7456_vm6, %v4158_v24, %v4159_v43 }
 0x2d1   : > { %2903 = vst.msk [vmem:[#allocation2 + $0x6c] sm:$0xf] %vm2875_vm12, %v2786_v19  ;;  %4258 = vrot.lane.b32.xlu1 %v4154_v52, %s7048_s7  ;;  %6825 = vmatmul.mubr.msk.bf16.gmra.mxu0 %vm4563_vm0, %v7003_v34  ;;  %v3689_v52 = vor.u32 %v3688_v61, %v9254_v46  ;;  %v9274_v19 = vld [vmem:[%s7094_s20 + $0xc8] sm:$0xf]  ;;  %v5231_v34 = vmul.u32 24, %v5230_v0  ;;  %v3685_v60 = vsel %vm7105_vm2, %v3680_v45, %v9254_v46 }
 0x2d2   : > { %4256 = vrot.lane.b32.xlu0 %v4151_v11, %s7048_s7  ;;  %v3694_v11 = vrot.slane %v3692_v59, 5  ;;  %v3702_v18 = vshll.u32 %v9274_v19, 16  ;;  %v9330_v46 = vld [vmem:[%s7094_s20 + $0xc0] sm:$0xf]  ;;  %v9334_v59 = vld [vmem:[%s7094_s20 + $0xc8] sm:$0xf] }
 0x2d3   : > { %v3073_v23 = vpop.permute.xlu1 %3072  ;;  %v9292_v54 = vsub.s32 %v9199_v39, %v5231_v34 }
 0x2d4   : > { %3191 = vst.msk [vmem:[#allocation2 + $0x68] sm:$0xf] %vm3164_vm13, %v3073_v23  ;;  %v3071_v21 = vpop.permute.xlu0 %3070  ;;  %v9282_v23 = vld [vmem:[%s7094_s20 + $0xc0] sm:$0xf]  ;;  %v9313_v47 = vrot.slane %v3702_v18, 5 }
 0x2d5   : > { %3190 = vst.msk [vmem:[#allocation2 + $0x64] sm:$0xf] %vm3164_vm13, %v3071_v21  ;;  %2811 = vrot.lane.b32.xlu1 %v2709_v10, %s7045_s25  ;;  %v2285_v10 = vshrl.u32 %v7016_v22, 16  ;;  %v3699_v21 = vor.u32 %v3698_v12, %v3694_v11  ;;  %v4162_v50 = vrot.slane %v9282_v23, 5  ;;  %vm5732_vm1 = vcmp.ne.s32.totalorder %v9292_v54, 0 }
 0x2d6   : > { %4260 = vrot.lane.b32.xlu0 %v4157_v40, %s7048_s7  ;;  %v5242_v40 = vmul.u32 24, %v5241_v8  ;;  %vm5780_vm3 = vcmp.lt.s32.totalorder %v9292_v54, 0  ;;  %v5876_v30 = vadd.s32 24, %v9292_v54  ;;  %v4167_v23 = vrot.slane %v4165_v5, 4 }
 0x2d7   : > { %v3795_v55 = vpop.permute.xlu1 %3794  ;;  %v2287_v29 = vrot.slane %v2285_v10, 4  ;;  %v4164_v2 = vrot.slane %v4162_v50, 4  ;;  %vm9358_vm9 = vmand %vm5780_vm3, %vm5732_vm1  ;;  %v2536_v10 = vld [vmem:[%s7094_s20 + $0xcc] sm:$0x1] }
 0x2d8   : > { %3915 = vst.msk [vmem:[#allocation2 + $0x60] sm:$0xf] %vm3890_vm14, %v3795_v55  ;;  %v3075_v38 = vpop.permute.xlu0 %3074  ;;  %v9300_v44 = vsub.s32 %v9204_v4, %v5242_v40  ;;  %v3700_v55 = vrot.slane %v3699_v21, 4  ;;  %v1810_v4 = vld [vmem:[%s7094_s20 + $0xcc] sm:$0x1]  ;;  %v5924_v34 = vsel %vm9358_vm9, %v5876_v30, %v9292_v54  ;;  %v4168_v40 = vrot.slane %v9334_v59, 5 }
 0x2d9   : > { %3192 = vst.msk [vmem:[#allocation2 + $0x6c] sm:$0xf] %vm3164_vm13, %v3075_v38  ;;  %2815 = vrot.lane.b32.xlu1 %v2715_v32, %s7045_s25  ;;  %v3690_v32 = vrot.slane %v3689_v52, 4  ;;  %v9318_v38 = vsub.s32 %v9219_v14, %v5220_v35  ;;  %v4161_v14 = vrot.slane %v4159_v43, 4  ;;  %v2291_v61 = vshll.u32 %v1810_v4, 16 }
 0x2da   : > { %2813 = vrot.lane.b32.xlu0 %v2712_v42, %s7045_s25  ;;  %v5209_v42 = vmul.u32 24, %v5208_v62  ;;  %vm5733_vm4 = vcmp.ne.s32.totalorder %v9300_v44, 0  ;;  %vm5781_vm5 = vcmp.lt.s32.totalorder %v9300_v44, 0  ;;  %v5877_v6 = vadd.s32 24, %v9300_v44  ;;  %v3258_v21 = vld [vmem:[%s7094_s20 + $0xcc] sm:$0xf] }
 0x2db   : > { %v3799_v51 = vpop.permute.xlu1 %3798  ;;  %v3695_v7 = vsel %vm7105_vm2, %v3690_v32, %v3694_v11  ;;  %vm5731_vm10 = vcmp.ne.s32.totalorder %v9318_v38, 0  ;;  %vm5779_vm11 = vcmp.lt.s32.totalorder %v9318_v38, 0  ;;  %v2720_v11 = vrot.slane %v9330_v46, 5  ;;  %v3260_v46 = vld [vmem:[%s7094_s20 + $0xd4] sm:$0xf] }
 0x2dc   : > { %3917 = vst.msk [vmem:[#allocation2 + $0x68] sm:$0xf] %vm3890_vm14, %v3799_v51  ;;  %v3797_v63 = vpop.permute.xlu0 %3796  ;;  %v9306_v57 = vsub.s32 %v9183_v36, %v5209_v42  ;;  %v9340_v51 = vld [vmem:[%s7094_s20 + $0xc4] sm:$0xf]  ;;  %v4166_v12 = vsel %vm7456_vm6, %v4164_v2, %v4165_v5  ;;  %v4163_v31 = vsel %vm7456_vm6, %v4161_v14, %v4162_v50  ;;  %v2293_v13 = vrot.slane %v2291_v61, 5  ;;  %vm9401_vm3 = vmand %vm5779_vm11, %vm5731_vm10 }
 0x2dd   : > { %3916 = vst.msk [vmem:[#allocation2 + $0x64] sm:$0xf] %vm3890_vm14, %v3797_v63  ;;  %3100 = vrot.lane.b32.xlu1 %v2964_v58, %s7046_s26  ;;  %v2288_v58 = vor.u32 %v2287_v29, %v8231_v9  ;;  %v9343_v9 = vld [vmem:[%s7094_s20 + $0xc8] sm:$0xf]  ;;  %v3705_v63 = vsel %vm7105_vm2, %v3700_v55, %v9313_v47  ;;  %v2723_v45 = vrot.slane %v9340_v51, 5  ;;  %v2722_v24 = vrot.slane %v2720_v11, 4 }
 0x2de   : > { %2817 = vrot.lane.b32.xlu0 %v2718_v3, %s7045_s25  ;;  %vm5730_vm7 = vcmp.ne.s32.totalorder %v9306_v57, 0  ;;  %vm5778_vm8 = vcmp.lt.s32.totalorder %v9306_v57, 0  ;;  %v5874_v52 = vadd.s32 24, %v9306_v57  ;;  %v2719_v43 = vrot.slane %v2717_v37, 4  ;;  %v2969_v37 = vld [vmem:[%s7094_s20 + $0xcc] sm:$0xf] }
 0x2df   : > { %v4231_v26 = vpop.permute.xlu1 %4230  ;;  %vm9384_vm1 = vmand %vm5778_vm8, %vm5730_vm7  ;;  %vm9426_vm11 = vcmp.lt.s32.totalorder %v5924_v34, 16  ;;  %v2729_v50 = vrot.slane %v2536_v10, 5  ;;  %v2725_v53 = vrot.slane %v2723_v45, 4  ;;  %v3712_v29 = vshll.u32 %v3258_v21, 16 }
 0x2e0   : > { %4351 = vst.msk [vmem:[#allocation2 + $0x60] sm:$0xf] %vm10428_vm15, %v4231_v26  ;;  %v3801_v33 = vpop.permute.xlu0 %3800  ;;  %v5875_v26 = vadd.s32 24, %v9318_v38  ;;  %v4169_v55 = vsel %vm7456_vm6, %v4167_v23, %v4168_v40  ;;  %v7049_v4 = vmov 0.0   ;;  %v2724_v5 = vsel %vm7456_vm6, %v2722_v24, %v2723_v45 }
 0x2e1   : > { %3918 = vst.msk [vmem:[#allocation2 + $0x6c] sm:$0xf] %vm3890_vm14, %v3801_v33  ;;  %3104 = vrot.lane.b32.xlu1 %v2966_v17, %s7046_s26  ;;  %v2289_v33 = vrot.slane %v2288_v58, 4  ;;  %v3259_v58 = vld [vmem:[%s7094_s20 + $0xd0] sm:$0xf]  ;;  %v9473_v61 = vadd.s32 32, %v9183_v36 }
 0x2e2   : > { %3102 = vrot.lane.b32.xlu0 %v2965_v25, %s7046_s26  ;;  %v2726_v25 = vrot.slane %v9343_v9, 5  ;;  %v5923_v35 = vsel %vm9401_vm3, %v5875_v26, %v9318_v38  ;;  %v3732_v62 = vshll.u32 %v3260_v46, 16  ;;  %v3736_v26 = vshrl.u32 %v3260_v46, 16 }
 0x2e3   : > { %v4235_v48 = vpop.permute.xlu1 %4234  ;;  %v2294_v20 = vsel %vm7105_vm2, %v2289_v33, %v2293_v13  ;;  %v9510_v13 = vmul.u32.u64.low 2863311531, %v9473_v61  ;;  %v9511_v34 = vmul.u32.u64.high 2863311531, %v9473_v61, %v9510_v13  ;;  %v3726_v22 = vshrl.u32 %v3259_v58, 16 }
 0x2e4   : > { %4353 = vst.msk [vmem:[#allocation2 + $0x68] sm:$0xf] %vm10428_vm15, %v4235_v48  ;;  %v4233_v49 = vpop.permute.xlu0 %4232  ;;  %v2727_v9 = vsel %vm7456_vm6, %v2725_v53, %v2726_v25  ;;  %v9515_v10 = vadd.s32 56, %v9183_v36  ;;  %v9526_v24 = vrot.slane %v3732_v62, 5  ;;  %vm10450_vm7 = vcmask 290048  }
 0x2e5   : > { %4352 = vst.msk [vmem:[#allocation2 + $0x64] sm:$0xf] %vm10428_vm15, %v4233_v49  ;;  %3826 = vrot.lane.b32.xlu1 %v3675_v16, %s7047_s29  ;;  %v2728_v49 = vrot.slane %v2726_v25, 4  ;;  %v9502_v25 = vadd.s32 48, %v9183_v36  ;;  %vm10451_vm8 = vmmov %vm10450_vm7 }
 0x2e6   : > { %3106 = vrot.lane.b32.xlu0 %v2967_v28, %s7046_s26  ;;  %v5922_v28 = vsel %vm9384_vm1, %v5874_v52, %v9306_v57  ;;  %vm10452_vm9 = vmmov %vm10450_vm7 }
 0x2e7   : > { %v2788_v39 = vpop.permute.xlu1 %2787  ;;  %v2730_v14 = vsel %vm7456_vm6, %v2728_v49, %v2729_v50  ;;  %vm10453_vm10 = vmmov %vm10450_vm7 }
 0x2e8   : > { %2904 = vst.msk [vmem:[#allocation2 + $0x70] sm:$0xf] %vm2875_vm12, %v2788_v39  ;;  %v4237_v1 = vpop.permute.xlu0 %4236  ;;  %v3716_v39 = vshrl.u32 %v3258_v21, 16 }
 0x2e9   : > { %4354 = vst.msk [vmem:[#allocation2 + $0x6c] sm:$0xf] %vm10428_vm15, %v4237_v1  ;;  %3830 = vrot.lane.b32.xlu1 %v3695_v7, %s7047_s29  ;;  %vm9370_vm15 = vmand %vm5781_vm5, %vm5733_vm4  ;;  %vm9447_vm4 = vcmp.lt.s32.totalorder %v5922_v28, 16  ;;  %vm9455_vm5 = vcmp.lt.s32.totalorder %v5923_v35, 16  ;;  %v2721_v1 = vsel %vm7456_vm6, %v2719_v43, %v2720_v11  ;;  %v3738_v43 = vrot.slane %v3736_v26, 4 }
 0x2ea   : > { %3828 = vrot.lane.b32.xlu0 %v3685_v60, %s7047_s29  ;;  %v5925_v32 = vsel %vm9370_vm15, %v5877_v6, %v9300_v44  ;;  %v3706_v44 = vshrl.u32 %v9274_v19, 16  ;;  %v6532_v19 = vsel %vm9426_vm11, 1.0, %v7049_v4  ;;  %v6530_v51 = vsel %vm9447_vm4, 1.0, %v7049_v4 }
 0x2eb   : > { %v2792_v3 = vpop.permute.xlu1 %2791  ;;  %vm9437_vm15 = vcmp.lt.s32.totalorder %v5925_v32, 16  ;;  %v9529_v18 = vmul.u32.u64.low 2863311531, %v9502_v25  ;;  %v9530_v35 = vmul.u32.u64.high 2863311531, %v9502_v25, %v9529_v18 }
 0x2ec   : > { %2906 = vst.msk [vmem:[#allocation2 + $0x78] sm:$0xf] %vm2875_vm12, %v2792_v3  ;;  %v2790_v15 = vpop.permute.xlu0 %2789  ;;  %v7004_v8 = vld [vmem:[#allocation2 + $0x60] sm:$0xff]   ;;  %v6533_v2 = vsel %vm9437_vm15, 1.0, %v7049_v4  ;;  %v9486_v3 = vrot.slane %v3712_v29, 5  ;;  %v9498_v17 = vrot.slane %v3706_v44, 4 }
 0x2ed   : > { %2905 = vst.msk [vmem:[#allocation2 + $0x74] sm:$0xf] %vm2875_vm12, %v2790_v15  ;;  %4262 = vrot.lane.b32.xlu1 %v4160_v41, %s7048_s7  ;;  %6828 = vmatprep.mubr.msk.bf16.mxu1 %vm4563_vm0, %v7004_v8  ;;  %v6531_v15 = vsel %vm9455_vm5, 1.0, %v7049_v4  ;;  %v9496_v8 = vrot.slane %v3716_v39, 4  ;;  %v3728_v29 = vrot.slane %v3726_v22, 4 }
 0x2ee   : > { %3832 = vrot.lane.b32.xlu0 %v3705_v63, %s7047_s29  ;;  %v9489_v63 = vadd.s32 40, %v9183_v36 }
 0x2ef   : > { %v3077_v16 = vpop.permute.xlu1 %3076 }
 0x2f0   : > { %3193 = vst.msk [vmem:[#allocation2 + $0x70] sm:$0xf] %vm3164_vm13, %v3077_v16  ;;  %v2794_v42 = vpop.permute.xlu0 %2793  ;;  %v7005_v48 = vld [vmem:[#allocation2 + $0x68] sm:$0xff]   ;;  %v9518_v16 = vmul.u32.u64.low 2863311531, %v9489_v63  ;;  %v9519_v23 = vmul.u32.u64.high 2863311531, %v9489_v63, %v9518_v16 }
 0x2f1   : > { %2907 = vst.msk [vmem:[#allocation2 + $0x7c] sm:$0xf] %vm2875_vm12, %v2794_v42  ;;  %4266 = vrot.lane.b32.xlu1 %v4166_v12, %s7048_s7  ;;  %v6806_v54 = vpop.f32.mrf.mxu0  ;;  %6829 = vmatmul.mubr.msk.bf16.vlgmr.msra.gmra.mxu1 %vm4563_vm0, %v7005_v48  ;;  %v3722_v12 = vshll.u32 %v3259_v58, 16  ;;  %v3709_v48 = vor.u32 %v9498_v17, %v9313_v47  ;;  %v3719_v47 = vor.u32 %v9496_v8, %v9486_v3 }
 0x2f2   : > { %4264 = vrot.lane.b32.xlu0 %v4163_v31, %s7048_s7 }
 0x2f3   : > { %v3081_v7 = vpop.permute.xlu1 %3080  ;;  %v4674_v41 = vpop.f32.mrf.mxu0  ;;  %v3724_v53 = vrot.slane %v3722_v12, 5 }
 0x2f4   : > { %3195 = vst.msk [vmem:[#allocation2 + $0x78] sm:$0xf] %vm3164_vm13, %v3081_v7  ;;  %v3079_v60 = vpop.permute.xlu0 %3078  ;;  %v9540_v44 = vmul.u32.u64.low 2863311531, %v9515_v10  ;;  %v9541_v7 = vmul.u32.u64.high 2863311531, %v9515_v10, %v9540_v44 }
 0x2f5   : > { %3194 = vst.msk [vmem:[#allocation2 + $0x74] sm:$0xf] %vm3164_vm13, %v3079_v60  ;;  %2389 = vrot.lane.b32.xlu1 %v2294_v20, %s7044_s24  ;;  %v6807_v30 = vpop.f32.mrf.mxu0  ;;  %v3261_v20 = vld [vmem:[%s7094_s20 + $0xd8] sm:$0x1] }
 0x2f6   : > { %4268 = vrot.lane.b32.xlu0 %v4169_v55, %s7048_s7  ;;  %v9491_v0 = vpack.c.bf16 %v6807_v30, %v6806_v54  ;;  %v5252_v30 = vshrl.u32 %v9511_v34, 4  ;;  %v3987_v44 = vld [vmem:[%s7094_s20 + $0xd8] sm:$0x1] }
 0x2f7   : > { %v3803_v6 = vpop.permute.xlu1 %3802  ;;  %v4677_v11 = vpop.f32.mrf.mxu0  ;;  %v4180_v27 = vrot.slane %v3987_v44, 5 }
 0x2f8   : > { %3919 = vst.msk [vmem:[#allocation2 + $0x70] sm:$0xf] %vm3890_vm14, %v3803_v6  ;;  %v3083_v52 = vpop.permute.xlu0 %3082  ;;  %6748 = vst [vmem:[%s9479_s17 + $0x8] sm:$0xff] %v9491_v0   ;;  %v5107_v31 = vunpack.c.l.bf16 %v9491_v0  ;;  %v4865_v33 = vpack.c.bf16 %v4677_v11, %v4674_v41  ;;  %v5108_v32 = vunpack.c.h.bf16 %v9491_v0  ;;  %v9552_v0 = vld [vmem:[%s7094_s20 + $0xcc] sm:$0xf]  ;;  %v5263_v6 = vshrl.u32 %v9519_v23, 4 }
 0x2f9   : > { %3196 = vst.msk [vmem:[#allocation2 + $0x7c] sm:$0xf] %vm3164_vm13, %v3083_v52  ;;  %2821 = vrot.lane.b32.xlu1 %v2724_v5, %s7045_s25  ;;  %v3742_v5 = vshll.u32 %v3261_v20, 16  ;;  %v2970_v52 = vld [vmem:[%s7094_s20 + $0xd0] sm:$0xf]  ;;  %v3729_v11 = vor.u32 %v3728_v29, %v3724_v53  ;;  %v4171_v13 = vrot.slane %v9552_v0, 5 }
 0x2fa   : > { %2819 = vrot.lane.b32.xlu0 %v2721_v1, %s7045_s25  ;;  %6632 = vst [vmem:[%s9479_s17] sm:$0xff] %v4865_v33   ;;  %v5105_v45 = vunpack.c.l.bf16 %v4865_v33  ;;  %v5106_v21 = vunpack.c.h.bf16 %v4865_v33  ;;  %v6116_v49 = vmul.f32 %v6532_v19, %v5107_v31  ;;  %v6117_v55 = vmul.f32 %v6533_v2, %v5108_v32  ;;  %v2968_v19 = vld [vmem:[%s7094_s20 + $0xc8] sm:$0xf]  ;;  %v2971_v2 = vld [vmem:[%s7094_s20 + $0xd4] sm:$0xf] }
 0x2fb   : > { %v3807_v42 = vpop.permute.xlu1 %3806  ;;  %v3739_v1 = vor.u32 %v3738_v43, %v9526_v24  ;;  %v3744_v26 = vrot.slane %v3742_v5, 5  ;;  %v5253_v34 = vmul.u32 24, %v5252_v30  ;;  %v3985_v23 = vld [vmem:[%s7094_s20 + $0xd0] sm:$0xf]  ;;  %v4170_v29 = vrot.slane %v4168_v40, 4 }
 0x2fc   : > { %3921 = vst.msk [vmem:[#allocation2 + $0x78] sm:$0xf] %vm3890_vm14, %v3807_v42  ;;  %v3805_v28 = vpop.permute.xlu0 %3804  ;;  %v6114_v50 = vmul.f32 %v6530_v51, %v5105_v45  ;;  %v6115_v54 = vmul.f32 %v6531_v15, %v5106_v21  ;;  %v3720_v51 = vrot.slane %v3719_v47, 4  ;;  %v6219_v15 = vmul.f32 %v6117_v55, %v5108_v32  ;;  %v9570_v32 = vld [vmem:[%s7094_s20 + $0xd4] sm:$0xf] }
 0x2fd   : > { %3920 = vst.msk [vmem:[#allocation2 + $0x74] sm:$0xf] %vm3890_vm14, %v3805_v28  ;;  %2825 = vrot.lane.b32.xlu1 %v2730_v14, %s7045_s25  ;;  %v6218_v14 = vmul.f32 %v6116_v49, %v5107_v31  ;;  %v5274_v31 = vshrl.u32 %v9530_v35, 4  ;;  %v3740_v33 = vrot.slane %v3739_v1, 4  ;;  %v3730_v28 = vrot.slane %v3729_v11, 4 }
 0x2fe   : > { %2823 = vrot.lane.b32.xlu0 %v2727_v9, %s7045_s25  ;;  %v6162_v57 = vadd.f32 %v6115_v54, %v6114_v50  ;;  %v6216_v39 = vmul.f32 %v6114_v50, %v5105_v45  ;;  %v6217_v60 = vmul.f32 %v6115_v54, %v5106_v21  ;;  %v3710_v9 = vrot.slane %v3709_v48, 4 }
 0x2ff   : > { %v4239_v41 = vpop.permute.xlu1 %4238  ;;  %v3725_v16 = vsel %vm7105_vm2, %v3720_v51, %v3724_v53  ;;  %v5285_v45 = vshrl.u32 %v9541_v7, 4  ;;  %v5264_v21 = vmul.u32 24, %v5263_v6  ;;  %v5275_v18 = vmul.u32 24, %v5274_v31 }
 0x300   : > { %4355 = vst.msk [vmem:[#allocation2 + $0x70] sm:$0xf] %vm10450_vm7, %v4239_v41  ;;  %v3809_v38 = vpop.permute.xlu0 %3808  ;;  %v6163_v58 = vadd.f32 %v6162_v57, %v6116_v49  ;;  %v6264_v46 = vadd.f32 %v6217_v60, %v6216_v39  ;;  %v3715_v48 = vsel %vm7105_vm2, %v3710_v9, %v9486_v3  ;;  %v4173_v35 = vrot.slane %v4171_v13, 4 }
 0x301   : > { %3922 = vst.msk [vmem:[#allocation2 + $0x7c] sm:$0xf] %vm3890_vm14, %v3809_v38  ;;  %3110 = vrot.lane.b32.xlu1 %v2969_v37, %s7046_s26  ;;  %v4174_v49 = vrot.slane %v3985_v23, 5  ;;  %v4177_v50 = vrot.slane %v9570_v32, 5  ;;  %v9581_v54 = vsub.s32 %v9473_v61, %v5253_v34  ;;  %v3745_v3 = vsel %vm7105_vm2, %v3740_v33, %v3744_v26 }
 0x302   : > { %3108 = vrot.lane.b32.xlu0 %v2968_v19, %s7046_s26  ;;  %v6265_v8 = vadd.f32 %v6264_v46, %v6218_v14  ;;  %v9556_v12 = vadd.f32 %v6163_v58, %v6117_v55  ;;  %v5286_v47 = vmul.u32 24, %v5285_v45  ;;  %v5265_v20 = vsub.s32 %v9489_v63, %v5264_v21 }
 0x303   : > { %v4243_v17 = vpop.permute.xlu1 %4242  ;;  %v3735_v53 = vsel %vm7105_vm2, %v3730_v28, %v9526_v24  ;;  %v5276_v55 = vsub.s32 %v9502_v25, %v5275_v18  ;;  %v4175_v63 = vsel %vm7456_vm6, %v4173_v35, %v4174_v49  ;;  %v4179_v57 = vrot.slane %v4177_v50, 4 }
 0x304   : > { %4357 = vst.msk [vmem:[#allocation2 + $0x78] sm:$0xf] %vm10451_vm8, %v4243_v17  ;;  %v4241_v62 = vpop.permute.xlu0 %4240  ;;  %v9563_v22 = vadd.f32 %v6265_v8, %v6219_v15  ;;  %vm5734_vm2 = vcmp.ne.s32.totalorder %v9581_v54, 0  ;;  %vm5782_vm1 = vcmp.lt.s32.totalorder %v9581_v54, 0  ;;  %v5287_v59 = vsub.s32 %v9515_v10, %v5286_v47 }
 0x305   : > { %4356 = vst.msk [vmem:[#allocation2 + $0x74] sm:$0xf] %vm10452_vm9, %v4241_v62  ;;  %3114 = vrot.lane.b32.xlu1 %v2971_v2, %s7046_s26  ;;  %vm5735_vm3 = vcmp.ne.s32.totalorder %v5265_v20, 0  ;;  %vm5783_vm11 = vcmp.lt.s32.totalorder %v5265_v20, 0  ;;  %v4172_v25 = vsel %vm7456_vm6, %v4170_v29, %v4171_v13  ;;  %v4176_v24 = vrot.slane %v4174_v49, 4  ;;  %vm9612_vm5 = vmand %vm5782_vm1, %vm5734_vm2 }
 0x306   : > { %3112 = vrot.lane.b32.xlu0 %v2970_v52, %s7046_s26  ;;  %v5878_v39 = vadd.s32 24, %v9581_v54  ;;  %vm5736_vm15 = vcmp.ne.s32.totalorder %v5276_v55, 0  ;;  %vm5784_vm4 = vcmp.lt.s32.totalorder %v5276_v55, 0  ;;  %v5879_v19 = vadd.s32 24, %v5265_v20  ;;  %vm9619_vm7 = vmand %vm5783_vm11, %vm5735_vm3 }
 0x307   : > { %v2796_v42 = vpop.permute.xlu1 %2795  ;;  %v4181_v5 = vsel %vm7456_vm6, %v4179_v57, %v4180_v27  ;;  %vm5737_vm8 = vcmp.ne.s32.totalorder %v5287_v59, 0  ;;  %vm5785_vm9 = vcmp.lt.s32.totalorder %v5287_v59, 0  ;;  %v5880_v14 = vadd.s32 24, %v5276_v55 }
 0x308   : > { %2908 = vst.msk [vmem:[#allocation2 + $0x80] sm:$0xf] %vm2875_vm12, %v2796_v42  ;;  %v4245_v43 = vpop.permute.xlu0 %4244  ;;  %v4178_v46 = vsel %vm7456_vm6, %v4176_v24, %v4177_v50  ;;  %v5926_v30 = vsel %vm9612_vm5, %v5878_v39, %v9581_v54  ;;  %v5881_v0 = vadd.s32 24, %v5287_v59  ;;  %v5927_v6 = vsel %vm9619_vm7, %v5879_v19, %v5265_v20  ;;  %vm9647_vm6 = vmand %vm5785_vm9, %vm5737_vm8 }
 0x309   : > { %4358 = vst.msk [vmem:[#allocation2 + $0x7c] sm:$0xf] %vm10453_vm10, %v4245_v43  ;;  %3836 = vrot.lane.b32.xlu1 %v3725_v16, %s7047_s29  ;;  %vm9631_vm10 = vmand %vm5784_vm4, %vm5736_vm15  ;;  %vm5974_vm2 = vcmp.lt.s32.totalorder %v5926_v30, 16  ;;  %v9655_v52 = vadd.s32 72, %v9183_v36  ;;  %vm5975_vm1 = vcmp.lt.s32.totalorder %v5927_v6, 16  ;;  %v9661_v13 = vadd.s32 80, %v9183_v36 }
 0x30a   : > { %3834 = vrot.lane.b32.xlu0 %v3715_v48, %s7047_s29  ;;  %v5928_v17 = vsel %vm9631_vm10, %v5880_v14, %v5276_v55  ;;  %v5929_v26 = vsel %vm9647_vm6, %v5881_v0, %v5287_v59  ;;  %v9664_v34 = vmul.u32.u64.low 2863311531, %v9642_v56  ;;  %v9665_v16 = vmul.u32.u64.high 2863311531, %v9642_v56, %v9664_v34 }
 0x30b   : > { %v2800_v37 = vpop.permute.xlu1 %2799  ;;  %vm5976_vm3 = vcmp.lt.s32.totalorder %v5928_v17, 16  ;;  %v6534_v32 = vsel %vm5974_vm2, 1.0, %v7049_v4  ;;  %v6535_v45 = vsel %vm5975_vm1, 1.0, %v7049_v4  ;;  %v9672_v21 = vadd.s32 88, %v9183_v36 }
 0x30c   : > { %2910 = vst.msk [vmem:[#allocation2 + $0x88] sm:$0xf] %vm2875_vm12, %v2800_v37  ;;  %v2798_v61 = vpop.permute.xlu0 %2797  ;;  %v7006_v7 = vld [vmem:[#allocation2 + $0x70] sm:$0xff]   ;;  %v9675_v42 = vmul.u32.u64.low 2863311531, %v9655_v52  ;;  %v9676_v48 = vmul.u32.u64.high 2863311531, %v9655_v52, %v9675_v42  ;;  %vm5977_vm11 = vcmp.lt.s32.totalorder %v5929_v26, 16 }
 0x30d   : > { %2909 = vst.msk [vmem:[#allocation2 + $0x84] sm:$0xf] %vm2875_vm12, %v2798_v61  ;;  %3840 = vrot.lane.b32.xlu1 %v3745_v3, %s7047_s29  ;;  %6832 = vmatprep.mubr.msk.bf16.mxu1 %vm4563_vm0, %v7006_v7  ;;  %v6536_v49 = vsel %vm5976_vm3, 1.0, %v7049_v4  ;;  %v9682_v54 = vmul.u32.u64.low 2863311531, %v9661_v13  ;;  %v9683_v3 = vmul.u32.u64.high 2863311531, %v9661_v13, %v9682_v54  ;;  %vm10462_vm15 = vcmask 290048  }
 0x30e   : > { %3838 = vrot.lane.b32.xlu0 %v3735_v53, %s7047_s29  ;;  %v6537_v53 = vsel %vm5977_vm11, 1.0, %v7049_v4  ;;  %v9688_v29 = vmul.u32.u64.low 2863311531, %v9672_v21  ;;  %v9689_v44 = vmul.u32.u64.high 2863311531, %v9672_v21, %v9688_v29  ;;  %v5296_v27 = vshrl.u32 %v9665_v16, 4  ;;  %vm10463_vm4 = vmmov %vm10462_vm15 }
 0x30f   : > { %v3085_v40 = vpop.permute.xlu1 %3084  ;;  %v5307_v39 = vshrl.u32 %v9676_v48, 4  ;;  %v5318_v38 = vshrl.u32 %v9683_v3, 4  ;;  %vm10464_vm5 = vmmov %vm10463_vm4  ;;  %v9745_v3 = vadd.s32 104, %v9183_v36 }
 0x310   : > { %3197 = vst.msk [vmem:[#allocation2 + $0x80] sm:$0xf] %vm3164_vm13, %v3085_v40  ;;  %v2802_v60 = vpop.permute.xlu0 %2801  ;;  %v7007_v41 = vld [vmem:[#allocation2 + $0x78] sm:$0xff]   ;;  %v5297_v14 = vmul.u32 24, %v5296_v27  ;;  %vm10465_vm7 = vmmov %vm10463_vm4  ;;  %v9762_v27 = vadd.s32 120, %v9183_v36 }
 0x311   : > { %2911 = vst.msk [vmem:[#allocation2 + $0x8c] sm:$0xf] %vm2875_vm12, %v2802_v60  ;;  %4272 = vrot.lane.b32.xlu1 %v4175_v63, %s7048_s7  ;;  %v6810_v1 = vpop.f32.mrf.mxu0  ;;  %6833 = vmatmul.mubr.msk.bf16.gmra.mxu1 %vm4563_vm0, %v7007_v41 }
 0x312   : > { %4270 = vrot.lane.b32.xlu0 %v4172_v25, %s7048_s7  ;;  %v5298_v0 = vsub.s32 %v9642_v56, %v5297_v14 }
 0x313   : > { %v3089_v58 = vpop.permute.xlu1 %3088  ;;  %v4690_v9 = vpop.f32.mrf.mxu0 }
 0x314   : > { %3199 = vst.msk [vmem:[#allocation2 + $0x88] sm:$0xf] %vm3164_vm13, %v3089_v58  ;;  %v3087_v51 = vpop.permute.xlu0 %3086  ;;  %vm5738_vm8 = vcmp.ne.s32.totalorder %v5298_v0, 0  ;;  %vm5786_vm9 = vcmp.lt.s32.totalorder %v5298_v0, 0 }
 0x315   : > { %3198 = vst.msk [vmem:[#allocation2 + $0x84] sm:$0xf] %vm3164_vm13, %v3087_v51  ;;  %4276 = vrot.lane.b32.xlu1 %v4181_v5, %s7048_s7  ;;  %v6811_v8 = vpop.f32.mrf.mxu0  ;;  %vm9715_vm3 = vmand %vm5786_vm9, %vm5738_vm8 }
 0x316   : > { %4274 = vrot.lane.b32.xlu0 %v4178_v46, %s7048_s7  ;;  %v4868_v11 = vpack.c.bf16 %v6811_v8, %v6810_v1  ;;  %v5308_v46 = vmul.u32 24, %v5307_v39 }
 0x317   : > { %v3811_v62 = vpop.permute.xlu1 %3810  ;;  %v4693_v33 = vpop.f32.mrf.mxu0 }
 0x318   : > { %3923 = vst.msk [vmem:[#allocation2 + $0x80] sm:$0xf] %vm3890_vm14, %v3811_v62  ;;  %v3091_v31 = vpop.permute.xlu0 %3090  ;;  %6750 = vst [vmem:[%s9479_s17 + $0x18] sm:$0xff] %v4868_v11   ;;  %v4867_v23 = vpack.c.bf16 %v4693_v33, %v4690_v9  ;;  %v5111_v28 = vunpack.c.l.bf16 %v4868_v11  ;;  %v5112_v47 = vunpack.c.h.bf16 %v4868_v11  ;;  %v5319_v9 = vmul.u32 24, %v5318_v38 }
 0x319   : > { %3200 = vst.msk [vmem:[#allocation2 + $0x8c] sm:$0xf] %vm3164_vm13, %v3091_v31  ;;  %v5309_v15 = vsub.s32 %v9655_v52, %v5308_v46  ;;  %v5882_v31 = vadd.s32 24, %v5298_v0 }
 0x31a   : > { %6749 = vst [vmem:[%s9479_s17 + $0x10] sm:$0xff] %v4867_v23   ;;  %v5109_v43 = vunpack.c.l.bf16 %v4867_v23  ;;  %v5110_v18 = vunpack.c.h.bf16 %v4867_v23  ;;  %v6120_v61 = vmul.f32 %v6536_v49, %v5111_v28  ;;  %v6121_v59 = vmul.f32 %v6537_v53, %v5112_v47 }
 0x31b   : > { %v3815_v35 = vpop.permute.xlu1 %3814  ;;  %v5320_v62 = vsub.s32 %v9661_v13, %v5319_v9  ;;  %vm5739_vm10 = vcmp.ne.s32.totalorder %v5309_v15, 0  ;;  %vm5787_vm6 = vcmp.lt.s32.totalorder %v5309_v15, 0  ;;  %v5883_v34 = vadd.s32 24, %v5309_v15 }
 0x31c   : > { %3925 = vst.msk [vmem:[#allocation2 + $0x88] sm:$0xf] %vm3890_vm14, %v3815_v35  ;;  %v3813_v50 = vpop.permute.xlu0 %3812  ;;  %v6118_v20 = vmul.f32 %v6534_v32, %v5109_v43  ;;  %v6119_v37 = vmul.f32 %v6535_v45, %v5110_v18  ;;  %v6222_v60 = vmul.f32 %v6120_v61, %v5111_v28  ;;  %v6223_v1 = vmul.f32 %v6121_v59, %v5112_v47  ;;  %vm9720_vm11 = vmand %vm5787_vm6, %vm5739_vm10 }
 0x31d   : > { %3924 = vst.msk [vmem:[#allocation2 + $0x84] sm:$0xf] %vm3890_vm14, %v3813_v50  ;;  %vm5740_vm2 = vcmp.ne.s32.totalorder %v5320_v62, 0  ;;  %vm5788_vm1 = vcmp.lt.s32.totalorder %v5320_v62, 0  ;;  %v5884_v32 = vadd.s32 24, %v5320_v62  ;;  %v5930_v42 = vsel %vm9715_vm3, %v5882_v31, %v5298_v0 }
 0x31e   : > { %v6165_v7 = vadd.f32 %v9556_v12, %v6118_v20  ;;  %v6220_v55 = vmul.f32 %v6118_v20, %v5109_v43  ;;  %v6221_v25 = vmul.f32 %v6119_v37, %v5110_v18  ;;  %v5931_v18 = vsel %vm9720_vm11, %v5883_v34, %v5309_v15 }
 0x31f   : > { %v4247_v63 = vpop.permute.xlu1 %4246  ;;  %v9735_v35 = vadd.s32 96, %v9183_v36  ;;  %vm5978_vm8 = vcmp.lt.s32.totalorder %v5930_v42, 16  ;;  %vm5979_vm9 = vcmp.lt.s32.totalorder %v5931_v18, 16 }
 0x320   : > { %4359 = vst.msk [vmem:[#allocation2 + $0x80] sm:$0xf] %vm10462_vm15, %v4247_v63  ;;  %v3817_v57 = vpop.permute.xlu0 %3816  ;;  %v6166_v40 = vadd.f32 %v6165_v7, %v6119_v37  ;;  %v6267_v24 = vadd.f32 %v9563_v22, %v6220_v55  ;;  %v5329_v22 = vshrl.u32 %v9689_v44, 4  ;;  %v9751_v44 = vadd.s32 112, %v9183_v36 }
 0x321   : > { %3926 = vst.msk [vmem:[#allocation2 + $0x8c] sm:$0xf] %vm3890_vm14, %v3817_v57  ;;  %v6538_v63 = vsel %vm5978_vm8, 1.0, %v7049_v4  ;;  %v6539_v57 = vsel %vm5979_vm9, 1.0, %v7049_v4 }
 0x322   : > { %v6167_v41 = vadd.f32 %v6166_v40, %v6120_v61  ;;  %v6268_v10 = vadd.f32 %v6267_v24, %v6221_v25  ;;  %v5330_v6 = vmul.u32 24, %v5329_v22 }
 0x323   : > { %v4251_v12 = vpop.permute.xlu1 %4250  ;;  %v9754_v61 = vmul.u32.u64.low 2863311531, %v9735_v35  ;;  %v9755_v7 = vmul.u32.u64.high 2863311531, %v9735_v35, %v9754_v61  ;;  %v9778_v22 = vmul.u32.u64.low 2863311531, %v9762_v27  ;;  %v9779_v46 = vmul.u32.u64.high 2863311531, %v9762_v27, %v9778_v22 }
 0x324   : > { %4361 = vst.msk [vmem:[#allocation2 + $0x88] sm:$0xf] %vm10463_vm4, %v4251_v12  ;;  %v4249_v19 = vpop.permute.xlu0 %4248  ;;  %v6269_v5 = vadd.f32 %v6268_v10, %v6222_v60  ;;  %v9700_v58 = vadd.f32 %v6167_v41, %v6121_v59  ;;  %v5331_v26 = vsub.s32 %v9672_v21, %v5330_v6 }
 0x325   : > { %4360 = vst.msk [vmem:[#allocation2 + $0x84] sm:$0xf] %vm10464_vm5, %v4249_v19  ;;  %vm9725_vm5 = vmand %vm5788_vm1, %vm5740_vm2  ;;  %v9765_v59 = vmul.u32.u64.low 2863311531, %v9745_v3  ;;  %v9766_v40 = vmul.u32.u64.high 2863311531, %v9745_v3, %v9765_v59  ;;  %v9772_v12 = vmul.u32.u64.low 2863311531, %v9751_v44  ;;  %v9773_v19 = vmul.u32.u64.high 2863311531, %v9751_v44, %v9772_v12 }
 0x326   : > { %v9703_v30 = vadd.f32 %v6269_v5, %v6223_v1  ;;  %vm5741_vm15 = vcmp.ne.s32.totalorder %v5331_v26, 0  ;;  %vm5789_vm4 = vcmp.lt.s32.totalorder %v5331_v26, 0  ;;  %v5885_v43 = vadd.s32 24, %v5331_v26 }
 0x327   : > { %v2804_v2 = vpop.permute.xlu1 %2803  ;;  %v5932_v54 = vsel %vm9725_vm5, %v5884_v32, %v5320_v62  ;;  %vm10474_vm2 = vcmask 290048   ;;  %v5340_v15 = vshrl.u32 %v9755_v7, 4  ;;  %v5362_v13 = vshrl.u32 %v9773_v19, 4 }
 0x328   : > { %2912 = vst.msk [vmem:[#allocation2 + $0x90] sm:$0xf] %vm2875_vm12, %v2804_v2  ;;  %v4253_v51 = vpop.permute.xlu0 %4252  ;;  %vm5980_vm10 = vcmp.lt.s32.totalorder %v5932_v54, 16  ;;  %vm10475_vm1 = vmmov %vm10474_vm2  ;;  %v9835_v19 = vadd.s32 136, %v9183_v36 }
 0x329   : > { %4362 = vst.msk [vmem:[#allocation2 + $0x8c] sm:$0xf] %vm10465_vm7, %v4253_v51  ;;  %vm9738_vm7 = vmand %vm5789_vm4, %vm5741_vm15  ;;  %v6540_v41 = vsel %vm5980_vm10, 1.0, %v7049_v4 }
 0x32a   : > { %v5933_v37 = vsel %vm9738_vm7, %v5885_v43, %v5331_v26  ;;  %v5351_v26 = vshrl.u32 %v9766_v40, 4  ;;  %vm10476_vm3 = vmmov %vm10475_vm1 }
 0x32b   : > { %v2808_v8 = vpop.permute.xlu1 %2807  ;;  %vm5981_vm6 = vcmp.lt.s32.totalorder %v5933_v37, 16  ;;  %vm10477_vm11 = vmmov %vm10475_vm1 }
 0x32c   : > { %2914 = vst.msk [vmem:[#allocation2 + $0x98] sm:$0xf] %vm2875_vm12, %v2808_v8  ;;  %v2806_v17 = vpop.permute.xlu0 %2805  ;;  %v7008_v11 = vld [vmem:[#allocation2 + $0x80] sm:$0xff]   ;;  %v6541_v14 = vsel %vm5981_vm6, 1.0, %v7049_v4 }
 0x32d   : > { %2913 = vst.msk [vmem:[#allocation2 + $0x94] sm:$0xf] %vm2875_vm12, %v2806_v17  ;;  %6836 = vmatprep.mubr.msk.bf16.mxu1 %vm4563_vm0, %v7008_v11 }
 0x32f   : > { %v3093_v56 = vpop.permute.xlu1 %3092 }
 0x330   : > { %3201 = vst.msk [vmem:[#allocation2 + $0x90] sm:$0xf] %vm3164_vm13, %v3093_v56  ;;  %v2810_v52 = vpop.permute.xlu0 %2809  ;;  %v7009_v33 = vld [vmem:[#allocation2 + $0x88] sm:$0xff]  }
 0x331   : > { %2915 = vst.msk [vmem:[#allocation2 + $0x9c] sm:$0xf] %vm2875_vm12, %v2810_v52  ;;  %v6814_v23 = vpop.f32.mrf.mxu0  ;;  %6837 = vmatmul.mubr.msk.bf16.gmra.mxu1 %vm4563_vm0, %v7009_v33 }
 0x333   : > { %v3097_v45 = vpop.permute.xlu1 %3096  ;;  %v4706_v28 = vpop.f32.mrf.mxu0 }
 0x334   : > { %3203 = vst.msk [vmem:[#allocation2 + $0x98] sm:$0xf] %vm3164_vm13, %v3097_v45  ;;  %v3095_v48 = vpop.permute.xlu0 %3094  ;;  %v5352_v45 = vmul.u32 24, %v5351_v26 }
 0x335   : > { %3202 = vst.msk [vmem:[#allocation2 + $0x94] sm:$0xf] %vm3164_vm13, %v3095_v48  ;;  %v6815_v50 = vpop.f32.mrf.mxu0 }
 0x336   : > { %v4870_v47 = vpack.c.bf16 %v6815_v50, %v6814_v23  ;;  %v5341_v23 = vmul.u32 24, %v5340_v15  ;;  %v5353_v49 = vsub.s32 %v9745_v3, %v5352_v45  ;;  %v9852_v15 = vadd.s32 152, %v9183_v36 }
 0x337   : > { %v3819_v20 = vpop.permute.xlu1 %3818  ;;  %v4709_v29 = vpop.f32.mrf.mxu0 }
 0x338   : > { %3927 = vst.msk [vmem:[#allocation2 + $0x90] sm:$0xf] %vm3890_vm14, %v3819_v20  ;;  %v3099_v53 = vpop.permute.xlu0 %3098  ;;  %6752 = vst [vmem:[%s9479_s17 + $0x28] sm:$0xff] %v4870_v47   ;;  %v4869_v55 = vpack.c.bf16 %v4709_v29, %v4706_v28  ;;  %v5115_v25 = vunpack.c.l.bf16 %v4870_v47  ;;  %v5116_v38 = vunpack.c.h.bf16 %v4870_v47  ;;  %v5363_v28 = vmul.u32 24, %v5362_v13 }
 0x339   : > { %3204 = vst.msk [vmem:[#allocation2 + $0x9c] sm:$0xf] %vm3164_vm13, %v3099_v53  ;;  %v5342_v43 = vsub.s32 %v9735_v35, %v5341_v23  ;;  %vm5743_vm5 = vcmp.ne.s32.totalorder %v5353_v49, 0  ;;  %vm5791_vm7 = vcmp.lt.s32.totalorder %v5353_v49, 0  ;;  %v5887_v61 = vadd.s32 24, %v5353_v49 }
 0x33a   : > { %6751 = vst [vmem:[%s9479_s17 + $0x20] sm:$0xff] %v4869_v55   ;;  %v5113_v24 = vunpack.c.l.bf16 %v4869_v55  ;;  %v5114_v39 = vunpack.c.h.bf16 %v4869_v55  ;;  %v6124_v2 = vmul.f32 %v6540_v41, %v5115_v25  ;;  %v6125_v8 = vmul.f32 %v6541_v14, %v5116_v38  ;;  %vm9810_vm6 = vmand %vm5791_vm7, %vm5743_vm5 }
 0x33b   : > { %v3823_v60 = vpop.permute.xlu1 %3822  ;;  %v5364_v20 = vsub.s32 %v9751_v44, %v5363_v28  ;;  %vm5742_vm15 = vcmp.ne.s32.totalorder %v5342_v43, 0  ;;  %vm5790_vm4 = vcmp.lt.s32.totalorder %v5342_v43, 0  ;;  %v5886_v53 = vadd.s32 24, %v5342_v43 }
 0x33c   : > { %3929 = vst.msk [vmem:[#allocation2 + $0x98] sm:$0xf] %vm3890_vm14, %v3823_v60  ;;  %v3821_v10 = vpop.permute.xlu0 %3820  ;;  %v6122_v1 = vmul.f32 %v6538_v63, %v5113_v24  ;;  %v6123_v5 = vmul.f32 %v6539_v57, %v5114_v39  ;;  %v6226_v56 = vmul.f32 %v6124_v2, %v5115_v25  ;;  %v6227_v34 = vmul.f32 %v6125_v8, %v5116_v38  ;;  %vm9805_vm10 = vmand %vm5790_vm4, %vm5742_vm15 }
 0x33d   : > { %3928 = vst.msk [vmem:[#allocation2 + $0x94] sm:$0xf] %vm3890_vm14, %v3821_v10  ;;  %vm5744_vm8 = vcmp.ne.s32.totalorder %v5364_v20, 0  ;;  %vm5792_vm9 = vcmp.lt.s32.totalorder %v5364_v20, 0  ;;  %v5888_v63 = vadd.s32 24, %v5364_v20  ;;  %v5934_v59 = vsel %vm9805_vm10, %v5886_v53, %v5342_v43 }
 0x33e   : > { %v6169_v51 = vadd.f32 %v9700_v58, %v6122_v1  ;;  %v6224_v9 = vmul.f32 %v6122_v1, %v5113_v24  ;;  %v6225_v11 = vmul.f32 %v6123_v5, %v5114_v39  ;;  %v5935_v39 = vsel %vm9810_vm6, %v5887_v61, %v5353_v49 }
 0x33f   : > { %v4255_v0 = vpop.permute.xlu1 %4254  ;;  %v9825_v60 = vadd.s32 128, %v9183_v36  ;;  %vm5982_vm15 = vcmp.lt.s32.totalorder %v5934_v59, 16  ;;  %vm5983_vm4 = vcmp.lt.s32.totalorder %v5935_v39, 16  ;;  %vm10489_vm6 = vcmask 158848  }
 0x340   : > { %4363 = vst.msk [vmem:[#allocation2 + $0x90] sm:$0xf] %vm10474_vm2, %v4255_v0  ;;  %v3825_v6 = vpop.permute.xlu0 %3824  ;;  %v6170_v17 = vadd.f32 %v6169_v51, %v6123_v5  ;;  %v6271_v62 = vadd.f32 %v9703_v30, %v6224_v9  ;;  %v5373_v30 = vshrl.u32 %v9779_v46, 4  ;;  %v9841_v46 = vadd.s32 144, %v9183_v36 }
 0x341   : > { %3930 = vst.msk [vmem:[#allocation2 + $0x9c] sm:$0xf] %vm3890_vm14, %v3825_v6  ;;  %v6542_v0 = vsel %vm5982_vm15, 1.0, %v7049_v4  ;;  %v6543_v6 = vsel %vm5983_vm4, 1.0, %v7049_v4 }
 0x342   : > { %v6171_v31 = vadd.f32 %v6170_v17, %v6124_v2  ;;  %v6272_v52 = vadd.f32 %v6271_v62, %v6225_v11  ;;  %v5374_v18 = vmul.u32 24, %v5373_v30 }
 0x343   : > { %v4259_v58 = vpop.permute.xlu1 %4258  ;;  %v9844_v2 = vmul.u32.u64.low 2863311531, %v9825_v60  ;;  %v9845_v51 = vmul.u32.u64.high 2863311531, %v9825_v60, %v9844_v2  ;;  %v9868_v30 = vmul.u32.u64.low 2863311531, %v9852_v15  ;;  %v9869_v45 = vmul.u32.u64.high 2863311531, %v9852_v15, %v9868_v30 }
 0x344   : > { %4365 = vst.msk [vmem:[#allocation2 + $0x98] sm:$0xf] %vm10475_vm1, %v4259_v58  ;;  %v4257_v33 = vpop.permute.xlu0 %4256  ;;  %v6273_v16 = vadd.f32 %v6272_v52, %v6226_v56  ;;  %v9790_v32 = vadd.f32 %v6171_v31, %v6125_v8  ;;  %v5375_v37 = vsub.s32 %v9762_v27, %v5374_v18 }
 0x345   : > { %4364 = vst.msk [vmem:[#allocation2 + $0x94] sm:$0xf] %vm10476_vm3, %v4257_v33  ;;  %vm9815_vm3 = vmand %vm5792_vm9, %vm5744_vm8  ;;  %v9855_v8 = vmul.u32.u64.low 2863311531, %v9835_v19  ;;  %v9856_v17 = vmul.u32.u64.high 2863311531, %v9835_v19, %v9855_v8  ;;  %v9862_v58 = vmul.u32.u64.low 2863311531, %v9841_v46  ;;  %v9863_v33 = vmul.u32.u64.high 2863311531, %v9841_v46, %v9862_v58 }
 0x346   : > { %v9793_v42 = vadd.f32 %v6273_v16, %v6227_v34  ;;  %vm5745_vm2 = vcmp.ne.s32.totalorder %v5375_v37, 0  ;;  %vm5793_vm1 = vcmp.lt.s32.totalorder %v5375_v37, 0  ;;  %v5889_v24 = vadd.s32 24, %v5375_v37 }
 0x347   : > { %v2812_v21 = vpop.permute.xlu1 %2811  ;;  %v5936_v12 = vsel %vm9815_vm3, %v5888_v63, %v5364_v20  ;;  %vm10486_vm8 = vcmask 290048   ;;  %v5384_v49 = vshrl.u32 %v9845_v51, 4  ;;  %v5406_v44 = vshrl.u32 %v9863_v33, 4 }
 0x348   : > { %2916 = vst.msk [vmem:[#allocation2 + $0xa0] sm:$0xf] %vm2875_vm12, %v2812_v21  ;;  %v4261_v48 = vpop.permute.xlu0 %4260  ;;  %vm5984_vm5 = vcmp.lt.s32.totalorder %v5936_v12, 16  ;;  %vm10487_vm9 = vmmov %vm10486_vm8  ;;  %v9925_v33 = vadd.s32 168, %v9183_v36 }
 0x349   : > { %4366 = vst.msk [vmem:[#allocation2 + $0x9c] sm:$0xf] %vm10477_vm11, %v4261_v48  ;;  %vm9828_vm11 = vmand %vm5793_vm1, %vm5745_vm2  ;;  %v6544_v31 = vsel %vm5984_vm5, 1.0, %v7049_v4 }
 0x34a   : > { %v5937_v5 = vsel %vm9828_vm11, %v5889_v24, %v5375_v37  ;;  %v5395_v37 = vshrl.u32 %v9856_v17, 4  ;;  %vm10488_vm10 = vmmov %vm10486_vm8 }
 0x34b   : > { %v2816_v50 = vpop.permute.xlu1 %2815  ;;  %vm5985_vm7 = vcmp.lt.s32.totalorder %v5937_v5, 16  ;;  %vm10490_vm2 = vmmov %vm10486_vm8 }
 0x34c   : > { %2918 = vst.msk [vmem:[#allocation2 + $0xa8] sm:$0xf] %vm2875_vm12, %v2816_v50  ;;  %v2814_v54 = vpop.permute.xlu0 %2813  ;;  %v7010_v47 = vld [vmem:[#allocation2 + $0x90] sm:$0xff]   ;;  %v6545_v23 = vsel %vm5985_vm7, 1.0, %v7049_v4 }
 0x34d   : > { %2917 = vst.msk [vmem:[#allocation2 + $0xa4] sm:$0xf] %vm2875_vm12, %v2814_v54  ;;  %6840 = vmatprep.mubr.msk.bf16.mxu1 %vm4563_vm0, %v7010_v47 }
 0x34f   : > { %v3101_v35 = vpop.permute.xlu1 %3100 }
 0x350   : > { %3205 = vst.msk [vmem:[#allocation2 + $0xa0] sm:$0xf] %vm3164_vm13, %v3101_v35  ;;  %v2818_v3 = vpop.permute.xlu0 %2817  ;;  %v7011_v29 = vld [vmem:[#allocation2 + $0x98] sm:$0xff]  }
 0x351   : > { %2919 = vst.msk [vmem:[#allocation2 + $0xac] sm:$0xf] %vm2875_vm12, %v2818_v3  ;;  %v6818_v55 = vpop.f32.mrf.mxu0  ;;  %6841 = vmatmul.mubr.msk.bf16.gmra.mxu1 %vm4563_vm0, %v7011_v29 }
 0x353   : > { %v3105_v57 = vpop.permute.xlu1 %3104  ;;  %v4722_v25 = vpop.f32.mrf.mxu0 }
 0x354   : > { %3207 = vst.msk [vmem:[#allocation2 + $0xa8] sm:$0xf] %vm3164_vm13, %v3105_v57  ;;  %v3103_v40 = vpop.permute.xlu0 %3102  ;;  %v5396_v57 = vmul.u32 24, %v5395_v37 }
 0x355   : > { %3206 = vst.msk [vmem:[#allocation2 + $0xa4] sm:$0xf] %vm3164_vm13, %v3103_v40  ;;  %v6819_v10 = vpop.f32.mrf.mxu0 }
 0x356   : > { %v4872_v38 = vpack.c.bf16 %v6819_v10, %v6818_v55  ;;  %v5385_v55 = vmul.u32 24, %v5384_v49  ;;  %v5397_v41 = vsub.s32 %v9835_v19, %v5396_v57  ;;  %v9942_v49 = vadd.s32 184, %v9183_v36 }
 0x357   : > { %v3827_v1 = vpop.permute.xlu1 %3826  ;;  %v4725_v22 = vpop.f32.mrf.mxu0 }
 0x358   : > { %3931 = vst.msk [vmem:[#allocation2 + $0xa0] sm:$0xf] %vm3890_vm14, %v3827_v1  ;;  %v3107_v14 = vpop.permute.xlu0 %3106  ;;  %6754 = vst [vmem:[%s9479_s17 + $0x38] sm:$0xff] %v4872_v38   ;;  %v4871_v9 = vpack.c.bf16 %v4725_v22, %v4722_v25  ;;  %v5119_v11 = vunpack.c.l.bf16 %v4872_v38  ;;  %v5120_v13 = vunpack.c.h.bf16 %v4872_v38  ;;  %v5407_v25 = vmul.u32 24, %v5406_v44 }
 0x359   : > { %3208 = vst.msk [vmem:[#allocation2 + $0xac] sm:$0xf] %vm3164_vm13, %v3107_v14  ;;  %v5386_v24 = vsub.s32 %v9825_v60, %v5385_v55  ;;  %vm5747_vm11 = vcmp.ne.s32.totalorder %v5397_v41, 0  ;;  %vm5795_vm15 = vcmp.lt.s32.totalorder %v5397_v41, 0  ;;  %v5891_v2 = vadd.s32 24, %v5397_v41 }
 0x35a   : > { %6753 = vst [vmem:[%s9479_s17 + $0x30] sm:$0xff] %v4871_v9   ;;  %v5117_v62 = vunpack.c.l.bf16 %v4871_v9  ;;  %v5118_v26 = vunpack.c.h.bf16 %v4871_v9  ;;  %v6128_v21 = vmul.f32 %v6544_v31, %v5119_v11  ;;  %v6129_v50 = vmul.f32 %v6545_v23, %v5120_v13 }
 0x35b   : > { %v3831_v56 = vpop.permute.xlu1 %3830  ;;  %v5408_v1 = vsub.s32 %v9841_v46, %v5407_v25  ;;  %vm5746_vm1 = vcmp.ne.s32.totalorder %v5386_v24, 0  ;;  %vm5794_vm3 = vcmp.lt.s32.totalorder %v5386_v24, 0  ;;  %v5890_v14 = vadd.s32 24, %v5386_v24 }
 0x35c   : > { %3933 = vst.msk [vmem:[#allocation2 + $0xa8] sm:$0xf] %vm3890_vm14, %v3831_v56  ;;  %v3829_v52 = vpop.permute.xlu0 %3828  ;;  %v6126_v34 = vmul.f32 %v6542_v0, %v5117_v62  ;;  %v6127_v16 = vmul.f32 %v6543_v6, %v5118_v26  ;;  %v6230_v35 = vmul.f32 %v6128_v21, %v5119_v11  ;;  %v6231_v61 = vmul.f32 %v6129_v50, %v5120_v13  ;;  %vm9895_vm7 = vmand %vm5794_vm3, %vm5746_vm1 }
 0x35d   : > { %3932 = vst.msk [vmem:[#allocation2 + $0xa4] sm:$0xf] %vm3890_vm14, %v3829_v52  ;;  %vm5748_vm4 = vcmp.ne.s32.totalorder %v5408_v1, 0  ;;  %vm5796_vm5 = vcmp.lt.s32.totalorder %v5408_v1, 0  ;;  %v5892_v0 = vadd.s32 24, %v5408_v1  ;;  %v5938_v8 = vsel %vm9895_vm7, %v5890_v14, %v5386_v24 }
 0x35e   : > { %v6173_v48 = vadd.f32 %v9790_v32, %v6126_v34  ;;  %v6228_v28 = vmul.f32 %v6126_v34, %v5117_v62  ;;  %v6229_v47 = vmul.f32 %v6127_v16, %v5118_v26  ;;  %v9915_v56 = vadd.s32 160, %v9183_v36 }
 0x35f   : > { %v4263_v43 = vpop.permute.xlu1 %4262 }
 0x360   : > { %4367 = vst.msk [vmem:[#allocation2 + $0xa0] sm:$0xf] %vm10486_vm8, %v4263_v43  ;;  %v3833_v18 = vpop.permute.xlu0 %3832  ;;  %v6174_v54 = vadd.f32 %v6173_v48, %v6127_v16  ;;  %v6275_v20 = vadd.f32 %v9793_v42, %v6228_v28  ;;  %v5417_v42 = vshrl.u32 %v9869_v45, 4  ;;  %vm9900_vm8 = vmand %vm5795_vm15, %vm5747_vm11  ;;  %v9931_v45 = vadd.s32 176, %v9183_v36 }
 0x361   : > { %3934 = vst.msk [vmem:[#allocation2 + $0xac] sm:$0xf] %vm3890_vm14, %v3833_v18  ;;  %v5939_v26 = vsel %vm9900_vm8, %v5891_v2, %v5397_v41 }
 0x362   : > { %v6175_v53 = vadd.f32 %v6174_v54, %v6128_v21  ;;  %v6276_v3 = vadd.f32 %v6275_v20, %v6229_v47  ;;  %v5418_v39 = vmul.u32 24, %v5417_v42  ;;  %vm5987_vm1 = vcmp.lt.s32.totalorder %v5939_v26, 16 }
 0x363   : > { %v4267_v32 = vpop.permute.xlu1 %4266  ;;  %v9934_v21 = vmul.u32.u64.low 2863311531, %v9915_v56  ;;  %v9935_v48 = vmul.u32.u64.high 2863311531, %v9915_v56, %v9934_v21  ;;  %v6547_v18 = vsel %vm5987_vm1, 1.0, %v7049_v4 }
 0x364   : > { %4369 = vst.msk [vmem:[#allocation2 + $0xa8] sm:$0xf] %vm10487_vm9, %v4267_v32  ;;  %v4265_v29 = vpop.permute.xlu0 %4264  ;;  %v6277_v7 = vadd.f32 %v6276_v3, %v6230_v35  ;;  %v9880_v63 = vadd.f32 %v6175_v53, %v6129_v50  ;;  %v5419_v5 = vsub.s32 %v9852_v15, %v5418_v39 }
 0x365   : > { %4368 = vst.msk [vmem:[#allocation2 + $0xa4] sm:$0xf] %vm10488_vm10, %v4265_v29  ;;  %v9945_v50 = vmul.u32.u64.low 2863311531, %v9925_v33  ;;  %v9946_v54 = vmul.u32.u64.high 2863311531, %v9925_v33, %v9945_v50  ;;  %v9952_v32 = vmul.u32.u64.low 2863311531, %v9931_v45  ;;  %v9953_v29 = vmul.u32.u64.high 2863311531, %v9931_v45, %v9952_v32 }
 0x366   : > { %v9883_v59 = vadd.f32 %v6277_v7, %v6231_v61  ;;  %vm5749_vm9 = vcmp.ne.s32.totalorder %v5419_v5, 0  ;;  %vm5797_vm10 = vcmp.lt.s32.totalorder %v5419_v5, 0  ;;  %v5893_v62 = vadd.s32 24, %v5419_v5 }
 0x367   : > { %v2390_v27 = vpop.permute.xlu1 %2389  ;;  %v9958_v42 = vmul.u32.u64.low 2863311531, %v9942_v49  ;;  %v9959_v57 = vmul.u32.u64.high 2863311531, %v9942_v49, %v9958_v42  ;;  %v5428_v41 = vshrl.u32 %v9935_v48, 4  ;;  %v5450_v46 = vshrl.u32 %v9953_v29, 4 }
 0x368   : > { %2487 = vst.msk [vmem:[#allocation2 + $0xbc] sm:$0xf] %vm10489_vm6, %v2390_v27  ;;  %v4269_v40 = vpop.permute.xlu0 %4268  ;;  %vm9905_vm6 = vmand %vm5796_vm5, %vm5748_vm4 }
 0x369   : > { %4370 = vst.msk [vmem:[#allocation2 + $0xac] sm:$0xf] %vm10490_vm2, %v4269_v40  ;;  %v5940_v58 = vsel %vm9905_vm6, %v5892_v0, %v5408_v1  ;;  %vm5986_vm2 = vcmp.lt.s32.totalorder %v5938_v8, 16 }
 0x36a   : > { %vm5988_vm3 = vcmp.lt.s32.totalorder %v5940_v58, 16  ;;  %v6546_v43 = vsel %vm5986_vm2, 1.0, %v7049_v4 }
 0x36b   : > { %v2822_v10 = vpop.permute.xlu1 %2821  ;;  %v6548_v53 = vsel %vm5988_vm3, 1.0, %v7049_v4 }
 0x36c   : > { %2921 = vst.msk [vmem:[#allocation2 + $0xb4] sm:$0xf] %vm2875_vm12, %v2822_v10  ;;  %v2820_v12 = vpop.permute.xlu0 %2819  ;;  %v7012_v38 = vld [vmem:[#allocation2 + $0xa0] sm:$0xff]  }
 0x36d   : > { %2920 = vst.msk [vmem:[#allocation2 + $0xb0] sm:$0xf] %vm2875_vm12, %v2820_v12  ;;  %6844 = vmatprep.mubr.msk.bf16.mxu1 %vm4563_vm0, %v7012_v38 }
 0x36f   : > { %v2826_v60 = vpop.permute.xlu1 %2825 }
 0x370   : > { %2923 = vst.msk [vmem:[#allocation2 + $0xbc] sm:$0xf] %vm2875_vm12, %v2826_v60  ;;  %v2824_v19 = vpop.permute.xlu0 %2823  ;;  %v7013_v22 = vld [vmem:[#allocation2 + $0xa8] sm:$0xff]  }
 0x371   : > { %2922 = vst.msk [vmem:[#allocation2 + $0xb8] sm:$0xf] %vm2875_vm12, %v2824_v19  ;;  %v6822_v9 = vpop.f32.mrf.mxu0  ;;  %6845 = vmatmul.mubr.msk.bf16.gmra.mxu1 %vm4563_vm0, %v7013_v22  ;;  %vm9918_vm12 = vmand %vm5797_vm10, %vm5749_vm9 }
 0x372   : > { %v5941_v16 = vsel %vm9918_vm12, %v5893_v62, %v5419_v5  ;;  %v5439_v5 = vshrl.u32 %v9946_v54, 4 }
 0x373   : > { %v3111_v6 = vpop.permute.xlu1 %3110  ;;  %v4738_v11 = vpop.f32.mrf.mxu0  ;;  %vm5989_vm11 = vcmp.lt.s32.totalorder %v5941_v16, 16 }
 0x374   : > { %3210 = vst.msk [vmem:[#allocation2 + $0xb4] sm:$0xf] %vm3164_vm13, %v3111_v6  ;;  %v3109_v17 = vpop.permute.xlu0 %3108  ;;  %v6549_v55 = vsel %vm5989_vm11, 1.0, %v7049_v4  ;;  %v5440_v6 = vmul.u32 24, %v5439_v5 }
 0x375   : > { %3209 = vst.msk [vmem:[#allocation2 + $0xb0] sm:$0xf] %vm3164_vm13, %v3109_v17  ;;  %v6823_v52 = vpop.f32.mrf.mxu0 }
 0x376   : > { %v4874_v13 = vpack.c.bf16 %v6823_v52, %v6822_v9  ;;  %v5429_v9 = vmul.u32 24, %v5428_v41  ;;  %v5441_v31 = vsub.s32 %v9925_v33, %v5440_v6 }
 0x377   : > { %v3115_v34 = vpop.permute.xlu1 %3114  ;;  %v4741_v30 = vpop.f32.mrf.mxu0 }
 0x378   : > { %3212 = vst.msk [vmem:[#allocation2 + $0xbc] sm:$0xf] %vm3164_vm13, %v3115_v34  ;;  %v3113_v23 = vpop.permute.xlu0 %3112  ;;  %6756 = vst [vmem:[%s9479_s17 + $0x48] sm:$0xff] %v4874_v13   ;;  %v4873_v28 = vpack.c.bf16 %v4741_v30, %v4738_v11  ;;  %v5123_v47 = vunpack.c.l.bf16 %v4874_v13  ;;  %v5124_v44 = vunpack.c.h.bf16 %v4874_v13  ;;  %v5451_v11 = vmul.u32 24, %v5450_v46 }
 0x379   : > { %3211 = vst.msk [vmem:[#allocation2 + $0xb8] sm:$0xf] %vm3164_vm13, %v3113_v23  ;;  %vm10499_vm13 = vcmask 290048   ;;  %v5430_v62 = vsub.s32 %v9915_v56, %v5429_v9  ;;  %vm5751_vm8 = vcmp.ne.s32.totalorder %v5441_v31, 0  ;;  %vm5799_vm9 = vcmp.lt.s32.totalorder %v5441_v31, 0 }
 0x37a   : > { %6755 = vst [vmem:[%s9479_s17 + $0x40] sm:$0xff] %v4873_v28   ;;  %v5121_v20 = vunpack.c.l.bf16 %v4873_v28  ;;  %v5122_v37 = vunpack.c.h.bf16 %v4873_v28  ;;  %v6132_v27 = vmul.f32 %v6548_v53, %v5123_v47  ;;  %v6133_v10 = vmul.f32 %v6549_v55, %v5124_v44  ;;  %vm10500_vm15 = vmmov %vm10499_vm13 }
 0x37b   : > { %v3837_v35 = vpop.permute.xlu1 %3836  ;;  %vm10502_vm4 = vmmov %vm10499_vm13  ;;  %v5452_v58 = vsub.s32 %v9931_v45, %v5451_v11  ;;  %vm5750_vm5 = vcmp.ne.s32.totalorder %v5430_v62, 0  ;;  %vm5798_vm7 = vcmp.lt.s32.totalorder %v5430_v62, 0  ;;  %v5894_v34 = vadd.s32 24, %v5430_v62 }
 0x37c   : > { %3936 = vst.msk [vmem:[#allocation2 + $0xb4] sm:$0xf] %vm3890_vm14, %v3837_v35  ;;  %v3835_v3 = vpop.permute.xlu0 %3834  ;;  %v6130_v61 = vmul.f32 %v6546_v43, %v5121_v20  ;;  %v6131_v7 = vmul.f32 %v6547_v18, %v5122_v37  ;;  %v6234_v60 = vmul.f32 %v6132_v27, %v5123_v47  ;;  %v6235_v2 = vmul.f32 %v6133_v10, %v5124_v44  ;;  %vm9982_vm12 = vmand %vm5798_vm7, %vm5750_vm5 }
 0x37d   : > { %3935 = vst.msk [vmem:[#allocation2 + $0xb0] sm:$0xf] %vm3890_vm14, %v3835_v3  ;;  %vm5752_vm10 = vcmp.ne.s32.totalorder %v5452_v58, 0  ;;  %vm5800_vm6 = vcmp.lt.s32.totalorder %v5452_v58, 0  ;;  %v5895_v33 = vadd.s32 24, %v5441_v31  ;;  %vm9986_vm2 = vmand %vm5799_vm9, %vm5751_vm8  ;;  %v5896_v45 = vadd.s32 24, %v5452_v58 }
 0x37e   : > { %v6177_v40 = vadd.f32 %v9880_v63, %v6130_v61  ;;  %v6232_v25 = vmul.f32 %v6130_v61, %v5121_v20  ;;  %v6233_v38 = vmul.f32 %v6131_v7, %v5122_v37  ;;  %vm9991_vm11 = vmand %vm5800_vm6, %vm5752_vm10  ;;  %v5942_v48 = vsel %vm9982_vm12, %v5894_v34, %v5430_v62 }
 0x37f   : > { %v3841_v24 = vpop.permute.xlu1 %3840  ;;  %v5943_v18 = vsel %vm9986_vm2, %v5895_v33, %v5441_v31  ;;  %v5944_v47 = vsel %vm9991_vm11, %v5896_v45, %v5452_v58  ;;  %v5179_v20 = vadd.s32 200, %v9183_v36  ;;  %v5180_v3 = vadd.s32 208, %v9183_v36 }
 0x380   : > { %3938 = vst.msk [vmem:[#allocation2 + $0xbc] sm:$0xf] %vm3890_vm14, %v3841_v24  ;;  %v3839_v39 = vpop.permute.xlu0 %3838  ;;  %v6178_v12 = vadd.f32 %v6177_v40, %v6131_v7  ;;  %v6279_v1 = vadd.f32 %v9883_v59, %v6232_v25  ;;  %v5461_v59 = vshrl.u32 %v9959_v57, 4  ;;  %v5181_v55 = vadd.s32 216, %v9183_v36 }
 0x381   : > { %3937 = vst.msk [vmem:[#allocation2 + $0xb8] sm:$0xf] %vm3890_vm14, %v3839_v39  ;;  %vm10501_vm14 = vmmov %vm10499_vm13  ;;  %v10017_v42 = vmul.u32.u64.low 2863311531, %v5179_v20  ;;  %v10018_v57 = vmul.u32.u64.high 2863311531, %v5179_v20, %v10017_v42  ;;  %v10022_v39 = vmul.u32.u64.low 2863311531, %v5180_v3  ;;  %v10023_v41 = vmul.u32.u64.high 2863311531, %v5180_v3, %v10022_v39 }
 0x382   : > { %v6179_v14 = vadd.f32 %v6178_v12, %v6132_v27  ;;  %v6280_v19 = vadd.f32 %v6279_v1, %v6233_v38  ;;  %v5462_v26 = vmul.u32 24, %v5461_v59 }
 0x383   : > { %v4273_v63 = vpop.permute.xlu1 %4272  ;;  %v5483_v59 = vshrl.u32 %v10018_v57, 4  ;;  %v5494_v11 = vshrl.u32 %v10023_v41, 4 }
 0x384   : > { %4372 = vst.msk [vmem:[#allocation2 + $0xb4] sm:$0xf] %vm10499_vm13, %v4273_v63  ;;  %v4271_v22 = vpop.permute.xlu0 %4270  ;;  %v6281_v51 = vadd.f32 %v6280_v19, %v6234_v60  ;;  %v9970_v0 = vadd.f32 %v6179_v14, %v6133_v10  ;;  %v5463_v13 = vsub.s32 %v9942_v49, %v5462_v26  ;;  %v5178_v49 = vadd.s32 192, %v9183_v36 }
 0x385   : > { %4371 = vst.msk [vmem:[#allocation2 + $0xb0] sm:$0xf] %vm10500_vm15, %v4271_v22  ;;  %vm5991_vm15 = vcmp.lt.s32.totalorder %v5943_v18, 16  ;;  %v10026_v5 = vmul.u32.u64.low 2863311531, %v5181_v55  ;;  %v10027_v60 = vmul.u32.u64.high 2863311531, %v5181_v55, %v10026_v5  ;;  %v5484_v58 = vmul.u32 24, %v5483_v59 }
 0x386   : > { %v9973_v8 = vadd.f32 %v6281_v51, %v6235_v2  ;;  %vm5753_vm1 = vcmp.ne.s32.totalorder %v5463_v13, 0  ;;  %vm5801_vm3 = vcmp.lt.s32.totalorder %v5463_v13, 0  ;;  %v5897_v43 = vadd.s32 24, %v5463_v13 }
 0x387   : > { %v4277_v15 = vpop.permute.xlu1 %4276  ;;  %vm10000_vm13 = vmand %vm5801_vm3, %vm5753_vm1  ;;  %v10010_v32 = vmul.u32.u64.low 2863311531, %v5178_v49  ;;  %v10011_v29 = vmul.u32.u64.high 2863311531, %v5178_v49, %v10010_v32  ;;  %v6551_v7 = vsel %vm5991_vm15, 1.0, %v7049_v4  ;;  %v5495_v34 = vmul.u32 24, %v5494_v11 }
 0x388   : > { %4374 = vst.msk [vmem:[#allocation2 + $0xbc] sm:$0xf] %vm10501_vm14, %v4277_v15  ;;  %v4275_v17 = vpop.permute.xlu0 %4274  ;;  %v5945_v35 = vsel %vm10000_vm13, %v5897_v43, %v5463_v13  ;;  %vm5992_vm14 = vcmp.lt.s32.totalorder %v5944_v47, 16  ;;  %v5485_v56 = vsub.s32 %v5179_v20, %v5484_v58  ;;  %v5182_v20 = vadd.s32 224, %v9183_v36 }
 0x389   : > { %4373 = vst.msk [vmem:[#allocation2 + $0xb8] sm:$0xf] %vm10502_vm4, %v4275_v17  ;;  %vm5993_vm4 = vcmp.lt.s32.totalorder %v5945_v35, 16  ;;  %v6552_v24 = vsel %vm5992_vm14, 1.0, %v7049_v4  ;;  %v5472_v22 = vshrl.u32 %v10011_v29, 4  ;;  %v5496_v33 = vsub.s32 %v5180_v3, %v5495_v34 }
 0x38a   : > { %v6553_v1 = vsel %vm5993_vm4, 1.0, %v7049_v4  ;;  %vm5755_vm8 = vcmp.ne.s32.totalorder %v5485_v56, 0  ;;  %vm5803_vm9 = vcmp.lt.s32.totalorder %v5485_v56, 0  ;;  %v5899_v21 = vadd.s32 24, %v5485_v56 }
 0x38b   : > { %v5473_v31 = vmul.u32 24, %v5472_v22  ;;  %vm5756_vm10 = vcmp.ne.s32.totalorder %v5496_v33, 0  ;;  %vm5804_vm6 = vcmp.lt.s32.totalorder %v5496_v33, 0  ;;  %vm10043_vm2 = vmand %vm5803_vm9, %vm5755_vm8  ;;  %v5900_v43 = vadd.s32 24, %v5496_v33 }
 0x38c   : > { %v7014_v52 = vld [vmem:[#allocation2 + $0xb0] sm:$0xff]   ;;  %vm10047_vm11 = vmand %vm5804_vm6, %vm5756_vm10  ;;  %v5947_v47 = vsel %vm10043_vm2, %v5899_v21, %v5485_v56  ;;  %v5183_v3 = vadd.s32 232, %v9183_v36 }
 0x38d   : > { %6848 = vmatprep.mubr.msk.bf16.mxu1 %vm4563_vm0, %v7014_v52  ;;  %vm5995_vm15 = vcmp.lt.s32.totalorder %v5947_v47, 16 }
 0x390   : > { %v7015_v16 = vld [vmem:[#allocation2 + $0xb8] sm:$0xff]  }
 0x391   : > { %v6826_v30 = vpop.f32.mrf.mxu0  ;;  %6849 = vmatmul.mubr.msk.bf16.gmra.mxu1 %vm4563_vm0, %v7015_v16  ;;  %vm5990_vm0 = vcmp.lt.s32.totalorder %v5942_v48, 16  ;;  %v5474_v16 = vsub.s32 %v5178_v49, %v5473_v31 }
 0x392   : > { %v6550_v61 = vsel %vm5990_vm0, 1.0, %v7049_v4 }
 0x393   : > { %v4754_v28 = vpop.f32.mrf.mxu0  ;;  %vm5754_vm5 = vcmp.ne.s32.totalorder %v5474_v16, 0  ;;  %vm5802_vm7 = vcmp.lt.s32.totalorder %v5474_v16, 0 }
 0x394   : > { %vm10039_vm12 = vmand %vm5802_vm7, %vm5754_vm5 }
 0x395   : > { %v6827_v54 = vpop.f32.mrf.mxu0 }
 0x396   : > { %v4876_v37 = vpack.c.bf16 %v6827_v54, %v6826_v30  ;;  %v5898_v30 = vadd.s32 24, %v5474_v16 }
 0x397   : > { %v4757_v53 = vpop.f32.mrf.mxu0 }
 0x398   : > { %6758 = vst [vmem:[%s9479_s17 + $0x58] sm:$0xff] %v4876_v37   ;;  %v4875_v44 = vpack.c.bf16 %v4757_v53, %v4754_v28  ;;  %v5127_v27 = vunpack.c.l.bf16 %v4876_v37  ;;  %v5128_v10 = vunpack.c.h.bf16 %v4876_v37  ;;  %v5946_v49 = vsel %vm10039_vm12, %v5898_v30, %v5474_v16 }
 0x399   : > { %v5948_v53 = vsel %vm10047_vm11, %v5900_v43, %v5496_v33  ;;  %vm5994_vm0 = vcmp.lt.s32.totalorder %v5946_v49, 16 }
 0x39a   : > { %6757 = vst [vmem:[%s9479_s17 + $0x50] sm:$0xff] %v4875_v44   ;;  %v5125_v40 = vunpack.c.l.bf16 %v4875_v44  ;;  %v5126_v25 = vunpack.c.h.bf16 %v4875_v44  ;;  %v6136_v14 = vmul.f32 %v6552_v24, %v5127_v27  ;;  %v6137_v46 = vmul.f32 %v6553_v1, %v5128_v10 }
 0x39b   : > { %vm5996_vm14 = vcmp.lt.s32.totalorder %v5948_v53, 16  ;;  %v6554_v57 = vsel %vm5994_vm0, 1.0, %v7049_v4 }
 0x39c   : > { %v6134_v12 = vmul.f32 %v6550_v61, %v5125_v40  ;;  %v6135_v38 = vmul.f32 %v6551_v7, %v5126_v25  ;;  %v6238_v6 = vmul.f32 %v6136_v14, %v5127_v27  ;;  %v6239_v62 = vmul.f32 %v6137_v46, %v5128_v10 }
 0x39d   : > { %v5184_v61 = vadd.s32 240, %v9183_v36  ;;  %v6555_v27 = vsel %vm5995_vm15, 1.0, %v7049_v4 }
 0x39e   : > { %v6181_v19 = vadd.f32 %v9970_v0, %v6134_v12  ;;  %v6236_v63 = vmul.f32 %v6134_v12, %v5125_v40  ;;  %v6237_v51 = vmul.f32 %v6135_v38, %v5126_v25  ;;  %v5505_v0 = vshrl.u32 %v10027_v60, 4 }
 0x39f   : > { %v5185_v40 = vadd.s32 248, %v9183_v36  ;;  %v10073_v25 = vmul.u32.u64.low 2863311531, %v5183_v3  ;;  %v10074_v24 = vmul.u32.u64.high 2863311531, %v5183_v3, %v10073_v25  ;;  %v6556_v12 = vsel %vm5996_vm14, 1.0, %v7049_v4 }
 0x3a0   : > { %v6182_v2 = vadd.f32 %v6181_v19, %v6135_v38  ;;  %v6283_v9 = vadd.f32 %v9973_v8, %v6236_v63  ;;  %v5506_v8 = vmul.u32 24, %v5505_v0 }
 0x3a1   : > { %v10078_v38 = vmul.u32.u64.low 2863311531, %v5184_v61  ;;  %v10079_v1 = vmul.u32.u64.high 2863311531, %v5184_v61, %v10078_v38  ;;  %v10082_v63 = vmul.u32.u64.low 2863311531, %v5185_v40  ;;  %v10083_v22 = vmul.u32.u64.high 2863311531, %v5185_v40, %v10082_v63 }
 0x3a2   : > { %v6183_v15 = vadd.f32 %v6182_v2, %v6136_v14  ;;  %v6284_v17 = vadd.f32 %v6283_v9, %v6237_v51  ;;  %v5507_v23 = vsub.s32 %v5181_v55, %v5506_v8  ;;  %v5527_v11 = vshrl.u32 %v10074_v24, 4 }
 0x3a3   : > { %v10066_v7 = vmul.u32.u64.low 2863311531, %v5182_v20  ;;  %v10067_v55 = vmul.u32.u64.high 2863311531, %v5182_v20, %v10066_v7  ;;  %v5538_v0 = vshrl.u32 %v10079_v1, 4 }
 0x3a4   : > { %v6285_v26 = vadd.f32 %v6284_v17, %v6238_v6  ;;  %v10034_v52 = vadd.f32 %v6183_v15, %v6137_v46  ;;  %vm5757_vm1 = vcmp.ne.s32.totalorder %v5507_v23, 0  ;;  %vm5805_vm3 = vcmp.lt.s32.totalorder %v5507_v23, 0 }
 0x3a5   : > { %v5901_v54 = vadd.s32 24, %v5507_v23  ;;  %vm10056_vm13 = vmand %vm5805_vm3, %vm5757_vm1  ;;  %v5516_v9 = vshrl.u32 %v10067_v55, 4  ;;  %v5528_v56 = vmul.u32 24, %v5527_v11 }
 0x3a6   : > { %v10037_v13 = vadd.f32 %v6285_v26, %v6239_v62 }
 0x3a7   : > { %v5949_v29 = vsel %vm10056_vm13, %v5901_v54, %v5507_v23  ;;  %v5517_v16 = vmul.u32 24, %v5516_v9  ;;  %v5539_v23 = vmul.u32 24, %v5538_v0  ;;  %v5529_v45 = vsub.s32 %v5183_v3, %v5528_v56 }
 0x3a8   : > { %vm5997_vm4 = vcmp.lt.s32.totalorder %v5949_v29, 16  ;;  %v5186_v3 = vadd.s32 256, %v9183_v36 }
 0x3a9   : > { %v6557_v19 = vsel %vm5997_vm4, 1.0, %v7049_v4  ;;  %v5518_v30 = vsub.s32 %v5182_v20, %v5517_v16  ;;  %v5540_v21 = vsub.s32 %v5184_v61, %v5539_v23  ;;  %vm5759_vm8 = vcmp.ne.s32.totalorder %v5529_v45, 0 }
 0x3aa   : > { %vm5807_vm9 = vcmp.lt.s32.totalorder %v5529_v45, 0  ;;  %v5903_v18 = vadd.s32 24, %v5529_v45  ;;  %v5187_v61 = vadd.s32 264, %v9183_v36 }
 0x3ab   : > { %vm5758_vm5 = vcmp.ne.s32.totalorder %v5518_v30, 0  ;;  %vm5806_vm7 = vcmp.lt.s32.totalorder %v5518_v30, 0  ;;  %vm5760_vm10 = vcmp.ne.s32.totalorder %v5540_v21, 0  ;;  %vm5808_vm6 = vcmp.lt.s32.totalorder %v5540_v21, 0  ;;  %vm10099_vm2 = vmand %vm5807_vm9, %vm5759_vm8 }
 0x3ac   : > { %vm10095_vm12 = vmand %vm5806_vm7, %vm5758_vm5  ;;  %v5904_v54 = vadd.s32 24, %v5540_v21  ;;  %v5951_v53 = vsel %vm10099_vm2, %v5903_v18, %v5529_v45 }
 0x3ad   : > { %vm10103_vm11 = vmand %vm5808_vm6, %vm5760_vm10  ;;  %vm5999_vm15 = vcmp.lt.s32.totalorder %v5951_v53, 16 }
 0x3b1   : > { %v6830_v28 = vpop.f32.mrf.mxu1 }
 0x3b3   : > { %v4770_v50 = vpop.f32.mrf.mxu1 }
 0x3b5   : > { %v6831_v35 = vpop.f32.mrf.mxu1 }
 0x3b6   : > { %v4878_v32 = vpack.c.bf16 %v6831_v35, %v6830_v28  ;;  %v5902_v28 = vadd.s32 24, %v5518_v30 }
 0x3b7   : > { %v4773_v44 = vpop.f32.mrf.mxu1 }
 0x3b8   : > { %6760 = vst [vmem:[%s9479_s17 + $0x68] sm:$0xff] %v4878_v32   ;;  %v4877_v42 = vpack.c.bf16 %v4773_v44, %v4770_v50  ;;  %v5131_v39 = vunpack.c.l.bf16 %v4878_v32  ;;  %v5132_v5 = vunpack.c.h.bf16 %v4878_v32  ;;  %v5950_v20 = vsel %vm10095_vm12, %v5902_v28, %v5518_v30 }
 0x3b9   : > { %v5952_v44 = vsel %vm10103_vm11, %v5904_v54, %v5540_v21  ;;  %vm5998_vm0 = vcmp.lt.s32.totalorder %v5950_v20, 16 }
 0x3ba   : > { %6759 = vst [vmem:[%s9479_s17 + $0x60] sm:$0xff] %v4877_v42   ;;  %v5129_v41 = vunpack.c.l.bf16 %v4877_v42  ;;  %v5130_v10 = vunpack.c.h.bf16 %v4877_v42  ;;  %v6140_v46 = vmul.f32 %v6556_v12, %v5131_v39  ;;  %v6141_v59 = vmul.f32 %v6557_v19, %v5132_v5 }
 0x3bb   : > { %vm6000_vm14 = vcmp.lt.s32.totalorder %v5952_v44, 16  ;;  %v6558_v24 = vsel %vm5998_vm0, 1.0, %v7049_v4 }
 0x3bc   : > { %v6138_v60 = vmul.f32 %v6554_v57, %v5129_v41  ;;  %v6139_v14 = vmul.f32 %v6555_v27, %v5130_v10  ;;  %v6242_v62 = vmul.f32 %v6140_v46, %v5131_v39  ;;  %v6243_v58 = vmul.f32 %v6141_v59, %v5132_v5 }
 0x3bd   : > { %v5188_v57 = vadd.s32 272, %v9183_v36  ;;  %v6559_v39 = vsel %vm5999_vm15, 1.0, %v7049_v4 }
 0x3be   : > { %v6185_v2 = vadd.f32 %v10034_v52, %v6138_v60  ;;  %v6240_v51 = vmul.f32 %v6138_v60, %v5129_v41  ;;  %v6241_v15 = vmul.f32 %v6139_v14, %v5130_v10  ;;  %v5549_v52 = vshrl.u32 %v10083_v22, 4 }
 0x3bf   : > { %v5189_v41 = vadd.s32 280, %v9183_v36  ;;  %v10129_v10 = vmul.u32.u64.low 2863311531, %v5187_v61  ;;  %v10130_v12 = vmul.u32.u64.high 2863311531, %v5187_v61, %v10129_v10  ;;  %v6560_v60 = vsel %vm6000_vm14, 1.0, %v7049_v4 }
 0x3c0   : > { %v6186_v6 = vadd.f32 %v6185_v2, %v6139_v14  ;;  %v6287_v17 = vadd.f32 %v10037_v13, %v6240_v51  ;;  %v5550_v13 = vmul.u32 24, %v5549_v52 }
 0x3c1   : > { %v10134_v14 = vmul.u32.u64.low 2863311531, %v5188_v57  ;;  %v10135_v19 = vmul.u32.u64.high 2863311531, %v5188_v57, %v10134_v14  ;;  %v10138_v51 = vmul.u32.u64.low 2863311531, %v5189_v41  ;;  %v10139_v9 = vmul.u32.u64.high 2863311531, %v5189_v41, %v10138_v51 }
 0x3c2   : > { %v6187_v26 = vadd.f32 %v6186_v6, %v6140_v46  ;;  %v6288_v31 = vadd.f32 %v6287_v17, %v6241_v15  ;;  %v5551_v48 = vsub.s32 %v5185_v40, %v5550_v13  ;;  %v5571_v0 = vshrl.u32 %v10130_v12, 4 }
 0x3c3   : > { %v10122_v27 = vmul.u32.u64.low 2863311531, %v5186_v3  ;;  %v10123_v40 = vmul.u32.u64.high 2863311531, %v5186_v3, %v10122_v27  ;;  %v5582_v52 = vshrl.u32 %v10135_v19, 4 }
 0x3c4   : > { %v6289_v34 = vadd.f32 %v6288_v31, %v6242_v62  ;;  %v10090_v8 = vadd.f32 %v6187_v26, %v6141_v59  ;;  %vm5761_vm1 = vcmp.ne.s32.totalorder %v5551_v48, 0  ;;  %vm5809_vm3 = vcmp.lt.s32.totalorder %v5551_v48, 0 }
 0x3c5   : > { %v5905_v35 = vadd.s32 24, %v5551_v48  ;;  %vm10112_vm13 = vmand %vm5809_vm3, %vm5761_vm1  ;;  %v5560_v17 = vshrl.u32 %v10123_v40, 4  ;;  %v5572_v45 = vmul.u32 24, %v5571_v0 }
 0x3c6   : > { %v10093_v33 = vadd.f32 %v6289_v34, %v6243_v58 }
 0x3c7   : > { %v5953_v55 = vsel %vm10112_vm13, %v5905_v35, %v5551_v48  ;;  %v5561_v30 = vmul.u32 24, %v5560_v17  ;;  %v5583_v48 = vmul.u32 24, %v5582_v52  ;;  %v5573_v18 = vsub.s32 %v5187_v61, %v5572_v45 }
 0x3c8   : > { %vm6001_vm4 = vcmp.lt.s32.totalorder %v5953_v55, 16  ;;  %v5191_v52 = vadd.s32 296, %v9183_v36 }
 0x3c9   : > { %v6561_v2 = vsel %vm6001_vm4, 1.0, %v7049_v4  ;;  %v5562_v28 = vsub.s32 %v5186_v3, %v5561_v30  ;;  %vm5763_vm8 = vcmp.ne.s32.totalorder %v5573_v18, 0  ;;  %vm5811_vm9 = vcmp.lt.s32.totalorder %v5573_v18, 0 }
 0x3ca   : > { %v5907_v47 = vadd.s32 24, %v5573_v18  ;;  %vm5859_vm2 = vmand %vm5811_vm9, %vm5763_vm8 }
 0x3cb   : > { %vm5762_vm5 = vcmp.ne.s32.totalorder %v5562_v28, 0  ;;  %vm5810_vm7 = vcmp.lt.s32.totalorder %v5562_v28, 0  ;;  %v5906_v54 = vadd.s32 24, %v5562_v28 }
 0x3cc   : > { %vm10147_vm12 = vmand %vm5810_vm7, %vm5762_vm5  ;;  %v5955_v32 = vsel %vm5859_vm2, %v5907_v47, %v5573_v18  ;;  %v5194_v18 = vadd.s32 320, %v9183_v36  ;;  %v10195_v47 = vadd.s32 336, %v9183_v36 }
 0x3cd   : > { %v5954_v3 = vsel %vm10147_vm12, %v5906_v54, %v5562_v28  ;;  %vm6003_vm15 = vcmp.lt.s32.totalorder %v5955_v32, 16  ;;  %v10202_v32 = vadd.s32 344, %v9183_v36 }
 0x3ce   : > { %vm6002_vm0 = vcmp.lt.s32.totalorder %v5954_v3, 16  ;;  %v6563_v27 = vsel %vm6003_vm15, 1.0, %v7049_v4 }
 0x3d1   : > { %v6834_v50 = vpop.f32.mrf.mxu1 }
 0x3d3   : > { %v4786_v37 = vpop.f32.mrf.mxu1 }
 0x3d5   : > { %v6835_v29 = vpop.f32.mrf.mxu1 }
 0x3d6   : > { %v4880_v7 = vpack.c.bf16 %v6835_v29, %v6834_v50  ;;  %v10192_v50 = vadd.s32 328, %v9183_v36 }
 0x3d7   : > { %v4789_v42 = vpop.f32.mrf.mxu1 }
 0x3d8   : > { %6762 = vst [vmem:[%s9479_s17 + $0x78] sm:$0xff] %v4880_v7   ;;  %v4879_v25 = vpack.c.bf16 %v4789_v42, %v4786_v37  ;;  %v5135_v38 = vunpack.c.l.bf16 %v4880_v7  ;;  %v5136_v63 = vunpack.c.h.bf16 %v4880_v7 }
 0x3da   : > { %6761 = vst [vmem:[%s9479_s17 + $0x70] sm:$0xff] %v4879_v25   ;;  %v5133_v1 = vunpack.c.l.bf16 %v4879_v25  ;;  %v5134_v5 = vunpack.c.h.bf16 %v4879_v25  ;;  %v6144_v59 = vmul.f32 %v6560_v60, %v5135_v38  ;;  %v6145_v11 = vmul.f32 %v6561_v2, %v5136_v63 }
 0x3dc   : > { %v6142_v22 = vmul.f32 %v6558_v24, %v5133_v1  ;;  %v6143_v46 = vmul.f32 %v6559_v39, %v5134_v5  ;;  %v6246_v58 = vmul.f32 %v6144_v59, %v5135_v38  ;;  %v6247_v56 = vmul.f32 %v6145_v11, %v5136_v63 }
 0x3de   : > { %v6189_v6 = vadd.f32 %v10090_v8, %v6142_v22  ;;  %v6244_v15 = vmul.f32 %v6142_v22, %v5133_v1  ;;  %v6245_v26 = vmul.f32 %v6143_v46, %v5134_v5  ;;  %v5593_v8 = vshrl.u32 %v10139_v9, 4 }
 0x3e0   : > { %v6190_v62 = vadd.f32 %v6189_v6, %v6143_v46  ;;  %v6291_v31 = vadd.f32 %v10093_v33, %v6244_v15  ;;  %v5594_v43 = vmul.u32 24, %v5593_v8  ;;  %v5584_v33 = vsub.s32 %v5188_v57, %v5583_v48 }
 0x3e1   : > { %v6562_v57 = vsel %vm6002_vm0, 1.0, %v7049_v4 }
 0x3e2   : > { %v6191_v34 = vadd.f32 %v6190_v62, %v6144_v59  ;;  %v6292_v16 = vadd.f32 %v6291_v31, %v6245_v26  ;;  %v5595_v49 = vsub.s32 %v5189_v41, %v5594_v43  ;;  %vm5764_vm10 = vcmp.ne.s32.totalorder %v5584_v33, 0 }
 0x3e3   : > { %vm5812_vm6 = vcmp.lt.s32.totalorder %v5584_v33, 0  ;;  %v5908_v37 = vadd.s32 24, %v5584_v33  ;;  %v5190_v62 = vadd.s32 288, %v9183_v36 }
 0x3e4   : > { %v6293_v23 = vadd.f32 %v6292_v16, %v6246_v58  ;;  %v6192_v13 = vadd.f32 %v6191_v34, %v6145_v11  ;;  %vm5765_vm1 = vcmp.ne.s32.totalorder %v5595_v49, 0  ;;  %vm5813_vm3 = vcmp.lt.s32.totalorder %v5595_v49, 0  ;;  %vm5860_vm11 = vmand %vm5812_vm6, %vm5764_vm10 }
 0x3e5   : > { %v5909_v53 = vadd.s32 24, %v5595_v49  ;;  %vm5861_vm13 = vmand %vm5813_vm3, %vm5765_vm1  ;;  %v5956_v44 = vsel %vm5860_vm11, %v5908_v37, %v5584_v33  ;;  %v10166_v58 = vmul.u32.u64.low 2863311531, %v5190_v62  ;;  %v10167_v34 = vmul.u32.u64.high 2863311531, %v5190_v62, %v10166_v58 }
 0x3e6   : > { %v6294_v21 = vadd.f32 %v6293_v23, %v6247_v56  ;;  %vm6004_vm14 = vcmp.lt.s32.totalorder %v5956_v44, 16  ;;  %v5192_v56 = vadd.s32 304, %v9183_v36  ;;  %v5193_v23 = vadd.s32 312, %v9183_v36 }
 0x3e7   : > { %v5957_v7 = vsel %vm5861_vm13, %v5909_v53, %v5595_v49  ;;  %v6564_v39 = vsel %vm6004_vm14, 1.0, %v7049_v4 }
 0x3e8   : > { %vm6005_vm4 = vcmp.lt.s32.totalorder %v5957_v7, 16  ;;  %v10181_v8 = vmul.u32.u64.low 2863311531, %v5192_v56  ;;  %v10182_v45 = vmul.u32.u64.high 2863311531, %v5192_v56, %v10181_v8 }
 0x3e9   : > { %v6565_v38 = vsel %vm6005_vm4, 1.0, %v7049_v4  ;;  %v10185_v48 = vmul.u32.u64.low 2863311531, %v5193_v23  ;;  %v10186_v28 = vmul.u32.u64.high 2863311531, %v5193_v23, %v10185_v48 }
 0x3ea   : > { %v5626_v49 = vshrl.u32 %v10182_v45, 4 }
 0x3ec   : > { %v5627_v3 = vmul.u32 24, %v5626_v49 }
 0x3f1   : > { %v6838_v20 = vpop.f32.mrf.mxu1 }
 0x3f3   : > { %v4802_v35 = vpop.f32.mrf.mxu1 }
 0x3f5   : > { %v6839_v29 = vpop.f32.mrf.mxu1 }
 0x3f6   : > { %v4882_v61 = vpack.c.bf16 %v6839_v29, %v6838_v20  ;;  %v10197_v20 = vmul.u32.u64.low 2863311531, %v5194_v18  ;;  %v10198_v37 = vmul.u32.u64.high 2863311531, %v5194_v18, %v10197_v20 }
 0x3f7   : > { %v4805_v55 = vpop.f32.mrf.mxu1  ;;  %v10205_v29 = vmul.u32.u64.low 2863311531, %v10192_v50  ;;  %v10206_v44 = vmul.u32.u64.high 2863311531, %v10192_v50, %v10205_v29 }
 0x3f8   : > { %6764 = vst [vmem:[%s9479_s17 + $0x88] sm:$0xff] %v4882_v61   ;;  %v4881_v42 = vpack.c.bf16 %v4805_v55, %v4802_v35  ;;  %v5139_v40 = vunpack.c.l.bf16 %v4882_v61  ;;  %v5140_v41 = vunpack.c.h.bf16 %v4882_v61  ;;  %v5637_v35 = vshrl.u32 %v10186_v28, 4 }
 0x3f9   : > { %v10209_v61 = vmul.u32.u64.low 2863311531, %v10195_v47  ;;  %v10210_v7 = vmul.u32.u64.high 2863311531, %v10195_v47, %v10209_v61 }
 0x3fa   : > { %6763 = vst [vmem:[%s9479_s17 + $0x80] sm:$0xff] %v4881_v42   ;;  %v5137_v25 = vunpack.c.l.bf16 %v4881_v42  ;;  %v5138_v24 = vunpack.c.h.bf16 %v4881_v42  ;;  %v6148_v1 = vmul.f32 %v6564_v39, %v5139_v40  ;;  %v6149_v14 = vmul.f32 %v6565_v38, %v5140_v41 }
 0x3fb   : > { %v5638_v55 = vmul.u32 24, %v5637_v35  ;;  %v5648_v39 = vshrl.u32 %v10198_v37, 4 }
 0x3fc   : > { %v6146_v10 = vmul.f32 %v6562_v57, %v5137_v25  ;;  %v6147_v12 = vmul.f32 %v6563_v27, %v5138_v24  ;;  %v6250_v46 = vmul.f32 %v6148_v1, %v5139_v40  ;;  %v6251_v9 = vmul.f32 %v6149_v14, %v5140_v41 }
 0x3fd   : > { %v10221_v41 = vsub.s32 %v5193_v23, %v5638_v55 }
 0x3fe   : > { %v6193_v5 = vadd.f32 %v6192_v13, %v6146_v10  ;;  %v6248_v60 = vmul.f32 %v6146_v10, %v5137_v25  ;;  %v6249_v63 = vmul.f32 %v6147_v12, %v5138_v24  ;;  %v5628_v24 = vsub.s32 %v5192_v56, %v5627_v3 }
 0x3ff   : > { %v10178_v30 = vmul.u32.u64.low 2863311531, %v5191_v52  ;;  %v10179_v13 = vmul.u32.u64.high 2863311531, %v5191_v52, %v10178_v30  ;;  %v10217_v40 = vmul.u32.u64.low 2863311531, %v10202_v32  ;;  %v10218_v25 = vmul.u32.u64.high 2863311531, %v10202_v32, %v10217_v40 }
 0x400   : > { %v6194_v19 = vadd.f32 %v6193_v5, %v6147_v12  ;;  %v6295_v22 = vadd.f32 %v6294_v21, %v6248_v60  ;;  %v5604_v21 = vshrl.u32 %v10167_v34, 4  ;;  %vm5768_vm6 = vcmp.ne.s32.totalorder %v5628_v24, 0 }
 0x401   : > { %v5615_v33 = vshrl.u32 %v10179_v13, 4  ;;  %vm5816_vm12 = vcmp.lt.s32.totalorder %v5628_v24, 0  ;;  %vm5769_vm1 = vcmp.ne.s32.totalorder %v10221_v41, 0  ;;  %vm5817_vm11 = vcmp.lt.s32.totalorder %v10221_v41, 0 }
 0x402   : > { %v6195_v2 = vadd.f32 %v6194_v19, %v6148_v1  ;;  %v6296_v51 = vadd.f32 %v6295_v22, %v6249_v63  ;;  %v5605_v43 = vmul.u32 24, %v5604_v21  ;;  %v5659_v1 = vshrl.u32 %v10206_v44, 4  ;;  %vm10250_vm13 = vmand %vm5816_vm12, %vm5768_vm6 }
 0x403   : > { %v5616_v53 = vmul.u32 24, %v5615_v33  ;;  %v5649_v19 = vmul.u32 24, %v5648_v39  ;;  %v5912_v63 = vadd.s32 24, %v5628_v24  ;;  %v10233_v22 = vadd.s32 352, %v9183_v36  ;;  %vm10279_vm0 = vmand %vm5817_vm11, %vm5769_vm1 }
 0x404   : > { %v6297_v59 = vadd.f32 %v6296_v51, %v6250_v46  ;;  %v10159_v6 = vadd.f32 %v6195_v2, %v6149_v14  ;;  %v5606_v54 = vsub.s32 %v5190_v62, %v5605_v43  ;;  %v5670_v14 = vshrl.u32 %v10210_v7, 4 }
 0x405   : > { %v5617_v42 = vsub.s32 %v5191_v52, %v5616_v53  ;;  %v5913_v46 = vadd.s32 24, %v10221_v41  ;;  %v10238_v51 = vadd.s32 368, %v9183_v36  ;;  %v5660_v62 = vmul.u32 24, %v5659_v1 }
 0x406   : > { %v10161_v15 = vadd.f32 %v6297_v59, %v6251_v9  ;;  %vm5766_vm5 = vcmp.ne.s32.totalorder %v5606_v54, 0  ;;  %vm5814_vm7 = vcmp.lt.s32.totalorder %v5606_v54, 0  ;;  %v5910_v57 = vadd.s32 24, %v5606_v54 }
 0x407   : > { %vm10212_vm8 = vmand %vm5814_vm7, %vm5766_vm5  ;;  %vm5767_vm9 = vcmp.ne.s32.totalorder %v5617_v42, 0  ;;  %vm5815_vm10 = vcmp.lt.s32.totalorder %v5617_v42, 0  ;;  %v5911_v38 = vadd.s32 24, %v5617_v42  ;;  %v10241_v9 = vadd.s32 360, %v9183_v36 }
 0x408   : > { %v5958_v10 = vsel %vm10212_vm8, %v5910_v57, %v5606_v54  ;;  %vm10226_vm2 = vmand %vm5815_vm10, %vm5767_vm9  ;;  %v5671_v58 = vmul.u32 24, %v5670_v14  ;;  %v5650_v52 = vsub.s32 %v5194_v18, %v5649_v19  ;;  %v10256_v56 = vadd.s32 376, %v9183_v36 }
 0x409   : > { %vm6006_vm3 = vcmp.lt.s32.totalorder %v5958_v10, 16  ;;  %v5959_v59 = vsel %vm10226_vm2, %v5911_v38, %v5617_v42  ;;  %v10264_v13 = vmul.u32.u64.low 2863311531, %v10233_v22  ;;  %v10265_v8 = vmul.u32.u64.high 2863311531, %v10233_v22, %v10264_v13 }
 0x40a   : > { %v10268_v45 = vmul.u32.u64.low 2863311531, %v10238_v51  ;;  %v10269_v21 = vmul.u32.u64.high 2863311531, %v10238_v51, %v10268_v45  ;;  %v10272_v48 = vmul.u32.u64.low 2863311531, %v10241_v9  ;;  %v10273_v28 = vmul.u32.u64.high 2863311531, %v10241_v9, %v10272_v48 }
 0x40b   : > { %v5960_v43 = vsel %vm10250_vm13, %v5912_v63, %v5628_v24  ;;  %v5661_v33 = vsub.s32 %v10192_v50, %v5660_v62  ;;  %vm5770_vm15 = vcmp.ne.s32.totalorder %v5650_v52, 0  ;;  %vm5818_vm14 = vcmp.lt.s32.totalorder %v5650_v52, 0 }
 0x40c   : > { %v10289_v49 = vmul.u32.u64.low 2863311531, %v10256_v56  ;;  %v10290_v54 = vmul.u32.u64.high 2863311531, %v10256_v56, %v10289_v49  ;;  %vm6007_vm4 = vcmp.lt.s32.totalorder %v5959_v59, 16  ;;  %v5672_v37 = vsub.s32 %v10195_v47, %v5671_v58  ;;  %vm10301_vm7 = vmand %vm5818_vm14, %vm5770_vm15 }
 0x40d   : > { %v5961_v35 = vsel %vm10279_vm0, %v5913_v46, %v10221_v41  ;;  %v5914_v53 = vadd.s32 24, %v5650_v52  ;;  %vm10296_vm5 = vcmp.lt.s32.totalorder %v5960_v43, 16  ;;  %v6567_v44 = vsel %vm6007_vm4, 1.0, %v7049_v4 }
 0x40e   : > { %vm5771_vm8 = vcmp.ne.s32.totalorder %v5661_v33, 0  ;;  %vm5819_vm9 = vcmp.lt.s32.totalorder %v5661_v33, 0  ;;  %vm10309_vm10 = vcmp.lt.s32.totalorder %v5961_v35, 16  ;;  %vm5772_vm6 = vcmp.ne.s32.totalorder %v5672_v37, 0 }
 0x40f   : > { %v5692_v55 = vshrl.u32 %v10265_v8, 4  ;;  %v5962_v42 = vsel %vm10301_vm7, %v5914_v53, %v5650_v52  ;;  %v5714_v57 = vshrl.u32 %v10269_v21, 4  ;;  %v5703_v27 = vshrl.u32 %v10273_v28, 4  ;;  %vm10321_vm2 = vmand %vm5819_vm9, %vm5771_vm8 }
 0x410   : > { %vm5820_vm12 = vcmp.lt.s32.totalorder %v5672_v37, 0  ;;  %v6568_v39 = vsel %vm10296_vm5, 1.0, %v7049_v4  ;;  %v5725_v41 = vshrl.u32 %v10290_v54, 4  ;;  %vm6010_vm11 = vcmp.lt.s32.totalorder %v5962_v42, 16 }
 0x411   : > { %v6842_v17 = vpop.f32.mrf.mxu1  ;;  %vm10334_vm13 = vmand %vm5820_vm12, %vm5772_vm6  ;;  %v5704_v14 = vmul.u32 24, %v5703_v27  ;;  %v6570_v59 = vsel %vm6010_vm11, 1.0, %v7049_v4 }
 0x413   : > { %v4818_v11 = vpop.f32.mrf.mxu1  ;;  %v5705_v52 = vsub.s32 %v10241_v9, %v5704_v14 }
 0x415   : > { %v6843_v26 = vpop.f32.mrf.mxu1  ;;  %vm5775_vm8 = vcmp.ne.s32.totalorder %v5705_v52, 0  ;;  %vm5823_vm9 = vcmp.lt.s32.totalorder %v5705_v52, 0  ;;  %v5919_v49 = vadd.s32 24, %v5705_v52 }
 0x416   : > { %v10164_v31 = vpack.c.bf16 %v6843_v26, %v6842_v17 }
 0x417   : > { %v4821_v0 = vpop.f32.mrf.mxu1 }
 0x418   : > { %6766 = vst [vmem:[%s9479_s17 + $0x98] sm:$0xff] %v10164_v31   ;;  %v10171_v16 = vpack.c.bf16 %v4821_v0, %v4818_v11  ;;  %v5681_v11 = vshrl.u32 %v10218_v25, 4  ;;  %v6566_v0 = vsel %vm6006_vm3, 1.0, %v7049_v4  ;;  %v5144_v38 = vunpack.c.h.bf16 %v10164_v31 }
 0x41a   : > { %6765 = vst [vmem:[%s9479_s17 + $0x90] sm:$0xff] %v10171_v16   ;;  %v5141_v23 = vunpack.c.l.bf16 %v10171_v16  ;;  %v5682_v18 = vmul.u32 24, %v5681_v11  ;;  %v5142_v50 = vunpack.c.h.bf16 %v10171_v16  ;;  %v5915_v16 = vadd.s32 24, %v5661_v33 }
 0x41b   : > { %v5726_v11 = vmul.u32 24, %v5725_v41 }
 0x41c   : > { %v6150_v20 = vmul.f32 %v6566_v0, %v5141_v23  ;;  %v10307_v61 = vsub.s32 %v10202_v32, %v5682_v18  ;;  %v5143_v32 = vunpack.c.l.bf16 %v10164_v31  ;;  %v6151_v40 = vmul.f32 %v6567_v44, %v5142_v50 }
 0x41d   : > { %v5963_v5 = vsel %vm10321_vm2, %v5915_v16, %v5661_v33  ;;  %v5727_v28 = vsub.s32 %v10256_v56, %v5726_v11 }
 0x41e   : > { %v6252_v7 = vmul.f32 %v6150_v20, %v5141_v23  ;;  %v6197_v25 = vadd.f32 %v10159_v6, %v6150_v20  ;;  %vm5773_vm1 = vcmp.ne.s32.totalorder %v10307_v61, 0  ;;  %vm5821_vm3 = vcmp.lt.s32.totalorder %v10307_v61, 0 }
 0x41f   : > { %v5693_v6 = vmul.u32 24, %v5692_v55  ;;  %v6152_v19 = vmul.f32 %v6568_v39, %v5143_v32  ;;  %v6253_v46 = vmul.f32 %v6151_v40, %v5142_v50  ;;  %v5917_v31 = vadd.s32 24, %v10307_v61  ;;  %vm10350_vm0 = vmand %vm5821_vm3, %vm5773_vm1 }
 0x420   : > { %v6299_v10 = vadd.f32 %v10161_v15, %v6252_v7  ;;  %v6198_v63 = vadd.f32 %v6197_v25, %v6151_v40  ;;  %vm6011_vm15 = vcmp.lt.s32.totalorder %v5963_v5, 16  ;;  %vm5777_vm6 = vcmp.ne.s32.totalorder %v5727_v28, 0  ;;  %vm10375_vm1 = vmand %vm5823_vm9, %vm5775_vm8 }
 0x421   : > { %v5694_v58 = vsub.s32 %v10233_v22, %v5693_v6  ;;  %v6254_v13 = vmul.f32 %v6152_v19, %v5143_v32  ;;  %v5965_v21 = vsel %vm10350_vm0, %v5917_v31, %v10307_v61  ;;  %vm5825_vm12 = vcmp.lt.s32.totalorder %v5727_v28, 0 }
 0x422   : > { %v6300_v62 = vadd.f32 %v6299_v10, %v6253_v46  ;;  %v6199_v8 = vadd.f32 %v6198_v63, %v6152_v19  ;;  %vm6013_vm3 = vcmp.lt.s32.totalorder %v5965_v21, 16  ;;  %v5921_v44 = vadd.s32 24, %v5727_v28 }
 0x423   : > { %vm5774_vm4 = vcmp.ne.s32.totalorder %v5694_v58, 0  ;;  %vm5822_vm5 = vcmp.lt.s32.totalorder %v5694_v58, 0  ;;  %v5918_v56 = vadd.s32 24, %v5694_v58  ;;  %v5967_v42 = vsel %vm10375_vm1, %v5919_v49, %v5705_v52 }
 0x424   : > { %v6301_v22 = vadd.f32 %v6300_v62, %v6254_v13  ;;  %vm10369_vm2 = vmand %vm5822_vm5, %vm5774_vm4 }
 0x425   : > { %v5966_v16 = vsel %vm10369_vm2, %v5918_v56, %v5694_v58 }
 0x426   : > { %vm6014_vm0 = vcmp.lt.s32.totalorder %v5966_v16, 16 }
 0x427   : > { %v6574_v5 = vsel %vm6014_vm0, 1.0, %v7049_v4 }
 0x431   : > { %v6846_v12 = vpop.f32.mrf.mxu1 }
 0x433   : > { %v4834_v60 = vpop.f32.mrf.mxu1 }
 0x435   : > { %v6847_v2 = vpop.f32.mrf.mxu1 }
 0x436   : > { %v10245_v17 = vpack.c.bf16 %v6847_v2, %v6846_v12  ;;  %v5916_v12 = vadd.s32 24, %v5672_v37  ;;  %v6569_v2 = vsel %vm10309_vm10, 1.0, %v7049_v4 }
 0x437   : > { %v4837_v34 = vpop.f32.mrf.mxu1  ;;  %v6153_v23 = vmul.f32 %v6569_v2, %v5144_v38 }
 0x438   : > { %6768 = vst [vmem:[%s9479_s17 + $0xa8] sm:$0xff] %v10245_v17   ;;  %v10261_v30 = vpack.c.bf16 %v4837_v34, %v4834_v60  ;;  %v5715_v60 = vmul.u32 24, %v5714_v57  ;;  %v5964_v0 = vsel %vm10334_vm13, %v5916_v12, %v5672_v37  ;;  %vm10389_vm13 = vmand %vm5825_vm12, %vm5777_vm6  ;;  %v5148_v7 = vunpack.c.h.bf16 %v10245_v17 }
 0x439   : > { %vm10362_vm14 = vcmp.lt.s32.totalorder %v5964_v0, 16  ;;  %v6255_v9 = vmul.f32 %v6153_v23, %v5144_v38  ;;  %v6200_v43 = vadd.f32 %v6199_v8, %v6153_v23  ;;  %v6573_v57 = vsel %vm6013_vm3, 1.0, %v7049_v4 }
 0x43a   : > { %6767 = vst [vmem:[%s9479_s17 + $0xa0] sm:$0xff] %v10261_v30   ;;  %v5145_v15 = vunpack.c.l.bf16 %v10261_v30  ;;  %v5716_v34 = vsub.s32 %v10238_v51, %v5715_v60  ;;  %v5146_v36 = vunpack.c.h.bf16 %v10261_v30  ;;  %v6571_v51 = vsel %vm6011_vm15, 1.0, %v7049_v4 }
 0x43b   : > { %v5147_v30 = vunpack.c.l.bf16 %v10245_v17  ;;  %v6302_v37 = vadd.f32 %v6301_v22, %v6255_v9  ;;  %v6572_v53 = vsel %vm10362_vm14, 1.0, %v7049_v4  ;;  %v5969_v17 = vsel %vm10389_vm13, %v5921_v44, %v5727_v28 }
 0x43c   : > { %v6154_v45 = vmul.f32 %v6570_v59, %v5145_v15  ;;  %vm5776_vm7 = vcmp.ne.s32.totalorder %v5716_v34, 0  ;;  %vm5824_vm10 = vcmp.lt.s32.totalorder %v5716_v34, 0  ;;  %v6155_v54 = vmul.f32 %v6571_v51, %v5146_v36 }
 0x43d   : > { %vm10383_vm11 = vmand %vm5824_vm10, %vm5776_vm7  ;;  %v5920_v29 = vadd.s32 24, %v5716_v34  ;;  %v6156_v27 = vmul.f32 %v6572_v53, %v5147_v30  ;;  %vm6015_vm15 = vcmp.lt.s32.totalorder %v5967_v42, 16  ;;  %v6157_v10 = vmul.f32 %v6573_v57, %v5148_v7 }
 0x43e   : > { %v6256_v18 = vmul.f32 %v6154_v45, %v5145_v15  ;;  %v6201_v20 = vadd.f32 %v6200_v43, %v6154_v45  ;;  %v6257_v40 = vmul.f32 %v6155_v54, %v5146_v36  ;;  %vm6017_vm4 = vcmp.lt.s32.totalorder %v5969_v17, 16 }
 0x43f   : > { %v5968_v24 = vsel %vm10383_vm11, %v5920_v29, %v5716_v34  ;;  %v6258_v6 = vmul.f32 %v6156_v27, %v5147_v30  ;;  %v6575_v60 = vsel %vm6015_vm15, 1.0, %v7049_v4  ;;  %v6259_v15 = vmul.f32 %v6157_v10, %v5148_v7 }
 0x440   : > { %v6303_v61 = vadd.f32 %v6302_v37, %v6256_v18  ;;  %v6202_v32 = vadd.f32 %v6201_v20, %v6155_v54  ;;  %vm6016_vm14 = vcmp.lt.s32.totalorder %v5968_v24, 16  ;;  %v6577_v26 = vsel %vm6017_vm4, 1.0, %v7049_v4 }
 0x441   : > { %v6576_v2 = vsel %vm6016_vm14, 1.0, %v7049_v4 }
 0x442   : > { %v6304_v39 = vadd.f32 %v6303_v61, %v6257_v40  ;;  %v6203_v38 = vadd.f32 %v6202_v32, %v6156_v27 }
 0x444   : > { %v6305_v14 = vadd.f32 %v6304_v39, %v6258_v6  ;;  %v6204_v62 = vadd.f32 %v6203_v38, %v6157_v10 }
 0x446   : > { %v6306_v52 = vadd.f32 %v6305_v14, %v6259_v15 }
 0x451   : > { %v6850_v3 = vpop.f32.mrf.mxu1 }
 0x453   : > { %v4850_v55 = vpop.f32.mrf.mxu1 }
 0x455   : > { %v6851_v25 = vpop.f32.mrf.mxu1 }
 0x456   : > { %v4888_v41 = vpack.c.bf16 %v6851_v25, %v6850_v3 }
 0x457   : > { %v4853_v12 = vpop.f32.mrf.mxu1 }
 0x458   : > { %6770 = vst [vmem:[%s9479_s17 + $0xb8] sm:$0xff] %v4888_v41   ;;  %v4887_v1 = vpack.c.bf16 %v4853_v12, %v4850_v55  ;;  %v5151_v19 = vunpack.c.l.bf16 %v4888_v41  ;;  %v5152_v31 = vunpack.c.h.bf16 %v4888_v41 }
 0x45a   : > { %6769 = vst [vmem:[%s9479_s17 + $0xb0] sm:$0xff] %v4887_v1   ;;  %v5149_v63 = vunpack.c.l.bf16 %v4887_v1  ;;  %v5150_v46 = vunpack.c.h.bf16 %v4887_v1  ;;  %v6160_v0 = vmul.f32 %v6576_v2, %v5151_v19  ;;  %v6161_v23 = vmul.f32 %v6577_v26, %v5152_v31 }
 0x45c   : > { %v6158_v59 = vmul.f32 %v6574_v5, %v5149_v63  ;;  %v6159_v11 = vmul.f32 %v6575_v60, %v5150_v46  ;;  %v6262_v21 = vmul.f32 %v6160_v0, %v5151_v19  ;;  %v6263_v22 = vmul.f32 %v6161_v23, %v5152_v31 }
 0x45e   : > { %v6205_v58 = vadd.f32 %v6204_v62, %v6158_v59  ;;  %v6260_v34 = vmul.f32 %v6158_v59, %v5149_v63  ;;  %v6261_v8 = vmul.f32 %v6159_v11, %v5150_v46 }
 0x460   : > { %v6206_v13 = vadd.f32 %v6205_v58, %v6159_v11  ;;  %v6307_v45 = vadd.f32 %v6306_v52, %v6260_v34 }
 0x462   : > { %v6207_v48 = vadd.f32 %v6206_v13, %v6160_v0  ;;  %v6308_v28 = vadd.f32 %v6307_v45, %v6261_v8 }
 0x464   : > { %v6208_v36 = vadd.f32 %v6207_v48, %v6161_v23  ;;  %v6309_v51 = vadd.f32 %v6308_v28, %v6262_v21 }
 0x466   : > { %v6209_v9 = vrot.slane %v6208_v36, 4  ;;  %v6310_v43 = vadd.f32 %v6309_v51, %v6263_v22 }
 0x468   : > { %v6210_v4 = vadd.f32 %v6209_v9, %v6208_v36  ;;  %v6311_v18 = vrot.slane %v6310_v43, 4 }
 0x46a   : > { %v6211_v33 = vrot.slane %v6210_v4, 2  ;;  %v6312_v56 = vadd.f32 %v6311_v18, %v6310_v43 }
 0x46c   : > { %v6212_v49 = vadd.f32 %v6211_v33, %v6210_v4  ;;  %v6313_v30 = vrot.slane %v6312_v56, 2 }
 0x46e   : > { %v6213_v54 = vrot.slane %v6212_v49, 1  ;;  %v6314_v20 = vadd.f32 %v6313_v30, %v6312_v56 }
 0x470   : > { %v6214_v37 = vadd.f32 %v6213_v54, %v6212_v49  ;;  %v6315_v35 = vrot.slane %v6314_v20, 1 }
 0x472   : > { %6215 = vst [vmem:[%s205_s21] sm:$0x1] %v6214_v37  ;;  %v6316_v53 = vadd.f32 %v6315_v35, %v6314_v20 }
 0x474   : > { %6317 = vst [vmem:[%s205_s21 + $0x1] sm:$0x1] %v6316_v53 }
 0x475 PF: > { %s14_s14 = sadd.s32 1, %s7039_s14   ;;  %s10559_s12 = smov %s7035_s13 }
 0x476   : > { %p11_p7 = scmp.ge.s32.totalorder %s14_s14, 4   ;;  %s10560_s13 = smov %s10562_s15 }
 0x478   :  { %13 = sbr.rel (!%p11_p7) target bundleno = 2 (0x2), region = 70 }

</bundles_post_ra>
